<compile_context>
chip_gen: v7x
topology: tpu7x:2x2x1
jax: 0.10.0
libtpu: 0.0.40
codegen_flags: <defaults>
</compile_context>

<pallas_src>
import math

import jax
import jax.numpy as jnp
import numpy as np
from jax.experimental import pallas as pl
from jax.experimental.pallas import tpu as pltpu

_HI = jax.lax.Precision.HIGHEST


# ---------------------------------------------------------------------------
# Fused feature kernel: 1x1 kqv conv + 3x3 conv_out, batch folded into lanes.
# ---------------------------------------------------------------------------
def features(x2, kqv_w, kqv_b, conv_w, conv_b, h, w):
    # x2: (Cin, B*HW) channels-major, lane axis = batch*spatial
    cin, n = x2.shape
    hw = h * w
    bsz = n // hw
    cout_kqv = kqv_w.shape[0]
    cout_conv, _, kh, kw = conv_w.shape
    ry, rx = (kh - 1) // 2, (kw - 1) // 2
    pad = ry * w + rx
    ntaps = kh * kw

    # per-tap weights (taps, Cout, Cin) and zero-padded lane-flat input
    w9 = jnp.transpose(conv_w, (2, 3, 0, 1)).reshape(ntaps, cout_conv, cin)
    xp = jnp.pad(x2, ((0, 0), (pad, pad)))

    # per-tap spatial-validity masks over the folded (batch, spatial) lane axis.
    # Folding the batch is safe: any lane whose shifted read crosses a batch (or
    # image) boundary is exactly a masked-out position.
    ii = np.arange(hw)
    hh, ww_ = ii // w, ii % w
    offs, masks = [], []
    for dy in range(kh):
        for dx in range(kw):
            offs.append((dy - ry) * w + (dx - rx))
            valid = ((hh + dy - ry >= 0) & (hh + dy - ry < h) &
                     (ww_ + dx - rx >= 0) & (ww_ + dx - rx < w)).astype(np.float32)
            masks.append(np.tile(valid, bsz))
    masks = jnp.asarray(np.stack(masks)[:, None, :])          # (taps, 1, N)

    def kernel(x_ref, xp_ref, kw_ref, kb_ref, w9_ref, m_ref, cb_ref,
               kqv_ref, conv_ref):
        xv = x_ref[...]                                        # (Cin, N)
        # --- 1x1 kqv conv: one lane-dense MXU matmul over the folded batch ---
        kqv_ref[...] = (jnp.dot(kw_ref[...], xv,
                                preferred_element_type=jnp.float32) + kb_ref[...])
        # --- 3x3 'same' conv: lane-shifted taps, each a (Cout,Cin)@(Cin,N) dot ---
        acc = jnp.zeros((cout_conv, n), jnp.float32)
        for t in range(ntaps):
            off = offs[t]
            if off == 0:
                xt = xv                                        # centre tap, no mask
            else:
                xt = xp_ref[:, pad + off:pad + off + n] * m_ref[t]
            acc = acc + jnp.dot(w9_ref[t], xt,
                                preferred_element_type=jnp.float32)
        conv_ref[...] = acc + cb_ref[...]

    return pl.pallas_call(
        kernel,
        out_shape=(jax.ShapeDtypeStruct((cout_kqv, n), jnp.float32),
                   jax.ShapeDtypeStruct((cout_conv, n), jnp.float32)),
    )(x2, xp, kqv_w, kqv_b.reshape(cout_kqv, 1), w9, masks,
      conv_b.reshape(cout_conv, 1))


# ---------------------------------------------------------------------------
# 1x1 conv == matmul over the folded batch (used for attn_out)
# ---------------------------------------------------------------------------
def _pointwise_kernel(x_ref, w_ref, b_ref, o_ref):
    o_ref[...] = (jnp.dot(w_ref[...], x_ref[...],
                          preferred_element_type=jnp.float32) + b_ref[...])


def pointwise_conv(x2, w, b):
    # x2: (Cin, B*HW);  w: (Cout, Cin);  b: (Cout,)
    cout = w.shape[0]
    return pl.pallas_call(
        _pointwise_kernel,
        out_shape=jax.ShapeDtypeStruct((cout, x2.shape[1]), jnp.float32),
    )(x2, w, b.reshape(cout, 1))


# ---------------------------------------------------------------------------
# Attention core, grid = (batch, head), HW kept in the lane dimension.
# ---------------------------------------------------------------------------
def _attention_kernel(q_ref, k_ref, v_ref, b_ref, o_ref):
    # q: (HW, dkh)  k: (dkh, HW)  v: (dvh, HW)  bias: (HW, HW)  o: (dvh, HW)
    logits = jnp.dot(q_ref[...], k_ref[...],
                     preferred_element_type=jnp.float32) + b_ref[...]
    m = jnp.max(logits, axis=-1, keepdims=True)
    p = jnp.exp(logits - m)
    denom = jnp.sum(p, axis=-1, keepdims=True)
    p = p * pl.reciprocal(denom, approx=True)                  # softmax rows
    # out[d, s1] = sum_k v[d, k] * p[s1, k]  -> lane-dense (dvh, HW) store
    o_ref[...] = jax.lax.dot_general(
        v_ref[...], p, (((1,), (1,)), ((), ())),
        preferred_element_type=jnp.float32)


def attention(q_hd, k_t, v_t, bias):
    # q_hd: (B, nh, HW, dkh)  k_t: (B, nh, dkh, HW)  v_t: (B, nh, dvh, HW)
    # bias: (B, HW, HW)  (identical across heads -- spec behaviour)
    bsz, nh, hw, dkh = q_hd.shape
    dvh = v_t.shape[2]
    return pl.pallas_call(
        _attention_kernel,
        out_shape=jax.ShapeDtypeStruct((bsz, nh, dvh, hw), jnp.float32),
        grid=(bsz, nh),
        in_specs=[
            pl.BlockSpec((None, None, hw, dkh), lambda b, n: (b, n, 0, 0)),
            pl.BlockSpec((None, None, dkh, hw), lambda b, n: (b, n, 0, 0)),
            pl.BlockSpec((None, None, dvh, hw), lambda b, n: (b, n, 0, 0)),
            # same block across the head axis -> DMA'd only when the batch changes
            pl.BlockSpec((None, hw, hw), lambda b, n: (b, 0, 0)),
        ],
        out_specs=pl.BlockSpec((None, None, dvh, hw), lambda b, n: (b, n, 0, 0)),
        compiler_params=pltpu.CompilerParams(
            dimension_semantics=("parallel", "parallel")),
    )(q_hd, k_t, v_t, bias)


# ---------------------------------------------------------------------------
# Relative position logits (pure pad/reshape/broadcast glue, kept in XLA)
# ---------------------------------------------------------------------------
def _rel_to_abs(x):
    b, nh, l, _ = x.shape
    x = jnp.concatenate([x, jnp.zeros((b, nh, l, 1), x.dtype)], axis=3)
    flat = x.reshape(b, nh, l * 2 * l)
    flat = jnp.concatenate([flat, jnp.zeros((b, nh, l - 1), x.dtype)], axis=2)
    final = flat.reshape(b, nh, l + 1, 2 * l - 1)
    return final[:, :, :l, l - 1:]


def build_rel_bias(q5, rel_h, rel_w):
    # q5: (B, nh, H, W, dkh); the spec's einsum SUMS the heads, and the result is
    # broadcast identically back over heads; build the (B, HW, HW) bias directly.
    b, _, h, w, _ = q5.shape
    rw = jnp.einsum('bhxyd,md->bxym', q5, rel_w, precision=_HI)    # (B,H,W,2W-1)
    rw = _rel_to_abs(rw)                                           # (B,H,W,W): (h1,w1,w2)
    rh = jnp.einsum('bhxyd,md->bxym',
                    jnp.transpose(q5, (0, 1, 3, 2, 4)), rel_h, precision=_HI)
    rh = _rel_to_abs(rh)                                           # (B,W,H,H): (w1,h1,h2)
    bias = (rw[:, :, :, None, :] +                                 # (B,h1,w1,.,w2)
            jnp.transpose(rh, (0, 2, 1, 3))[:, :, :, :, None])     # (B,h1,w1,h2,.)
    return bias.reshape(b, h * w, h * w)


# literal (tiled) translation of the PyTorch relative_logits -- reference path only
def _relative_logits_1d(q5, rel_k, height, width, num_heads, transpose_mask):
    rel_logits = jnp.einsum('bhxyd,md->bxym', q5, rel_k, precision=_HI)
    rel_logits = rel_logits.reshape(-1, height, width, 2 * width - 1)
    rel_logits = _rel_to_abs(rel_logits)
    rel_logits = rel_logits.reshape(-1, height, width, width)
    rel_logits = jnp.expand_dims(rel_logits, 1)
    rel_logits = jnp.tile(rel_logits, (1, num_heads, 1, 1, 1))
    rel_logits = jnp.expand_dims(rel_logits, 3)
    rel_logits = jnp.tile(rel_logits, (1, 1, 1, height, 1, 1))
    rel_logits = jnp.transpose(rel_logits, transpose_mask)
    return rel_logits.reshape(-1, num_heads, height * width, height * width)


def relative_logits(q5, rel_h, rel_w, num_heads_repeat):
    _, _, h, w, _ = q5.shape
    rl_w = _relative_logits_1d(q5, rel_w, h, w, num_heads_repeat,
                               (0, 1, 2, 4, 3, 5))
    rl_h = _relative_logits_1d(jnp.transpose(q5, (0, 1, 3, 2, 4)), rel_h, w, h,
                               num_heads_repeat, (0, 1, 4, 2, 5, 3))
    return rl_h, rl_w


# ---------------------------------------------------------------------------
# Full forward
# ---------------------------------------------------------------------------
def aacn_forward(x, p, num_heads, dk, dv):
    bsz, cin, h, w = x.shape
    hw = h * w
    n = bsz * hw
    dkh = dk // num_heads
    dvh = dv // num_heads

    # channels-major with the batch folded into the lane axis: (Cin, B*HW)
    x2 = jnp.transpose(x.reshape(bsz, cin, hw), (1, 0, 2)).reshape(cin, n)

    # fused kqv 1x1 conv + conv_out 3x3 conv (single launch)
    kqv2, conv2 = features(x2, p['kqv_w'], p['kqv_b'],
                           p['conv_w'], p['conv_b'], h, w)

    kqv = jnp.transpose(kqv2.reshape(-1, bsz, hw), (1, 0, 2))       # (B, 2dk+dv, HW)
    k = kqv[:, :dk]
    q = kqv[:, dk:2 * dk] * (dkh ** -0.5)
    v = kqv[:, 2 * dk:]

    # torch.reshape semantics (raw row-major head split == split_heads_2d +
    # flatten_hw of the spec); k/v additionally transposed so HW=256 is the lane
    # dim inside the attention kernel.
    q_hd = q.reshape(bsz, num_heads, hw, dkh)
    k_t = jnp.transpose(k.reshape(bsz, num_heads, hw, dkh), (0, 1, 3, 2))
    v_t = jnp.transpose(v.reshape(bsz, num_heads, hw, dvh), (0, 1, 3, 2))

    # head-broadcast relative-position bias, built once per batch element
    q5 = q.reshape(bsz, num_heads, h, w, dkh)
    bias = build_rel_bias(q5, p['rel_h'], p['rel_w'])               # (B, HW, HW)

    attn_t = attention(q_hd, k_t, v_t, bias)                        # (B, nh, dvh, HW)

    # torch: (B,nh,HW,dvh) --reshape--> (B,nh,dvh,H,W) --> (B,dv,H,W)  (raw reshape)
    attn = jnp.transpose(attn_t, (0, 1, 3, 2)).reshape(bsz, dv, hw)
    attn2 = jnp.transpose(attn, (1, 0, 2)).reshape(dv, n)
    attn2 = pointwise_conv(attn2, p['attn_out_w'], p['attn_out_b'])
    attn_out = jnp.transpose(attn2.reshape(dv, bsz, hw),
                             (1, 0, 2)).reshape(bsz, dv, h, w)

    conv_out = jnp.transpose(conv2.reshape(-1, bsz, hw),
                             (1, 0, 2)).reshape(bsz, cin - dv, h, w)
    return jnp.concatenate([conv_out, attn_out], axis=1)


# ---------------------------------------------------------------------------
# Pure-JAX reference (literal translation of the PyTorch module)
# ---------------------------------------------------------------------------
def ref_forward(x, p, num_heads, dk, dv):
    bsz, cin, h, w = x.shape
    hw = h * w
    dkh = dk // num_heads
    dvh = dv // num_heads

    kqv = jnp.einsum('oc,bchw->bohw', p['kqv_w'], x, precision=_HI)
    kqv = kqv + p['kqv_b'][None, :, None, None]
    k = kqv[:, :dk]
    q = kqv[:, dk:2 * dk] * (dkh ** -0.5)
    v = kqv[:, 2 * dk:]

    q5 = q.reshape(bsz, num_heads, h, w, dkh)
    qf = q.reshape(bsz, num_heads, hw, dkh)
    kf = k.reshape(bsz, num_heads, hw, dkh)
    vf = v.reshape(bsz, num_heads, hw, dvh)

    qk = jnp.einsum('bnqd,bnkd->bnqk', qf, kf, precision=_HI)
    qr_h, qr_w = relative_logits(q5, p['rel_h'], p['rel_w'], num_heads)
    qk = qk + qr_h + qr_w
    wts = jax.nn.softmax(qk, axis=-1)
    attn = jnp.einsum('bnqk,bnkd->bnqd', wts, vf, precision=_HI)
    attn = attn.reshape(bsz, num_heads, dvh, h, w).reshape(bsz, dv, h, w)
    attn = jnp.einsum('oc,bchw->bohw', p['attn_out_w'], attn, precision=_HI)
    attn = attn + p['attn_out_b'][None, :, None, None]

    conv = jax.lax.conv_general_dilated(
        x, p['conv_w'], (1, 1), [(1, 1), (1, 1)],
        dimension_numbers=('NCHW', 'OIHW', 'NCHW'), precision=_HI)
    conv = conv + p['conv_b'][None, :, None, None]
    return jnp.concatenate([conv, attn], axis=1)


# ---------------------------------------------------------------------------
if __name__ == "__main__":
    key = jax.random.PRNGKey(0)
    B, Cin, H, W = 2, 64, 16, 16          # image_size = 16
    num_heads, kcoef, vcoef, ksize = 8, 0.25, 0.25, 3

    dk = math.floor(Cin * kcoef / num_heads) * num_heads
    if dk / num_heads < 20:
        dk = num_heads * 20
    dv = math.floor(Cin * vcoef / num_heads) * num_heads
    dkh = dk // num_heads

    ks = jax.random.split(key, 9)
    x = jax.random.normal(ks[0], (B, Cin, H, W), jnp.float32)
    params = {
        'kqv_w': jax.random.normal(ks[1], (2 * dk + dv, Cin), jnp.float32) * 0.05,
        'kqv_b': jax.random.normal(ks[2], (2 * dk + dv,), jnp.float32) * 0.05,
        'attn_out_w': jax.random.normal(ks[3], (dv, dv), jnp.float32) * 0.1,
        'attn_out_b': jax.random.normal(ks[4], (dv,), jnp.float32) * 0.1,
        'conv_w': jax.random.normal(ks[5], (Cin - dv, Cin, ksize, ksize),
                                    jnp.float32) * 0.05,
        'conv_b': jax.random.normal(ks[6], (Cin - dv,), jnp.float32) * 0.05,
        'rel_h': jax.random.normal(ks[7], (2 * H - 1, dkh), jnp.float32) * 0.1,
        'rel_w': jax.random.normal(ks[8], (2 * W - 1, dkh), jnp.float32) * 0.1,
    }

    fwd = jax.jit(lambda xx, pp: aacn_forward(xx, pp, num_heads, dk, dv))
    out = jax.block_until_ready(fwd(x, params))

    ref = jax.block_until_ready(ref_forward(x, params, num_heads, dk, dv))
    np.testing.assert_allclose(np.asarray(out), np.asarray(ref),
                               atol=2e-3, rtol=2e-3)
    print("KERNEL_OK")
</pallas_src>

<mosaic_0001>
module attributes {stable_mosaic.version = 11 : i64} {
  func.func @kernel(%arg0: memref<64x512xf32, #tpu.memory_space<vmem>>, %arg1: memref<64x546xf32, #tpu.memory_space<vmem>>, %arg2: memref<336x64xf32, #tpu.memory_space<vmem>>, %arg3: memref<336x1xf32, #tpu.memory_space<vmem>>, %arg4: memref<9x48x64xf32, #tpu.memory_space<vmem>>, %arg5: memref<9x1x512xf32, #tpu.memory_space<vmem>>, %arg6: memref<48x1xf32, #tpu.memory_space<vmem>>, %arg7: memref<336x512xf32, #tpu.memory_space<vmem>>, %arg8: memref<48x512xf32, #tpu.memory_space<vmem>>) attributes {dimension_semantics = [], scalar_prefetch = 0 : i64, scratch_operands = 0 : i64, tpu.core_type = #tpu.core_type<tc>} {
    %c0 = arith.constant 0 : index
    %c0_0 = arith.constant 0 : index
    %0 = vector.load %arg0[%c0, %c0_0] : memref<64x512xf32, #tpu.memory_space<vmem>>, vector<64x512xf32>
    %c0_1 = arith.constant 0 : index
    %c0_2 = arith.constant 0 : index
    %1 = vector.load %arg2[%c0_1, %c0_2] : memref<336x64xf32, #tpu.memory_space<vmem>>, vector<336x64xf32>
    %cst = arith.constant dense<0.000000e+00> : vector<336x512xf32>
    %2 = tpu.matmul %1, %0, %cst {dimension_numbers = #tpu.dot_dimension_numbers<[1], [0], [0], [1], [0, 0, 1, 1], [], []>} : vector<336x64xf32>, vector<64x512xf32>, vector<336x512xf32> -> vector<336x512xf32>
    %c0_3 = arith.constant 0 : index
    %c0_4 = arith.constant 0 : index
    %3 = vector.load %arg3[%c0_3, %c0_4] : memref<336x1xf32, #tpu.memory_space<vmem>>, vector<336x1xf32>
    %4 = vector.broadcast %3 : vector<336x1xf32> to vector<336x512xf32>
    %5 = arith.addf %2, %4 : vector<336x512xf32>
    %c0_5 = arith.constant 0 : index
    %c0_6 = arith.constant 0 : index
    %6 = vector.load %arg7[%c0_5, %c0_6] : memref<336x512xf32, #tpu.memory_space<vmem>>, vector<336x512xf32>
    tpu.vector_store %arg7[%c0_5, %c0_6], %5 {strides = array<i32>} : memref<336x512xf32, #tpu.memory_space<vmem>>, vector<336x512xf32>,
    %cst_7 = arith.constant 0.000000e+00 : f32
    %7 = vector.broadcast %cst_7 : f32 to vector<48x512xf32>
    %c0_8 = arith.constant 0 : index
    %c0_9 = arith.constant 0 : index
    %8 = vector.load %arg1[%c0_8, %c0_9] : memref<64x546xf32, #tpu.memory_space<vmem>>, vector<64x512xf32>
    %c0_10 = arith.constant 0 : index
    %c0_11 = arith.constant 0 : index
    %c0_12 = arith.constant 0 : index
    %9 = vector.load %arg5[%c0_10, %c0_11, %c0_12] : memref<9x1x512xf32, #tpu.memory_space<vmem>>, vector<1x1x512xf32>
    %10 = vector.shape_cast %9 : vector<1x1x512xf32> to vector<1x512xf32>
    %11 = vector.broadcast %10 : vector<1x512xf32> to vector<64x512xf32>
    %12 = arith.mulf %8, %11 : vector<64x512xf32>
    %c0_13 = arith.constant 0 : index
    %c0_14 = arith.constant 0 : index
    %c0_15 = arith.constant 0 : index
    %13 = vector.load %arg4[%c0_13, %c0_14, %c0_15] : memref<9x48x64xf32, #tpu.memory_space<vmem>>, vector<1x48x64xf32>
    %14 = vector.shape_cast %13 : vector<1x48x64xf32> to vector<48x64xf32>
    %cst_16 = arith.constant dense<0.000000e+00> : vector<48x512xf32>
    %15 = tpu.matmul %14, %12, %cst_16 {dimension_numbers = #tpu.dot_dimension_numbers<[1], [0], [0], [1], [0, 0, 1, 1], [], []>} : vector<48x64xf32>, vector<64x512xf32>, vector<48x512xf32> -> vector<48x512xf32>
    %16 = arith.addf %7, %15 : vector<48x512xf32>
    %c0_17 = arith.constant 0 : index
    %c1 = arith.constant 1 : index
    %17 = vector.load %arg1[%c0_17, %c1] : memref<64x546xf32, #tpu.memory_space<vmem>>, vector<64x512xf32>
    %c1_18 = arith.constant 1 : index
    %c0_19 = arith.constant 0 : index
    %c0_20 = arith.constant 0 : index
    %18 = vector.load %arg5[%c1_18, %c0_19, %c0_20] : memref<9x1x512xf32, #tpu.memory_space<vmem>>, vector<1x1x512xf32>
    %19 = vector.shape_cast %18 : vector<1x1x512xf32> to vector<1x512xf32>
    %20 = vector.broadcast %19 : vector<1x512xf32> to vector<64x512xf32>
    %21 = arith.mulf %17, %20 : vector<64x512xf32>
    %c1_21 = arith.constant 1 : index
    %c0_22 = arith.constant 0 : index
    %c0_23 = arith.constant 0 : index
    %22 = vector.load %arg4[%c1_21, %c0_22, %c0_23] : memref<9x48x64xf32, #tpu.memory_space<vmem>>, vector<1x48x64xf32>
    %23 = vector.shape_cast %22 : vector<1x48x64xf32> to vector<48x64xf32>
    %cst_24 = arith.constant dense<0.000000e+00> : vector<48x512xf32>
    %24 = tpu.matmul %23, %21, %cst_24 {dimension_numbers = #tpu.dot_dimension_numbers<[1], [0], [0], [1], [0, 0, 1, 1], [], []>} : vector<48x64xf32>, vector<64x512xf32>, vector<48x512xf32> -> vector<48x512xf32>
    %25 = arith.addf %16, %24 : vector<48x512xf32>
    %c0_25 = arith.constant 0 : index
    %c2 = arith.constant 2 : index
    %26 = vector.load %arg1[%c0_25, %c2] : memref<64x546xf32, #tpu.memory_space<vmem>>, vector<64x512xf32>
    %c2_26 = arith.constant 2 : index
    %c0_27 = arith.constant 0 : index
    %c0_28 = arith.constant 0 : index
    %27 = vector.load %arg5[%c2_26, %c0_27, %c0_28] : memref<9x1x512xf32, #tpu.memory_space<vmem>>, vector<1x1x512xf32>
    %28 = vector.shape_cast %27 : vector<1x1x512xf32> to vector<1x512xf32>
    %29 = vector.broadcast %28 : vector<1x512xf32> to vector<64x512xf32>
    %30 = arith.mulf %26, %29 : vector<64x512xf32>
    %c2_29 = arith.constant 2 : index
    %c0_30 = arith.constant 0 : index
    %c0_31 = arith.constant 0 : index
    %31 = vector.load %arg4[%c2_29, %c0_30, %c0_31] : memref<9x48x64xf32, #tpu.memory_space<vmem>>, vector<1x48x64xf32>
    %32 = vector.shape_cast %31 : vector<1x48x64xf32> to vector<48x64xf32>
    %cst_32 = arith.constant dense<0.000000e+00> : vector<48x512xf32>
    %33 = tpu.matmul %32, %30, %cst_32 {dimension_numbers = #tpu.dot_dimension_numbers<[1], [0], [0], [1], [0, 0, 1, 1], [], []>} : vector<48x64xf32>, vector<64x512xf32>, vector<48x512xf32> -> vector<48x512xf32>
    %34 = arith.addf %25, %33 : vector<48x512xf32>
    %c0_33 = arith.constant 0 : index
    %c16 = arith.constant 16 : index
    %35 = vector.load %arg1[%c0_33, %c16] : memref<64x546xf32, #tpu.memory_space<vmem>>, vector<64x512xf32>
    %c3 = arith.constant 3 : index
    %c0_34 = arith.constant 0 : index
    %c0_35 = arith.constant 0 : index
    %36 = vector.load %arg5[%c3, %c0_34, %c0_35] : memref<9x1x512xf32, #tpu.memory_space<vmem>>, vector<1x1x512xf32>
    %37 = vector.shape_cast %36 : vector<1x1x512xf32> to vector<1x512xf32>
    %38 = vector.broadcast %37 : vector<1x512xf32> to vector<64x512xf32>
    %39 = arith.mulf %35, %38 : vector<64x512xf32>
    %c3_36 = arith.constant 3 : index
    %c0_37 = arith.constant 0 : index
    %c0_38 = arith.constant 0 : index
    %40 = vector.load %arg4[%c3_36, %c0_37, %c0_38] : memref<9x48x64xf32, #tpu.memory_space<vmem>>, vector<1x48x64xf32>
    %41 = vector.shape_cast %40 : vector<1x48x64xf32> to vector<48x64xf32>
    %cst_39 = arith.constant dense<0.000000e+00> : vector<48x512xf32>
    %42 = tpu.matmul %41, %39, %cst_39 {dimension_numbers = #tpu.dot_dimension_numbers<[1], [0], [0], [1], [0, 0, 1, 1], [], []>} : vector<48x64xf32>, vector<64x512xf32>, vector<48x512xf32> -> vector<48x512xf32>
    %43 = arith.addf %34, %42 : vector<48x512xf32>
    %c4 = arith.constant 4 : index
    %c0_40 = arith.constant 0 : index
    %c0_41 = arith.constant 0 : index
    %44 = vector.load %arg4[%c4, %c0_40, %c0_41] : memref<9x48x64xf32, #tpu.memory_space<vmem>>, vector<1x48x64xf32>
    %45 = vector.shape_cast %44 : vector<1x48x64xf32> to vector<48x64xf32>
    %cst_42 = arith.constant dense<0.000000e+00> : vector<48x512xf32>
    %46 = tpu.matmul %45, %0, %cst_42 {dimension_numbers = #tpu.dot_dimension_numbers<[1], [0], [0], [1], [0, 0, 1, 1], [], []>} : vector<48x64xf32>, vector<64x512xf32>, vector<48x512xf32> -> vector<48x512xf32>
    %47 = arith.addf %43, %46 : vector<48x512xf32>
    %c0_43 = arith.constant 0 : index
    %c18 = arith.constant 18 : index
    %48 = vector.load %arg1[%c0_43, %c18] : memref<64x546xf32, #tpu.memory_space<vmem>>, vector<64x512xf32>
    %c5 = arith.constant 5 : index
    %c0_44 = arith.constant 0 : index
    %c0_45 = arith.constant 0 : index
    %49 = vector.load %arg5[%c5, %c0_44, %c0_45] : memref<9x1x512xf32, #tpu.memory_space<vmem>>, vector<1x1x512xf32>
    %50 = vector.shape_cast %49 : vector<1x1x512xf32> to vector<1x512xf32>
    %51 = vector.broadcast %50 : vector<1x512xf32> to vector<64x512xf32>
    %52 = arith.mulf %48, %51 : vector<64x512xf32>
    %c5_46 = arith.constant 5 : index
    %c0_47 = arith.constant 0 : index
    %c0_48 = arith.constant 0 : index
    %53 = vector.load %arg4[%c5_46, %c0_47, %c0_48] : memref<9x48x64xf32, #tpu.memory_space<vmem>>, vector<1x48x64xf32>
    %54 = vector.shape_cast %53 : vector<1x48x64xf32> to vector<48x64xf32>
    %cst_49 = arith.constant dense<0.000000e+00> : vector<48x512xf32>
    %55 = tpu.matmul %54, %52, %cst_49 {dimension_numbers = #tpu.dot_dimension_numbers<[1], [0], [0], [1], [0, 0, 1, 1], [], []>} : vector<48x64xf32>, vector<64x512xf32>, vector<48x512xf32> -> vector<48x512xf32>
    %56 = arith.addf %47, %55 : vector<48x512xf32>
    %c0_50 = arith.constant 0 : index
    %c32 = arith.constant 32 : index
    %57 = vector.load %arg1[%c0_50, %c32] : memref<64x546xf32, #tpu.memory_space<vmem>>, vector<64x512xf32>
    %c6 = arith.constant 6 : index
    %c0_51 = arith.constant 0 : index
    %c0_52 = arith.constant 0 : index
    %58 = vector.load %arg5[%c6, %c0_51, %c0_52] : memref<9x1x512xf32, #tpu.memory_space<vmem>>, vector<1x1x512xf32>
    %59 = vector.shape_cast %58 : vector<1x1x512xf32> to vector<1x512xf32>
    %60 = vector.broadcast %59 : vector<1x512xf32> to vector<64x512xf32>
    %61 = arith.mulf %57, %60 : vector<64x512xf32>
    %c6_53 = arith.constant 6 : index
    %c0_54 = arith.constant 0 : index
    %c0_55 = arith.constant 0 : index
    %62 = vector.load %arg4[%c6_53, %c0_54, %c0_55] : memref<9x48x64xf32, #tpu.memory_space<vmem>>, vector<1x48x64xf32>
    %63 = vector.shape_cast %62 : vector<1x48x64xf32> to vector<48x64xf32>
    %cst_56 = arith.constant dense<0.000000e+00> : vector<48x512xf32>
    %64 = tpu.matmul %63, %61, %cst_56 {dimension_numbers = #tpu.dot_dimension_numbers<[1], [0], [0], [1], [0, 0, 1, 1], [], []>} : vector<48x64xf32>, vector<64x512xf32>, vector<48x512xf32> -> vector<48x512xf32>
    %65 = arith.addf %56, %64 : vector<48x512xf32>
    %c0_57 = arith.constant 0 : index
    %c33 = arith.constant 33 : index
    %66 = vector.load %arg1[%c0_57, %c33] : memref<64x546xf32, #tpu.memory_space<vmem>>, vector<64x512xf32>
    %c7 = arith.constant 7 : index
    %c0_58 = arith.constant 0 : index
    %c0_59 = arith.constant 0 : index
    %67 = vector.load %arg5[%c7, %c0_58, %c0_59] : memref<9x1x512xf32, #tpu.memory_space<vmem>>, vector<1x1x512xf32>
    %68 = vector.shape_cast %67 : vector<1x1x512xf32> to vector<1x512xf32>
    %69 = vector.broadcast %68 : vector<1x512xf32> to vector<64x512xf32>
    %70 = arith.mulf %66, %69 : vector<64x512xf32>
    %c7_60 = arith.constant 7 : index
    %c0_61 = arith.constant 0 : index
    %c0_62 = arith.constant 0 : index
    %71 = vector.load %arg4[%c7_60, %c0_61, %c0_62] : memref<9x48x64xf32, #tpu.memory_space<vmem>>, vector<1x48x64xf32>
    %72 = vector.shape_cast %71 : vector<1x48x64xf32> to vector<48x64xf32>
    %cst_63 = arith.constant dense<0.000000e+00> : vector<48x512xf32>
    %73 = tpu.matmul %72, %70, %cst_63 {dimension_numbers = #tpu.dot_dimension_numbers<[1], [0], [0], [1], [0, 0, 1, 1], [], []>} : vector<48x64xf32>, vector<64x512xf32>, vector<48x512xf32> -> vector<48x512xf32>
    %74 = arith.addf %65, %73 : vector<48x512xf32>
    %c0_64 = arith.constant 0 : index
    %c34 = arith.constant 34 : index
    %75 = vector.load %arg1[%c0_64, %c34] : memref<64x546xf32, #tpu.memory_space<vmem>>, vector<64x512xf32>
    %c8 = arith.constant 8 : index
    %c0_65 = arith.constant 0 : index
    %c0_66 = arith.constant 0 : index
    %76 = vector.load %arg5[%c8, %c0_65, %c0_66] : memref<9x1x512xf32, #tpu.memory_space<vmem>>, vector<1x1x512xf32>
    %77 = vector.shape_cast %76 : vector<1x1x512xf32> to vector<1x512xf32>
    %78 = vector.broadcast %77 : vector<1x512xf32> to vector<64x512xf32>
    %79 = arith.mulf %75, %78 : vector<64x512xf32>
    %c8_67 = arith.constant 8 : index
    %c0_68 = arith.constant 0 : index
    %c0_69 = arith.constant 0 : index
    %80 = vector.load %arg4[%c8_67, %c0_68, %c0_69] : memref<9x48x64xf32, #tpu.memory_space<vmem>>, vector<1x48x64xf32>
    %81 = vector.shape_cast %80 : vector<1x48x64xf32> to vector<48x64xf32>
    %cst_70 = arith.constant dense<0.000000e+00> : vector<48x512xf32>
    %82 = tpu.matmul %81, %79, %cst_70 {dimension_numbers = #tpu.dot_dimension_numbers<[1], [0], [0], [1], [0, 0, 1, 1], [], []>} : vector<48x64xf32>, vector<64x512xf32>, vector<48x512xf32> -> vector<48x512xf32>
    %83 = arith.addf %74, %82 : vector<48x512xf32>
    %c0_71 = arith.constant 0 : index
    %c0_72 = arith.constant 0 : index
    %84 = vector.load %arg6[%c0_71, %c0_72] : memref<48x1xf32, #tpu.memory_space<vmem>>, vector<48x1xf32>
    %85 = vector.broadcast %84 : vector<48x1xf32> to vector<48x512xf32>
    %86 = arith.addf %83, %85 : vector<48x512xf32>
    %c0_73 = arith.constant 0 : index
    %c0_74 = arith.constant 0 : index
    %87 = vector.load %arg8[%c0_73, %c0_74] : memref<48x512xf32, #tpu.memory_space<vmem>>, vector<48x512xf32>
    tpu.vector_store %arg8[%c0_73, %c0_74], %86 {strides = array<i32>} : memref<48x512xf32, #tpu.memory_space<vmem>>, vector<48x512xf32>,
    return
  }
}

module attributes {stable_mosaic.version = 11 : i64} {
  func.func @_attention_kernel(%arg0: i32, %arg1: i32, %arg2: memref<1x1x256x20xf32, #tpu.memory_space<vmem>>, %arg3: memref<1x1x20x256xf32, #tpu.memory_space<vmem>>, %arg4: memref<1x1x2x256xf32, #tpu.memory_space<vmem>>, %arg5: memref<1x256x256xf32, #tpu.memory_space<vmem>>, %arg6: memref<1x1x2x256xf32, #tpu.memory_space<vmem>>) attributes {dimension_semantics = [#tpu.dimension_semantics<parallel>, #tpu.dimension_semantics<parallel>], iteration_bounds = array<i64: 2, 8>, scalar_prefetch = 0 : i64, scratch_operands = 0 : i64, tpu.core_type = #tpu.core_type<tc>, window_params = [{transform_indices = @transform_0, window_bounds = array<i64: 1, 1, 256, 20>}, {transform_indices = @transform_1, window_bounds = array<i64: 1, 1, 20, 256>}, {transform_indices = @transform_2, window_bounds = array<i64: 1, 1, 2, 256>}, {transform_indices = @transform_3, window_bounds = array<i64: 1, 256, 256>}, {transform_indices = @transform_4, window_bounds = array<i64: 1, 1, 2, 256>}]} {
    %c0 = arith.constant 0 : index
    %c0_0 = arith.constant 0 : index
    %c0_1 = arith.constant 0 : index
    %c0_2 = arith.constant 0 : index
    %0 = vector.load %arg2[%c0, %c0_0, %c0_1, %c0_2] : memref<1x1x256x20xf32, #tpu.memory_space<vmem>>, vector<1x1x256x20xf32>
    %1 = vector.shape_cast %0 : vector<1x1x256x20xf32> to vector<256x20xf32>
    %c0_3 = arith.constant 0 : index
    %c0_4 = arith.constant 0 : index
    %c0_5 = arith.constant 0 : index
    %c0_6 = arith.constant 0 : index
    %2 = vector.load %arg3[%c0_3, %c0_4, %c0_5, %c0_6] : memref<1x1x20x256xf32, #tpu.memory_space<vmem>>, vector<1x1x20x256xf32>
    %3 = vector.shape_cast %2 : vector<1x1x20x256xf32> to vector<20x256xf32>
    %cst = arith.constant dense<0.000000e+00> : vector<256x256xf32>
    %4 = tpu.matmul %1, %3, %cst {dimension_numbers = #tpu.dot_dimension_numbers<[1], [0], [0], [1], [0, 0, 1, 1], [], []>} : vector<256x20xf32>, vector<20x256xf32>, vector<256x256xf32> -> vector<256x256xf32>
    %c0_7 = arith.constant 0 : index
    %c0_8 = arith.constant 0 : index
    %c0_9 = arith.constant 0 : index
    %5 = vector.load %arg5[%c0_7, %c0_8, %c0_9] : memref<1x256x256xf32, #tpu.memory_space<vmem>>, vector<1x256x256xf32>
    %6 = vector.shape_cast %5 : vector<1x256x256xf32> to vector<256x256xf32>
    %7 = arith.addf %4, %6 : vector<256x256xf32>
    %cst_10 = arith.constant dense<0xFF800000> : vector<256xf32>
    %8 = vector.multi_reduction <maximumf>, %7, %cst_10 [1] : vector<256x256xf32> to vector<256xf32>
    %9 = vector.shape_cast %8 : vector<256xf32> to vector<256x1xf32>
    %10 = vector.broadcast %9 : vector<256x1xf32> to vector<256x256xf32>
    %11 = arith.subf %7, %10 : vector<256x256xf32>
    %12 = math.exp %11 : vector<256x256xf32>
    %cst_11 = arith.constant dense<0.000000e+00> : vector<256xf32>
    %13 = vector.multi_reduction <add>, %12, %cst_11 [1] : vector<256x256xf32> to vector<256xf32>
    %14 = vector.shape_cast %13 : vector<256xf32> to vector<256x1xf32>
    %15 = tpu.reciprocal %14 {approx = true} : vector<256x1xf32> -> vector<256x1xf32>
    %16 = vector.broadcast %15 : vector<256x1xf32> to vector<256x256xf32>
    %17 = arith.mulf %12, %16 : vector<256x256xf32>
    %c0_12 = arith.constant 0 : index
    %c0_13 = arith.constant 0 : index
    %c0_14 = arith.constant 0 : index
    %c0_15 = arith.constant 0 : index
    %18 = vector.load %arg4[%c0_12, %c0_13, %c0_14, %c0_15] : memref<1x1x2x256xf32, #tpu.memory_space<vmem>>, vector<1x1x2x256xf32>
    %19 = vector.shape_cast %18 : vector<1x1x2x256xf32> to vector<2x256xf32>
    %cst_16 = arith.constant dense<0.000000e+00> : vector<2x256xf32>
    %20 = tpu.matmul %19, %17, %cst_16 {dimension_numbers = #tpu.dot_dimension_numbers<[1], [1], [0], [0], [0, 0, 1, 0], [], []>} : vector<2x256xf32>, vector<256x256xf32>, vector<2x256xf32> -> vector<2x256xf32>
    %c0_17 = arith.constant 0 : index
    %c0_18 = arith.constant 0 : index
    %c0_19 = arith.constant 0 : index
    %c0_20 = arith.constant 0 : index
    %21 = vector.load %arg6[%c0_17, %c0_18, %c0_19, %c0_20] : memref<1x1x2x256xf32, #tpu.memory_space<vmem>>, vector<1x1x2x256xf32>
    %22 = vector.shape_cast %21 : vector<1x1x2x256xf32> to vector<2x256xf32>
    %23 = vector.shape_cast %20 : vector<2x256xf32> to vector<1x1x2x256xf32>
    tpu.vector_store %arg6[%c0_17, %c0_18, %c0_19, %c0_20], %23 {strides = array<i32>} : memref<1x1x2x256xf32, #tpu.memory_space<vmem>>, vector<1x1x2x256xf32>,
    return
  }
  func.func @transform_0(%arg0: i32, %arg1: i32) -> (i32, i32, i32, i32) {
    %c0_i32 = arith.constant 0 : i32
    %c0_i32_0 = arith.constant 0 : i32
    %c0_i32_1 = arith.constant 0 : i32
    return %arg0, %arg1, %c0_i32, %c0_i32_0 : i32, i32, i32, i32
  }
  func.func @transform_1(%arg0: i32, %arg1: i32) -> (i32, i32, i32, i32) {
    %c0_i32 = arith.constant 0 : i32
    %c0_i32_0 = arith.constant 0 : i32
    %c0_i32_1 = arith.constant 0 : i32
    return %arg0, %arg1, %c0_i32, %c0_i32_0 : i32, i32, i32, i32
  }
  func.func @transform_2(%arg0: i32, %arg1: i32) -> (i32, i32, i32, i32) {
    %c0_i32 = arith.constant 0 : i32
    %c0_i32_0 = arith.constant 0 : i32
    %c0_i32_1 = arith.constant 0 : i32
    return %arg0, %arg1, %c0_i32, %c0_i32_0 : i32, i32, i32, i32
  }
  func.func @transform_3(%arg0: i32, %arg1: i32) -> (i32, i32, i32) {
    %c0_i32 = arith.constant 0 : i32
    %c0_i32_0 = arith.constant 0 : i32
    %c0_i32_1 = arith.constant 0 : i32
    return %arg0, %c0_i32, %c0_i32_0 : i32, i32, i32
  }
  func.func @transform_4(%arg0: i32, %arg1: i32) -> (i32, i32, i32, i32) {
    %c0_i32 = arith.constant 0 : i32
    %c0_i32_0 = arith.constant 0 : i32
    %c0_i32_1 = arith.constant 0 : i32
    return %arg0, %arg1, %c0_i32, %c0_i32_0 : i32, i32, i32, i32
  }
}

module attributes {stable_mosaic.version = 11 : i64} {
  func.func @_pointwise_kernel(%arg0: memref<16x512xf32, #tpu.memory_space<vmem>>, %arg1: memref<16x16xf32, #tpu.memory_space<vmem>>, %arg2: memref<16x1xf32, #tpu.memory_space<vmem>>, %arg3: memref<16x512xf32, #tpu.memory_space<vmem>>) attributes {dimension_semantics = [], scalar_prefetch = 0 : i64, scratch_operands = 0 : i64, tpu.core_type = #tpu.core_type<tc>} {
    %c0 = arith.constant 0 : index
    %c0_0 = arith.constant 0 : index
    %0 = vector.load %arg1[%c0, %c0_0] : memref<16x16xf32, #tpu.memory_space<vmem>>, vector<16x16xf32>
    %c0_1 = arith.constant 0 : index
    %c0_2 = arith.constant 0 : index
    %1 = vector.load %arg0[%c0_1, %c0_2] : memref<16x512xf32, #tpu.memory_space<vmem>>, vector<16x512xf32>
    %cst = arith.constant dense<0.000000e+00> : vector<16x512xf32>
    %2 = tpu.matmul %0, %1, %cst {dimension_numbers = #tpu.dot_dimension_numbers<[1], [0], [0], [1], [0, 0, 1, 1], [], []>} : vector<16x16xf32>, vector<16x512xf32>, vector<16x512xf32> -> vector<16x512xf32>
    %c0_3 = arith.constant 0 : index
    %c0_4 = arith.constant 0 : index
    %3 = vector.load %arg2[%c0_3, %c0_4] : memref<16x1xf32, #tpu.memory_space<vmem>>, vector<16x1xf32>
    %4 = vector.broadcast %3 : vector<16x1xf32> to vector<16x512xf32>
    %5 = arith.addf %2, %4 : vector<16x512xf32>
    %c0_5 = arith.constant 0 : index
    %c0_6 = arith.constant 0 : index
    %6 = vector.load %arg3[%c0_5, %c0_6] : memref<16x512xf32, #tpu.memory_space<vmem>>, vector<16x512xf32>
    tpu.vector_store %arg3[%c0_5, %c0_6], %5 {strides = array<i32>} : memref<16x512xf32, #tpu.memory_space<vmem>>, vector<16x512xf32>,
    return
  }
}

</mosaic_0001>

<bundles_post_ra>
// kernel: _lambda_.3
= control target key start
LH: loop header
LB: loop body
LE: loop exit
PB: predicated region body
PF: predicated region fallthrough
CT: control target
= control target key end

     0   :  { %14 = vsyncpa [#allocation3], 0  ;;  %s10757_s0 = inlined_call_operand.vmem [shape: f32[64,512], index: 0, kind: input, shape index: {}]   ;;  %s10758_s1 = inlined_call_operand.vmem [shape: f32[64,546], index: 1, kind: input, shape index: {}]   ;;  %s10759_s2 = inlined_call_operand.vmem [shape: f32[336,64], index: 2, kind: input, shape index: {}]   ;;  %s10760_s3 = inlined_call_operand.vmem [shape: f32[336,1], index: 3, kind: input, shape index: {}]   ;;  %s10761_s4 = inlined_call_operand.hbm [shape: f32[9,48,64], index: 4, kind: input, shape index: {}]   ;;  %s10762_s5 = inlined_call_operand.hbm [shape: f32[9,1,512], index: 5, kind: input, shape index: {}]   ;;  %s10763_s6 = inlined_call_operand.vmem [shape: f32[48,1], index: 6, kind: input, shape index: {}]   ;;  %s10764_s7 = inlined_call_operand.vmem [shape: f32[336,512], index: 7, kind: output, shape index: {0}]   ;;  %s10765_s8 = inlined_call_operand.vmem [shape: f32[48,512], index: 8, kind: output, shape index: {1}]  }
   0x1   :  { %15 = vsyncpa [#allocation5], 0  ;;  %s7124_s27 = smov [#allocation2]   ;;  %s7076_s9 = scalar_lea.hbm %s10761_s4, 6912 }
   0x2   :  { %s29_s28 = sshll.u32 %s7124_s27, 4  ;;  %p7077_p0 = scmp.ne.s32.totalorder %s10761_s4, %s7076_s9  ;;  %s30_s28 = int_to_ptr.vmem [resolvable:$true] %s29_s28 }
   0x3   :  { %p7080_p1 = scmp.lt.u32.totalorder %s7076_s9, %s10761_s4 }
   0x5   :  { %p7082_p2 = pnand %p7080_p1, %p7077_p0 }
   0x7   :  { %7085 = shalt.err (!%p7082_p2)
}
   0x8   :  { %s7086_s14 = scalar_lea.vmem %s30_s28, 6912  ;;  %p7091_p4 = scmp.lt.s32.totalorder %s30_s28, %s30_s28 }
   0x9   :  { %p7087_p3 = scmp.ne.s32.totalorder %s30_s28, %s7086_s14  ;;  %p7092_p5 = scmp.lt.s32.totalorder %s7086_s14, %s7086_s14 }
   0xb   :  { %p7093_p6 = por %p7092_p5, %p7091_p4 }
   0xd   :  { %p7094_p7 = pnand %p7093_p6, %p7087_p3 }
   0xf   :  { %7097 = shalt.err (!%p7094_p7)
}
  0x10   :  { %s7125_s15 = smov 128   ;;  %s7126_s16 = smov 8  }
  0x11   :  { %35 = dma.hbm_to_vmem [thread:$0]  %s10761_s4, 6912, %s30_s28, [#allocation3], %s7125_s15, %s7125_s15, %s7126_s16  }
  0x12   :  { %s7127_s19 = smov [#allocation4]   ;;  %s7098_s23 = scalar_lea.hbm %s10762_s5, 576 }
  0x13   :  { %s41_s20 = sshll.u32 %s7127_s19, 4  ;;  %p7099_p8 = scmp.ne.s32.totalorder %s10762_s5, %s7098_s23  ;;  %s42_s20 = int_to_ptr.vmem [resolvable:$true] %s41_s20 }
  0x14   :  { %p7102_p9 = scmp.lt.u32.totalorder %s7098_s23, %s10762_s5 }
  0x16   :  { %p7104_p10 = pnand %p7102_p9, %p7099_p8 }
  0x18   :  { %7107 = shalt.err (!%p7104_p10)
}
  0x19   :  { %s7108_s29 = scalar_lea.vmem %s42_s20, 576  ;;  %p7113_p12 = scmp.lt.s32.totalorder %s42_s20, %s42_s20 }
  0x1a   :  { %p7109_p11 = scmp.ne.s32.totalorder %s42_s20, %s7108_s29  ;;  %p7114_p13 = scmp.lt.s32.totalorder %s7108_s29, %s7108_s29 }
  0x1c   :  { %p7115_p0 = por %p7114_p13, %p7113_p12 }
  0x1e   :  { %p7116_p1 = pnand %p7115_p0, %p7109_p11 }
  0x20   :  { %7119 = shalt.err (!%p7116_p1)
}
  0x21   :  { %s7128_s4 = smov 64   ;;  %s7129_s28 = smov 4  }
  0x22   :  { %47 = dma.hbm_to_vmem [thread:$0]  %s10762_s5, 576, %s42_s20, [#allocation5], %s7128_s4, %s7128_s4, %s7129_s28  }
  0x23   :  { %7120 = dma.done.wait [#allocation3], 6912  }
  0x24   :  { %7121 = vsyncadd [#allocation3], 4294960384 }
  0x25   :  { %7122 = dma.done.wait [#allocation5], 576  }
  0x26   :  { %7123 = vsyncadd [#allocation5], 4294966720  ;;  %v7130_v0 = vmov 0   ;;  %v10766_v1 = vmov 0.0   ;;  %v132_v2 = vld [vmem:[%s10760_s3 + $0x10] sm:$0xff]  ;;  %v130_v3 = vld [vmem:[%s10760_s3] sm:$0xff] }
  0x27   :  { %6263 = vset.pattern.permute.xlu1 %v7130_v0  ;;  %6262 = vset.pattern.permute.xlu0 %v7130_v0  ;;  %v57_v4 = vld [vmem:[%s10757_s0 + $0x8] sm:$0xff]  ;;  %v59_v6 = vld [vmem:[%s10757_s0 + $0x18] sm:$0xff]  ;;  %v56_v10 = vld [vmem:[%s10757_s0] sm:$0xff]  ;;  %vm382_vm0 = vcmask 523264   ;;  %s7132_s20 = smov 1   ;;  %vm1438_vm1 = vcmask 7168  }
  0x28   :  { %573 = vmatprep.mubr.f32.mxu0 %v10766_v1  ;;  %890 = vmatprep.mubr.f32.mxu1 %v10766_v1  ;;  %v61_v5 = vld [vmem:[%s10757_s0 + $0x28] sm:$0xff]  ;;  %v63_v7 = vld [vmem:[%s10757_s0 + $0x38] sm:$0xff]  ;;  %v60_v11 = vld [vmem:[%s10757_s0 + $0x20] sm:$0xff]  ;;  %s7133_s15 = smov 127   ;;  %vm1614_vm2 = vcmask 1039360   ;;  %vm2146_vm3 = vcmask 15360  }
  0x29   :  { %184 = vperm.xlu1 %6263, %v132_v2   ;;  %174 = vperm.xlu0 %6262, %v130_v3   ;;  %v7235_v8 = vpack.c.bf16 %v61_v5, %v57_v4  ;;  %v7237_v9 = vpack.c.bf16 %v63_v7, %v59_v6  ;;  %v58_v12 = vld [vmem:[%s10757_s0 + $0x10] sm:$0xff]  ;;  %v7248_v13 = vpack.c.bf16 %v60_v11, %v56_v10  ;;  %v133_v15 = vld [vmem:[%s10760_s3 + $0x18] sm:$0xff]  ;;  %v131_v16 = vld [vmem:[%s10760_s3 + $0x8] sm:$0xff]  ;;  %s7135_s28 = smov 126   ;;  %s7136_s27 = smov 16   ;;  %vm2322_vm4 = vcmask 1031168  }
  0x2a   :  { %v62_v14 = vld [vmem:[%s10757_s0 + $0x30] sm:$0xff]  ;;  %v65_v18 = vld [vmem:[%s10757_s0 + $0x48] sm:$0xff]  ;;  %v67_v20 = vld [vmem:[%s10757_s0 + $0x58] sm:$0xff]  ;;  %vm2658_vm5 = vcmask 130048   ;;  %s7139_s5 = smov 32   ;;  %s7140_s14 = smov 33  }
  0x2b   :  { %10809 = vst [vmem:[#allocation8_spill] sm:$0xff] %v7235_v8  ;;  %10810 = vst [vmem:[#allocation9_spill] sm:$0xff] %v7237_v9  ;;  %5729 = vmatprep.subr.bf16.mxu0 %v7235_v8  ;;  %5745 = vmatprep.subr.bf16.mxu1 %v7237_v9  ;;  %v7261_v17 = vpack.c.bf16 %v62_v14, %v58_v12  ;;  %v69_v19 = vld [vmem:[%s10757_s0 + $0x68] sm:$0xff]  ;;  %v71_v22 = vld [vmem:[%s10757_s0 + $0x78] sm:$0xff]  ;;  %vm3421_vm6 = vcmask 146432   ;;  %vm2834_vm7 = vcmask 916480  }
  0x2c   :  { %10811 = vst [vmem:[#allocation10_spill] sm:$0xff] %v7248_v13  ;;  %5731 = vmatpush1.bf16.msra.mxu0 %v7248_v13  ;;  %v7273_v21 = vpack.c.bf16 %v69_v19, %v65_v18  ;;  %v64_v23 = vld [vmem:[%s10757_s0 + $0x40] sm:$0xff]  ;;  %v7285_v25 = vpack.c.bf16 %v71_v22, %v67_v20  ;;  %v66_v27 = vld [vmem:[%s10757_s0 + $0x50] sm:$0xff]  ;;  %v135_v29 = vld [vmem:[%s10760_s3 + $0x28] sm:$0xff]  ;;  %s7142_s12 = smov 34   ;;  %vm3933_vm8 = vcmask 261120  }
  0x2d   :  { %10812 = vst [vmem:[#allocation11_spill] sm:$0xff] %v7261_v17  ;;  %189 = vperm.xlu1 %6263, %v133_v15   ;;  %v68_v24 = vld [vmem:[%s10757_s0 + $0x60] sm:$0xff]  ;;  %5747 = vmatpush1.bf16.msra.mxu1 %v7261_v17  ;;  %v70_v28 = vld [vmem:[%s10757_s0 + $0x70] sm:$0xff]  ;;  %v73_v32 = vld [vmem:[%s10757_s0 + $0x88] sm:$0xff]  ;;  %vm4445_vm9 = vcmask 269312   ;;  %s7144_s16 = smov 95  }
  0x2e   :  { %10813 = vst [vmem:[#allocation12_spill] sm:$0xff] %v7273_v21  ;;  %179 = vperm.xlu0 %6262, %v131_v16   ;;  %10814 = vst [vmem:[#allocation13_spill] sm:$0xff] %v7285_v25  ;;  %v7287_v26 = vpack.c.bf16 %v68_v24, %v64_v23  ;;  %5733 = vmatprep.subr.bf16.mxu0 %v7273_v21  ;;  %v7299_v30 = vpack.c.bf16 %v70_v28, %v66_v27  ;;  %v134_v31 = vld [vmem:[%s10760_s3 + $0x20] sm:$0xff]  ;;  %v77_v33 = vld [vmem:[%s10757_s0 + $0xa8] sm:$0xff]  ;;  %vm3597_vm10 = vcmask 900096   ;;  %vm4957_vm11 = vcmask 277504  }
  0x2f   :  { %5749 = vmatprep.subr.bf16.mxu1 %v7285_v25  ;;  %v7311_v34 = vpack.c.bf16 %v77_v33, %v73_v32  ;;  %v75_v35 = vld [vmem:[%s10757_s0 + $0x98] sm:$0xff]  ;;  %v72_v37 = vld [vmem:[%s10757_s0 + $0x80] sm:$0xff]  ;;  %v74_v40 = vld [vmem:[%s10757_s0 + $0x90] sm:$0xff]  ;;  %s7145_s29 = smov 94   ;;  %vm4109_vm12 = vcmask 785408   ;;  %vm4621_vm13 = vcmask 777216  }
  0x30   :  { %10815 = vst [vmem:[#allocation14_spill] sm:$0xff] %v7287_v26  ;;  %10816 = vst [vmem:[#allocation15_spill] sm:$0xff] %v7299_v30  ;;  %v79_v36 = vld [vmem:[%s10757_s0 + $0xb8] sm:$0xff]  ;;  %5735 = vmatpush1.bf16.msra.mxu0 %v7287_v26  ;;  %v76_v39 = vld [vmem:[%s10757_s0 + $0xa0] sm:$0xff]  ;;  %vm5133_vm14 = vcmask 769024  }
  0x31   :  { %10817 = vst [vmem:[#allocation16_spill] sm:$0xff] %v7311_v34  ;;  %199 = vperm.xlu1 %6263, %v135_v29   ;;  %v7323_v38 = vpack.c.bf16 %v79_v36, %v75_v35  ;;  %v78_v41 = vld [vmem:[%s10757_s0 + $0xb0] sm:$0xff]  ;;  %5751 = vmatpush1.bf16.msra.mxu1 %v7299_v30  ;;  %v7335_v42 = vpack.c.bf16 %v76_v39, %v72_v37  ;;  %v137_v44 = vld [vmem:[%s10760_s3 + $0x38] sm:$0xff]  ;;  %v81_v46 = vld [vmem:[%s10757_s0 + $0xc8] sm:$0xff] }
  0x32   :  { %194 = vperm.xlu0 %6262, %v134_v31   ;;  %v7337_v43 = vpack.c.bf16 %v78_v41, %v74_v40  ;;  %v136_v45 = vld [vmem:[%s10760_s3 + $0x30] sm:$0xff]  ;;  %5737 = vmatprep.subr.bf16.mxu0 %v7311_v34  ;;  %v85_v47 = vld [vmem:[%s10757_s0 + $0xe8] sm:$0xff]  ;;  %v83_v48 = vld [vmem:[%s10757_s0 + $0xd8] sm:$0xff] }
  0x33   :  { %10818 = vst [vmem:[#allocation17_spill] sm:$0xff] %v7323_v38  ;;  %10819 = vst [vmem:[#allocation18_spill] sm:$0xff] %v7335_v42  ;;  %5753 = vmatprep.subr.bf16.mxu1 %v7323_v38  ;;  %v87_v49 = vld [vmem:[%s10757_s0 + $0xf8] sm:$0xff]  ;;  %v7359_v50 = vpack.c.bf16 %v85_v47, %v81_v46  ;;  %v80_v52 = vld [vmem:[%s10757_s0 + $0xc0] sm:$0xff] }
  0x34   :  { %10820 = vst [vmem:[#allocation19_spill] sm:$0xff] %v7337_v43  ;;  %v7361_v51 = vpack.c.bf16 %v87_v49, %v83_v48  ;;  %v84_v53 = vld [vmem:[%s10757_s0 + $0xe0] sm:$0xff]  ;;  %v82_v54 = vld [vmem:[%s10757_s0 + $0xd0] sm:$0xff]  ;;  %5739 = vmatpush1.bf16.msra.mxu0 %v7335_v42  ;;  %v139_v58 = vld [vmem:[%s10760_s3 + $0x48] sm:$0xff] }
  0x35   :  { %10821 = vst [vmem:[#allocation20_spill] sm:$0xff] %v7359_v50  ;;  %209 = vperm.xlu1 %6263, %v137_v44   ;;  %v7373_v55 = vpack.c.bf16 %v84_v53, %v80_v52  ;;  %v86_v56 = vld [vmem:[%s10757_s0 + $0xf0] sm:$0xff]  ;;  %5755 = vmatpush1.bf16.msra.mxu1 %v7337_v43  ;;  %v138_v59 = vld [vmem:[%s10760_s3 + $0x40] sm:$0xff]  ;;  %v141_v61 = vld [vmem:[%s10760_s3 + $0x58] sm:$0xff]  ;;  %v1345_v52 = vlaneseq }
  0x36   :  { %10822 = vst [vmem:[#allocation21_spill] sm:$0xff] %v7361_v51  ;;  %204 = vperm.xlu0 %6262, %v136_v45   ;;  %v7379_v57 = vpack.c.bf16 %v86_v56, %v82_v54  ;;  %5741 = vmatprep.subr.bf16.mxu0 %v7359_v50  ;;  %v88_v60 = vld [vmem:[%s10759_s2] sm:$0xff]  ;;  %v140_v62 = vld [vmem:[%s10760_s3 + $0x50] sm:$0xff]  ;;  %v89_v63 = vld [vmem:[%s10759_s2 + $0x8] sm:$0xff] }
  0x37   :  { %10823 = vst [vmem:[#allocation22_spill] sm:$0xff] %v7373_v55  ;;  %5757 = vmatprep.subr.bf16.mxu1 %v7361_v51  ;;  %v143_v0 = vld [vmem:[%s10760_s3 + $0x68] sm:$0xff]  ;;  %v142_v2 = vld [vmem:[%s10760_s3 + $0x60] sm:$0xff]  ;;  %v90_v3 = vld [vmem:[%s10759_s2 + $0x10] sm:$0xff] }
  0x38   :  { %10824 = vst [vmem:[#allocation23_spill] sm:$0xff] %v7379_v57  ;;  %5743 = vmatpush1.bf16.msra.mxu0 %v7373_v55  ;;  %v145_v4 = vld [vmem:[%s10760_s3 + $0x78] sm:$0xff]  ;;  %v144_v5 = vld [vmem:[%s10760_s3 + $0x70] sm:$0xff]  ;;  %v147_v7 = vld [vmem:[%s10760_s3 + $0x88] sm:$0xff] }
  0x39   :  { %219 = vperm.xlu1 %6263, %v139_v58   ;;  %5759 = vmatpush1.bf16.msra.mxu1 %v7379_v57  ;;  %v91_v6 = vld [vmem:[%s10759_s2 + $0x18] sm:$0xff]  ;;  %v146_v10 = vld [vmem:[%s10760_s3 + $0x80] sm:$0xff]  ;;  %v148_v14 = vld [vmem:[%s10760_s3 + $0x90] sm:$0xff]  ;;  %v1346_v58 = vshrl.u32 %v1345_v52, 7 }
  0x3a   :  { %214 = vperm.xlu0 %6262, %v138_v59   ;;  %v92_v11 = vld [vmem:[%s10759_s2 + $0x20] sm:$0xff]  ;;  %v149_v12 = vld [vmem:[%s10760_s3 + $0x98] sm:$0xff]  ;;  %v93_v15 = vld [vmem:[%s10759_s2 + $0x28] sm:$0xff] }
  0x3b   :  { %5536 = vmatmul.mubr.msk.f32.vlgmr.msra.gmra.mrb[0].mxu0 %vm382_vm0, %v88_v60  ;;  %v151_v16 = vld [vmem:[%s10760_s3 + $0xa8] sm:$0xff]  ;;  %v150_v18 = vld [vmem:[%s10760_s3 + $0xa0] sm:$0xff]  ;;  %v94_v19 = vld [vmem:[%s10759_s2 + $0x30] sm:$0xff] }
  0x3c   :  { %5578 = vmatmul.mubr.msk.f32.vlgmr.msra.gmra.mrb[0].mxu1 %vm382_vm0, %v88_v60  ;;  %579 = vmatprep.mubr.f32.mxu0 %v10766_v1  ;;  %v153_v20 = vld [vmem:[%s10760_s3 + $0xb8] sm:$0xff]  ;;  %v152_v22 = vld [vmem:[%s10760_s3 + $0xb0] sm:$0xff]  ;;  %v155_v24 = vld [vmem:[%s10760_s3 + $0xc8] sm:$0xff] }
  0x3d   :  { %229 = vperm.xlu1 %6263, %v141_v61   ;;  %896 = vmatprep.mubr.f32.mxu1 %v10766_v1  ;;  %v95_v23 = vld [vmem:[%s10759_s2 + $0x38] sm:$0xff]  ;;  %v154_v27 = vld [vmem:[%s10760_s3 + $0xc0] sm:$0xff]  ;;  %v156_v31 = vld [vmem:[%s10760_s3 + $0xd0] sm:$0xff] }
  0x3e   :  { %224 = vperm.xlu0 %6262, %v140_v62   ;;  %v96_v28 = vld [vmem:[%s10759_s2 + $0x40] sm:$0xff]  ;;  %v157_v29 = vld [vmem:[%s10760_s3 + $0xd8] sm:$0xff]  ;;  %v97_v32 = vld [vmem:[%s10759_s2 + $0x48] sm:$0xff]  ;;  %v7591_v62 = vsub.s32 1, %v1346_v58 }
  0x3f   :  { %5537 = vmatmul.mubr.msk.f32.gmra.mrb[2].mxu0 %vm382_vm0, %v89_v63  ;;  %v159_v33 = vld [vmem:[%s10760_s3 + $0xe8] sm:$0xff]  ;;  %v158_v35 = vld [vmem:[%s10760_s3 + $0xe0] sm:$0xff]  ;;  %v98_v36 = vld [vmem:[%s10759_s2 + $0x50] sm:$0xff] }
  0x40   :  { %5579 = vmatmul.mubr.msk.f32.gmra.mrb[2].mxu1 %vm382_vm0, %v89_v63  ;;  %585 = vmatprep.mubr.f32.mxu0 %v10766_v1  ;;  %v161_v37 = vld [vmem:[%s10760_s3 + $0xf8] sm:$0xff]  ;;  %v160_v39 = vld [vmem:[%s10760_s3 + $0xf0] sm:$0xff]  ;;  %v163_v41 = vld [vmem:[%s10760_s3 + $0x108] sm:$0xff] }
  0x41   :  { %239 = vperm.xlu1 %6263, %v143_v0   ;;  %902 = vmatprep.mubr.f32.mxu1 %v10766_v1  ;;  %v99_v40 = vld [vmem:[%s10759_s2 + $0x58] sm:$0xff]  ;;  %v162_v44 = vld [vmem:[%s10760_s3 + $0x100] sm:$0xff]  ;;  %v164_v47 = vld [vmem:[%s10760_s3 + $0x110] sm:$0xff] }
  0x42   :  { %234 = vperm.xlu0 %6262, %v142_v2   ;;  %v100_v45 = vld [vmem:[%s10759_s2 + $0x60] sm:$0xff]  ;;  %v165_v46 = vld [vmem:[%s10760_s3 + $0x118] sm:$0xff]  ;;  %v101_v48 = vld [vmem:[%s10759_s2 + $0x68] sm:$0xff]  ;;  %v7597_v2 = vsub.s32 0, %v1346_v58 }
  0x43   :  { %5538 = vmatmul.mubr.msk.f32.gmra.mrb[4].mxu0 %vm382_vm0, %v90_v3  ;;  %v167_v49 = vld [vmem:[%s10760_s3 + $0x128] sm:$0xff]  ;;  %v166_v53 = vld [vmem:[%s10760_s3 + $0x120] sm:$0xff]  ;;  %v102_v54 = vld [vmem:[%s10759_s2 + $0x70] sm:$0xff] }
  0x44   :  { %5580 = vmatmul.mubr.msk.f32.gmra.mrb[4].mxu1 %vm382_vm0, %v90_v3  ;;  %591 = vmatprep.mubr.f32.mxu0 %v10766_v1  ;;  %v169_v56 = vld [vmem:[%s10760_s3 + $0x138] sm:$0xff]  ;;  %v168_v59 = vld [vmem:[%s10760_s3 + $0x130] sm:$0xff]  ;;  %v171_v61 = vld [vmem:[%s10760_s3 + $0x148] sm:$0xff] }
  0x45   :  { %249 = vperm.xlu1 %6263, %v145_v4   ;;  %908 = vmatprep.mubr.f32.mxu1 %v10766_v1  ;;  %v103_v60 = vld [vmem:[%s10759_s2 + $0x78] sm:$0xff]  ;;  %v170_v63 = vld [vmem:[%s10760_s3 + $0x140] sm:$0xff]  ;;  %v1412_v0 = vld [vmem:[#allocation4 + $0x4] sm:$0xf] }
  0x46   :  { %244 = vperm.xlu0 %6262, %v144_v5   ;;  %v104_v3 = vld [vmem:[%s10759_s2 + $0x80] sm:$0xff]  ;;  %v1421_v4 = vrot.slane %v1412_v0, %v7591_v62  ;;  %v7606_v5 = vsub.s32 3, %v1346_v58  ;;  %v121_v52 = vld [vmem:[%s10759_s2 + $0x108] sm:$0xff]  ;;  %v1405_v50 = vld [vmem:[%s10758_s1 + $0x70] sm:$0xff] }
  0x47   :  { %5539 = vmatmul.mubr.msk.f32.gmra.mrb[6].mxu0 %vm382_vm0, %v91_v6  ;;  %v1315_v55 = vld [vmem:[%s10758_s1 + $0x28] sm:$0xff]  ;;  %v1403_v51 = vld [vmem:[%s10758_s1 + $0x20] sm:$0xff]  ;;  %v1339_v34 = vld [vmem:[%s10758_s1 + $0x118] sm:$0xff] }
  0x48   :  { %5581 = vmatmul.mubr.msk.f32.gmra.mrb[6].mxu1 %vm382_vm0, %v91_v6  ;;  %597 = vmatprep.mubr.f32.mxu0 %v10766_v1  ;;  %v1417_v6 = vrot.slane %v1412_v0, %v7597_v2  ;;  %v1331_v38 = vld [vmem:[%s10758_s1 + $0xc8] sm:$0xff]  ;;  %v1409_v30 = vld [vmem:[%s10758_s1 + $0x110] sm:$0xff] }
  0x49   :  { %259 = vperm.xlu1 %6263, %v147_v7   ;;  %914 = vmatprep.mubr.f32.mxu1 %v10766_v1  ;;  %v7610_v7 = vsub.s32 2, %v1346_v58 }
  0x4a   :  { %254 = vperm.xlu0 %6262, %v146_v10   ;;  %v105_v10 = vld [vmem:[%s10759_s2 + $0x88] sm:$0xff] }
  0x4b   :  { %5540 = vmatmul.mubr.msk.f32.gmra.mrb[8].mxu0 %vm382_vm0, %v92_v11 }
  0x4c   :  { %5582 = vmatmul.mubr.msk.f32.gmra.mrb[8].mxu1 %vm382_vm0, %v92_v11  ;;  %603 = vmatprep.mubr.f32.mxu0 %v10766_v1  ;;  %v1429_v11 = vrot.slane %v1412_v0, %v7606_v5 }
  0x4d   :  { %269 = vperm.xlu1 %6263, %v149_v12   ;;  %920 = vmatprep.mubr.f32.mxu1 %v10766_v1  ;;  %v1425_v12 = vrot.slane %v1412_v0, %v7610_v7  ;;  %v124_v0 = vld [vmem:[%s10759_s2 + $0x120] sm:$0xff] }
  0x4e   :  { %264 = vperm.xlu0 %6262, %v148_v14   ;;  %v106_v14 = vld [vmem:[%s10759_s2 + $0x90] sm:$0xff] }
  0x4f   :  { %5541 = vmatmul.mubr.msk.f32.gmra.mrb[10].mxu0 %vm382_vm0, %v93_v15 }
  0x50   :  { %5583 = vmatmul.mubr.msk.f32.gmra.mrb[10].mxu1 %vm382_vm0, %v93_v15  ;;  %609 = vmatprep.mubr.f32.mxu0 %v10766_v1  ;;  %v107_v15 = vld [vmem:[%s10759_s2 + $0x98] sm:$0xff] }
  0x51   :  { %279 = vperm.xlu1 %6263, %v151_v16   ;;  %926 = vmatprep.mubr.f32.mxu1 %v10766_v1  ;;  %v108_v16 = vld [vmem:[%s10759_s2 + $0xa0] sm:$0xff] }
  0x52   :  { %274 = vperm.xlu0 %6262, %v150_v18   ;;  %v109_v18 = vld [vmem:[%s10759_s2 + $0xa8] sm:$0xff] }
  0x53   :  { %5542 = vmatmul.mubr.msk.f32.gmra.mrb[12].mxu0 %vm382_vm0, %v94_v19 }
  0x54   :  { %5584 = vmatmul.mubr.msk.f32.gmra.mrb[12].mxu1 %vm382_vm0, %v94_v19  ;;  %615 = vmatprep.mubr.f32.mxu0 %v10766_v1  ;;  %v110_v19 = vld [vmem:[%s10759_s2 + $0xb0] sm:$0xff] }
  0x55   :  { %289 = vperm.xlu1 %6263, %v153_v20   ;;  %932 = vmatprep.mubr.f32.mxu1 %v10766_v1  ;;  %v111_v20 = vld [vmem:[%s10759_s2 + $0xb8] sm:$0xff] }
  0x56   :  { %284 = vperm.xlu0 %6262, %v152_v22   ;;  %v112_v22 = vld [vmem:[%s10759_s2 + $0xc0] sm:$0xff] }
  0x57   :  { %5543 = vmatmul.mubr.msk.f32.gmra.mrb[14].mxu0 %vm382_vm0, %v95_v23 }
  0x58   :  { %5585 = vmatmul.mubr.msk.f32.gmra.mrb[14].mxu1 %vm382_vm0, %v95_v23  ;;  %621 = vmatprep.mubr.f32.mxu0 %v10766_v1  ;;  %v113_v23 = vld [vmem:[%s10759_s2 + $0xc8] sm:$0xff] }
  0x59   :  { %299 = vperm.xlu1 %6263, %v155_v24   ;;  %938 = vmatprep.mubr.f32.mxu1 %v10766_v1  ;;  %v114_v24 = vld [vmem:[%s10759_s2 + $0xd0] sm:$0xff] }
  0x5a   :  { %294 = vperm.xlu0 %6262, %v154_v27   ;;  %v115_v27 = vld [vmem:[%s10759_s2 + $0xd8] sm:$0xff] }
  0x5b   :  { %5544 = vmatmul.mubr.msk.f32.gmra.mrb[16].mxu0 %vm382_vm0, %v96_v28 }
  0x5c   :  { %5586 = vmatmul.mubr.msk.f32.gmra.mrb[16].mxu1 %vm382_vm0, %v96_v28  ;;  %627 = vmatprep.mubr.f32.mxu0 %v10766_v1 }
  0x5d   :  { %309 = vperm.xlu1 %6263, %v157_v29   ;;  %944 = vmatprep.mubr.f32.mxu1 %v10766_v1 }
  0x5e   :  { %304 = vperm.xlu0 %6262, %v156_v31   ;;  %v116_v31 = vld [vmem:[%s10759_s2 + $0xe0] sm:$0xff] }
  0x5f   :  { %5545 = vmatmul.mubr.msk.f32.gmra.mrb[18].mxu0 %vm382_vm0, %v97_v32 }
  0x60   :  { %5587 = vmatmul.mubr.msk.f32.gmra.mrb[18].mxu1 %vm382_vm0, %v97_v32  ;;  %633 = vmatprep.mubr.f32.mxu0 %v10766_v1 }
  0x61   :  { %319 = vperm.xlu1 %6263, %v159_v33   ;;  %950 = vmatprep.mubr.f32.mxu1 %v10766_v1 }
  0x62   :  { %314 = vperm.xlu0 %6262, %v158_v35   ;;  %v117_v35 = vld [vmem:[%s10759_s2 + $0xe8] sm:$0xff] }
  0x63   :  { %5546 = vmatmul.mubr.msk.f32.gmra.mrb[20].mxu0 %vm382_vm0, %v98_v36 }
  0x64   :  { %5588 = vmatmul.mubr.msk.f32.gmra.mrb[20].mxu1 %vm382_vm0, %v98_v36  ;;  %639 = vmatprep.mubr.f32.mxu0 %v10766_v1 }
  0x65   :  { %329 = vperm.xlu1 %6263, %v161_v37   ;;  %956 = vmatprep.mubr.f32.mxu1 %v10766_v1 }
  0x66   :  { %324 = vperm.xlu0 %6262, %v160_v39   ;;  %v118_v39 = vld [vmem:[%s10759_s2 + $0xf0] sm:$0xff] }
  0x67   :  { %5547 = vmatmul.mubr.msk.f32.gmra.mrb[22].mxu0 %vm382_vm0, %v99_v40 }
  0x68   :  { %5589 = vmatmul.mubr.msk.f32.gmra.mrb[22].mxu1 %vm382_vm0, %v99_v40  ;;  %645 = vmatprep.mubr.f32.mxu0 %v10766_v1 }
  0x69   :  { %339 = vperm.xlu1 %6263, %v163_v41   ;;  %962 = vmatprep.mubr.f32.mxu1 %v10766_v1 }
  0x6a   :  { %334 = vperm.xlu0 %6262, %v162_v44   ;;  %v119_v44 = vld [vmem:[%s10759_s2 + $0xf8] sm:$0xff] }
  0x6b   :  { %5548 = vmatmul.mubr.msk.f32.gmra.mrb[24].mxu0 %vm382_vm0, %v100_v45 }
  0x6c   :  { %5590 = vmatmul.mubr.msk.f32.gmra.mrb[24].mxu1 %vm382_vm0, %v100_v45  ;;  %651 = vmatprep.mubr.f32.mxu0 %v10766_v1 }
  0x6d   :  { %349 = vperm.xlu1 %6263, %v165_v46   ;;  %968 = vmatprep.mubr.f32.mxu1 %v10766_v1 }
  0x6e   :  { %344 = vperm.xlu0 %6262, %v164_v47   ;;  %v120_v47 = vld [vmem:[%s10759_s2 + $0x100] sm:$0xff] }
  0x6f   :  { %5549 = vmatmul.mubr.msk.f32.gmra.mrb[26].mxu0 %vm382_vm0, %v101_v48 }
  0x70   :  { %5591 = vmatmul.mubr.msk.f32.gmra.mrb[26].mxu1 %vm382_vm0, %v101_v48  ;;  %657 = vmatprep.mubr.f32.mxu0 %v10766_v1 }
  0x71   :  { %359 = vperm.xlu1 %6263, %v167_v49   ;;  %974 = vmatprep.mubr.f32.mxu1 %v10766_v1 }
  0x72   :  { %354 = vperm.xlu0 %6262, %v166_v53  }
  0x73   :  { %5550 = vmatmul.mubr.msk.f32.gmra.mrb[28].mxu0 %vm382_vm0, %v102_v54 }
  0x74   :  { %5592 = vmatmul.mubr.msk.f32.gmra.mrb[28].mxu1 %vm382_vm0, %v102_v54  ;;  %663 = vmatprep.mubr.f32.mxu0 %v10766_v1 }
  0x75   :  { %369 = vperm.xlu1 %6263, %v169_v56   ;;  %980 = vmatprep.mubr.f32.mxu1 %v10766_v1  ;;  %v122_v56 = vld [vmem:[%s10759_s2 + $0x110] sm:$0xff] }
  0x76   :  { %364 = vperm.xlu0 %6262, %v168_v59  }
  0x77   :  { %5551 = vmatmul.mubr.msk.f32.gmra.mrb[30].mxu0 %vm382_vm0, %v103_v60 }
  0x78   :  { %5593 = vmatmul.mubr.msk.f32.gmra.mrb[30].mxu1 %vm382_vm0, %v103_v60  ;;  %669 = vmatprep.mubr.f32.mxu0 %v10766_v1  ;;  %v123_v60 = vld [vmem:[%s10759_s2 + $0x118] sm:$0xff] }
  0x79   :  { %379 = vperm.xlu1 %6263, %v171_v61   ;;  %986 = vmatprep.mubr.f32.mxu1 %v10766_v1 }
  0x7a   :  { %374 = vperm.xlu0 %6262, %v170_v63  }
  0x7b   :  { %5552 = vmatmul.mubr.msk.f32.gmra.mrb[32].mxu0 %vm382_vm0, %v104_v3 }
  0x7c   :  { %5594 = vmatmul.mubr.msk.f32.gmra.mrb[32].mxu1 %vm382_vm0, %v104_v3  ;;  %675 = vmatprep.mubr.f32.mxu0 %v10766_v1 }
  0x7d   :  { %992 = vmatprep.mubr.f32.mxu1 %v10766_v1  ;;  %1432 = vrot.lane.b32.xlu1 %v1421_v4, %s7132_s20 }
  0x7e   :  { %1430 = vrot.lane.b32.xlu0 %v1417_v6, %s7132_s20  ;;  %v125_v6 = vld [vmem:[%s10759_s2 + $0x128] sm:$0xff] }
  0x7f   :  { %5553 = vmatmul.mubr.msk.f32.gmra.mrb[34].mxu0 %vm382_vm0, %v105_v10 }
  0x80   :  { %5595 = vmatmul.mubr.msk.f32.gmra.mrb[34].mxu1 %vm382_vm0, %v105_v10  ;;  %681 = vmatprep.mubr.f32.mxu0 %v10766_v1 }
  0x81   :  { %998 = vmatprep.mubr.f32.mxu1 %v10766_v1  ;;  %1436 = vrot.lane.b32.xlu1 %v1429_v11, %s7132_s20 }
  0x82   :  { %1434 = vrot.lane.b32.xlu0 %v1425_v12, %s7132_s20  ;;  %v126_v12 = vld [vmem:[%s10759_s2 + $0x130] sm:$0xff] }
  0x83   :  { %5554 = vmatmul.mubr.msk.f32.gmra.mrb[36].mxu0 %vm382_vm0, %v106_v14 }
  0x84   :  { %5596 = vmatmul.mubr.msk.f32.gmra.mrb[36].mxu1 %vm382_vm0, %v106_v14  ;;  %687 = vmatprep.mubr.f32.mxu0 %v10766_v1 }
  0x85   :  { %1004 = vmatprep.mubr.f32.mxu1 %v10766_v1 }
  0x87   :  { %5555 = vmatmul.mubr.msk.f32.gmra.mrb[38].mxu0 %vm382_vm0, %v107_v15 }
  0x88   :  { %5597 = vmatmul.mubr.msk.f32.gmra.mrb[38].mxu1 %vm382_vm0, %v107_v15  ;;  %693 = vmatprep.mubr.f32.mxu0 %v10766_v1 }
  0x89   :  { %1010 = vmatprep.mubr.f32.mxu1 %v10766_v1 }
  0x8b   :  { %5556 = vmatmul.mubr.msk.f32.gmra.mrb[40].mxu0 %vm382_vm0, %v108_v16 }
  0x8c   :  { %5598 = vmatmul.mubr.msk.f32.gmra.mrb[40].mxu1 %vm382_vm0, %v108_v16  ;;  %699 = vmatprep.mubr.f32.mxu0 %v10766_v1  ;;  %v127_v16 = vld [vmem:[%s10759_s2 + $0x138] sm:$0xff] }
  0x8d   :  { %1016 = vmatprep.mubr.f32.mxu1 %v10766_v1 }
  0x8f   :  { %5557 = vmatmul.mubr.msk.f32.gmra.mrb[42].mxu0 %vm382_vm0, %v109_v18 }
  0x90   :  { %5599 = vmatmul.mubr.msk.f32.gmra.mrb[42].mxu1 %vm382_vm0, %v109_v18  ;;  %705 = vmatprep.mubr.f32.mxu0 %v10766_v1 }
  0x91   :  { %1022 = vmatprep.mubr.f32.mxu1 %v10766_v1 }
  0x93   :  { %5558 = vmatmul.mubr.msk.f32.gmra.mrb[44].mxu0 %vm382_vm0, %v110_v19 }
  0x94   :  { %5600 = vmatmul.mubr.msk.f32.gmra.mrb[44].mxu1 %vm382_vm0, %v110_v19  ;;  %711 = vmatprep.mubr.f32.mxu0 %v10766_v1 }
  0x95   :  { %1028 = vmatprep.mubr.f32.mxu1 %v10766_v1 }
  0x97   :  { %5559 = vmatmul.mubr.msk.f32.gmra.mrb[46].mxu0 %vm382_vm0, %v111_v20 }
  0x98   :  { %5601 = vmatmul.mubr.msk.f32.gmra.mrb[46].mxu1 %vm382_vm0, %v111_v20  ;;  %717 = vmatprep.mubr.f32.mxu0 %v10766_v1  ;;  %v128_v20 = vld [vmem:[%s10759_s2 + $0x140] sm:$0xff] }
  0x99   :  { %1034 = vmatprep.mubr.f32.mxu1 %v10766_v1 }
  0x9b   :  { %5560 = vmatmul.mubr.msk.f32.gmra.mrb[48].mxu0 %vm382_vm0, %v112_v22 }
  0x9c   :  { %5602 = vmatmul.mubr.msk.f32.gmra.mrb[48].mxu1 %vm382_vm0, %v112_v22  ;;  %723 = vmatprep.mubr.f32.mxu0 %v10766_v1 }
  0x9d   :  { %1040 = vmatprep.mubr.f32.mxu1 %v10766_v1 }
  0x9f   :  { %5561 = vmatmul.mubr.msk.f32.gmra.mrb[50].mxu0 %vm382_vm0, %v113_v23 }
  0xa0   :  { %5603 = vmatmul.mubr.msk.f32.gmra.mrb[50].mxu1 %vm382_vm0, %v113_v23  ;;  %729 = vmatprep.mubr.f32.mxu0 %v10766_v1 }
  0xa1   :  { %1046 = vmatprep.mubr.f32.mxu1 %v10766_v1 }
  0xa3   :  { %5562 = vmatmul.mubr.msk.f32.gmra.mrb[52].mxu0 %vm382_vm0, %v114_v24 }
  0xa4   :  { %5604 = vmatmul.mubr.msk.f32.gmra.mrb[52].mxu1 %vm382_vm0, %v114_v24  ;;  %735 = vmatprep.mubr.f32.mxu0 %v10766_v1  ;;  %v129_v24 = vld [vmem:[%s10759_s2 + $0x148] sm:$0xff] }
  0xa5   :  { %1052 = vmatprep.mubr.f32.mxu1 %v10766_v1 }
  0xa7   :  { %5563 = vmatmul.mubr.msk.f32.gmra.mrb[54].mxu0 %vm382_vm0, %v115_v27 }
  0xa8   :  { %v7692_v28 = vpop.permute.xlu1 %184  ;;  %v7694_v29 = vpop.permute.xlu0 %174  ;;  %5605 = vmatmul.mubr.msk.f32.gmra.mrb[54].mxu1 %vm382_vm0, %v115_v27  ;;  %741 = vmatprep.mubr.f32.mxu0 %v10766_v1 }
  0xa9   :  { %1058 = vmatprep.mubr.f32.mxu1 %v10766_v1 }
  0xab   :  { %5564 = vmatmul.mubr.msk.f32.gmra.mrb[56].mxu0 %vm382_vm0, %v116_v31 }
  0xac   :  { %v7703_v32 = vpop.permute.xlu1 %189  ;;  %5606 = vmatmul.mubr.msk.f32.gmra.mrb[56].mxu1 %vm382_vm0, %v116_v31  ;;  %747 = vmatprep.mubr.f32.mxu0 %v10766_v1 }
  0xad   :  { %v7706_v33 = vpop.permute.xlu0 %179  ;;  %1064 = vmatprep.mubr.f32.mxu1 %v10766_v1 }
  0xaf   :  { %5565 = vmatmul.mubr.msk.f32.gmra.mrb[58].mxu0 %vm382_vm0, %v117_v35 }
  0xb0   :  { %v7714_v36 = vpop.permute.xlu1 %199  ;;  %5607 = vmatmul.mubr.msk.f32.gmra.mrb[58].mxu1 %vm382_vm0, %v117_v35  ;;  %753 = vmatprep.mubr.f32.mxu0 %v10766_v1 }
  0xb1   :  { %v7717_v37 = vpop.permute.xlu0 %194  ;;  %1070 = vmatprep.mubr.f32.mxu1 %v10766_v1 }
  0xb3   :  { %5566 = vmatmul.mubr.msk.f32.gmra.mrb[60].mxu0 %vm382_vm0, %v118_v39 }
  0xb4   :  { %v7725_v40 = vpop.permute.xlu1 %209  ;;  %5608 = vmatmul.mubr.msk.f32.gmra.mrb[60].mxu1 %vm382_vm0, %v118_v39  ;;  %759 = vmatprep.mubr.f32.mxu0 %v10766_v1 }
  0xb5   :  { %v7728_v41 = vpop.permute.xlu0 %204  ;;  %1076 = vmatprep.mubr.f32.mxu1 %v10766_v1 }
  0xb7   :  { %5567 = vmatmul.mubr.msk.f32.gmra.mrb[62].mxu0 %vm382_vm0, %v119_v44 }
  0xb8   :  { %v7736_v45 = vpop.permute.xlu1 %219  ;;  %5609 = vmatmul.mubr.msk.f32.gmra.mrb[62].mxu1 %vm382_vm0, %v119_v44  ;;  %765 = vmatprep.mubr.f32.mxu0 %v10766_v1 }
  0xb9   :  { %v7739_v46 = vpop.permute.xlu0 %214  ;;  %1082 = vmatprep.mubr.f32.mxu1 %v10766_v1 }
  0xbb   :  { %5568 = vmatmul.mubr.msk.f32.gmra.mrb[64].mxu0 %vm382_vm0, %v120_v47 }
  0xbc   :  { %v7747_v48 = vpop.permute.xlu1 %229  ;;  %5610 = vmatmul.mubr.msk.f32.gmra.mrb[64].mxu1 %vm382_vm0, %v120_v47  ;;  %771 = vmatprep.mubr.f32.mxu0 %v10766_v1 }
  0xbd   :  { %v7750_v49 = vpop.permute.xlu0 %224  ;;  %1088 = vmatprep.mubr.f32.mxu1 %v10766_v1 }
  0xbf   :  { %5569 = vmatmul.mubr.msk.f32.gmra.mrb[66].mxu0 %vm382_vm0, %v121_v52 }
  0xc0   :  { %v7758_v53 = vpop.permute.xlu1 %239  ;;  %5611 = vmatmul.mubr.msk.f32.gmra.mrb[66].mxu1 %vm382_vm0, %v121_v52  ;;  %777 = vmatprep.mubr.f32.mxu0 %v10766_v1 }
  0xc1   :  { %v7761_v54 = vpop.permute.xlu0 %234  ;;  %1094 = vmatprep.mubr.f32.mxu1 %v10766_v1 }
  0xc3   :  { %5570 = vmatmul.mubr.msk.f32.gmra.mrb[68].mxu0 %vm382_vm0, %v122_v56 }
  0xc4   :  { %v7769_v58 = vpop.permute.xlu1 %249  ;;  %5612 = vmatmul.mubr.msk.f32.gmra.mrb[68].mxu1 %vm382_vm0, %v122_v56  ;;  %783 = vmatprep.mubr.f32.mxu0 %v10766_v1 }
  0xc5   :  { %v7772_v59 = vpop.permute.xlu0 %244  ;;  %1100 = vmatprep.mubr.f32.mxu1 %v10766_v1 }
  0xc7   :  { %5571 = vmatmul.mubr.msk.f32.gmra.mrb[70].mxu0 %vm382_vm0, %v123_v60 }
  0xc8   :  { %v7780_v61 = vpop.permute.xlu1 %259  ;;  %5613 = vmatmul.mubr.msk.f32.gmra.mrb[70].mxu1 %vm382_vm0, %v123_v60  ;;  %789 = vmatprep.mubr.f32.mxu0 %v10766_v1 }
  0xc9   :  { %v7783_v63 = vpop.permute.xlu0 %254  ;;  %1106 = vmatprep.mubr.f32.mxu1 %v10766_v1 }
  0xcb   :  { %5572 = vmatmul.mubr.msk.f32.gmra.mrb[72].mxu0 %vm382_vm0, %v124_v0 }
  0xcc   :  { %v7791_v3 = vpop.permute.xlu1 %269  ;;  %5614 = vmatmul.mubr.msk.f32.gmra.mrb[72].mxu1 %vm382_vm0, %v124_v0  ;;  %795 = vmatprep.mubr.f32.mxu0 %v10766_v1 }
  0xcd   :  { %v7794_v4 = vpop.permute.xlu0 %264  ;;  %1112 = vmatprep.mubr.f32.mxu1 %v10766_v1 }
  0xcf   :  { %5573 = vmatmul.mubr.msk.f32.gmra.mrb[74].mxu0 %vm382_vm0, %v125_v6 }
  0xd0   :  { %v7802_v10 = vpop.permute.xlu1 %279  ;;  %5615 = vmatmul.mubr.msk.f32.gmra.mrb[74].mxu1 %vm382_vm0, %v125_v6  ;;  %801 = vmatprep.mubr.f32.mxu0 %v10766_v1 }
  0xd1   :  { %v7805_v11 = vpop.permute.xlu0 %274  ;;  %1118 = vmatprep.mubr.f32.mxu1 %v10766_v1 }
  0xd3   :  { %5574 = vmatmul.mubr.msk.f32.gmra.mrb[76].mxu0 %vm382_vm0, %v126_v12 }
  0xd4   :  { %v7813_v14 = vpop.permute.xlu1 %289  ;;  %5616 = vmatmul.mubr.msk.f32.gmra.mrb[76].mxu1 %vm382_vm0, %v126_v12  ;;  %807 = vmatprep.mubr.f32.mxu0 %v10766_v1 }
  0xd5   :  { %v7816_v15 = vpop.permute.xlu0 %284  ;;  %1124 = vmatprep.mubr.f32.mxu1 %v10766_v1 }
  0xd7   :  { %5575 = vmatmul.mubr.msk.f32.gmra.mrb[78].mxu0 %vm382_vm0, %v127_v16 }
  0xd8   :  { %v7824_v18 = vpop.permute.xlu1 %299  ;;  %5617 = vmatmul.mubr.msk.f32.gmra.mrb[78].mxu1 %vm382_vm0, %v127_v16  ;;  %813 = vmatprep.mubr.f32.mxu0 %v10766_v1 }
  0xd9   :  { %v7827_v19 = vpop.permute.xlu0 %294  ;;  %1130 = vmatprep.mubr.f32.mxu1 %v10766_v1 }
  0xdb   :  { %5576 = vmatmul.mubr.msk.f32.gmra.mrb[80].mxu0 %vm382_vm0, %v128_v20 }
  0xdc   :  { %v7835_v22 = vpop.permute.xlu1 %309  ;;  %5618 = vmatmul.mubr.msk.f32.gmra.mrb[80].mxu1 %vm382_vm0, %v128_v20  ;;  %819 = vmatprep.mubr.f32.mxu0 %v10766_v1 }
  0xdd   :  { %v7838_v23 = vpop.permute.xlu0 %304  ;;  %1136 = vmatprep.mubr.f32.mxu1 %v10766_v1 }
  0xdf   :  { %5577 = vmatmul.mubr.msk.f32.gmra.mrb[82].mxu0 %vm382_vm0, %v129_v24 }
  0xe0   :  { %v7846_v27 = vpop.permute.xlu1 %319  ;;  %5619 = vmatmul.mubr.msk.f32.gmra.mrb[82].mxu1 %vm382_vm0, %v129_v24  ;;  %1761 = vmatprep.mubr.f32.mxu0 %v10766_v1 }
  0xe1   :  { %v7849_v31 = vpop.permute.xlu0 %314  ;;  %1862 = vmatprep.mubr.f32.mxu1 %v10766_v1  ;;  %v1323_v1 = vld [vmem:[%s10758_s1 + $0x78] sm:$0xff] }
  0xe4   :  { %v7853_v35 = vpop.permute.xlu1 %329 }
  0xe5   :  { %v7855_v39 = vpop.permute.xlu0 %324 }
  0xe8   :  { %v7857_v44 = vpop.permute.xlu1 %339 }
  0xe9   :  { %v7859_v47 = vpop.permute.xlu0 %334 }
  0xec   :  { %v7861_v52 = vpop.permute.xlu1 %349 }
  0xed   :  { %10825 = vst [vmem:[#allocation24_spill] sm:$0xff] %v7861_v52  ;;  %v7863_v56 = vpop.permute.xlu0 %344 }
  0xee   :  { %10826 = vst [vmem:[#allocation25_spill] sm:$0xff] %v7863_v56 }
  0xf0   :  { %v7865_v60 = vpop.permute.xlu1 %359 }
  0xf1   :  { %10827 = vst [vmem:[#allocation26_spill] sm:$0xff] %v7865_v60  ;;  %v7867_v0 = vpop.permute.xlu0 %354 }
  0xf2   :  { %10828 = vst [vmem:[#allocation27_spill] sm:$0xff] %v7867_v0 }
  0xf4   :  { %v7869_v6 = vpop.permute.xlu1 %369 }
  0xf5   :  { %10829 = vst [vmem:[#allocation28_spill] sm:$0xff] %v7869_v6  ;;  %v7871_v12 = vpop.permute.xlu0 %364 }
  0xf6   :  { %10830 = vst [vmem:[#allocation29_spill] sm:$0xff] %v7871_v12 }
  0xf8   :  { %v7873_v16 = vpop.permute.xlu1 %379 }
  0xf9   :  { %10831 = vst [vmem:[#allocation30_spill] sm:$0xff] %v7873_v16  ;;  %v7875_v20 = vpop.permute.xlu0 %374 }
  0xfa   :  { %10832 = vst [vmem:[#allocation31_spill] sm:$0xff] %v7875_v20 }
  0xfc   :  { %v1433_v24 = vpop.permute.xlu1 %1432 }
  0xfd   :  { %v7883_v57 = vpop.permute.xlu0 %1430 }
  0xfe   :  { %v1462_v42 = vmul.f32 %v7883_v57, %v1323_v1  ;;  %v1452_v43 = vmul.f32 %v7883_v57, %v1315_v55  ;;  %v1407_v1 = vld [vmem:[%s10758_s1 + $0xc0] sm:$0xff]  ;;  %v7911_v13 = vsel %vm1438_vm1, %v7883_v57, %v1433_v24  ;;  %v1482_v17 = vmul.f32 %v7883_v57, %v1339_v34 }
  0xff   :  { %v1472_v8 = vmul.f32 %v7883_v57, %v1331_v38 }
 0x100   :  { %v7899_v26 = vpop.permute.xlu1 %1436 }
 0x101   :  { %v1435_v21 = vpop.permute.xlu0 %1434  ;;  %v1461_v55 = vmul.f32 %v7899_v26, %v1405_v50  ;;  %v1451_v25 = vmul.f32 %v7899_v26, %v1403_v51  ;;  %v1481_v20 = vmul.f32 %v7899_v26, %v1409_v30  ;;  %v1471_v6 = vmul.f32 %v7899_v26, %v1407_v1  ;;  %v1311_v50 = vld [vmem:[%s10758_s1] sm:$0xff]  ;;  %v1312_v51 = vld [vmem:[%s10758_s1 + $0x8] sm:$0xff]  ;;  %v1314_v30 = vld [vmem:[%s10758_s1 + $0x18] sm:$0xff] }
 0x102   :  { %v7924_v12 = vsel %vm1438_vm1, %v1433_v24, %v1435_v21  ;;  %v7928_v34 = vsel %vm1438_vm1, %v1435_v21, %v7899_v26  ;;  %v1447_v38 = vmul.f32 %v7883_v57, %v1311_v50 }
 0x103   :  { %v6269_v9 = vpack.i.bf16 %v1462_v42, %v1461_v55  ;;  %v6264_v16 = vpack.i.bf16 %v1452_v43, %v1451_v25  ;;  %v1313_v25 = vld [vmem:[%s10758_s1 + $0x10] sm:$0xff]  ;;  %v1448_v42 = vmul.f32 %v7911_v13, %v1312_v51  ;;  %v6279_v43 = vpack.i.bf16 %v1482_v17, %v1481_v20  ;;  %v1318_v55 = vld [vmem:[%s10758_s1 + $0x40] sm:$0xff] }
 0x104   :  { %v6274_v21 = vpack.i.bf16 %v1472_v8, %v1471_v6  ;;  %v1449_v24 = vmul.f32 %v7924_v12, %v1313_v25  ;;  %v1450_v1 = vmul.f32 %v7928_v34, %v1314_v30  ;;  %v1316_v17 = vld [vmem:[%s10758_s1 + $0x30] sm:$0xff]  ;;  %v1455_v20 = vmul.f32 %v7928_v34, %v1318_v55  ;;  %v1320_v30 = vld [vmem:[%s10758_s1 + $0x58] sm:$0xff] }
 0x105   :  { %6270 = vrot.lane.b32.xlu1 %v6269_v9, %s7133_s15  ;;  %6265 = vrot.lane.b32.xlu0 %v6264_v16, %s7133_s15  ;;  %v1404_v9 = vld [vmem:[%s10758_s1 + $0x48] sm:$0xff]  ;;  %v1317_v16 = vld [vmem:[%s10758_s1 + $0x38] sm:$0xff]  ;;  %v6284_v8 = vpack.i.bf16 %v1448_v42, %v1447_v38 }
 0x106   :  { %v6289_v6 = vpack.i.bf16 %v1450_v1, %v1449_v24  ;;  %v1456_v50 = vmul.f32 %v7899_v26, %v1404_v9  ;;  %v1454_v51 = vmul.f32 %v7924_v12, %v1317_v16  ;;  %v1319_v25 = vld [vmem:[%s10758_s1 + $0x50] sm:$0xff]  ;;  %v1321_v38 = vld [vmem:[%s10758_s1 + $0x60] sm:$0xff]  ;;  %v1322_v42 = vld [vmem:[%s10758_s1 + $0x68] sm:$0xff]  ;;  %v1458_v24 = vmul.f32 %v7911_v13, %v1320_v30 }
 0x107   :  { %v1459_v16 = vmul.f32 %v7924_v12, %v1321_v38  ;;  %v1460_v60 = vmul.f32 %v7928_v34, %v1322_v42  ;;  %v1324_v38 = vld [vmem:[%s10758_s1 + $0x80] sm:$0xff] }
 0x108   :  { %v6299_v55 = vpack.i.bf16 %v1456_v50, %v1455_v20 }
 0x109   :  { %6280 = vrot.lane.b32.xlu1 %v6279_v43, %s7133_s15  ;;  %6275 = vrot.lane.b32.xlu0 %v6274_v21, %s7133_s15  ;;  %v1453_v43 = vmul.f32 %v7911_v13, %v1316_v17  ;;  %v1457_v21 = vmul.f32 %v7883_v57, %v1319_v25  ;;  %v1326_v17 = vld [vmem:[%s10758_s1 + $0x90] sm:$0xff] }
 0x10b   :  { %v6294_v9 = vpack.i.bf16 %v1454_v51, %v1453_v43  ;;  %v6304_v30 = vpack.i.bf16 %v1458_v24, %v1457_v21  ;;  %v1327_v43 = vld [vmem:[%s10758_s1 + $0xa0] sm:$0xff]  ;;  %v1328_v21 = vld [vmem:[%s10758_s1 + $0xa8] sm:$0xff] }
 0x10d   :  { %6285 = vrot.lane.b32.xlu0 %v6284_v8, %s7133_s15  ;;  %6290 = vrot.lane.b32.xlu1 %v6289_v6, %s7133_s15  ;;  %v1325_v8 = vld [vmem:[%s10758_s1 + $0x88] sm:$0xff]  ;;  %v1406_v6 = vld [vmem:[%s10758_s1 + $0x98] sm:$0xff] }
 0x10e   :  { %v575_v1 = vpop.f32.mrb[0].mxu0  ;;  %v1464_v42 = vmul.f32 %v7924_v12, %v1325_v8 }
 0x10f   :  { %v576_v0 = vadd.f32 %v575_v1, %v7694_v29  ;;  %v892_v52 = vpop.f32.mrb[0].mxu1  ;;  %v577_v56 = vpop.f32.mrb[1].mxu0 }
 0x110   :  { %v893_v20 = vadd.f32 %v892_v52, %v7694_v29  ;;  %v578_v50 = vadd.f32 %v577_v56, %v7694_v29  ;;  %v894_v51 = vpop.f32.mrb[1].mxu1  ;;  %v6309_v56 = vpack.i.bf16 %v1460_v60, %v1459_v16 }
 0x111   :  { %6300 = vrot.lane.b32.xlu0 %v6299_v55, %s7133_s15  ;;  %6295 = vrot.lane.b32.xlu1 %v6294_v9, %s7133_s15  ;;  %1143 = vst [vmem:[%s10764_s7] sm:$0xff] %v576_v0  ;;  %v895_v25 = vadd.f32 %v894_v51, %v7694_v29  ;;  %v1465_v0 = vmul.f32 %v7928_v34, %v1326_v17  ;;  %v1329_v55 = vld [vmem:[%s10758_s1 + $0xb0] sm:$0xff] }
 0x112   :  { %1145 = vst [vmem:[%s10764_s7 + $0x10] sm:$0xff] %v893_v20  ;;  %1144 = vst [vmem:[%s10764_s7 + $0x8] sm:$0xff] %v578_v50  ;;  %v581_v52 = vpop.f32.mrb[2].mxu0  ;;  %v1466_v29 = vmul.f32 %v7899_v26, %v1406_v6  ;;  %v1330_v9 = vld [vmem:[%s10758_s1 + $0xb8] sm:$0xff]  ;;  %v1463_v6 = vmul.f32 %v7911_v13, %v1324_v38  ;;  %v1467_v50 = vmul.f32 %v7883_v57, %v1327_v43  ;;  %v1408_v43 = vld [vmem:[%s10758_s1 + $0xe8] sm:$0xff] }
 0x113   :  { %1146 = vst [vmem:[%s10764_s7 + $0x18] sm:$0xff] %v895_v25  ;;  %v582_v60 = vadd.f32 %v581_v52, %v7706_v33  ;;  %v898_v24 = vpop.f32.mrb[2].mxu1  ;;  %v583_v1 = vpop.f32.mrb[3].mxu0  ;;  %v1468_v51 = vmul.f32 %v7911_v13, %v1328_v21  ;;  %v1469_v52 = vmul.f32 %v7924_v12, %v1329_v55 }
 0x114   :  { %v899_v16 = vadd.f32 %v898_v24, %v7706_v33  ;;  %v584_v8 = vadd.f32 %v583_v1, %v7706_v33  ;;  %v900_v17 = vpop.f32.mrb[3].mxu1  ;;  %v6319_v38 = vpack.i.bf16 %v1466_v29, %v1465_v0  ;;  %v1333_v29 = vld [vmem:[%s10758_s1 + $0xd8] sm:$0xff] }
 0x115   :  { %6310 = vrot.lane.b32.xlu0 %v6309_v56, %s7133_s15  ;;  %6305 = vrot.lane.b32.xlu1 %v6304_v30, %s7133_s15  ;;  %1147 = vst [vmem:[%s10764_s7 + $0x20] sm:$0xff] %v582_v60  ;;  %v901_v20 = vadd.f32 %v900_v17, %v7706_v33  ;;  %v6314_v30 = vpack.i.bf16 %v1464_v42, %v1463_v6  ;;  %v1334_v33 = vld [vmem:[%s10758_s1 + $0xe0] sm:$0xff] }
 0x116   :  { %1149 = vst [vmem:[%s10764_s7 + $0x30] sm:$0xff] %v899_v16  ;;  %1148 = vst [vmem:[%s10764_s7 + $0x28] sm:$0xff] %v584_v8  ;;  %v587_v25 = vpop.f32.mrb[4].mxu0  ;;  %v1470_v56 = vmul.f32 %v7928_v34, %v1330_v9  ;;  %v1475_v9 = vmul.f32 %v7928_v34, %v1334_v33  ;;  %v1476_v16 = vmul.f32 %v7899_v26, %v1408_v43  ;;  %v1332_v8 = vld [vmem:[%s10758_s1 + $0xd0] sm:$0xff]  ;;  %v1338_v43 = vld [vmem:[%s10758_s1 + $0x108] sm:$0xff] }
 0x117   :  { %1150 = vst [vmem:[%s10764_s7 + $0x38] sm:$0xff] %v901_v20  ;;  %v588_v21 = vadd.f32 %v587_v25, %v7692_v28  ;;  %v904_v42 = vpop.f32.mrb[4].mxu1  ;;  %v589_v0 = vpop.f32.mrb[5].mxu0  ;;  %v6324_v6 = vpack.i.bf16 %v1468_v51, %v1467_v50  ;;  %v1337_v25 = vld [vmem:[%s10758_s1 + $0x100] sm:$0xff]  ;;  %v1335_v50 = vld [vmem:[%s10758_s1 + $0xf0] sm:$0xff]  ;;  %v1336_v51 = vld [vmem:[%s10758_s1 + $0xf8] sm:$0xff] }
 0x118   :  { %v905_v60 = vadd.f32 %v904_v42, %v7692_v28  ;;  %v590_v24 = vadd.f32 %v589_v0, %v7692_v28  ;;  %v906_v1 = vpop.f32.mrb[5].mxu1  ;;  %v6329_v20 = vpack.i.bf16 %v1470_v56, %v1469_v52  ;;  %v1473_v42 = vmul.f32 %v7911_v13, %v1332_v8 }
 0x119   :  { %6315 = vrot.lane.b32.xlu0 %v6314_v30, %s7133_s15  ;;  %6320 = vrot.lane.b32.xlu1 %v6319_v38, %s7133_s15  ;;  %1151 = vst [vmem:[%s10764_s7 + $0x40] sm:$0xff] %v588_v21  ;;  %v907_v55 = vadd.f32 %v906_v1, %v7692_v28  ;;  %v1474_v28 = vmul.f32 %v7924_v12, %v1333_v29 }
 0x11a   :  { %1153 = vst [vmem:[%s10764_s7 + $0x50] sm:$0xff] %v905_v60  ;;  %1152 = vst [vmem:[%s10764_s7 + $0x48] sm:$0xff] %v590_v24  ;;  %v593_v17 = vpop.f32.mrb[6].mxu0  ;;  %v6339_v29 = vpack.i.bf16 %v1476_v16, %v1475_v9  ;;  %v1479_v60 = vmul.f32 %v7924_v12, %v1337_v25  ;;  %v1477_v8 = vmul.f32 %v7883_v57, %v1335_v50  ;;  %v1410_v57 = vld [vmem:[%s10758_s1 + $0x138] sm:$0xff] }
 0x11b   :  { %1154 = vst [vmem:[%s10764_s7 + $0x58] sm:$0xff] %v907_v55  ;;  %v594_v30 = vadd.f32 %v593_v17, %v7703_v32  ;;  %v910_v38 = vpop.f32.mrb[6].mxu1  ;;  %v595_v33 = vpop.f32.mrb[7].mxu0  ;;  %v6334_v1 = vpack.i.bf16 %v1474_v28, %v1473_v42  ;;  %v1480_v55 = vmul.f32 %v7928_v34, %v1338_v43  ;;  %v1478_v17 = vmul.f32 %v7911_v13, %v1336_v51 }
 0x11c   :  { %v911_v52 = vadd.f32 %v910_v38, %v7703_v32  ;;  %v596_v56 = vadd.f32 %v595_v33, %v7703_v32  ;;  %v912_v21 = vpop.f32.mrb[7].mxu1  ;;  %v1340_v33 = vld [vmem:[%s10758_s1 + $0x120] sm:$0xff] }
 0x11d   :  { %6325 = vrot.lane.b32.xlu0 %v6324_v6, %s7133_s15  ;;  %6330 = vrot.lane.b32.xlu1 %v6329_v20, %s7133_s15  ;;  %1155 = vst [vmem:[%s10764_s7 + $0x60] sm:$0xff] %v594_v30  ;;  %v913_v0 = vadd.f32 %v912_v21, %v7703_v32  ;;  %v1341_v32 = vld [vmem:[%s10758_s1 + $0x128] sm:$0xff]  ;;  %v6349_v51 = vpack.i.bf16 %v1480_v55, %v1479_v60 }
 0x11e   :  { %1157 = vst [vmem:[%s10764_s7 + $0x70] sm:$0xff] %v911_v52  ;;  %1156 = vst [vmem:[%s10764_s7 + $0x68] sm:$0xff] %v596_v56  ;;  %v599_v24 = vpop.f32.mrb[8].mxu0  ;;  %v1342_v20 = vld [vmem:[%s10758_s1 + $0x130] sm:$0xff]  ;;  %v1484_v43 = vmul.f32 %v7924_v12, %v1341_v32  ;;  %v6344_v52 = vpack.i.bf16 %v1478_v17, %v1477_v8 }
 0x11f   :  { %1158 = vst [vmem:[%s10764_s7 + $0x78] sm:$0xff] %v913_v0  ;;  %v600_v9 = vadd.f32 %v599_v24, %v7717_v37  ;;  %v916_v16 = vpop.f32.mrb[8].mxu1  ;;  %v601_v6 = vpop.f32.mrb[9].mxu0  ;;  %v1485_v56 = vmul.f32 %v7928_v34, %v1342_v20  ;;  %v1483_v34 = vmul.f32 %v7911_v13, %v1340_v33 }
 0x120   :  { %v917_v28 = vadd.f32 %v916_v16, %v7717_v37  ;;  %v602_v25 = vadd.f32 %v601_v6, %v7717_v37  ;;  %v918_v30 = vpop.f32.mrb[9].mxu1 }
 0x121   :  { %6340 = vrot.lane.b32.xlu0 %v6339_v29, %s7133_s15  ;;  %6335 = vrot.lane.b32.xlu1 %v6334_v1, %s7133_s15  ;;  %1159 = vst [vmem:[%s10764_s7 + $0x80] sm:$0xff] %v600_v9  ;;  %v919_v38 = vadd.f32 %v918_v30, %v7717_v37  ;;  %v1486_v37 = vmul.f32 %v7899_v26, %v1410_v57  ;;  %v2120_v26 = vld [vmem:[#allocation4 + $0x8] sm:$0xf] }
 0x122   :  { %1161 = vst [vmem:[%s10764_s7 + $0x90] sm:$0xff] %v917_v28  ;;  %1160 = vst [vmem:[%s10764_s7 + $0x88] sm:$0xff] %v602_v25  ;;  %v605_v50 = vpop.f32.mrb[10].mxu0  ;;  %v6354_v55 = vpack.i.bf16 %v1484_v43, %v1483_v34  ;;  %v2129_v20 = vrot.slane %v2120_v26, %v7591_v62  ;;  %v2133_v33 = vrot.slane %v2120_v26, %v7610_v7 }
 0x123   :  { %1162 = vst [vmem:[%s10764_s7 + $0x98] sm:$0xff] %v919_v38  ;;  %v606_v12 = vadd.f32 %v605_v50, %v7714_v36  ;;  %v922_v21 = vpop.f32.mrb[10].mxu1  ;;  %v607_v42 = vpop.f32.mrb[11].mxu0  ;;  %v6359_v8 = vpack.i.bf16 %v1486_v37, %v1485_v56 }
 0x124   :  { %v923_v0 = vadd.f32 %v922_v21, %v7714_v36  ;;  %v608_v29 = vadd.f32 %v607_v42, %v7714_v36  ;;  %v924_v24 = vpop.f32.mrb[11].mxu1 }
 0x125   :  { %6350 = vrot.lane.b32.xlu0 %v6349_v51, %s7133_s15  ;;  %6345 = vrot.lane.b32.xlu1 %v6344_v52, %s7133_s15  ;;  %1163 = vst [vmem:[%s10764_s7 + $0xa0] sm:$0xff] %v606_v12  ;;  %v925_v60 = vadd.f32 %v924_v24, %v7714_v36  ;;  %v2125_v36 = vrot.slane %v2120_v26, %v7597_v2 }
 0x126   :  { %1165 = vst [vmem:[%s10764_s7 + $0xb0] sm:$0xff] %v923_v0  ;;  %1164 = vst [vmem:[%s10764_s7 + $0xa8] sm:$0xff] %v608_v29  ;;  %v611_v1 = vpop.f32.mrb[12].mxu0  ;;  %v2137_v51 = vrot.slane %v2120_v26, %v7606_v5 }
 0x127   :  { %1166 = vst [vmem:[%s10764_s7 + $0xb8] sm:$0xff] %v925_v60  ;;  %v612_v13 = vadd.f32 %v611_v1, %v7728_v41  ;;  %v928_v17 = vpop.f32.mrb[12].mxu1  ;;  %v613_v32 = vpop.f32.mrb[13].mxu0 }
 0x128   :  { %v929_v9 = vadd.f32 %v928_v17, %v7728_v41  ;;  %v614_v16 = vadd.f32 %v613_v32, %v7728_v41  ;;  %v930_v6 = vpop.f32.mrb[13].mxu1 }
 0x129   :  { %6355 = vrot.lane.b32.xlu0 %v6354_v55, %s7133_s15  ;;  %6360 = vrot.lane.b32.xlu1 %v6359_v8, %s7133_s15  ;;  %1167 = vst [vmem:[%s10764_s7 + $0xc0] sm:$0xff] %v612_v13  ;;  %v931_v57 = vadd.f32 %v930_v6, %v7728_v41  ;;  %s7134_s15 = smov 2  }
 0x12a   :  { %1169 = vst [vmem:[%s10764_s7 + $0xd0] sm:$0xff] %v929_v9  ;;  %1168 = vst [vmem:[%s10764_s7 + $0xc8] sm:$0xff] %v614_v16  ;;  %v617_v28 = vpop.f32.mrb[14].mxu0 }
 0x12b   :  { %1170 = vst [vmem:[%s10764_s7 + $0xd8] sm:$0xff] %v931_v57  ;;  %v618_v25 = vadd.f32 %v617_v28, %v7725_v40  ;;  %v934_v30 = vpop.f32.mrb[14].mxu1  ;;  %v619_v38 = vpop.f32.mrb[15].mxu0 }
 0x12c   :  { %v935_v41 = vadd.f32 %v934_v30, %v7725_v40  ;;  %v620_v43 = vadd.f32 %v619_v38, %v7725_v40  ;;  %v936_v50 = vpop.f32.mrb[15].mxu1 }
 0x12d   :  { %2138 = vrot.lane.b32.xlu0 %v2125_v36, %s7134_s15  ;;  %2140 = vrot.lane.b32.xlu1 %v2129_v20, %s7134_s15  ;;  %1171 = vst [vmem:[%s10764_s7 + $0xe0] sm:$0xff] %v618_v25  ;;  %v937_v52 = vadd.f32 %v936_v50, %v7725_v40 }
 0x12e   :  { %1173 = vst [vmem:[%s10764_s7 + $0xf0] sm:$0xff] %v935_v41  ;;  %1172 = vst [vmem:[%s10764_s7 + $0xe8] sm:$0xff] %v620_v43  ;;  %v623_v56 = vpop.f32.mrb[16].mxu0 }
 0x12f   :  { %1174 = vst [vmem:[%s10764_s7 + $0xf8] sm:$0xff] %v937_v52  ;;  %v624_v37 = vadd.f32 %v623_v56, %v7739_v46  ;;  %v940_v12 = vpop.f32.mrb[16].mxu1  ;;  %v625_v21 = vpop.f32.mrb[17].mxu0 }
 0x130   :  { %v941_v42 = vadd.f32 %v940_v12, %v7739_v46  ;;  %v626_v40 = vadd.f32 %v625_v21, %v7739_v46  ;;  %v942_v0 = vpop.f32.mrb[17].mxu1 }
 0x131   :  { %2142 = vrot.lane.b32.xlu0 %v2133_v33, %s7134_s15  ;;  %2144 = vrot.lane.b32.xlu1 %v2137_v51, %s7134_s15  ;;  %1175 = vst [vmem:[%s10764_s7 + $0x100] sm:$0xff] %v624_v37  ;;  %v943_v29 = vadd.f32 %v942_v0, %v7739_v46 }
 0x132   :  { %1177 = vst [vmem:[%s10764_s7 + $0x110] sm:$0xff] %v941_v42  ;;  %1176 = vst [vmem:[%s10764_s7 + $0x108] sm:$0xff] %v626_v40  ;;  %v629_v24 = vpop.f32.mrb[18].mxu0 }
 0x133   :  { %1178 = vst [vmem:[%s10764_s7 + $0x118] sm:$0xff] %v943_v29  ;;  %v630_v34 = vadd.f32 %v629_v24, %v7736_v45  ;;  %v946_v26 = vpop.f32.mrb[18].mxu1  ;;  %v631_v60 = vpop.f32.mrb[19].mxu0 }
 0x134   :  { %v947_v1 = vadd.f32 %v946_v26, %v7736_v45  ;;  %v632_v46 = vadd.f32 %v631_v60, %v7736_v45  ;;  %v948_v55 = vpop.f32.mrb[19].mxu1 }
 0x135   :  { %1179 = vst [vmem:[%s10764_s7 + $0x120] sm:$0xff] %v630_v34  ;;  %v949_v8 = vadd.f32 %v948_v55, %v7736_v45 }
 0x136   :  { %1181 = vst [vmem:[%s10764_s7 + $0x130] sm:$0xff] %v947_v1  ;;  %1180 = vst [vmem:[%s10764_s7 + $0x128] sm:$0xff] %v632_v46  ;;  %v635_v13 = vpop.f32.mrb[20].mxu0 }
 0x137   :  { %1182 = vst [vmem:[%s10764_s7 + $0x138] sm:$0xff] %v949_v8  ;;  %v636_v17 = vadd.f32 %v635_v13, %v7750_v49  ;;  %v952_v32 = vpop.f32.mrb[20].mxu1  ;;  %v637_v36 = vpop.f32.mrb[21].mxu0 }
 0x138   :  { %v953_v9 = vadd.f32 %v952_v32, %v7750_v49  ;;  %v638_v45 = vadd.f32 %v637_v36, %v7750_v49  ;;  %v954_v16 = vpop.f32.mrb[21].mxu1 }
 0x139   :  { %1183 = vst [vmem:[%s10764_s7 + $0x140] sm:$0xff] %v636_v17  ;;  %v955_v6 = vadd.f32 %v954_v16, %v7750_v49 }
 0x13a   :  { %1185 = vst [vmem:[%s10764_s7 + $0x150] sm:$0xff] %v953_v9  ;;  %1184 = vst [vmem:[%s10764_s7 + $0x148] sm:$0xff] %v638_v45  ;;  %v641_v20 = vpop.f32.mrb[22].mxu0 }
 0x13b   :  { %1186 = vst [vmem:[%s10764_s7 + $0x158] sm:$0xff] %v955_v6  ;;  %v642_v57 = vadd.f32 %v641_v20, %v7747_v48  ;;  %v958_v28 = vpop.f32.mrb[22].mxu1  ;;  %v643_v25 = vpop.f32.mrb[23].mxu0 }
 0x13c   :  { %v959_v30 = vadd.f32 %v958_v28, %v7747_v48  ;;  %v644_v49 = vadd.f32 %v643_v25, %v7747_v48  ;;  %v960_v38 = vpop.f32.mrb[23].mxu1 }
 0x13d   :  { %1187 = vst [vmem:[%s10764_s7 + $0x160] sm:$0xff] %v642_v57  ;;  %v961_v33 = vadd.f32 %v960_v38, %v7747_v48 }
 0x13e   :  { %1189 = vst [vmem:[%s10764_s7 + $0x170] sm:$0xff] %v959_v30  ;;  %1188 = vst [vmem:[%s10764_s7 + $0x168] sm:$0xff] %v644_v49  ;;  %v647_v41 = vpop.f32.mrb[24].mxu0 }
 0x13f   :  { %1190 = vst [vmem:[%s10764_s7 + $0x178] sm:$0xff] %v961_v33  ;;  %v648_v43 = vadd.f32 %v647_v41, %v7761_v54  ;;  %v964_v50 = vpop.f32.mrb[24].mxu1  ;;  %v649_v51 = vpop.f32.mrb[25].mxu0 }
 0x140   :  { %v965_v52 = vadd.f32 %v964_v50, %v7761_v54  ;;  %v650_v48 = vadd.f32 %v649_v51, %v7761_v54  ;;  %v966_v56 = vpop.f32.mrb[25].mxu1 }
 0x141   :  { %1191 = vst [vmem:[%s10764_s7 + $0x180] sm:$0xff] %v648_v43  ;;  %v967_v37 = vadd.f32 %v966_v56, %v7761_v54 }
 0x142   :  { %1193 = vst [vmem:[%s10764_s7 + $0x190] sm:$0xff] %v965_v52  ;;  %1192 = vst [vmem:[%s10764_s7 + $0x188] sm:$0xff] %v650_v48  ;;  %v653_v12 = vpop.f32.mrb[26].mxu0 }
 0x143   :  { %1194 = vst [vmem:[%s10764_s7 + $0x198] sm:$0xff] %v967_v37  ;;  %v654_v21 = vadd.f32 %v653_v12, %v7758_v53  ;;  %v970_v42 = vpop.f32.mrb[26].mxu1  ;;  %v655_v40 = vpop.f32.mrb[27].mxu0 }
 0x144   :  { %v971_v0 = vadd.f32 %v970_v42, %v7758_v53  ;;  %v656_v54 = vadd.f32 %v655_v40, %v7758_v53  ;;  %v972_v29 = vpop.f32.mrb[27].mxu1 }
 0x145   :  { %1195 = vst [vmem:[%s10764_s7 + $0x1a0] sm:$0xff] %v654_v21  ;;  %v973_v24 = vadd.f32 %v972_v29, %v7758_v53 }
 0x146   :  { %1197 = vst [vmem:[%s10764_s7 + $0x1b0] sm:$0xff] %v971_v0  ;;  %1196 = vst [vmem:[%s10764_s7 + $0x1a8] sm:$0xff] %v656_v54  ;;  %v659_v34 = vpop.f32.mrb[28].mxu0 }
 0x147   :  { %1198 = vst [vmem:[%s10764_s7 + $0x1b8] sm:$0xff] %v973_v24  ;;  %v660_v26 = vadd.f32 %v659_v34, %v7772_v59  ;;  %v976_v60 = vpop.f32.mrb[28].mxu1  ;;  %v661_v1 = vpop.f32.mrb[29].mxu0 }
 0x148   :  { %v977_v46 = vadd.f32 %v976_v60, %v7772_v59  ;;  %v662_v53 = vadd.f32 %v661_v1, %v7772_v59  ;;  %v978_v55 = vpop.f32.mrb[29].mxu1 }
 0x149   :  { %1199 = vst [vmem:[%s10764_s7 + $0x1c0] sm:$0xff] %v660_v26  ;;  %v979_v8 = vadd.f32 %v978_v55, %v7772_v59 }
 0x14a   :  { %1201 = vst [vmem:[%s10764_s7 + $0x1d0] sm:$0xff] %v977_v46  ;;  %1200 = vst [vmem:[%s10764_s7 + $0x1c8] sm:$0xff] %v662_v53  ;;  %v665_v13 = vpop.f32.mrb[30].mxu0 }
 0x14b   :  { %1202 = vst [vmem:[%s10764_s7 + $0x1d8] sm:$0xff] %v979_v8  ;;  %v666_v17 = vadd.f32 %v665_v13, %v7769_v58  ;;  %v982_v32 = vpop.f32.mrb[30].mxu1  ;;  %v667_v36 = vpop.f32.mrb[31].mxu0 }
 0x14c   :  { %v983_v9 = vadd.f32 %v982_v32, %v7769_v58  ;;  %v668_v59 = vadd.f32 %v667_v36, %v7769_v58  ;;  %v984_v45 = vpop.f32.mrb[31].mxu1 }
 0x14d   :  { %1203 = vst [vmem:[%s10764_s7 + $0x1e0] sm:$0xff] %v666_v17  ;;  %v985_v16 = vadd.f32 %v984_v45, %v7769_v58 }
 0x14e   :  { %1205 = vst [vmem:[%s10764_s7 + $0x1f0] sm:$0xff] %v983_v9  ;;  %1204 = vst [vmem:[%s10764_s7 + $0x1e8] sm:$0xff] %v668_v59  ;;  %v671_v6 = vpop.f32.mrb[32].mxu0 }
 0x14f   :  { %1206 = vst [vmem:[%s10764_s7 + $0x1f8] sm:$0xff] %v985_v16  ;;  %v672_v20 = vadd.f32 %v671_v6, %v7783_v63  ;;  %v988_v57 = vpop.f32.mrb[32].mxu1  ;;  %v673_v28 = vpop.f32.mrb[33].mxu0 }
 0x150   :  { %v989_v25 = vadd.f32 %v988_v57, %v7783_v63  ;;  %v674_v58 = vadd.f32 %v673_v28, %v7783_v63  ;;  %v990_v30 = vpop.f32.mrb[33].mxu1 }
 0x151   :  { %1207 = vst [vmem:[%s10764_s7 + $0x200] sm:$0xff] %v672_v20  ;;  %v991_v49 = vadd.f32 %v990_v30, %v7783_v63 }
 0x152   :  { %1209 = vst [vmem:[%s10764_s7 + $0x210] sm:$0xff] %v989_v25  ;;  %1208 = vst [vmem:[%s10764_s7 + $0x208] sm:$0xff] %v674_v58  ;;  %v677_v38 = vpop.f32.mrb[34].mxu0 }
 0x153   :  { %1210 = vst [vmem:[%s10764_s7 + $0x218] sm:$0xff] %v991_v49  ;;  %v678_v33 = vadd.f32 %v677_v38, %v7780_v61  ;;  %v994_v41 = vpop.f32.mrb[34].mxu1  ;;  %v679_v43 = vpop.f32.mrb[35].mxu0 }
 0x154   :  { %v995_v50 = vadd.f32 %v994_v41, %v7780_v61  ;;  %v680_v63 = vadd.f32 %v679_v43, %v7780_v61  ;;  %v996_v51 = vpop.f32.mrb[35].mxu1 }
 0x155   :  { %1211 = vst [vmem:[%s10764_s7 + $0x220] sm:$0xff] %v678_v33  ;;  %v997_v52 = vadd.f32 %v996_v51, %v7780_v61 }
 0x156   :  { %1213 = vst [vmem:[%s10764_s7 + $0x230] sm:$0xff] %v995_v50  ;;  %1212 = vst [vmem:[%s10764_s7 + $0x228] sm:$0xff] %v680_v63  ;;  %v683_v48 = vpop.f32.mrb[36].mxu0 }
 0x157   :  { %1214 = vst [vmem:[%s10764_s7 + $0x238] sm:$0xff] %v997_v52  ;;  %v684_v56 = vadd.f32 %v683_v48, %v7794_v4  ;;  %v1000_v37 = vpop.f32.mrb[36].mxu1  ;;  %v685_v12 = vpop.f32.mrb[37].mxu0 }
 0x158   :  { %v1001_v21 = vadd.f32 %v1000_v37, %v7794_v4  ;;  %v686_v61 = vadd.f32 %v685_v12, %v7794_v4  ;;  %v1002_v42 = vpop.f32.mrb[37].mxu1 }
 0x159   :  { %1215 = vst [vmem:[%s10764_s7 + $0x240] sm:$0xff] %v684_v56  ;;  %v1003_v40 = vadd.f32 %v1002_v42, %v7794_v4 }
 0x15a   :  { %1217 = vst [vmem:[%s10764_s7 + $0x250] sm:$0xff] %v1001_v21  ;;  %1216 = vst [vmem:[%s10764_s7 + $0x248] sm:$0xff] %v686_v61  ;;  %v689_v0 = vpop.f32.mrb[38].mxu0 }
 0x15b   :  { %1218 = vst [vmem:[%s10764_s7 + $0x258] sm:$0xff] %v1003_v40  ;;  %v690_v54 = vadd.f32 %v689_v0, %v7791_v3  ;;  %v1006_v29 = vpop.f32.mrb[38].mxu1  ;;  %v691_v24 = vpop.f32.mrb[39].mxu0 }
 0x15c   :  { %v1007_v34 = vadd.f32 %v1006_v29, %v7791_v3  ;;  %v692_v4 = vadd.f32 %v691_v24, %v7791_v3  ;;  %v1008_v26 = vpop.f32.mrb[39].mxu1 }
 0x15d   :  { %1219 = vst [vmem:[%s10764_s7 + $0x260] sm:$0xff] %v690_v54  ;;  %v1009_v60 = vadd.f32 %v1008_v26, %v7791_v3 }
 0x15e   :  { %1221 = vst [vmem:[%s10764_s7 + $0x270] sm:$0xff] %v1007_v34  ;;  %1220 = vst [vmem:[%s10764_s7 + $0x268] sm:$0xff] %v692_v4  ;;  %v695_v1 = vpop.f32.mrb[40].mxu0 }
 0x15f   :  { %1222 = vst [vmem:[%s10764_s7 + $0x278] sm:$0xff] %v1009_v60  ;;  %v696_v46 = vadd.f32 %v695_v1, %v7805_v11  ;;  %v1012_v53 = vpop.f32.mrb[40].mxu1  ;;  %v697_v55 = vpop.f32.mrb[41].mxu0 }
 0x160   :  { %v1013_v8 = vadd.f32 %v1012_v53, %v7805_v11  ;;  %v698_v3 = vadd.f32 %v697_v55, %v7805_v11  ;;  %v1014_v13 = vpop.f32.mrb[41].mxu1 }
 0x161   :  { %1223 = vst [vmem:[%s10764_s7 + $0x280] sm:$0xff] %v696_v46  ;;  %v1015_v17 = vadd.f32 %v1014_v13, %v7805_v11 }
 0x162   :  { %1225 = vst [vmem:[%s10764_s7 + $0x290] sm:$0xff] %v1013_v8  ;;  %1224 = vst [vmem:[%s10764_s7 + $0x288] sm:$0xff] %v698_v3  ;;  %v701_v32 = vpop.f32.mrb[42].mxu0 }
 0x163   :  { %1226 = vst [vmem:[%s10764_s7 + $0x298] sm:$0xff] %v1015_v17  ;;  %v702_v36 = vadd.f32 %v701_v32, %v7802_v10  ;;  %v1018_v9 = vpop.f32.mrb[42].mxu1  ;;  %v703_v59 = vpop.f32.mrb[43].mxu0 }
 0x164   :  { %v1019_v45 = vadd.f32 %v1018_v9, %v7802_v10  ;;  %v704_v11 = vadd.f32 %v703_v59, %v7802_v10  ;;  %v1020_v16 = vpop.f32.mrb[43].mxu1 }
 0x165   :  { %1227 = vst [vmem:[%s10764_s7 + $0x2a0] sm:$0xff] %v702_v36  ;;  %v1021_v6 = vadd.f32 %v1020_v16, %v7802_v10 }
 0x166   :  { %1229 = vst [vmem:[%s10764_s7 + $0x2b0] sm:$0xff] %v1019_v45  ;;  %1228 = vst [vmem:[%s10764_s7 + $0x2a8] sm:$0xff] %v704_v11  ;;  %v707_v20 = vpop.f32.mrb[44].mxu0 }
 0x167   :  { %1230 = vst [vmem:[%s10764_s7 + $0x2b8] sm:$0xff] %v1021_v6  ;;  %v708_v57 = vadd.f32 %v707_v20, %v7816_v15  ;;  %v1024_v28 = vpop.f32.mrb[44].mxu1  ;;  %v709_v25 = vpop.f32.mrb[45].mxu0 }
 0x168   :  { %v1025_v58 = vadd.f32 %v1024_v28, %v7816_v15  ;;  %v710_v10 = vadd.f32 %v709_v25, %v7816_v15  ;;  %v1026_v30 = vpop.f32.mrb[45].mxu1 }
 0x169   :  { %1231 = vst [vmem:[%s10764_s7 + $0x2c0] sm:$0xff] %v708_v57  ;;  %v1027_v49 = vadd.f32 %v1026_v30, %v7816_v15 }
 0x16a   :  { %1233 = vst [vmem:[%s10764_s7 + $0x2d0] sm:$0xff] %v1025_v58  ;;  %1232 = vst [vmem:[%s10764_s7 + $0x2c8] sm:$0xff] %v710_v10  ;;  %v713_v38 = vpop.f32.mrb[46].mxu0  ;;  %v8533_v10 = vld [vmem:[#allocation4] sm:$0xf] }
 0x16b   :  { %1234 = vst [vmem:[%s10764_s7 + $0x2d8] sm:$0xff] %v1027_v49  ;;  %v714_v33 = vadd.f32 %v713_v38, %v7813_v14  ;;  %v1030_v41 = vpop.f32.mrb[46].mxu1  ;;  %v715_v43 = vpop.f32.mrb[47].mxu0 }
 0x16c   :  { %v1031_v50 = vadd.f32 %v1030_v41, %v7813_v14  ;;  %v716_v15 = vadd.f32 %v715_v43, %v7813_v14  ;;  %v1032_v63 = vpop.f32.mrb[47].mxu1 }
 0x16d   :  { %1235 = vst [vmem:[%s10764_s7 + $0x2e0] sm:$0xff] %v714_v33  ;;  %v1033_v51 = vadd.f32 %v1032_v63, %v7813_v14 }
 0x16e   :  { %1237 = vst [vmem:[%s10764_s7 + $0x2f0] sm:$0xff] %v1031_v50  ;;  %1236 = vst [vmem:[%s10764_s7 + $0x2e8] sm:$0xff] %v716_v15  ;;  %v719_v52 = vpop.f32.mrb[48].mxu0 }
 0x16f   :  { %1238 = vst [vmem:[%s10764_s7 + $0x2f8] sm:$0xff] %v1033_v51  ;;  %v720_v48 = vadd.f32 %v719_v52, %v7827_v19  ;;  %v1036_v56 = vpop.f32.mrb[48].mxu1  ;;  %v721_v37 = vpop.f32.mrb[49].mxu0 }
 0x170   :  { %v1037_v12 = vadd.f32 %v1036_v56, %v7827_v19  ;;  %v722_v14 = vadd.f32 %v721_v37, %v7827_v19  ;;  %v1038_v21 = vpop.f32.mrb[49].mxu1  ;;  %v8550_v37 = vrot.slane %v8533_v10, %v7591_v62 }
 0x171   :  { %1239 = vst [vmem:[%s10764_s7 + $0x300] sm:$0xff] %v720_v48  ;;  %v1039_v61 = vadd.f32 %v1038_v21, %v7827_v19 }
 0x172   :  { %1241 = vst [vmem:[%s10764_s7 + $0x310] sm:$0xff] %v1037_v12  ;;  %1240 = vst [vmem:[%s10764_s7 + $0x308] sm:$0xff] %v722_v14  ;;  %v725_v42 = vpop.f32.mrb[50].mxu0 }
 0x173   :  { %1242 = vst [vmem:[%s10764_s7 + $0x318] sm:$0xff] %v1039_v61  ;;  %v726_v40 = vadd.f32 %v725_v42, %v7824_v18  ;;  %v1042_v0 = vpop.f32.mrb[50].mxu1  ;;  %v727_v54 = vpop.f32.mrb[51].mxu0 }
 0x174   :  { %v1043_v29 = vadd.f32 %v1042_v0, %v7824_v18  ;;  %v728_v19 = vadd.f32 %v727_v54, %v7824_v18  ;;  %v1044_v24 = vpop.f32.mrb[51].mxu1 }
 0x175   :  { %1243 = vst [vmem:[%s10764_s7 + $0x320] sm:$0xff] %v726_v40  ;;  %v1045_v34 = vadd.f32 %v1044_v24, %v7824_v18 }
 0x176   :  { %1245 = vst [vmem:[%s10764_s7 + $0x330] sm:$0xff] %v1043_v29  ;;  %1244 = vst [vmem:[%s10764_s7 + $0x328] sm:$0xff] %v728_v19  ;;  %v731_v4 = vpop.f32.mrb[52].mxu0 }
 0x177   :  { %v8489_v26 = vpop.permute.xlu1 %6270  ;;  %1246 = vst [vmem:[%s10764_s7 + $0x338] sm:$0xff] %v1045_v34  ;;  %v732_v60 = vadd.f32 %v731_v4, %v7838_v23  ;;  %v1048_v1 = vpop.f32.mrb[52].mxu1 }
 0x178   :  { %v8495_v46 = vpop.permute.xlu0 %6265  ;;  %v1049_v18 = vadd.f32 %v1048_v1, %v7838_v23  ;;  %v733_v53 = vpop.f32.mrb[53].mxu0 }
 0x179   :  { %v1050_v55 = vpop.f32.mrb[53].mxu1  ;;  %1247 = vst [vmem:[%s10764_s7 + $0x340] sm:$0xff] %v732_v60  ;;  %v734_v8 = vadd.f32 %v733_v53, %v7838_v23  ;;  %v6267_v30 = vunpack.i.l.bf16 %v8495_v46  ;;  %v6268_v63 = vunpack.i.h.bf16 %v8495_v46 }
 0x17a   :  { %v1051_v3 = vadd.f32 %v1050_v55, %v7838_v23  ;;  %1249 = vst [vmem:[%s10764_s7 + $0x350] sm:$0xff] %v1049_v18  ;;  %v737_v13 = vpop.f32.mrb[54].mxu0 }
 0x17b   :  { %v8506_v17 = vpop.permute.xlu1 %6280  ;;  %1248 = vst [vmem:[%s10764_s7 + $0x348] sm:$0xff] %v734_v8  ;;  %v738_v32 = vadd.f32 %v737_v13, %v7835_v22  ;;  %v1054_v36 = vpop.f32.mrb[54].mxu1 }
 0x17c   :  { %1250 = vst [vmem:[%s10764_s7 + $0x358] sm:$0xff] %v1051_v3  ;;  %v8515_v9 = vpop.permute.xlu0 %6275  ;;  %v1055_v23 = vadd.f32 %v1054_v36, %v7835_v22  ;;  %v739_v59 = vpop.f32.mrb[55].mxu0 }
 0x17d   :  { %v1056_v45 = vpop.f32.mrb[55].mxu1  ;;  %1251 = vst [vmem:[%s10764_s7 + $0x360] sm:$0xff] %v738_v32  ;;  %v740_v11 = vadd.f32 %v739_v59, %v7835_v22 }
 0x17e   :  { %v1057_v16 = vadd.f32 %v1056_v45, %v7835_v22  ;;  %1253 = vst [vmem:[%s10764_s7 + $0x370] sm:$0xff] %v1055_v23  ;;  %v743_v6 = vpop.f32.mrb[56].mxu0 }
 0x17f   :  { %v6291_v20 = vpop.permute.xlu1 %6290  ;;  %1252 = vst [vmem:[%s10764_s7 + $0x368] sm:$0xff] %v740_v11  ;;  %v744_v57 = vadd.f32 %v743_v6, %v7849_v31  ;;  %v1060_v28 = vpop.f32.mrb[56].mxu1 }
 0x180   :  { %1254 = vst [vmem:[%s10764_s7 + $0x378] sm:$0xff] %v1057_v16  ;;  %v6293_v25 = vunpack.i.h.bf16 %v6291_v20  ;;  %v6292_v22 = vunpack.i.l.bf16 %v6291_v20  ;;  %v6286_v58 = vpop.permute.xlu0 %6285  ;;  %v1061_v49 = vadd.f32 %v1060_v28, %v7849_v31  ;;  %v745_v41 = vpop.f32.mrb[57].mxu0 }
 0x181   :  { %v6288_v38 = vunpack.i.h.bf16 %v6286_v58  ;;  %v6287_v33 = vunpack.i.l.bf16 %v6286_v58  ;;  %v1062_v43 = vpop.f32.mrb[57].mxu1  ;;  %1255 = vst [vmem:[%s10764_s7 + $0x380] sm:$0xff] %v744_v57  ;;  %v746_v50 = vadd.f32 %v745_v41, %v7849_v31  ;;  %v6272_v58 = vunpack.i.l.bf16 %v8489_v26 }
 0x182   :  { %v1063_v15 = vadd.f32 %v1062_v43, %v7849_v31  ;;  %1257 = vst [vmem:[%s10764_s7 + $0x390] sm:$0xff] %v1061_v49  ;;  %v1617_v51 = vsel %vm1614_vm2, %v6292_v22, %v6293_v25  ;;  %v749_v52 = vpop.f32.mrb[58].mxu0  ;;  %v1618_v56 = vsel %vm1614_vm2, %v6293_v25, %v6267_v30 }
 0x183   :  { %v6296_v48 = vpop.permute.xlu1 %6295  ;;  %v1615_v12 = vsel %vm1614_vm2, %v6287_v33, %v6288_v38  ;;  %1256 = vst [vmem:[%s10764_s7 + $0x388] sm:$0xff] %v746_v50  ;;  %v750_v31 = vadd.f32 %v749_v52, %v7846_v27  ;;  %v1066_v14 = vpop.f32.mrb[58].mxu1  ;;  %v1616_v24 = vsel %vm1614_vm2, %v6288_v38, %v6292_v22  ;;  %v6273_v22 = vunpack.i.h.bf16 %v8489_v26  ;;  %v8596_v33 = vld [vmem:[%s10758_s1 + $0x8] sm:$0xff] }
 0x184   :  { %1258 = vst [vmem:[%s10764_s7 + $0x398] sm:$0xff] %v1063_v15  ;;  %v6298_v21 = vunpack.i.h.bf16 %v6296_v48  ;;  %v6297_v61 = vunpack.i.l.bf16 %v6296_v48  ;;  %v6301_v42 = vpop.permute.xlu0 %6300  ;;  %v1067_v40 = vadd.f32 %v1066_v14, %v7846_v27  ;;  %v751_v29 = vpop.f32.mrb[59].mxu0 }
 0x185   :  { %v6303_v0 = vunpack.i.h.bf16 %v6301_v42  ;;  %v6302_v54 = vunpack.i.l.bf16 %v6301_v42  ;;  %v1068_v19 = vpop.f32.mrb[59].mxu1  ;;  %1259 = vst [vmem:[%s10764_s7 + $0x3a0] sm:$0xff] %v750_v31  ;;  %v752_v4 = vadd.f32 %v751_v29, %v7846_v27 }
 0x186   :  { %v1619_v34 = vsel %vm1614_vm2, %v6268_v63, %v6297_v61  ;;  %v1069_v60 = vadd.f32 %v1068_v19, %v7846_v27  ;;  %v1620_v1 = vsel %vm1614_vm2, %v6297_v61, %v6298_v21  ;;  %1261 = vst [vmem:[%s10764_s7 + $0x3b0] sm:$0xff] %v1067_v40  ;;  %v755_v18 = vpop.f32.mrb[60].mxu0 }
 0x187   :  { %v1621_v46 = vsel %vm1614_vm2, %v6298_v21, %v6302_v54  ;;  %v6306_v53 = vpop.permute.xlu1 %6305  ;;  %v5760_v55 = vpack.c.bf16 %v1620_v1, %v1616_v24  ;;  %v1622_v8 = vsel %vm1614_vm2, %v6302_v54, %v6303_v0  ;;  %v5762_v3 = vpack.c.bf16 %v1619_v34, %v1615_v12  ;;  %1260 = vst [vmem:[%s10764_s7 + $0x3a8] sm:$0xff] %v752_v4  ;;  %v1072_v13 = vpop.f32.mrb[60].mxu1 }
 0x188   :  { %1262 = vst [vmem:[%s10764_s7 + $0x3b8] sm:$0xff] %v1069_v60  ;;  %v756_v27 = vadd.f32 %v755_v18, %v7855_v39  ;;  %v6308_v32 = vunpack.i.h.bf16 %v6306_v53  ;;  %v6307_v36 = vunpack.i.l.bf16 %v6306_v53  ;;  %v6311_v23 = vpop.permute.xlu0 %6310  ;;  %v5776_v59 = vpack.c.bf16 %v1622_v8, %v1618_v56  ;;  %v757_v6 = vpop.f32.mrb[61].mxu0 }
 0x189   :  { %v1073_v45 = vadd.f32 %v1072_v13, %v7855_v39  ;;  %v6313_v11 = vunpack.i.h.bf16 %v6311_v23  ;;  %v6312_v16 = vunpack.i.l.bf16 %v6311_v23  ;;  %v1074_v20 = vpop.f32.mrb[61].mxu1  ;;  %5761 = vmatprep.subr.bf16.mxu0 %v5760_v55  ;;  %v5778_v57 = vpack.c.bf16 %v1621_v46, %v1617_v51  ;;  %v8641_v23 = vld [vmem:[%s10758_s1 + $0x30] sm:$0xff] }
 0x18a   :  { %1263 = vst [vmem:[%s10764_s7 + $0x3c0] sm:$0xff] %v756_v27  ;;  %v758_v28 = vadd.f32 %v757_v6, %v7855_v39  ;;  %v1075_v25 = vadd.f32 %v1074_v20, %v7855_v39  ;;  %5777 = vmatprep.subr.bf16.mxu1 %v5776_v59  ;;  %5763 = vmatpush1.bf16.msra.mxu0 %v5762_v3  ;;  %v761_v49 = vpop.f32.mrb[62].mxu0 }
 0x18b   :  { %1265 = vst [vmem:[%s10764_s7 + $0x3d0] sm:$0xff] %v1073_v45  ;;  %v1623_v30 = vsel %vm1614_vm2, %v6307_v36, %v6308_v32  ;;  %5779 = vmatpush1.bf16.msra.mxu1 %v5778_v57  ;;  %v6321_v38 = vpop.permute.xlu1 %6320  ;;  %v8600_v39 = vmul.f32 %v8596_v33, %v8550_v37  ;;  %v1625_v26 = vsel %vm1614_vm2, %v6312_v16, %v6313_v11  ;;  %v1078_v43 = vpop.f32.mrb[62].mxu1  ;;  %v6278_v45 = vunpack.i.h.bf16 %v8515_v9 }
 0x18c   :  { %1264 = vst [vmem:[%s10764_s7 + $0x3c8] sm:$0xff] %v758_v28  ;;  %1266 = vst [vmem:[%s10764_s7 + $0x3d8] sm:$0xff] %v1075_v25  ;;  %v762_v41 = vadd.f32 %v761_v49, %v7853_v35  ;;  %v6323_v50 = vunpack.i.h.bf16 %v6321_v38  ;;  %v6322_v15 = vunpack.i.l.bf16 %v6321_v38  ;;  %v6316_v63 = vpop.permute.xlu0 %6315  ;;  %v1079_v51 = vadd.f32 %v1078_v43, %v7853_v35  ;;  %v763_v56 = vpop.f32.mrb[63].mxu0 }
 0x18d   :  { %v6318_v52 = vunpack.i.h.bf16 %v6316_v63  ;;  %v6317_v48 = vunpack.i.l.bf16 %v6316_v63  ;;  %v1080_v12 = vpop.f32.mrb[63].mxu1  ;;  %v1624_v31 = vsel %vm1614_vm2, %v6308_v32, %v6312_v16  ;;  %v764_v14 = vadd.f32 %v763_v56, %v7853_v35 }
 0x18e   :  { %1267 = vst [vmem:[%s10764_s7 + $0x3e0] sm:$0xff] %v762_v41  ;;  %v1081_v21 = vadd.f32 %v1080_v12, %v7853_v35  ;;  %v1626_v61 = vsel %vm1614_vm2, %v6313_v11, %v6272_v58  ;;  %v1630_v42 = vsel %vm1614_vm2, %v6322_v15, %v6323_v50  ;;  %1269 = vst [vmem:[%s10764_s7 + $0x3f0] sm:$0xff] %v1079_v51  ;;  %v767_v54 = vpop.f32.mrb[64].mxu0  ;;  %v6277_v11 = vunpack.i.l.bf16 %v8515_v9 }
 0x18f   :  { %v1629_v40 = vsel %vm1614_vm2, %v6318_v52, %v6322_v15  ;;  %v1627_v0 = vsel %vm1614_vm2, %v6273_v22, %v6317_v48  ;;  %v6331_v29 = vpop.permute.xlu1 %6330  ;;  %v1628_v19 = vsel %vm1614_vm2, %v6317_v48, %v6318_v52  ;;  %v5780_v24 = vpack.c.bf16 %v1630_v42, %v1626_v61  ;;  %1268 = vst [vmem:[%s10764_s7 + $0x3e8] sm:$0xff] %v764_v14  ;;  %v1084_v34 = vpop.f32.mrb[64].mxu1 }
 0x190   :  { %1270 = vst [vmem:[%s10764_s7 + $0x3f8] sm:$0xff] %v1081_v21  ;;  %v768_v35 = vadd.f32 %v767_v54, %v7859_v47  ;;  %v6333_v4 = vunpack.i.h.bf16 %v6331_v29  ;;  %v6332_v60 = vunpack.i.l.bf16 %v6331_v29  ;;  %v6326_v1 = vpop.permute.xlu0 %6325  ;;  %v5764_v46 = vpack.c.bf16 %v1628_v19, %v1624_v31  ;;  %v769_v8 = vpop.f32.mrb[65].mxu0 }
 0x191   :  { %v1085_v18 = vadd.f32 %v1084_v34, %v7859_v47  ;;  %v6328_v53 = vunpack.i.h.bf16 %v6326_v1  ;;  %v6327_v55 = vunpack.i.l.bf16 %v6326_v1  ;;  %v1086_v3 = vpop.f32.mrb[65].mxu1  ;;  %5781 = vmatprep.subr.bf16.mxu1 %v5780_v24  ;;  %v5766_v27 = vpack.c.bf16 %v1627_v0, %v1623_v30 }
 0x192   :  { %1271 = vst [vmem:[%s10764_s7 + $0x400] sm:$0xff] %v768_v35  ;;  %v770_v13 = vadd.f32 %v769_v8, %v7859_v47  ;;  %v1087_v32 = vadd.f32 %v1086_v3, %v7859_v47  ;;  %5765 = vmatprep.subr.bf16.mxu0 %v5764_v46  ;;  %v5782_v36 = vpack.c.bf16 %v1629_v40, %v1625_v26  ;;  %v773_v6 = vpop.f32.mrb[66].mxu0  ;;  %v6283_v46 = vunpack.i.h.bf16 %v8506_v17 }
 0x193   :  { %v8645_v59 = vmul.f32 %v8641_v23, %v8550_v37  ;;  %1273 = vst [vmem:[%s10764_s7 + $0x410] sm:$0xff] %v1085_v18  ;;  %v1633_v47 = vsel %vm1614_vm2, %v6332_v60, %v6333_v4  ;;  %v1631_v16 = vsel %vm1614_vm2, %v6327_v55, %v6328_v53  ;;  %5767 = vmatpush1.bf16.msra.mxu0 %v5766_v27  ;;  %v6336_v20 = vpop.permute.xlu1 %6335  ;;  %v1090_v57 = vpop.f32.mrb[66].mxu1  ;;  %v6282_v18 = vunpack.i.l.bf16 %v8506_v17  ;;  %v10834_v17 = vld [vmem:[#allocation24_spill] sm:$0xff] }
 0x194   :  { %1272 = vst [vmem:[%s10764_s7 + $0x408] sm:$0xff] %v770_v13  ;;  %1274 = vst [vmem:[%s10764_s7 + $0x418] sm:$0xff] %v1087_v32  ;;  %v774_v9 = vadd.f32 %v773_v6, %v7857_v44  ;;  %5783 = vmatpush1.bf16.msra.mxu1 %v5782_v36  ;;  %v6338_v28 = vunpack.i.h.bf16 %v6336_v20  ;;  %v6337_v25 = vunpack.i.l.bf16 %v6336_v20  ;;  %v6341_v22 = vpop.permute.xlu0 %6340  ;;  %v1632_v58 = vsel %vm1614_vm2, %v6328_v53, %v6332_v60  ;;  %v775_v26 = vpop.f32.mrb[67].mxu0 }
 0x195   :  { %v1091_v30 = vadd.f32 %v1090_v57, %v7857_v44  ;;  %v6343_v49 = vunpack.i.h.bf16 %v6341_v22  ;;  %v6342_v38 = vunpack.i.l.bf16 %v6341_v22  ;;  %v1092_v41 = vpop.f32.mrb[67].mxu1  ;;  %v1634_v43 = vsel %vm1614_vm2, %v6333_v4, %v6277_v11 }
 0x196   :  { %1275 = vst [vmem:[%s10764_s7 + $0x420] sm:$0xff] %v774_v9  ;;  %v1635_v50 = vsel %vm1614_vm2, %v6278_v45, %v6337_v25  ;;  %v776_v15 = vadd.f32 %v775_v26, %v7857_v44  ;;  %v1093_v63 = vadd.f32 %v1092_v41, %v7857_v44  ;;  %v1636_v51 = vsel %vm1614_vm2, %v6337_v25, %v6338_v28  ;;  %v779_v48 = vpop.f32.mrb[68].mxu0  ;;  %v10833_v44 = vld [vmem:[#allocation25_spill] sm:$0xff] }
 0x197   :  { %1277 = vst [vmem:[%s10764_s7 + $0x430] sm:$0xff] %v1091_v30  ;;  %v1637_v52 = vsel %vm1614_vm2, %v6338_v28, %v6342_v38  ;;  %v6346_v56 = vpop.permute.xlu1 %6345  ;;  %v5768_v12 = vpack.c.bf16 %v1636_v51, %v1632_v58  ;;  %v1638_v31 = vsel %vm1614_vm2, %v6342_v38, %v6343_v49  ;;  %v5770_v14 = vpack.c.bf16 %v1635_v50, %v1631_v16  ;;  %v1096_v61 = vpop.f32.mrb[68].mxu1  ;;  %v10835_v50 = vld [vmem:[#allocation27_spill] sm:$0xff] }
 0x198   :  { %1276 = vst [vmem:[%s10764_s7 + $0x428] sm:$0xff] %v776_v15  ;;  %1278 = vst [vmem:[%s10764_s7 + $0x438] sm:$0xff] %v1093_v63  ;;  %v780_v21 = vadd.f32 %v779_v48, %v10833_v44  ;;  %v6348_v42 = vunpack.i.h.bf16 %v6346_v56  ;;  %v6347_v40 = vunpack.i.l.bf16 %v6346_v56  ;;  %v6351_v0 = vpop.permute.xlu0 %6350  ;;  %v5784_v54 = vpack.c.bf16 %v1638_v31, %v1634_v43  ;;  %v781_v35 = vpop.f32.mrb[69].mxu0 }
 0x199   :  { %v1097_v29 = vadd.f32 %v1096_v61, %v10833_v44  ;;  %v6353_v19 = vunpack.i.h.bf16 %v6351_v0  ;;  %v6352_v24 = vunpack.i.l.bf16 %v6351_v0  ;;  %v1098_v34 = vpop.f32.mrb[69].mxu1  ;;  %5769 = vmatprep.subr.bf16.mxu0 %v5768_v12  ;;  %v5786_v4 = vpack.c.bf16 %v1637_v52, %v1633_v47 }
 0x19a   :  { %1279 = vst [vmem:[%s10764_s7 + $0x440] sm:$0xff] %v780_v21  ;;  %v782_v60 = vadd.f32 %v781_v35, %v10833_v44  ;;  %v1099_v1 = vadd.f32 %v1098_v34, %v10833_v44  ;;  %5785 = vmatprep.subr.bf16.mxu1 %v5784_v54  ;;  %5771 = vmatpush1.bf16.msra.mxu0 %v5770_v14  ;;  %v785_v55 = vpop.f32.mrb[70].mxu0  ;;  %v8737_v21 = vld [vmem:[%s10758_s1] sm:$0xff]  ;;  %v1488_v54 = vld [vmem:[#allocation2 + $0x30] sm:$0xff] }
 0x19b   :  { %1281 = vst [vmem:[%s10764_s7 + $0x450] sm:$0xff] %v1097_v29  ;;  %v1639_v53 = vsel %vm1614_vm2, %v6347_v40, %v6348_v42  ;;  %5787 = vmatpush1.bf16.msra.mxu1 %v5786_v4  ;;  %v6361_v8 = vpop.permute.xlu1 %6360  ;;  %v5792_v3 = vpack.c.bf16 %v8645_v59, %v8600_v39  ;;  %v1641_v27 = vsel %vm1614_vm2, %v6352_v24, %v6353_v19  ;;  %v1102_v32 = vpop.f32.mrb[70].mxu1  ;;  %v10836_v35 = vld [vmem:[#allocation26_spill] sm:$0xff] }
 0x19c   :  { %1280 = vst [vmem:[%s10764_s7 + $0x448] sm:$0xff] %v782_v60  ;;  %1282 = vst [vmem:[%s10764_s7 + $0x458] sm:$0xff] %v1099_v1  ;;  %v786_v13 = vadd.f32 %v785_v55, %v10834_v17  ;;  %v6363_v36 = vunpack.i.h.bf16 %v6361_v8  ;;  %v6362_v45 = vunpack.i.l.bf16 %v6361_v8  ;;  %v6356_v11 = vpop.permute.xlu0 %6355  ;;  %v1103_v47 = vadd.f32 %v1102_v32, %v10834_v17  ;;  %v787_v20 = vpop.f32.mrb[71].mxu0  ;;  %v8778_v8 = vld [vmem:[#allocation4 + $0xc] sm:$0xf] }
 0x19d   :  { %v6358_v16 = vunpack.i.h.bf16 %v6356_v11  ;;  %v6357_v6 = vunpack.i.l.bf16 %v6356_v11  ;;  %v1104_v9 = vpop.f32.mrb[71].mxu1  ;;  %v1640_v57 = vsel %vm1614_vm2, %v6348_v42, %v6352_v24  ;;  %v788_v28 = vadd.f32 %v787_v20, %v10834_v17  ;;  %v8805_v11 = vld [vmem:[%s10758_s1 + $0x10] sm:$0xff] }
 0x19e   :  { %1283 = vst [vmem:[%s10764_s7 + $0x460] sm:$0xff] %v786_v13  ;;  %v1105_v25 = vadd.f32 %v1104_v9, %v10834_v17  ;;  %v1642_v22 = vsel %vm1614_vm2, %v6353_v19, %v6282_v18  ;;  %v1646_v58 = vsel %vm1614_vm2, %v6362_v45, %v6363_v36  ;;  %1285 = vst [vmem:[%s10764_s7 + $0x470] sm:$0xff] %v1103_v47  ;;  %v791_v38 = vpop.f32.mrb[72].mxu0  ;;  %v9051_v9 = vld [vmem:[%s10758_s1 + $0xb0] sm:$0xff] }
 0x19f   :  { %v1645_v30 = vsel %vm1614_vm2, %v6358_v16, %v6362_v45  ;;  %v1643_v49 = vsel %vm1614_vm2, %v6283_v46, %v6357_v6  ;;  %v2141_v26 = vpop.permute.xlu1 %2140  ;;  %v1644_v41 = vsel %vm1614_vm2, %v6357_v6, %v6358_v16  ;;  %v5788_v43 = vpack.c.bf16 %v1646_v58, %v1642_v22  ;;  %1284 = vst [vmem:[%s10764_s7 + $0x468] sm:$0xff] %v788_v28  ;;  %v1108_v63 = vpop.f32.mrb[72].mxu1  ;;  %v8767_v46 = vld [vmem:[%s10758_s1 + $0x20] sm:$0xff]  ;;  %v8815_v6 = vld [vmem:[%s10758_s1 + $0x18] sm:$0xff] }
 0x1a0   :  { %1286 = vst [vmem:[%s10764_s7 + $0x478] sm:$0xff] %v1105_v25  ;;  %v792_v15 = vadd.f32 %v791_v38, %v10835_v50  ;;  %v8727_v51 = vpop.permute.xlu0 %2138  ;;  %v5772_v52 = vpack.c.bf16 %v1644_v41, %v1640_v57  ;;  %v5774_v48 = vpack.c.bf16 %v1643_v49, %v1639_v53  ;;  %v5790_v56 = vpack.c.bf16 %v1645_v30, %v1641_v27  ;;  %v793_v31 = vpop.f32.mrb[73].mxu0  ;;  %v8774_v53 = vld [vmem:[%s10758_s1 + $0x28] sm:$0xff]  ;;  %v10837_v25 = vld [vmem:[#allocation29_spill] sm:$0xff] }
 0x1a1   :  { %v1109_v12 = vadd.f32 %v1108_v63, %v10835_v50  ;;  %v1110_v14 = vpop.f32.mrb[73].mxu1  ;;  %5789 = vmatprep.subr.bf16.mxu1 %v5788_v43  ;;  %v8732_v44 = vsel %vm2146_vm3, %v8727_v51, %v2141_v26  ;;  %v2155_v61 = vmul.f32 %v8737_v21, %v8727_v51  ;;  %v794_v42 = vadd.f32 %v793_v31, %v10835_v50  ;;  %v8840_v49 = vld [vmem:[%s10758_s1 + $0x40] sm:$0xff]  ;;  %v8847_v38 = vld [vmem:[%s10758_s1 + $0x48] sm:$0xff] }
 0x1a2   :  { %1287 = vst [vmem:[%s10764_s7 + $0x480] sm:$0xff] %v792_v15  ;;  %v1111_v40 = vadd.f32 %v1110_v14, %v10835_v50  ;;  %5773 = vmatprep.subr.bf16.mxu0 %v5772_v52  ;;  %5791 = vmatpush1.bf16.msra.mxu1 %v5790_v56  ;;  %v2156_v0 = vmul.f32 %v8596_v33, %v8732_v44  ;;  %v797_v29 = vpop.f32.mrb[74].mxu0  ;;  %v10838_v41 = vmov 0.0  }
 0x1a3   :  { %1289 = vst [vmem:[%s10764_s7 + $0x490] sm:$0xff] %v1109_v12  ;;  %5775 = vmatpush1.bf16.msra.mxu0 %v5774_v48  ;;  %v8751_v19 = vpop.permute.xlu1 %2144  ;;  %v8755_v24 = vrot.slane %v8533_v10, %v7606_v5  ;;  %1288 = vst [vmem:[%s10764_s7 + $0x488] sm:$0xff] %v794_v42  ;;  %v798_v34 = vadd.f32 %v797_v29, %v10836_v35  ;;  %v1114_v4 = vpop.f32.mrb[74].mxu1  ;;  %v2160_v55 = vmul.f32 %v8774_v53, %v8727_v51  ;;  %v8861_v48 = vld [vmem:[%s10758_s1 + $0x38] sm:$0xff] }
 0x1a4   :  { %1290 = vst [vmem:[%s10764_s7 + $0x498] sm:$0xff] %v1111_v40  ;;  %v2143_v60 = vpop.permute.xlu0 %2142  ;;  %v6364_v1 = vpack.i.bf16 %v2156_v0, %v2155_v61  ;;  %v2159_v18 = vmul.f32 %v8767_v46, %v8751_v19  ;;  %5793 = vmatprep.subr.bf16.mxu0 %v5792_v3  ;;  %v1115_v27 = vadd.f32 %v1114_v4, %v10836_v35  ;;  %v799_v32 = vpop.f32.mrb[75].mxu0  ;;  %10839 = vst [vmem:[#allocation25_spill] sm:$0xff] %v8861_v48  ;;  %v1489_v12 = vld [vmem:[#allocation2 + $0x38] sm:$0xff] }
 0x1a5   :  { %v8785_v17 = vsel %vm2146_vm3, %v2141_v26, %v2143_v60  ;;  %v8789_v13 = vsel %vm2146_vm3, %v2143_v60, %v8751_v19  ;;  %v1116_v36 = vpop.f32.mrb[75].mxu1  ;;  %5626 = vmatmul.mubr.msk.f32.vlgmr.msra.gmra.mrb[84].mxu1 %vm382_vm0, %v1488_v54  ;;  %v8794_v45 = vrot.slane %v8533_v10, %v7597_v2  ;;  %1291 = vst [vmem:[%s10764_s7 + $0x4a0] sm:$0xff] %v798_v34  ;;  %v8914_v4 = vld [vmem:[%s10758_s1 + $0x58] sm:$0xff] }
 0x1a6   :  { %v800_v39 = vadd.f32 %v799_v32, %v10836_v35  ;;  %v1117_v59 = vadd.f32 %v1116_v36, %v10836_v35  ;;  %6365 = vrot.lane.b32.xlu0 %v6364_v1, %s7135_s28  ;;  %v6374_v3 = vpack.i.bf16 %v2160_v55, %v2159_v18  ;;  %v2157_v47 = vmul.f32 %v8805_v11, %v8785_v17  ;;  %v803_v16 = vpop.f32.mrb[76].mxu0  ;;  %v8905_v35 = vld [vmem:[%s10758_s1 + $0x50] sm:$0xff] }
 0x1a7   :  { %1293 = vst [vmem:[%s10764_s7 + $0x4b0] sm:$0xff] %v1115_v27  ;;  %v2158_v20 = vmul.f32 %v8815_v6, %v8789_v13  ;;  %5620 = vmatmul.mubr.msk.f32.vlgmr.msra.gmra.mrb[84].mxu0 %vm382_vm0, %v1488_v54  ;;  %v8824_v57 = vmul.f32 %v8815_v6, %v8755_v24  ;;  %v8828_v28 = vrot.slane %v8533_v10, %v7610_v7  ;;  %v1120_v58 = vpop.f32.mrb[76].mxu1  ;;  %v805_v30 = vpop.f32.mrb[77].mxu0  ;;  %v8898_v54 = vld [vmem:[%s10758_s1 + $0x68] sm:$0xff]  ;;  %10840 = vst [vmem:[#allocation24_spill] sm:$0xff] %v8914_v4  ;;  %v10841_v1 = vld [vmem:[#allocation28_spill] sm:$0xff] }
 0x1a8   :  { %1292 = vst [vmem:[%s10764_s7 + $0x4a8] sm:$0xff] %v800_v39  ;;  %1294 = vst [vmem:[%s10764_s7 + $0x4b8] sm:$0xff] %v1117_v59  ;;  %v804_v22 = vadd.f32 %v803_v16, %v10837_v25  ;;  %v2163_v10 = vmul.f32 %v8840_v49, %v8789_v13  ;;  %v2164_v26 = vmul.f32 %v8847_v38, %v8751_v19  ;;  %1767 = vmatprep.mubr.f32.mxu0 %v10838_v41  ;;  %v1122_v63 = vpop.f32.mrb[77].mxu1 }
 0x1a9   :  { %v8854_v43 = vmul.f32 %v8840_v49, %v8755_v24  ;;  %v1121_v50 = vadd.f32 %v1120_v58, %v10837_v25  ;;  %v806_v15 = vadd.f32 %v805_v30, %v10837_v25  ;;  %v6369_v52 = vpack.i.bf16 %v2158_v20, %v2157_v47  ;;  %1868 = vmatprep.mubr.f32.mxu1 %v10838_v41 }
 0x1aa   :  { %v2162_v56 = vmul.f32 %v8861_v48, %v8785_v17  ;;  %1295 = vst [vmem:[%s10764_s7 + $0x4c0] sm:$0xff] %v804_v22  ;;  %v1123_v31 = vadd.f32 %v1122_v63, %v10837_v25  ;;  %6375 = vrot.lane.b32.xlu0 %v6374_v3, %s7135_s28  ;;  %v2161_v14 = vmul.f32 %v8641_v23, %v8732_v44  ;;  %v809_v40 = vpop.f32.mrb[78].mxu0  ;;  %v8891_v23 = vld [vmem:[%s10758_s1 + $0x60] sm:$0xff]  ;;  %v8972_v63 = vld [vmem:[%s10758_s1 + $0x88] sm:$0xff] }
 0x1ab   :  { %v8875_v61 = vmul.f32 %v8737_v21, %v8794_v45  ;;  %v8879_v42 = vmul.f32 %v8774_v53, %v8794_v45  ;;  %1297 = vst [vmem:[%s10764_s7 + $0x4d0] sm:$0xff] %v1121_v50  ;;  %1296 = vst [vmem:[%s10764_s7 + $0x4c8] sm:$0xff] %v806_v15  ;;  %6370 = vrot.lane.b32.xlu1 %v6369_v52, %s7135_s28  ;;  %v2167_v0 = vmul.f32 %v8891_v23, %v8785_v17  ;;  %v1126_v55 = vpop.f32.mrb[78].mxu1  ;;  %v811_v27 = vpop.f32.mrb[79].mxu0  ;;  %v8946_v22 = vld [vmem:[%s10758_s1 + $0x80] sm:$0xff] }
 0x1ac   :  { %v2168_v29 = vmul.f32 %v8898_v54, %v8789_v13  ;;  %v8909_v34 = vmul.f32 %v8905_v35, %v8727_v51  ;;  %v8918_v60 = vmul.f32 %v8914_v4, %v8732_v44  ;;  %1298 = vst [vmem:[%s10764_s7 + $0x4d8] sm:$0xff] %v1123_v31  ;;  %v810_v18 = vadd.f32 %v809_v40, %v10841_v1  ;;  %v1128_v47 = vpop.f32.mrb[79].mxu1  ;;  %v10844_v31 = vld [vmem:[#allocation31_spill] sm:$0xff] }
 0x1ad   :  { %v6384_v32 = vpack.i.bf16 %v2164_v26, %v2163_v10  ;;  %5621 = vmatmul.mubr.msk.f32.gmra.mrb[86].mxu0 %vm382_vm0, %v1489_v12  ;;  %v8927_v36 = vmul.f32 %v8805_v11, %v8828_v28  ;;  %v8931_v39 = vmul.f32 %v8861_v48, %v8828_v28  ;;  %v1127_v59 = vadd.f32 %v1126_v55, %v10841_v1 }
 0x1ae   :  { %v812_v3 = vadd.f32 %v811_v27, %v10841_v1  ;;  %v6379_v16 = vpack.i.bf16 %v2162_v56, %v2161_v14  ;;  %5627 = vmatmul.mubr.msk.f32.gmra.mrb[86].mxu1 %vm382_vm0, %v1489_v12  ;;  %1299 = vst [vmem:[%s10764_s7 + $0x4e0] sm:$0xff] %v810_v18  ;;  %v1129_v25 = vadd.f32 %v1128_v47, %v10841_v1  ;;  %10842 = vst [vmem:[#allocation27_spill] sm:$0xff] %v8946_v22  ;;  %v815_v26 = vpop.f32.mrb[80].mxu0  ;;  %v8979_v56 = vld [vmem:[%s10758_s1 + $0x70] sm:$0xff]  ;;  %v9006_v18 = vld [vmem:[%s10758_s1 + $0xa8] sm:$0xff] }
 0x1af   :  { %6385 = vrot.lane.b32.xlu0 %v6384_v32, %s7135_s28  ;;  %v8950_v58 = vmul.f32 %v8946_v22, %v8732_v44  ;;  %v8954_v30 = vmul.f32 %v8914_v4, %v8550_v37  ;;  %v8958_v10 = vmul.f32 %v8946_v22, %v8550_v37  ;;  %1301 = vst [vmem:[%s10764_s7 + $0x4f0] sm:$0xff] %v1127_v59  ;;  %10843 = vst [vmem:[#allocation26_spill] sm:$0xff] %v8979_v56  ;;  %v1132_v40 = vpop.f32.mrb[80].mxu1 }
 0x1b0   :  { %1300 = vst [vmem:[%s10764_s7 + $0x4e8] sm:$0xff] %v812_v3  ;;  %6380 = vrot.lane.b32.xlu1 %v6379_v16, %s7135_s28  ;;  %v6394_v50 = vpack.i.bf16 %v2168_v29, %v2167_v0  ;;  %v6389_v15 = vpack.i.bf16 %v8918_v60, %v8909_v34  ;;  %v2172_v52 = vmul.f32 %v8972_v63, %v8785_v17  ;;  %1302 = vst [vmem:[%s10764_s7 + $0x4f8] sm:$0xff] %v1129_v25  ;;  %v817_v0 = vpop.f32.mrb[81].mxu0  ;;  %v8990_v29 = vld [vmem:[%s10758_s1 + $0x78] sm:$0xff]  ;;  %v1134_v59 = vpop.f32.mrb[81].mxu1 }
 0x1b1   :  { %v2169_v12 = vmul.f32 %v8979_v56, %v8751_v19  ;;  %v816_v14 = vadd.f32 %v815_v26, %v10844_v31  ;;  %v2170_v34 = vmul.f32 %v8990_v29, %v8727_v51  ;;  %v8997_v60 = vld [vmem:[%s10758_s1 + $0xa0] sm:$0xff]  ;;  %v9010_v55 = vmul.f32 %v9006_v18, %v8732_v44  ;;  %1773 = vmatprep.mubr.f32.mxu0 %v10838_v41  ;;  %v9018_v3 = vld [vmem:[%s10758_s1 + $0x90] sm:$0xff]  ;;  %v9027_v16 = vld [vmem:[%s10758_s1 + $0x98] sm:$0xff] }
 0x1b2   :  { %v9001_v1 = vmul.f32 %v8997_v60, %v8727_v51  ;;  %v1133_v27 = vadd.f32 %v1132_v40, %v10844_v31  ;;  %v818_v32 = vadd.f32 %v817_v0, %v10844_v31  ;;  %v9022_v47 = vmul.f32 %v9018_v3, %v8789_v13  ;;  %10845 = vst [vmem:[#allocation29_spill] sm:$0xff] %v9027_v16  ;;  %v9042_v40 = vld [vmem:[%s10758_s1 + $0xc0] sm:$0xff]  ;;  %v821_v20 = vpop.f32.mrb[82].mxu0 }
 0x1b3   :  { %v9031_v25 = vmul.f32 %v9027_v16, %v8751_v19  ;;  %1874 = vmatprep.mubr.f32.mxu1 %v10838_v41  ;;  %1303 = vst [vmem:[%s10764_s7 + $0x500] sm:$0xff] %v816_v14  ;;  %v1135_v26 = vadd.f32 %v1134_v59, %v10844_v31  ;;  %6395 = vrot.lane.b32.xlu0 %v6394_v50, %s7135_s28  ;;  %10846 = vst [vmem:[#allocation28_spill] sm:$0xff] %v9042_v40  ;;  %v9060_v50 = vld [vmem:[%s10758_s1 + $0xb8] sm:$0xff]  ;;  %v1490_v59 = vld [vmem:[#allocation2 + $0x40] sm:$0xff]  ;;  %v823_v56 = vpop.f32.mrb[83].mxu0 }
 0x1b4   :  { %v9046_v0 = vmul.f32 %v9042_v40, %v8751_v19  ;;  %v9055_v14 = vmul.f32 %v9051_v9, %v8785_v17  ;;  %v9064_v31 = vmul.f32 %v9060_v50, %v8789_v13  ;;  %1305 = vst [vmem:[%s10764_s7 + $0x510] sm:$0xff] %v1133_v27  ;;  %1304 = vst [vmem:[%s10764_s7 + $0x508] sm:$0xff] %v818_v32  ;;  %6390 = vrot.lane.b32.xlu1 %v6389_v15, %s7135_s28  ;;  %v10847_v27 = vld [vmem:[#allocation30_spill] sm:$0xff]  ;;  %v1138_v15 = vpop.f32.mrb[82].mxu1 }
 0x1b5   :  { %v5794_v40 = vpack.c.bf16 %v8879_v42, %v8875_v61  ;;  %v5810_v22 = vpack.c.bf16 %v8931_v39, %v8927_v36  ;;  %v5796_v16 = vpack.c.bf16 %v8958_v10, %v8954_v30  ;;  %v1376_v4 = vmul.f32 %v8898_v54, %v8755_v24  ;;  %1306 = vst [vmem:[%s10764_s7 + $0x518] sm:$0xff] %v1135_v26  ;;  %v9089_v42 = vld [vmem:[%s10758_s1 + $0xc8] sm:$0xff]  ;;  %v1140_v10 = vpop.f32.mrb[83].mxu1 }
 0x1b6   :  { %v822_v32 = vadd.f32 %v821_v20, %v10847_v27  ;;  %v6404_v48 = vpack.i.bf16 %v2172_v52, %v8950_v58  ;;  %v6399_v61 = vpack.i.bf16 %v2170_v34, %v2169_v12  ;;  %v2180_v36 = vmul.f32 %v9089_v42, %v8727_v51  ;;  %5622 = vmatmul.mubr.msk.f32.gmra.mrb[88].mxu0 %vm382_vm0, %v1490_v59  ;;  %v1491_v12 = vld [vmem:[#allocation2 + $0x48] sm:$0xff] }
 0x1b7   :  { %v10848_v39 = vpack.c.bf16 %v8854_v43, %v8824_v57  ;;  %v1139_v30 = vadd.f32 %v1138_v15, %v10847_v27  ;;  %v824_v20 = vadd.f32 %v823_v56, %v10847_v27  ;;  %v6414_v58 = vpack.i.bf16 %v9010_v55, %v9001_v1  ;;  %5628 = vmatmul.mubr.msk.f32.gmra.mrb[88].mxu1 %vm382_vm0, %v1490_v59 }
 0x1b8   :  { %v6409_v52 = vpack.i.bf16 %v9031_v25, %v9022_v47  ;;  %1307 = vst [vmem:[%s10764_s7 + $0x520] sm:$0xff] %v822_v32  ;;  %v1141_v57 = vadd.f32 %v1140_v10, %v10847_v27  ;;  %6405 = vrot.lane.b32.xlu0 %v6404_v48, %s7135_s28  ;;  %v6424_v43 = vpack.i.bf16 %v2180_v36, %v9046_v0  ;;  %v9165_v36 = vld [vmem:[%s10758_s1 + $0xd8] sm:$0xff] }
 0x1b9   :  { %5809 = vmatprep.subr.bf16.mxu1 %v10848_v39  ;;  %v6419_v56 = vpack.i.bf16 %v9064_v31, %v9055_v14  ;;  %1309 = vst [vmem:[%s10764_s7 + $0x530] sm:$0xff] %v1139_v30  ;;  %1308 = vst [vmem:[%s10764_s7 + $0x528] sm:$0xff] %v824_v20  ;;  %6400 = vrot.lane.b32.xlu1 %v6399_v61, %s7135_s28  ;;  %v1380_v48 = vmul.f32 %v9018_v3, %v8755_v24  ;;  %v1492_v30 = vld [vmem:[#allocation2 + $0x50] sm:$0xff]  ;;  %v9173_v10 = vld [vmem:[%s10758_s1 + $0xf8] sm:$0xff] }
 0x1ba   :  { %5795 = vmatpush1.bf16.msra.mxu0 %v5794_v40  ;;  %v1373_v34 = vmul.f32 %v8905_v35, %v8794_v45  ;;  %v1377_v1 = vmul.f32 %v8990_v29, %v8794_v45  ;;  %1310 = vst [vmem:[%s10764_s7 + $0x538] sm:$0xff] %v1141_v57  ;;  %5811 = vmatpush1.bf16.msra.mxu1 %v5810_v22  ;;  %v9139_v22 = vld [vmem:[%s10758_s1 + $0xd0] sm:$0xff]  ;;  %s7138_s7 = smov 18  }
 0x1bb   :  { %1779 = vmatprep.mubr.f32.mxu0 %v10838_v41  ;;  %v1375_v55 = vmul.f32 %v8891_v23, %v8828_v28  ;;  %v1379_v47 = vmul.f32 %v8972_v63, %v8828_v28  ;;  %v1382_v25 = vmul.f32 %v9006_v18, %v8550_v37  ;;  %1880 = vmatprep.mubr.f32.mxu1 %v10838_v41 }
 0x1bc   :  { %5797 = vmatprep.subr.bf16.mxu0 %v5796_v16  ;;  %v5812_v26 = vpack.c.bf16 %v1380_v48, %v1376_v4  ;;  %v5798_v40 = vpack.c.bf16 %v1377_v1, %v1373_v34  ;;  %v1386_v0 = vmul.f32 %v9139_v22, %v8550_v37  ;;  %6415 = vrot.lane.b32.xlu0 %v6414_v58, %s7135_s28  ;;  %v9150_v4 = vld [vmem:[%s10758_s1 + $0xe0] sm:$0xff]  ;;  %v9196_v1 = vld [vmem:[%s10758_s1 + $0x130] sm:$0xff] }
 0x1bd   :  { %5623 = vmatmul.mubr.msk.f32.gmra.mrb[90].mxu0 %vm382_vm0, %v1491_v12  ;;  %v5814_v14 = vpack.c.bf16 %v1379_v47, %v1375_v55  ;;  %v1384_v31 = vmul.f32 %v9060_v50, %v8755_v24  ;;  %v1388_v16 = vmul.f32 %v9150_v4, %v8755_v24  ;;  %6410 = vrot.lane.b32.xlu1 %v6409_v52, %s7135_s28  ;;  %v9180_v52 = vld [vmem:[%s10758_s1 + $0x120] sm:$0xff]  ;;  %v9206_v55 = vld [vmem:[%s10758_s1 + $0xf0] sm:$0xff] }
 0x1be   :  { %5813 = vmatprep.subr.bf16.mxu1 %v5812_v26  ;;  %v5800_v59 = vpack.c.bf16 %v1386_v0, %v1382_v25  ;;  %v1381_v27 = vmul.f32 %v8997_v60, %v8794_v45  ;;  %v1385_v32 = vmul.f32 %v9089_v42, %v8794_v45  ;;  %5629 = vmatmul.mubr.msk.f32.gmra.mrb[90].mxu1 %vm382_vm0, %v1491_v12  ;;  %v9189_v12 = vld [vmem:[%s10758_s1 + $0x108] sm:$0xff]  ;;  %v9213_v25 = vld [vmem:[%s10758_s1 + $0x118] sm:$0xff]  ;;  %v9221_v26 = vld [vmem:[%s10758_s1 + $0x100] sm:$0xff] }
 0x1bf   :  { %5799 = vmatpush1.bf16.msra.mxu0 %v5798_v40  ;;  %v5816_v15 = vpack.c.bf16 %v1388_v16, %v1384_v31  ;;  %v1383_v61 = vmul.f32 %v9051_v9, %v8828_v28  ;;  %v1387_v39 = vmul.f32 %v9165_v36, %v8828_v28  ;;  %5815 = vmatpush1.bf16.msra.mxu1 %v5814_v14  ;;  %v9228_v0 = vld [vmem:[%s10758_s1 + $0x128] sm:$0xff] }
 0x1c0   :  { %1785 = vmatprep.mubr.f32.mxu0 %v10838_v41  ;;  %v5802_v20 = vpack.c.bf16 %v1385_v32, %v1381_v27  ;;  %v1390_v58 = vmul.f32 %v9173_v10, %v8550_v37  ;;  %v1394_v57 = vmul.f32 %v9180_v52, %v8550_v37  ;;  %6425 = vrot.lane.b32.xlu0 %v6424_v43, %s7135_s28 }
 0x1c1   :  { %1886 = vmatprep.mubr.f32.mxu1 %v10838_v41  ;;  %v5818_v48 = vpack.c.bf16 %v1387_v39, %v1383_v61  ;;  %v1392_v34 = vmul.f32 %v9189_v12, %v8755_v24  ;;  %v1396_v37 = vmul.f32 %v9196_v1, %v8755_v24  ;;  %6420 = vrot.lane.b32.xlu1 %v6419_v56, %s7135_s28 }
 0x1c2   :  { %v2637_v43 = vrot.slane %v8778_v8, %v7597_v2  ;;  %5801 = vmatprep.subr.bf16.mxu0 %v5800_v59  ;;  %v1389_v47 = vmul.f32 %v9206_v55, %v8794_v45  ;;  %v1393_v24 = vmul.f32 %v9213_v25, %v8794_v45  ;;  %5817 = vmatprep.subr.bf16.mxu1 %v5816_v15  ;;  %v1493_v59 = vld [vmem:[#allocation2 + $0x58] sm:$0xff]  ;;  %v9246_v15 = vld [vmem:[%s10758_s1 + $0xe8] sm:$0xff] }
 0x1c3   :  { %5624 = vmatmul.mubr.msk.f32.gmra.mrb[92].mxu0 %vm382_vm0, %v1492_v30  ;;  %v5804_v56 = vpack.c.bf16 %v1394_v57, %v1390_v58  ;;  %v1391_v40 = vmul.f32 %v9221_v26, %v8828_v28  ;;  %v1395_v45 = vmul.f32 %v9228_v0, %v8828_v28  ;;  %5630 = vmatmul.mubr.msk.f32.gmra.mrb[92].mxu1 %vm382_vm0, %v1492_v30 }
 0x1c4   :  { %5803 = vmatpush1.bf16.msra.mxu0 %v5802_v20  ;;  %v5820_v14 = vpack.c.bf16 %v1396_v37, %v1392_v34  ;;  %v10849_v31 = vrot.slane %v8778_v8, %v7591_v62  ;;  %v2649_v16 = vrot.slane %v8778_v8, %v7606_v5  ;;  %5819 = vmatpush1.bf16.msra.mxu1 %v5818_v48  ;;  %v1397_v20 = vld [vmem:[#allocation2] sm:$0xff] }
 0x1c5   :  { %2650 = vrot.lane.b32.xlu1 %v2637_v43, %s7136_s27  ;;  %v2645_v27 = vrot.slane %v8778_v8, %v7610_v7  ;;  %1791 = vmatprep.mubr.f32.mxu0 %v10838_v41  ;;  %v5806_v28 = vpack.c.bf16 %v1393_v24, %v1389_v47  ;;  %v2183_v32 = vmul.f32 %v9150_v4, %v8789_v13 }
 0x1c6   :  { %2652 = vrot.lane.b32.xlu0 %v10849_v31, %s7136_s27  ;;  %v2184_v61 = vmul.f32 %v9246_v15, %v8751_v19  ;;  %1892 = vmatprep.mubr.f32.mxu1 %v10838_v41  ;;  %v5822_v39 = vpack.c.bf16 %v1395_v45, %v1391_v40  ;;  %v2182_v8 = vmul.f32 %v9165_v36, %v8785_v17  ;;  %v9278_v40 = vld [vmem:[%s10758_s1 + $0x110] sm:$0xff] }
 0x1c7   :  { %5805 = vmatprep.subr.bf16.mxu0 %v5804_v56  ;;  %5821 = vmatprep.subr.bf16.mxu1 %v5820_v14  ;;  %v2181_v30 = vmul.f32 %v9139_v22, %v8732_v44  ;;  %v2187_v57 = vmul.f32 %v9221_v26, %v8785_v17  ;;  %v2188_v48 = vmul.f32 %v9189_v12, %v8789_v13 }
 0x1c8   :  { %5625 = vmatmul.mubr.msk.f32.gmra.mrb[94].mxu0 %vm382_vm0, %v1493_v59  ;;  %5631 = vmatmul.mubr.msk.f32.gmra.mrb[94].mxu1 %vm382_vm0, %v1493_v59  ;;  %v6434_v58 = vpack.i.bf16 %v2184_v61, %v2183_v32  ;;  %v2185_v37 = vmul.f32 %v9206_v55, %v8727_v51  ;;  %v2186_v43 = vmul.f32 %v9173_v10, %v8732_v44 }
 0x1c9   :  { %2654 = vrot.lane.b32.xlu1 %v2645_v27, %s7136_s27  ;;  %5807 = vmatpush1.bf16.msra.mxu0 %v5806_v28  ;;  %v6429_v34 = vpack.i.bf16 %v2182_v8, %v2181_v30  ;;  %v6444_v47 = vpack.i.bf16 %v2188_v48, %v2187_v57  ;;  %v2192_v24 = vmul.f32 %v9228_v0, %v8785_v17  ;;  %v9293_v27 = vld [vmem:[%s10758_s1 + $0x138] sm:$0xff] }
 0x1ca   :  { %2656 = vrot.lane.b32.xlu0 %v2649_v16, %s7136_s27  ;;  %5823 = vmatpush1.bf16.msra.mxu1 %v5822_v39  ;;  %v6439_v56 = vpack.i.bf16 %v2186_v43, %v2185_v37  ;;  %v2189_v45 = vmul.f32 %v9278_v40, %v8751_v19  ;;  %v2191_v14 = vmul.f32 %v9180_v52, %v8732_v44 }
 0x1cb   :  { %1981 = vmatprep.mubr.f32.mxu0 %v10838_v41  ;;  %2082 = vmatprep.mubr.f32.mxu1 %v10838_v41  ;;  %v2190_v17 = vmul.f32 %v9213_v25, %v8727_v51  ;;  %v2193_v59 = vmul.f32 %v9196_v1, %v8789_v13  ;;  %v2194_v28 = vmul.f32 %v9293_v27, %v8751_v19 }
 0x1cc   :  { %5632 = vmatmul.mubr.msk.f32.vlgmr.msra.gmra.mrb[84].mxu0 %vm382_vm0, %v1397_v20  ;;  %v6454_v31 = vpack.i.bf16 %v2192_v24, %v2191_v14 }
 0x1cd   :  { %6430 = vrot.lane.b32.xlu1 %v6429_v34, %s7135_s28  ;;  %5638 = vmatmul.mubr.msk.f32.vlgmr.msra.gmra.mrb[84].mxu1 %vm382_vm0, %v1397_v20  ;;  %v6449_v16 = vpack.i.bf16 %v2190_v17, %v2189_v45  ;;  %v6459_v44 = vpack.i.bf16 %v2194_v28, %v2193_v59 }
 0x1ce   :  { %6435 = vrot.lane.b32.xlu0 %v6434_v58, %s7135_s28  ;;  %1987 = vmatprep.mubr.f32.mxu0 %v10838_v41 }
 0x1cf   :  { %2088 = vmatprep.mubr.f32.mxu1 %v10838_v41 }
 0x1d1   :  { %6440 = vrot.lane.b32.xlu1 %v6439_v56, %s7135_s28 }
 0x1d2   :  { %6445 = vrot.lane.b32.xlu0 %v6444_v47, %s7135_s28 }
 0x1d5   :  { %6450 = vrot.lane.b32.xlu1 %v6449_v16, %s7135_s28 }
 0x1d6   :  { %6455 = vrot.lane.b32.xlu0 %v6454_v31, %s7135_s28 }
 0x1d9   :  { %6460 = vrot.lane.b32.xlu1 %v6459_v44, %s7135_s28  ;;  %s7137_s28 = smov 112  }
 0x218   :  { %v6366_v51 = vpop.permute.xlu0 %6365 }
 0x219   :  { %v6368_v39 = vunpack.i.h.bf16 %v6366_v51  ;;  %v6367_v13 = vunpack.i.l.bf16 %v6366_v51 }
 0x21b   :  { %v2323_v47 = vsel %vm2322_vm4, %v6367_v13, %v6368_v39 }
 0x21c   :  { %v6376_v32 = vpop.permute.xlu0 %6375 }
 0x21d   :  { %v6371_v61 = vpop.permute.xlu1 %6370  ;;  %v6377_v20 = vunpack.i.l.bf16 %v6376_v32  ;;  %v6378_v34 = vunpack.i.h.bf16 %v6376_v32 }
 0x21e   :  { %v6373_v8 = vunpack.i.h.bf16 %v6371_v61  ;;  %v6372_v30 = vunpack.i.l.bf16 %v6371_v61 }
 0x220   :  { %v2324_v24 = vsel %vm2322_vm4, %v6368_v39, %v6372_v30  ;;  %v2326_v56 = vsel %vm2322_vm4, %v6373_v8, %v6377_v20  ;;  %v2325_v28 = vsel %vm2322_vm4, %v6372_v30, %v6373_v8 }
 0x221   :  { %v6386_v58 = vpop.permute.xlu0 %6385 }
 0x222   :  { %v6381_v57 = vpop.permute.xlu1 %6380  ;;  %v6388_v48 = vunpack.i.h.bf16 %v6386_v58  ;;  %v6387_v19 = vunpack.i.l.bf16 %v6386_v58 }
 0x223   :  { %v6383_v37 = vunpack.i.h.bf16 %v6381_v57  ;;  %v6382_v43 = vunpack.i.l.bf16 %v6381_v57 }
 0x224   :  { %v2330_v45 = vsel %vm2322_vm4, %v6387_v19, %v6388_v48 }
 0x225   :  { %v2327_v14 = vsel %vm2322_vm4, %v6378_v34, %v6382_v43  ;;  %v2329_v17 = vsel %vm2322_vm4, %v6383_v37, %v6387_v19  ;;  %v6396_v31 = vpop.permute.xlu0 %6395  ;;  %v2328_v16 = vsel %vm2322_vm4, %v6382_v43, %v6383_v37  ;;  %v5840_v59 = vpack.c.bf16 %v2330_v45, %v2326_v56 }
 0x226   :  { %v6391_v44 = vpop.permute.xlu1 %6390  ;;  %v5824_v51 = vpack.c.bf16 %v2328_v16, %v2324_v24  ;;  %v5826_v32 = vpack.c.bf16 %v2327_v14, %v2323_v47  ;;  %v5842_v61 = vpack.c.bf16 %v2329_v17, %v2325_v28  ;;  %v6397_v13 = vunpack.i.l.bf16 %v6396_v31 }
 0x227   :  { %5841 = vmatprep.subr.bf16.mxu1 %v5840_v59  ;;  %v6393_v39 = vunpack.i.h.bf16 %v6391_v44  ;;  %v6392_v20 = vunpack.i.l.bf16 %v6391_v44  ;;  %v6398_v37 = vunpack.i.h.bf16 %v6396_v31 }
 0x228   :  { %5825 = vmatprep.subr.bf16.mxu0 %v5824_v51  ;;  %5843 = vmatpush1.bf16.msra.mxu1 %v5842_v61  ;;  %v1398_v61 = vld [vmem:[#allocation2 + $0x8] sm:$0xff] }
 0x229   :  { %5827 = vmatpush1.bf16.msra.mxu0 %v5826_v32  ;;  %v2332_v43 = vsel %vm2322_vm4, %v6393_v39, %v6397_v13  ;;  %v2331_v30 = vsel %vm2322_vm4, %v6392_v20, %v6393_v39  ;;  %v2333_v31 = vsel %vm2322_vm4, %v6397_v13, %v6398_v37  ;;  %5639 = vmatmul.mubr.msk.f32.gmra.mrb[86].mxu1 %vm382_vm0, %v1398_v61 }
 0x22a   :  { %v6406_v58 = vpop.permute.xlu0 %6405  ;;  %5633 = vmatmul.mubr.msk.f32.gmra.mrb[86].mxu0 %vm382_vm0, %v1398_v61  ;;  %2094 = vmatprep.mubr.f32.mxu1 %v10838_v41 }
 0x22b   :  { %v6401_v57 = vpop.permute.xlu1 %6400  ;;  %v6408_v48 = vunpack.i.h.bf16 %v6406_v58  ;;  %v6407_v19 = vunpack.i.l.bf16 %v6406_v58  ;;  %1993 = vmatprep.mubr.f32.mxu0 %v10838_v41 }
 0x22c   :  { %v6403_v34 = vunpack.i.h.bf16 %v6401_v57  ;;  %v6402_v47 = vunpack.i.l.bf16 %v6401_v57  ;;  %v1399_v57 = vld [vmem:[#allocation2 + $0x10] sm:$0xff] }
 0x22d   :  { %v2336_v8 = vsel %vm2322_vm4, %v6407_v19, %v6408_v48  ;;  %5640 = vmatmul.mubr.msk.f32.gmra.mrb[88].mxu1 %vm382_vm0, %v1399_v57 }
 0x22e   :  { %v2335_v24 = vsel %vm2322_vm4, %v6403_v34, %v6407_v19  ;;  %v9312_v56 = vpop.permute.xlu0 %6415  ;;  %v5828_v45 = vpack.c.bf16 %v2336_v8, %v2332_v43  ;;  %v2334_v51 = vsel %vm2322_vm4, %v6398_v37, %v6402_v47  ;;  %5634 = vmatmul.mubr.msk.f32.gmra.mrb[88].mxu0 %vm382_vm0, %v1399_v57  ;;  %v1400_v37 = vld [vmem:[#allocation2 + $0x18] sm:$0xff]  ;;  %2100 = vmatprep.mubr.f32.mxu1 %v10838_v41 }
 0x22f   :  { %v6411_v14 = vpop.permute.xlu1 %6410  ;;  %v5830_v17 = vpack.c.bf16 %v2335_v24, %v2331_v30  ;;  %1999 = vmatprep.mubr.f32.mxu0 %v10838_v41  ;;  %v6418_v8 = vunpack.i.h.bf16 %v9312_v56  ;;  %v6417_v47 = vunpack.i.l.bf16 %v9312_v56 }
 0x230   :  { %v6413_v16 = vunpack.i.h.bf16 %v6411_v14  ;;  %v6412_v59 = vunpack.i.l.bf16 %v6411_v14  ;;  %5829 = vmatprep.subr.bf16.mxu0 %v5828_v45 }
 0x231   :  { %5831 = vmatpush1.bf16.msra.mxu0 %v5830_v17  ;;  %v9348_v17 = vld [vmem:[#allocation4 + $0x14] sm:$0xf]  ;;  %5641 = vmatmul.mubr.msk.f32.gmra.mrb[90].mxu1 %vm382_vm0, %v1400_v37 }
 0x232   :  { %v2337_v28 = vsel %vm2322_vm4, %v6408_v48, %v6412_v59  ;;  %v9316_v44 = vpop.permute.xlu0 %6425  ;;  %v2338_v32 = vsel %vm2322_vm4, %v6412_v59, %v6413_v16  ;;  %5635 = vmatmul.mubr.msk.f32.gmra.mrb[90].mxu0 %vm382_vm0, %v1400_v37  ;;  %v3404_v61 = vrot.slane %v9348_v17, %v7591_v62  ;;  %v3400_v57 = vrot.slane %v9348_v17, %v7597_v2 }
 0x233   :  { %v9320_v39 = vpop.permute.xlu1 %6420  ;;  %v5844_v20 = vpack.c.bf16 %v2338_v32, %v2334_v51  ;;  %v5846_v58 = vpack.c.bf16 %v2337_v28, %v2333_v31  ;;  %v6427_v16 = vunpack.i.l.bf16 %v9316_v44  ;;  %2005 = vmatprep.mubr.f32.mxu0 %v10838_v41  ;;  %2106 = vmatprep.mubr.f32.mxu1 %v10838_v41 }
 0x235   :  { %5845 = vmatprep.subr.bf16.mxu1 %v5844_v20 }
 0x236   :  { %5847 = vmatpush1.bf16.msra.mxu1 %v5846_v58 }
 0x237   :  { %v9326_v48 = vpop.permute.xlu1 %2650 }
 0x238   :  { %v2653_v13 = vpop.permute.xlu0 %2652  ;;  %v2667_v34 = vmul.f32 %v8737_v21, %v9326_v48  ;;  %v2672_v21 = vmul.f32 %v8774_v53, %v9326_v48  ;;  %v6422_v53 = vunpack.i.l.bf16 %v9320_v39 }
 0x239   :  { %v9332_v19 = vsel %vm2658_vm5, %v9326_v48, %v2653_v13 }
 0x23a   :  { %v2668_v43 = vmul.f32 %v8596_v33, %v9332_v19  ;;  %v6423_v33 = vunpack.i.h.bf16 %v9320_v39 }
 0x23b   :  { %v2655_v24 = vpop.permute.xlu1 %2654 }
 0x23c   :  { %v9341_v30 = vpop.permute.xlu0 %2656  ;;  %v6464_v45 = vpack.i.bf16 %v2668_v43, %v2667_v34  ;;  %v9354_v59 = vsel %vm2658_vm5, %v2653_v13, %v2655_v24  ;;  %v2340_v43 = vsel %vm2322_vm4, %v6418_v8, %v6422_v53 }
 0x23d   :  { %v2671_v14 = vmul.f32 %v8767_v46, %v9341_v30  ;;  %v9358_v56 = vsel %vm2658_vm5, %v2655_v24, %v9341_v30  ;;  %v1401_v46 = vld [vmem:[#allocation2 + $0x20] sm:$0xff]  ;;  %v2669_v28 = vmul.f32 %v8805_v11, %v9354_v59  ;;  %v2339_v11 = vsel %vm2322_vm4, %v6417_v47, %v6418_v8 }
 0x23e   :  { %6465 = vrot.lane.b32.xlu0 %v6464_v45, %s7137_s28  ;;  %v2670_v51 = vmul.f32 %v8815_v6, %v9358_v56  ;;  %5636 = vmatmul.mubr.msk.f32.gmra.mrb[92].mxu0 %vm382_vm0, %v1401_v46  ;;  %v6428_v6 = vunpack.i.h.bf16 %v9316_v44  ;;  %v2342_v24 = vsel %vm2322_vm4, %v6423_v33, %v6427_v16 }
 0x23f   :  { %v6474_v31 = vpack.i.bf16 %v2672_v21, %v2671_v14  ;;  %v6431_v20 = vpop.permute.xlu1 %6430  ;;  %5642 = vmatmul.mubr.msk.f32.gmra.mrb[92].mxu1 %vm382_vm0, %v1401_v46  ;;  %2011 = vmatprep.mubr.f32.mxu0 %v10838_v41 }
 0x240   :  { %v6436_v32 = vpop.permute.xlu0 %6435  ;;  %v6469_v39 = vpack.i.bf16 %v2670_v51, %v2669_v28  ;;  %v6433_v34 = vunpack.i.h.bf16 %v6431_v20  ;;  %v6432_v37 = vunpack.i.l.bf16 %v6431_v20  ;;  %2112 = vmatprep.mubr.f32.mxu1 %v10838_v41  ;;  %v2341_v28 = vsel %vm2322_vm4, %v6422_v53, %v6423_v33 }
 0x241   :  { %v6438_v58 = vunpack.i.h.bf16 %v6436_v32  ;;  %v6437_v13 = vunpack.i.l.bf16 %v6436_v32  ;;  %v3408_v33 = vrot.slane %v9348_v17, %v7610_v7 }
 0x242   :  { %6475 = vrot.lane.b32.xlu0 %v6474_v31, %s7137_s28  ;;  %6470 = vrot.lane.b32.xlu1 %v6469_v39, %s7137_s28  ;;  %v2343_v47 = vsel %vm2322_vm4, %v6428_v6, %v6432_v37  ;;  %v2344_v21 = vsel %vm2322_vm4, %v6432_v37, %v6433_v34  ;;  %v1402_v31 = vld [vmem:[#allocation2 + $0x28] sm:$0xff] }
 0x243   :  { %v2346_v45 = vsel %vm2322_vm4, %v6437_v13, %v6438_v58  ;;  %v2345_v44 = vsel %vm2322_vm4, %v6433_v34, %v6437_v13  ;;  %v6441_v51 = vpop.permute.xlu1 %6440  ;;  %v5832_v8 = vpack.c.bf16 %v2344_v21, %v2340_v43  ;;  %v5834_v32 = vpack.c.bf16 %v2343_v47, %v2339_v11  ;;  %5637 = vmatmul.mubr.msk.f32.gmra.mrb[94].mxu0 %vm382_vm0, %v1402_v31 }
 0x244   :  { %v9385_v14 = vpop.permute.xlu0 %6445  ;;  %v5848_v46 = vpack.c.bf16 %v2346_v45, %v2342_v24  ;;  %v5850_v16 = vpack.c.bf16 %v2345_v44, %v2341_v28  ;;  %5643 = vmatmul.mubr.msk.f32.gmra.mrb[94].mxu1 %vm382_vm0, %v1402_v31  ;;  %v6443_v20 = vunpack.i.h.bf16 %v6441_v51  ;;  %v3412_v13 = vrot.slane %v9348_v17, %v7606_v5  ;;  %2469 = vmatprep.mubr.f32.mxu0 %v10838_v41  ;;  %v9407_v24 = vld [vmem:[%s10758_s1 + $0x30] sm:$0xff]  ;;  %v10852_v45 = vld [vmem:[#allocation26_spill] sm:$0xff] }
 0x245   :  { %v6447_v58 = vunpack.i.l.bf16 %v9385_v14  ;;  %v6442_v53 = vunpack.i.l.bf16 %v6441_v51  ;;  %5833 = vmatprep.subr.bf16.mxu0 %v5832_v8  ;;  %v2676_v11 = vmul.f32 %v8847_v38, %v9341_v30  ;;  %10851 = vst [vmem:[#allocation31_spill] sm:$0xff] %v9407_v24  ;;  %v2673_v38 = vmul.f32 %v9407_v24, %v9332_v19  ;;  %2570 = vmatprep.mubr.f32.mxu1 %v10838_v41 }
 0x246   :  { %5849 = vmatprep.subr.bf16.mxu1 %v5848_v46  ;;  %3415 = vrot.lane.b32.xlu0 %v3404_v61, %s7138_s7  ;;  %v2675_v61 = vmul.f32 %v8840_v49, %v9358_v56  ;;  %v2681_v47 = vmul.f32 %v10852_v45, %v9341_v30  ;;  %v6448_v49 = vunpack.i.h.bf16 %v9385_v14  ;;  %v2680_v46 = vmul.f32 %v8898_v54, %v9358_v56  ;;  %v10853_v45 = vld [vmem:[#allocation24_spill] sm:$0xff] }
 0x247   :  { %3413 = vrot.lane.b32.xlu1 %v3400_v57, %s7138_s7  ;;  %5851 = vmatpush1.bf16.msra.mxu1 %v5850_v16  ;;  %v6451_v6 = vpop.permute.xlu1 %6450  ;;  %v10850_v57 = vld [vmem:[#allocation25_spill] sm:$0xff]  ;;  %v2348_v44 = vsel %vm2322_vm4, %v6443_v20, %v6447_v58  ;;  %v2347_v31 = vsel %vm2322_vm4, %v6442_v53, %v6443_v20  ;;  %v2679_v14 = vmul.f32 %v8891_v23, %v9354_v59 }
 0x248   :  { %v6456_v39 = vpop.permute.xlu0 %6455  ;;  %5835 = vmatpush1.bf16.msra.mxu0 %v5834_v32  ;;  %v2674_v43 = vmul.f32 %v10850_v57, %v9354_v59  ;;  %v6453_v17 = vunpack.i.h.bf16 %v6451_v6  ;;  %v6452_v28 = vunpack.i.l.bf16 %v6451_v6  ;;  %v6484_v16 = vpack.i.bf16 %v2676_v11, %v2675_v61  ;;  %v10854_v53 = vld [vmem:[#allocation29_spill] sm:$0xff] }
 0x249   :  { %v6458_v34 = vunpack.i.h.bf16 %v6456_v39  ;;  %v6457_v37 = vunpack.i.l.bf16 %v6456_v39  ;;  %v2678_v24 = vmul.f32 %v10853_v45, %v9332_v19  ;;  %v6494_v54 = vpack.i.bf16 %v2681_v47, %v2680_v46  ;;  %v2196_v47 = vld [vmem:[#allocation2 + $0x60] sm:$0xff] }
 0x24a   :  { %3419 = vrot.lane.b32.xlu0 %v3412_v13, %s7138_s7  ;;  %v6479_v39 = vpack.i.bf16 %v2674_v43, %v2673_v38  ;;  %v2685_v20 = vmul.f32 %v9018_v3, %v9358_v56  ;;  %v2686_v11 = vmul.f32 %v10854_v53, %v9341_v30  ;;  %v2349_v6 = vsel %vm2322_vm4, %v6447_v58, %v6448_v49  ;;  %v10855_v3 = vld [vmem:[#allocation27_spill] sm:$0xff] }
 0x24b   :  { %3417 = vrot.lane.b32.xlu1 %v3408_v33, %s7138_s7  ;;  %v2352_v21 = vsel %vm2322_vm4, %v6457_v37, %v6458_v34  ;;  %v2351_v51 = vsel %vm2322_vm4, %v6453_v17, %v6457_v37  ;;  %v6461_v32 = vpop.permute.xlu1 %6460  ;;  %v2350_v37 = vsel %vm2322_vm4, %v6448_v49, %v6452_v28  ;;  %v6489_v43 = vpack.i.bf16 %v2679_v14, %v2678_v24 }
 0x24c   :  { %v5836_v8 = vpack.c.bf16 %v2352_v21, %v2348_v44  ;;  %v5838_v57 = vpack.c.bf16 %v2351_v51, %v2347_v31  ;;  %v6463_v13 = vunpack.i.h.bf16 %v6461_v32  ;;  %v6462_v33 = vunpack.i.l.bf16 %v6461_v32 }
 0x24d   :  { %v2684_v45 = vmul.f32 %v8972_v63, %v9354_v59  ;;  %v2683_v58 = vmul.f32 %v10855_v3, %v9332_v19  ;;  %v2682_v24 = vmul.f32 %v8990_v29, %v9326_v48  ;;  %v6504_v49 = vpack.i.bf16 %v2686_v11, %v2685_v20 }
 0x24e   :  { %5837 = vmatprep.subr.bf16.mxu0 %v5836_v8  ;;  %6485 = vrot.lane.b32.xlu0 %v6484_v16, %s7137_s28  ;;  %v2353_v23 = vsel %vm2322_vm4, %v6458_v34, %v6462_v33  ;;  %v2354_v61 = vsel %vm2322_vm4, %v6462_v33, %v6463_v13  ;;  %v2677_v34 = vmul.f32 %v8905_v35, %v9326_v48 }
 0x24f   :  { %6480 = vrot.lane.b32.xlu1 %v6479_v39, %s7137_s28  ;;  %5839 = vmatpush1.bf16.msra.mxu0 %v5838_v57  ;;  %v5852_v17 = vpack.c.bf16 %v2354_v61, %v2350_v37  ;;  %v5854_v38 = vpack.c.bf16 %v2353_v23, %v2349_v6  ;;  %v6499_v44 = vpack.i.bf16 %v2684_v45, %v2683_v58  ;;  %v2201_v45 = vld [vmem:[#allocation2 + $0x88] sm:$0xff] }
 0x250   :  { %v2689_v21 = vmul.f32 %v9051_v9, %v9354_v59  ;;  %v2688_v35 = vmul.f32 %v9006_v18, %v9332_v19  ;;  %v2694_v29 = vmul.f32 %v9165_v36, %v9354_v59  ;;  %v6509_v31 = vpack.i.bf16 %v2682_v24, %v2677_v34  ;;  %v10856_v9 = vld [vmem:[#allocation28_spill] sm:$0xff] }
 0x251   :  { %5853 = vmatprep.subr.bf16.mxu1 %v5852_v17  ;;  %v2690_v28 = vmul.f32 %v9060_v50, %v9358_v56  ;;  %v2691_v51 = vmul.f32 %v10856_v9, %v9341_v30  ;;  %v2693_v8 = vmul.f32 %v9139_v22, %v9332_v19  ;;  %v2687_v32 = vmul.f32 %v8997_v60, %v9326_v48  ;;  %v3907_v22 = vld [vmem:[#allocation4 + $0x18] sm:$0xf] }
 0x252   :  { %6495 = vrot.lane.b32.xlu0 %v6494_v54, %s7137_s28  ;;  %5644 = vmatmul.mubr.msk.f32.vlgmr.msra.gmra.mrb[84].mxu0 %vm382_vm0, %v2196_v47  ;;  %v6514_v46 = vpack.i.bf16 %v2689_v21, %v2688_v35  ;;  %v2692_v50 = vmul.f32 %v9089_v42, %v9326_v48  ;;  %v2695_v39 = vmul.f32 %v9150_v4, %v9358_v56 }
 0x253   :  { %6490 = vrot.lane.b32.xlu1 %v6489_v43, %s7137_s28  ;;  %5855 = vmatpush1.bf16.msra.mxu1 %v5854_v38  ;;  %v6524_v18 = vpack.i.bf16 %v2694_v29, %v2693_v8  ;;  %v6519_v16 = vpack.i.bf16 %v2691_v51, %v2690_v28  ;;  %v2696_v57 = vmul.f32 %v9246_v15, %v9341_v30  ;;  %v4419_v43 = vld [vmem:[#allocation4 + $0x1c] sm:$0xf]  ;;  %v2200_v38 = vld [vmem:[#allocation2 + $0x80] sm:$0xff] }
 0x254   :  { %2475 = vmatprep.mubr.f32.mxu0 %v10838_v41  ;;  %v6534_v14 = vpack.i.bf16 %v2692_v50, %v2687_v32  ;;  %v3916_v60 = vrot.slane %v3907_v22, %v7591_v62  ;;  %v3912_v42 = vrot.slane %v3907_v22, %v7597_v2  ;;  %v3924_v4 = vrot.slane %v3907_v22, %v7606_v5 }
 0x255   :  { %v6529_v13 = vpack.i.bf16 %v2696_v57, %v2695_v39  ;;  %v3920_v33 = vrot.slane %v3907_v22, %v7610_v7  ;;  %v2700_v54 = vmul.f32 %v9189_v12, %v9358_v56  ;;  %v2701_v20 = vmul.f32 %v9278_v40, %v9341_v30  ;;  %v9563_v22 = vld [vmem:[%s10758_s1 + $0x20] sm:$0xff] }
 0x256   :  { %6505 = vrot.lane.b32.xlu0 %v6504_v49, %s7137_s28  ;;  %5650 = vmatmul.mubr.msk.f32.vlgmr.msra.gmra.mrb[84].mxu1 %vm382_vm0, %v2196_v47  ;;  %v2699_v53 = vmul.f32 %v9221_v26, %v9354_v59  ;;  %v2698_v11 = vmul.f32 %v9173_v10, %v9332_v19  ;;  %v2705_v6 = vmul.f32 %v9196_v1, %v9358_v56 }
 0x257   :  { %6500 = vrot.lane.b32.xlu1 %v6499_v44, %s7137_s28  ;;  %2576 = vmatprep.mubr.f32.mxu1 %v10838_v41  ;;  %v6544_v23 = vpack.i.bf16 %v2701_v20, %v2700_v54  ;;  %v2706_v61 = vmul.f32 %v9293_v27, %v9341_v30  ;;  %v2704_v12 = vmul.f32 %v9228_v0, %v9354_v59  ;;  %v2199_v59 = vld [vmem:[#allocation2 + $0x78] sm:$0xff] }
 0x258   :  { %v6539_v37 = vpack.i.bf16 %v2699_v53, %v2698_v11  ;;  %v2703_v26 = vmul.f32 %v9180_v52, %v9332_v19  ;;  %v2697_v1 = vmul.f32 %v9206_v55, %v9326_v48  ;;  %v2702_v56 = vmul.f32 %v9213_v25, %v9326_v48  ;;  %v2197_v25 = vld [vmem:[#allocation2 + $0x68] sm:$0xff]  ;;  %v2198_v48 = vld [vmem:[#allocation2 + $0x70] sm:$0xff]  ;;  %v9591_v20 = vld [vmem:[%s10758_s1 + $0x38] sm:$0xff] }
 0x259   :  { %v6554_v10 = vpack.i.bf16 %v2706_v61, %v2705_v6  ;;  %v4424_v0 = vrot.slane %v4419_v43, %v7597_v2  ;;  %v4428_v52 = vrot.slane %v4419_v43, %v7591_v62  ;;  %v4432_v19 = vrot.slane %v4419_v43, %v7610_v7  ;;  %5645 = vmatmul.mubr.msk.f32.gmra.mrb[86].mxu0 %vm382_vm0, %v2197_v25  ;;  %v9598_v11 = vld [vmem:[%s10758_s1 + $0x40] sm:$0xff] }
 0x25a   :  { %6515 = vrot.lane.b32.xlu0 %v6514_v46, %s7137_s28  ;;  %v6549_v17 = vpack.i.bf16 %v2704_v12, %v2703_v26  ;;  %v6559_v30 = vpack.i.bf16 %v2702_v56, %v2697_v1  ;;  %v4436_v55 = vrot.slane %v4419_v43, %v7606_v5  ;;  %5651 = vmatmul.mubr.msk.f32.gmra.mrb[86].mxu1 %vm382_vm0, %v2197_v25  ;;  %v9607_v61 = vld [vmem:[%s10758_s1] sm:$0xff]  ;;  %v9614_v26 = vld [vmem:[%s10758_s1 + $0x28] sm:$0xff] }
 0x25b   :  { %6510 = vrot.lane.b32.xlu1 %v6509_v31, %s7137_s28  ;;  %2582 = vmatprep.mubr.f32.mxu1 %v10838_v41 }
 0x25c   :  { %2481 = vmatprep.mubr.f32.mxu0 %v10838_v41 }
 0x25d   :  { %5646 = vmatmul.mubr.msk.f32.gmra.mrb[88].mxu0 %vm382_vm0, %v2198_v48 }
 0x25e   :  { %6525 = vrot.lane.b32.xlu0 %v6524_v18, %s7137_s28  ;;  %5652 = vmatmul.mubr.msk.f32.gmra.mrb[88].mxu1 %vm382_vm0, %v2198_v48  ;;  %v9547_v18 = vld [vmem:[%s10758_s1 + $0x8] sm:$0xff] }
 0x25f   :  { %6520 = vrot.lane.b32.xlu1 %v6519_v16, %s7137_s28  ;;  %2588 = vmatprep.mubr.f32.mxu1 %v10838_v41 }
 0x260   :  { %2487 = vmatprep.mubr.f32.mxu0 %v10838_v41 }
 0x261   :  { %5647 = vmatmul.mubr.msk.f32.gmra.mrb[90].mxu0 %vm382_vm0, %v2199_v59 }
 0x262   :  { %6535 = vrot.lane.b32.xlu0 %v6534_v14, %s7137_s28  ;;  %5653 = vmatmul.mubr.msk.f32.gmra.mrb[90].mxu1 %vm382_vm0, %v2199_v59 }
 0x263   :  { %6530 = vrot.lane.b32.xlu1 %v6529_v13, %s7137_s28  ;;  %2594 = vmatprep.mubr.f32.mxu1 %v10838_v41  ;;  %v9570_v13 = vld [vmem:[%s10758_s1 + $0x48] sm:$0xff] }
 0x264   :  { %2493 = vmatprep.mubr.f32.mxu0 %v10838_v41 }
 0x265   :  { %5648 = vmatmul.mubr.msk.f32.gmra.mrb[92].mxu0 %vm382_vm0, %v2200_v38 }
 0x266   :  { %3927 = vrot.lane.b32.xlu0 %v3916_v60, %s7139_s5  ;;  %5654 = vmatmul.mubr.msk.f32.gmra.mrb[92].mxu1 %vm382_vm0, %v2200_v38 }
 0x267   :  { %3925 = vrot.lane.b32.xlu1 %v3912_v42, %s7139_s5  ;;  %2600 = vmatprep.mubr.f32.mxu1 %v10838_v41  ;;  %v9577_v42 = vld [vmem:[%s10758_s1 + $0x10] sm:$0xff] }
 0x268   :  { %2499 = vmatprep.mubr.f32.mxu0 %v10838_v41 }
 0x269   :  { %5649 = vmatmul.mubr.msk.f32.gmra.mrb[94].mxu0 %vm382_vm0, %v2201_v45 }
 0x26a   :  { %3931 = vrot.lane.b32.xlu0 %v3924_v4, %s7139_s5  ;;  %5655 = vmatmul.mubr.msk.f32.gmra.mrb[94].mxu1 %vm382_vm0, %v2201_v45 }
 0x26b   :  { %3929 = vrot.lane.b32.xlu1 %v3920_v33, %s7139_s5  ;;  %3082 = vmatprep.mubr.f32.mxu1 %v10838_v41  ;;  %v9584_v33 = vld [vmem:[%s10758_s1 + $0x18] sm:$0xff] }
 0x26c   :  { %2981 = vmatprep.mubr.f32.mxu0 %v10838_v41 }
 0x26e   :  { %6545 = vrot.lane.b32.xlu0 %v6544_v23, %s7137_s28  ;;  %v10857_v23 = vld [vmem:[#allocation31_spill] sm:$0xff] }
 0x26f   :  { %6540 = vrot.lane.b32.xlu1 %v6539_v37, %s7137_s28 }
 0x272   :  { %6555 = vrot.lane.b32.xlu0 %v6554_v10, %s7137_s28  ;;  %v9621_v10 = vld [vmem:[%s10758_s1 + $0x60] sm:$0xff] }
 0x273   :  { %6550 = vrot.lane.b32.xlu1 %v6549_v17, %s7137_s28 }
 0x276   :  { %4437 = vrot.lane.b32.xlu0 %v4424_v0, %s7140_s14 }
 0x277   :  { %6560 = vrot.lane.b32.xlu1 %v6559_v30, %s7137_s28  ;;  %s7141_s28 = smov 110  }
 0x27a   :  { %4441 = vrot.lane.b32.xlu0 %v4432_v19, %s7140_s14 }
 0x27b   :  { %4439 = vrot.lane.b32.xlu1 %v4428_v52, %s7140_s14  ;;  %v9628_v52 = vld [vmem:[%s10758_s1 + $0x68] sm:$0xff] }
 0x27f   :  { %4443 = vrot.lane.b32.xlu1 %v4436_v55, %s7140_s14  ;;  %v10858_v55 = vld [vmem:[#allocation26_spill] sm:$0xff] }
 0x2b0   :  { %v6466_v47 = vpop.permute.xlu0 %6465 }
 0x2b1   :  { %v6468_v34 = vunpack.i.h.bf16 %v6466_v47  ;;  %v6467_v24 = vunpack.i.l.bf16 %v6466_v47 }
 0x2b3   :  { %v9537_v31 = vsel %vm2834_vm7, %v6467_v24, %v6468_v34 }
 0x2b4   :  { %v6471_v3 = vpop.permute.xlu1 %6470  ;;  %v6476_v58 = vpop.permute.xlu0 %6475 }
 0x2b5   :  { %v6473_v49 = vunpack.i.h.bf16 %v6471_v3  ;;  %v6472_v44 = vunpack.i.l.bf16 %v6471_v3  ;;  %v6477_v21 = vunpack.i.l.bf16 %v6476_v58  ;;  %v6478_v28 = vunpack.i.h.bf16 %v6476_v58 }
 0x2b7   :  { %v9540_v9 = vsel %vm2834_vm7, %v6472_v44, %v6473_v49  ;;  %v2836_v16 = vsel %vm2834_vm7, %v6468_v34, %v6472_v44  ;;  %v2838_v50 = vsel %vm2834_vm7, %v6473_v49, %v6477_v21 }
 0x2b8   :  { %v3416_v29 = vpop.permute.xlu0 %3415 }
 0x2b9   :  { %v9530_v35 = vpop.permute.xlu1 %3413 }
 0x2ba   :  { %v9534_v46 = vsel %vm3421_vm6, %v9530_v35, %v3416_v29  ;;  %v3430_v12 = vmul.f32 %v9607_v61, %v9530_v35  ;;  %v3435_v43 = vmul.f32 %v9614_v26, %v9530_v35 }
 0x2bb   :  { %v3431_v32 = vmul.f32 %v9547_v18, %v9534_v46  ;;  %v3436_v37 = vmul.f32 %v10857_v23, %v9534_v46 }
 0x2bc   :  { %v9542_v8 = vpop.permute.xlu0 %3419 }
 0x2bd   :  { %v3418_v51 = vpop.permute.xlu1 %3417  ;;  %v3434_v14 = vmul.f32 %v9563_v22, %v9542_v8  ;;  %v3439_v60 = vmul.f32 %v9570_v13, %v9542_v8  ;;  %v9636_v25 = vmul.f32 %v10858_v55, %v9542_v8 }
 0x2be   :  { %v9554_v39 = vsel %vm3421_vm6, %v3416_v29, %v3418_v51  ;;  %v9558_v57 = vsel %vm3421_vm6, %v3418_v51, %v9542_v8 }
 0x2bf   :  { %v3432_v4 = vmul.f32 %v9577_v42, %v9554_v39  ;;  %v3433_v54 = vmul.f32 %v9584_v33, %v9558_v57  ;;  %v3437_v53 = vmul.f32 %v9591_v20, %v9554_v39  ;;  %v3438_v6 = vmul.f32 %v9598_v11, %v9558_v57 }
 0x2c0   :  { %v3442_v17 = vmul.f32 %v9621_v10, %v9554_v39  ;;  %v6486_v56 = vpop.permute.xlu0 %6485  ;;  %v9632_v19 = vmul.f32 %v9628_v52, %v9558_v57  ;;  %v3447_v58 = vmul.f32 %v8972_v63, %v9554_v39  ;;  %v9651_v63 = vld [vmem:[%s10758_s1 + $0x58] sm:$0xff] }
 0x2c1   :  { %v6481_v1 = vpop.permute.xlu1 %6480  ;;  %v6564_v0 = vpack.i.bf16 %v3432_v4, %v3431_v32  ;;  %v6569_v30 = vpack.i.bf16 %v3434_v14, %v3433_v54  ;;  %v6488_v38 = vunpack.i.h.bf16 %v6486_v56  ;;  %v6487_v45 = vunpack.i.l.bf16 %v6486_v56 }
 0x2c2   :  { %v6483_v48 = vunpack.i.h.bf16 %v6481_v1  ;;  %v6482_v59 = vunpack.i.l.bf16 %v6481_v1  ;;  %v6574_v47 = vpack.i.bf16 %v3437_v53, %v3436_v37  ;;  %v6579_v3 = vpack.i.bf16 %v3439_v60, %v3438_v6  ;;  %v9667_v6 = vld [vmem:[%s10758_s1 + $0x50] sm:$0xff]  ;;  %v9674_v1 = vld [vmem:[%s10758_s1 + $0x78] sm:$0xff] }
 0x2c3   :  { %6565 = vrot.lane.b32.xlu0 %v6564_v0, %s7141_s28  ;;  %6570 = vrot.lane.b32.xlu1 %v6569_v30, %s7141_s28  ;;  %v2842_v44 = vsel %vm2834_vm7, %v6487_v45, %v6488_v38  ;;  %v3440_v37 = vmul.f32 %v9667_v6, %v9530_v35  ;;  %v3445_v56 = vmul.f32 %v9674_v1, %v9530_v35 }
 0x2c4   :  { %v2839_v34 = vsel %vm2834_vm7, %v6478_v28, %v6482_v59  ;;  %v2841_v24 = vsel %vm2834_vm7, %v6483_v48, %v6487_v45  ;;  %v2840_v49 = vsel %vm2834_vm7, %v6482_v59, %v6483_v48  ;;  %v6496_v29 = vpop.permute.xlu0 %6495  ;;  %v5872_v32 = vpack.c.bf16 %v2842_v44, %v2838_v50 }
 0x2c5   :  { %v6491_v21 = vpop.permute.xlu1 %6490  ;;  %v5856_v51 = vpack.c.bf16 %v2840_v49, %v2836_v16  ;;  %v5858_v14 = vpack.c.bf16 %v2839_v34, %v9537_v31  ;;  %v5874_v4 = vpack.c.bf16 %v2841_v24, %v9540_v9  ;;  %v3441_v28 = vmul.f32 %v9651_v63, %v9534_v46  ;;  %v9660_v31 = vld [vmem:[%s10758_s1 + $0x80] sm:$0xff] }
 0x2c6   :  { %v6493_v60 = vunpack.i.h.bf16 %v6491_v21  ;;  %v6492_v54 = vunpack.i.l.bf16 %v6491_v21  ;;  %v6497_v53 = vunpack.i.l.bf16 %v6496_v29  ;;  %v3446_v9 = vmul.f32 %v9660_v31, %v9534_v46  ;;  %5873 = vmatprep.subr.bf16.mxu1 %v5872_v32  ;;  %v9700_v32 = vld [vmem:[%s10758_s1 + $0x98] sm:$0xff] }
 0x2c7   :  { %6575 = vrot.lane.b32.xlu0 %v6574_v47, %s7141_s28  ;;  %6580 = vrot.lane.b32.xlu1 %v6579_v3, %s7141_s28  ;;  %v6498_v16 = vunpack.i.h.bf16 %v6496_v29  ;;  %v6584_v50 = vpack.i.bf16 %v3435_v43, %v3430_v12  ;;  %v6589_v43 = vpack.i.bf16 %v3442_v17, %v3441_v28  ;;  %v6594_v30 = vpack.i.bf16 %v9636_v25, %v9632_v19  ;;  %v9687_v17 = vld [vmem:[%s10758_s1 + $0x90] sm:$0xff] }
 0x2c8   :  { %5857 = vmatprep.subr.bf16.mxu0 %v5856_v51  ;;  %5875 = vmatpush1.bf16.msra.mxu1 %v5874_v4  ;;  %v6506_v12 = vpop.permute.xlu0 %6505  ;;  %v6599_v55 = vpack.i.bf16 %v3447_v58, %v3446_v9  ;;  %v2845_v47 = vsel %vm2834_vm7, %v6493_v60, %v6497_v53  ;;  %v2844_v3 = vsel %vm2834_vm7, %v6492_v54, %v6493_v60 }
 0x2c9   :  { %5859 = vmatpush1.bf16.msra.mxu0 %v5858_v14  ;;  %v6501_v0 = vpop.permute.xlu1 %6500  ;;  %v6508_v38 = vunpack.i.h.bf16 %v6506_v12  ;;  %v6507_v45 = vunpack.i.l.bf16 %v6506_v12  ;;  %v3448_v19 = vmul.f32 %v9687_v17, %v9558_v57  ;;  %v2846_v34 = vsel %vm2834_vm7, %v6497_v53, %v6498_v16  ;;  %v9709_v53 = vld [vmem:[%s10758_s1 + $0xb0] sm:$0xff] }
 0x2ca   :  { %v6503_v48 = vunpack.i.h.bf16 %v6501_v0  ;;  %v6502_v59 = vunpack.i.l.bf16 %v6501_v0  ;;  %v3449_v14 = vmul.f32 %v9700_v32, %v9542_v8  ;;  %v6609_v60 = vpack.i.bf16 %v3445_v56, %v3440_v37 }
 0x2cb   :  { %6585 = vrot.lane.b32.xlu0 %v6584_v50, %s7141_s28  ;;  %6590 = vrot.lane.b32.xlu1 %v6589_v43, %s7141_s28  ;;  %v2850_v24 = vsel %vm2834_vm7, %v6507_v45, %v6508_v38  ;;  %v3452_v9 = vmul.f32 %v9709_v53, %v9554_v39 }
 0x2cc   :  { %v2849_v25 = vsel %vm2834_vm7, %v6503_v48, %v6507_v45  ;;  %v2848_v58 = vsel %vm2834_vm7, %v6502_v59, %v6503_v48  ;;  %v9695_v44 = vpop.permute.xlu0 %6515  ;;  %v5876_v29 = vpack.c.bf16 %v2850_v24, %v2846_v34  ;;  %v6604_v43 = vpack.i.bf16 %v3449_v14, %v3448_v19  ;;  %v9727_v48 = vld [vmem:[%s10758_s1 + $0xc0] sm:$0xff]  ;;  %v9741_v19 = vld [vmem:[%s10758_s1 + $0xd0] sm:$0xff]  ;;  %v9761_v14 = vld [vmem:[%s10758_s1 + $0xc8] sm:$0xff] }
 0x2cd   :  { %v6511_v49 = vpop.permute.xlu1 %6510  ;;  %v5860_v21 = vpack.c.bf16 %v2848_v58, %v2844_v3  ;;  %v5878_v51 = vpack.c.bf16 %v2849_v25, %v2845_v47  ;;  %v6518_v0 = vunpack.i.h.bf16 %v9695_v44  ;;  %v6517_v12 = vunpack.i.l.bf16 %v9695_v44  ;;  %v9734_v47 = vld [vmem:[%s10758_s1 + $0xa8] sm:$0xff]  ;;  %10859 = vst [vmem:[#allocation30_spill] sm:$0xff] %v9741_v19  ;;  %10861 = vst [vmem:[#allocation24_spill] sm:$0xff] %v9761_v14 }
 0x2ce   :  { %v6513_v4 = vunpack.i.h.bf16 %v6511_v49  ;;  %v6512_v28 = vunpack.i.l.bf16 %v6511_v49  ;;  %5877 = vmatprep.subr.bf16.mxu1 %v5876_v29  ;;  %v3451_v3 = vmul.f32 %v9734_v47, %v9534_v46  ;;  %v3456_v25 = vmul.f32 %v9741_v19, %v9534_v46  ;;  %v9752_v49 = vld [vmem:[%s10758_s1 + $0xa0] sm:$0xff] }
 0x2cf   :  { %6595 = vrot.lane.b32.xlu0 %v6594_v30, %s7141_s28  ;;  %6600 = vrot.lane.b32.xlu1 %v6599_v55, %s7141_s28  ;;  %v9720_v55 = vld [vmem:[%s10758_s1 + $0xb8] sm:$0xff]  ;;  %v3457_v24 = vmul.f32 %v9165_v36, %v9554_v39  ;;  %10860 = vst [vmem:[#allocation25_spill] sm:$0xff] %v9752_v49  ;;  %v3450_v44 = vmul.f32 %v9752_v49, %v9530_v35 }
 0x2d0   :  { %v2843_v16 = vsel %vm2834_vm7, %v6512_v28, %v6492_v54  ;;  %v2847_v50 = vsel %vm2834_vm7, %v6513_v4, %v6502_v59  ;;  %5861 = vmatprep.subr.bf16.mxu0 %v5860_v21  ;;  %5879 = vmatpush1.bf16.msra.mxu1 %v5878_v51  ;;  %v6526_v56 = vpop.permute.xlu0 %6525  ;;  %v3453_v54 = vmul.f32 %v9720_v55, %v9558_v57 }
 0x2d1   :  { %v6521_v37 = vpop.permute.xlu1 %6520  ;;  %v5862_v30 = vpack.c.bf16 %v2847_v50, %v2843_v16  ;;  %v3454_v59 = vmul.f32 %v9727_v48, %v9542_v8  ;;  %v6528_v38 = vunpack.i.h.bf16 %v6526_v56  ;;  %v6527_v45 = vunpack.i.l.bf16 %v6526_v56 }
 0x2d2   :  { %v6523_v58 = vunpack.i.h.bf16 %v6521_v37  ;;  %v6522_v34 = vunpack.i.l.bf16 %v6521_v37  ;;  %v6614_v21 = vpack.i.bf16 %v3452_v9, %v3451_v3  ;;  %v2852_v29 = vsel %vm2834_vm7, %v6517_v12, %v6518_v0  ;;  %v9768_v9 = vld [vmem:[%s10758_s1 + $0xe0] sm:$0xff] }
 0x2d3   :  { %6605 = vrot.lane.b32.xlu0 %v6604_v43, %s7141_s28  ;;  %6610 = vrot.lane.b32.xlu1 %v6609_v60, %s7141_s28  ;;  %v2856_v51 = vsel %vm2834_vm7, %v6527_v45, %v6528_v38  ;;  %v3455_v36 = vmul.f32 %v9761_v14, %v9530_v35  ;;  %v6619_v60 = vpack.i.bf16 %v3454_v59, %v3453_v54 }
 0x2d4   :  { %5863 = vmatpush1.bf16.msra.mxu0 %v5862_v30  ;;  %v6536_v28 = vpop.permute.xlu0 %6535  ;;  %v5864_v16 = vpack.c.bf16 %v2856_v51, %v2852_v29  ;;  %10862 = vst [vmem:[#allocation29_spill] sm:$0xff] %v9768_v9  ;;  %v3458_v50 = vmul.f32 %v9768_v9, %v9558_v57  ;;  %v3459_v37 = vmul.f32 %v9246_v15, %v9542_v8 }
 0x2d5   :  { %v6531_v4 = vpop.permute.xlu1 %6530  ;;  %v6538_v30 = vunpack.i.h.bf16 %v6536_v28  ;;  %v6537_v3 = vunpack.i.l.bf16 %v6536_v28  ;;  %v2853_v14 = vsel %vm2834_vm7, %v6518_v0, %v6522_v34  ;;  %v6624_v54 = vpack.i.bf16 %v3457_v24, %v3456_v25  ;;  %v9803_v24 = vld [vmem:[%s10758_s1 + $0x108] sm:$0xff] }
 0x2d6   :  { %v6533_v56 = vunpack.i.h.bf16 %v6531_v4  ;;  %v6532_v43 = vunpack.i.l.bf16 %v6531_v4  ;;  %v2854_v59 = vsel %vm2834_vm7, %v6522_v34, %v6523_v58  ;;  %5865 = vmatprep.subr.bf16.mxu0 %v5864_v16  ;;  %v4931_v4 = vld [vmem:[#allocation4 + $0x20] sm:$0xf]  ;;  %v6629_v9 = vpack.i.bf16 %v3459_v37, %v3458_v50  ;;  %v9819_v16 = vld [vmem:[%s10758_s1 + $0xf8] sm:$0xff]  ;;  %v9827_v50 = vld [vmem:[%s10758_s1 + $0x120] sm:$0xff] }
 0x2d7   :  { %6615 = vrot.lane.b32.xlu0 %v6614_v21, %s7141_s28  ;;  %6620 = vrot.lane.b32.xlu1 %v6619_v60, %s7141_s28  ;;  %v2851_v51 = vsel %vm2834_vm7, %v6537_v3, %v6517_v12  ;;  %v2855_v49 = vsel %vm2834_vm7, %v6538_v30, %v6527_v45  ;;  %v6634_v25 = vpack.i.bf16 %v3455_v36, %v3450_v44 }
 0x2d8   :  { %v2857_v29 = vsel %vm2834_vm7, %v6528_v38, %v6532_v43  ;;  %v2858_v15 = vsel %vm2834_vm7, %v6532_v43, %v6533_v56  ;;  %v3928_v0 = vpop.permute.xlu0 %3927  ;;  %v5866_v21 = vpack.c.bf16 %v2855_v49, %v2851_v51  ;;  %v4936_v38 = vrot.slane %v4931_v4, %v7597_v2  ;;  %v9796_v2 = vld [vmem:[%s10758_s1 + $0x100] sm:$0xff] }
 0x2d9   :  { %v9782_v28 = vpop.permute.xlu1 %3925  ;;  %v5880_v19 = vpack.c.bf16 %v2858_v15, %v2854_v59  ;;  %v5882_v60 = vpack.c.bf16 %v2857_v29, %v2853_v14  ;;  %v4940_v58 = vrot.slane %v4931_v4, %v7591_v62  ;;  %v4944_v34 = vrot.slane %v4931_v4, %v7610_v7  ;;  %v9812_v7 = vld [vmem:[%s10758_s1 + $0x128] sm:$0xff] }
 0x2da   :  { %5867 = vmatpush1.bf16.msra.mxu0 %v5866_v21  ;;  %v3463_v49 = vmul.f32 %v9803_v24, %v9558_v57  ;;  %v3464_v62 = vmul.f32 %v9278_v40, %v9542_v8  ;;  %v3467_v44 = vmul.f32 %v9812_v7, %v9554_v39  ;;  %v4948_v40 = vrot.slane %v4931_v4, %v7606_v5  ;;  %v9836_v5 = vld [vmem:[%s10758_s1 + $0x130] sm:$0xff] }
 0x2db   :  { %6625 = vrot.lane.b32.xlu0 %v6624_v54, %s7141_s28  ;;  %6630 = vrot.lane.b32.xlu1 %v6629_v9, %s7141_s28  ;;  %v3461_v9 = vmul.f32 %v9819_v16, %v9534_v46  ;;  %v3468_v29 = vmul.f32 %v9836_v5, %v9558_v57  ;;  %v3469_v21 = vmul.f32 %v9293_v27, %v9542_v8 }
 0x2dc   :  { %5881 = vmatprep.subr.bf16.mxu1 %v5880_v19  ;;  %v9787_v45 = vpop.permute.xlu0 %3931  ;;  %v3462_v19 = vmul.f32 %v9796_v2, %v9554_v39  ;;  %v3466_v39 = vmul.f32 %v9827_v50, %v9534_v46  ;;  %v6644_v54 = vpack.i.bf16 %v3464_v62, %v3463_v49  ;;  %v9842_v46 = vsel %vm3933_vm8, %v9782_v28, %v3928_v0 }
 0x2dd   :  { %5883 = vmatpush1.bf16.msra.mxu1 %v5882_v60  ;;  %v3930_v12 = vpop.permute.xlu1 %3929  ;;  %v9852_v60 = vld [vmem:[%s10758_s1 + $0xf0] sm:$0xff] }
 0x2de   :  { %v6639_v30 = vpack.i.bf16 %v3462_v19, %v3461_v9  ;;  %v6649_v59 = vpack.i.bf16 %v3467_v44, %v3466_v39  ;;  %v9845_v51 = vsel %vm3933_vm8, %v3928_v0, %v3930_v12  ;;  %v3460_v57 = vmul.f32 %v9852_v60, %v9530_v35  ;;  %v9871_v39 = vld [vmem:[%s10758_s1 + $0x118] sm:$0xff] }
 0x2df   :  { %6635 = vrot.lane.b32.xlu0 %v6634_v25, %s7141_s28  ;;  %4949 = vrot.lane.b32.xlu1 %v4936_v38, %s7142_s12  ;;  %v9862_v8 = vsel %vm3933_vm8, %v3930_v12, %v9787_v45  ;;  %v3465_v12 = vmul.f32 %v9871_v39, %v9530_v35 }
 0x2e0   :  { %v6546_v36 = vpop.permute.xlu0 %6545 }
 0x2e1   :  { %v6541_v14 = vpop.permute.xlu1 %6540  ;;  %v6547_v43 = vunpack.i.l.bf16 %v6546_v36  ;;  %v6548_v3 = vunpack.i.h.bf16 %v6546_v36 }
 0x2e2   :  { %v6543_v37 = vunpack.i.h.bf16 %v6541_v14  ;;  %v6542_v56 = vunpack.i.l.bf16 %v6541_v14 }
 0x2e3   :  { %4951 = vrot.lane.b32.xlu0 %v4940_v58, %s7142_s12  ;;  %4953 = vrot.lane.b32.xlu1 %v4944_v34, %s7142_s12  ;;  %v2862_v62 = vsel %vm2834_vm7, %v6547_v43, %v6548_v3  ;;  %v3945_v3 = vmul.f32 %v9584_v33, %v9862_v8 }
 0x2e4   :  { %v6556_v4 = vpop.permute.xlu0 %6555  ;;  %v2861_v0 = vsel %vm2834_vm7, %v6543_v37, %v6547_v43  ;;  %v2860_v27 = vsel %vm2834_vm7, %v6542_v56, %v6543_v37  ;;  %v3944_v43 = vmul.f32 %v9577_v42, %v9845_v51 }
 0x2e5   :  { %v6551_v15 = vpop.permute.xlu1 %6550  ;;  %v6558_v58 = vunpack.i.h.bf16 %v6556_v4  ;;  %v6557_v34 = vunpack.i.l.bf16 %v6556_v4  ;;  %v3946_v4 = vmul.f32 %v9563_v22, %v9787_v45 }
 0x2e6   :  { %v6553_v38 = vunpack.i.h.bf16 %v6551_v15  ;;  %v6552_v25 = vunpack.i.l.bf16 %v6551_v15  ;;  %v3943_v15 = vmul.f32 %v9547_v18, %v9842_v46 }
 0x2e7   :  { %4955 = vrot.lane.b32.xlu0 %v4948_v40, %s7142_s12  ;;  %6640 = vrot.lane.b32.xlu1 %v6639_v30, %s7141_s28  ;;  %v2866_v44 = vsel %vm2834_vm7, %v6557_v34, %v6558_v58 }
 0x2e8   :  { %v2865_v19 = vsel %vm2834_vm7, %v6553_v38, %v6557_v34  ;;  %v2864_v49 = vsel %vm2834_vm7, %v6552_v25, %v6553_v38  ;;  %v5884_v40 = vpack.c.bf16 %v2866_v44, %v2862_v62  ;;  %v6659_v34 = vpack.i.bf16 %v3465_v12, %v3460_v57  ;;  %v2709_v62 = vld [vmem:[#allocation2 + $0x98] sm:$0xff]  ;;  %v9917_v12 = vld [vmem:[%s10758_s1 + $0x70] sm:$0xff] }
 0x2e9   :  { %v5886_v14 = vpack.c.bf16 %v2865_v19, %v2861_v0  ;;  %v6561_v36 = vpop.permute.xlu1 %6560  ;;  %v5868_v9 = vpack.c.bf16 %v2864_v49, %v2860_v27  ;;  %v3949_v0 = vmul.f32 %v9591_v20, %v9845_v51  ;;  %v3951_v27 = vmul.f32 %v9570_v13, %v9787_v45  ;;  %v2708_v19 = vld [vmem:[#allocation2 + $0x90] sm:$0xff]  ;;  %v10863_v49 = vld [vmem:[#allocation9_spill] sm:$0xff] }
 0x2ea   :  { %v6563_v37 = vunpack.i.h.bf16 %v6561_v36  ;;  %v6562_v30 = vunpack.i.l.bf16 %v6561_v36  ;;  %5885 = vmatprep.subr.bf16.mxu1 %v5884_v40  ;;  %v3953_v57 = vmul.f32 %v9651_v63, %v9842_v46  ;;  %v3954_v36 = vmul.f32 %v9621_v10, %v9845_v51 }
 0x2eb   :  { %6645 = vrot.lane.b32.xlu0 %v6644_v54, %s7141_s28  ;;  %6650 = vrot.lane.b32.xlu1 %v6649_v59, %s7141_s28  ;;  %v6654_v54 = vpack.i.bf16 %v3469_v21, %v3468_v29  ;;  %v3948_v59 = vmul.f32 %v10857_v23, %v9842_v46  ;;  %v3950_v29 = vmul.f32 %v9598_v11, %v9862_v8 }
 0x2ec   :  { %v2859_v35 = vsel %vm2834_vm7, %v6562_v30, %v6542_v56  ;;  %v2863_v38 = vsel %vm2834_vm7, %v6563_v37, %v6552_v25  ;;  %5869 = vmatprep.subr.bf16.mxu0 %v5868_v9  ;;  %5887 = vmatpush1.bf16.msra.mxu1 %v5886_v14  ;;  %v6664_v56 = vpack.i.bf16 %v3944_v43, %v3943_v15  ;;  %v9929_v43 = vld [vmem:[%s10758_s1 + $0x88] sm:$0xff] }
 0x2ed   :  { %v5870_v58 = vpack.c.bf16 %v2863_v38, %v2859_v35  ;;  %5905 = vmatprep.subr.bf16.mxu1 %v10863_v49  ;;  %v6669_v25 = vpack.i.bf16 %v3946_v4, %v3945_v3  ;;  %v3942_v23 = vmul.f32 %v9607_v61, %v9782_v28  ;;  %v3947_v21 = vmul.f32 %v9614_v26, %v9782_v28  ;;  %v2710_v4 = vld [vmem:[#allocation2 + $0xa0] sm:$0xff]  ;;  %v2711_v49 = vld [vmem:[#allocation2 + $0xa8] sm:$0xff] }
 0x2ee   :  { %v6674_v44 = vpack.i.bf16 %v3949_v0, %v3948_v59  ;;  %v6679_v14 = vpack.i.bf16 %v3951_v27, %v3950_v29  ;;  %v3955_v40 = vmul.f32 %v9628_v52, %v9862_v8  ;;  %v3956_v37 = vmul.f32 %v9917_v12, %v9787_v45  ;;  %v10865_v27 = vld [vmem:[#allocation11_spill] sm:$0xff] }
 0x2ef   :  { %6655 = vrot.lane.b32.xlu0 %v6654_v54, %s7141_s28  ;;  %6660 = vrot.lane.b32.xlu1 %v6659_v34, %s7141_s28  ;;  %s7143_s28 = smov 96   ;;  %v6684_v9 = vpack.i.bf16 %v3947_v21, %v3942_v23  ;;  %v6689_v30 = vpack.i.bf16 %v3954_v36, %v3953_v57  ;;  %v3958_v15 = vmul.f32 %v9660_v31, %v9842_v46  ;;  %v10864_v54 = vld [vmem:[#allocation8_spill] sm:$0xff]  ;;  %v10867_v23 = vld [vmem:[#allocation13_spill] sm:$0xff] }
 0x2f0   :  { %5871 = vmatpush1.bf16.msra.mxu0 %v5870_v58  ;;  %5662 = vmatmul.mubr.msk.f32.vlgmr.msra.gmra.mrb[84].mxu1 %vm382_vm0, %v2708_v19  ;;  %v3959_v3 = vmul.f32 %v9929_v43, %v9845_v51  ;;  %v6694_v35 = vpack.i.bf16 %v3956_v37, %v3955_v40  ;;  %v3952_v38 = vmul.f32 %v9667_v6, %v9782_v28  ;;  %v9972_v37 = vld [vmem:[%s10758_s1 + $0xd8] sm:$0xff] }
 0x2f1   :  { %3088 = vmatprep.mubr.f32.mxu1 %v10838_v41  ;;  %v3957_v58 = vmul.f32 %v9674_v1, %v9782_v28  ;;  %5889 = vmatprep.subr.bf16.mxu0 %v10864_v54  ;;  %v3960_v59 = vmul.f32 %v9687_v17, %v9862_v8  ;;  %v3961_v0 = vmul.f32 %v9700_v32, %v9787_v45 }
 0x2f2   :  { %v6699_v34 = vpack.i.bf16 %v3959_v3, %v3958_v15  ;;  %5907 = vmatpush1.bf16.msra.mxu1 %v10865_v27  ;;  %v3964_v29 = vmul.f32 %v9709_v53, %v9845_v51  ;;  %v3965_v57 = vmul.f32 %v9720_v55, %v9862_v8  ;;  %v10871_v15 = vld [vmem:[#allocation14_spill] sm:$0xff]  ;;  %v2712_v3 = vld [vmem:[#allocation2 + $0xb0] sm:$0xff] }
 0x2f3   :  { %6665 = vrot.lane.b32.xlu0 %v6664_v56, %s7143_s28  ;;  %6670 = vrot.lane.b32.xlu1 %v6669_v25, %s7143_s28  ;;  %v6709_v56 = vpack.i.bf16 %v3957_v58, %v3952_v38  ;;  %v3963_v25 = vmul.f32 %v9734_v47, %v9842_v46  ;;  %v6704_v21 = vpack.i.bf16 %v3961_v0, %v3960_v59  ;;  %v9985_v58 = vld [vmem:[%s10758_s1 + $0xe8] sm:$0xff]  ;;  %v10874_v59 = vld [vmem:[#allocation16_spill] sm:$0xff]  ;;  %v9993_v0 = vpop.permute.xlu0 %4437 }
 0x2f4   :  { %5656 = vmatmul.mubr.msk.f32.vlgmr.msra.gmra.mrb[84].mxu0 %vm382_vm0, %v2708_v19  ;;  %5663 = vmatmul.mubr.msk.f32.gmra.mrb[86].mxu1 %vm382_vm0, %v2709_v62  ;;  %v10866_v19 = vld [vmem:[#allocation10_spill] sm:$0xff]  ;;  %v3971_v54 = vmul.f32 %v9985_v58, %v9787_v45  ;;  %v10875_v27 = vld [vmem:[#allocation19_spill] sm:$0xff] }
 0x2f5   :  { %2987 = vmatprep.mubr.f32.mxu0 %v10838_v41  ;;  %3094 = vmatprep.mubr.f32.mxu1 %v10838_v41  ;;  %v6714_v36 = vpack.i.bf16 %v3964_v29, %v3963_v25  ;;  %v4440_v25 = vpop.permute.xlu1 %4439  ;;  %v10876_v29 = vld [vmem:[#allocation25_spill] sm:$0xff] }
 0x2f6   :  { %5891 = vmatpush1.bf16.msra.mxu0 %v10866_v19  ;;  %5909 = vmatprep.subr.bf16.mxu1 %v10867_v23  ;;  %v3962_v23 = vmul.f32 %v10876_v29, %v9782_v28 }
 0x2f7   :  { %6675 = vrot.lane.b32.xlu0 %v6674_v44, %s7143_s28  ;;  %6680 = vrot.lane.b32.xlu1 %v6679_v14, %s7143_s28  ;;  %v10868_v44 = vld [vmem:[#allocation12_spill] sm:$0xff]  ;;  %v10869_v14 = vld [vmem:[#allocation15_spill] sm:$0xff] }
 0x2f8   :  { %5657 = vmatmul.mubr.msk.f32.gmra.mrb[86].mxu0 %vm382_vm0, %v2709_v62  ;;  %5664 = vmatmul.mubr.msk.f32.gmra.mrb[88].mxu1 %vm382_vm0, %v2710_v4  ;;  %v3966_v62 = vmul.f32 %v9727_v48, %v9787_v45 }
 0x2f9   :  { %2993 = vmatprep.mubr.f32.mxu0 %v10838_v41  ;;  %3100 = vmatprep.mubr.f32.mxu1 %v10838_v41 }
 0x2fa   :  { %5893 = vmatprep.subr.bf16.mxu0 %v10868_v44  ;;  %5911 = vmatpush1.bf16.msra.mxu1 %v10869_v14  ;;  %v3973_v44 = vmul.f32 %v9819_v16, %v9842_v46  ;;  %v3974_v14 = vmul.f32 %v9796_v2, %v9845_v51 }
 0x2fb   :  { %6685 = vrot.lane.b32.xlu0 %v6684_v9, %s7143_s28  ;;  %6690 = vrot.lane.b32.xlu1 %v6689_v30, %s7143_s28  ;;  %v10870_v9 = vld [vmem:[#allocation30_spill] sm:$0xff]  ;;  %v3969_v30 = vmul.f32 %v9972_v37, %v9845_v51 }
 0x2fc   :  { %5658 = vmatmul.mubr.msk.f32.gmra.mrb[88].mxu0 %vm382_vm0, %v2710_v4  ;;  %5665 = vmatmul.mubr.msk.f32.gmra.mrb[90].mxu1 %vm382_vm0, %v2711_v49  ;;  %v3968_v40 = vmul.f32 %v10870_v9, %v9842_v46  ;;  %v6719_v4 = vpack.i.bf16 %v3966_v62, %v3965_v57  ;;  %v10878_v62 = vld [vmem:[#allocation18_spill] sm:$0xff] }
 0x2fd   :  { %2999 = vmatprep.mubr.f32.mxu0 %v10838_v41  ;;  %5895 = vmatpush1.bf16.msra.mxu0 %v10871_v15  ;;  %v3975_v15 = vmul.f32 %v9803_v24, %v9862_v8 }
 0x2fe   :  { %3106 = vmatprep.mubr.f32.mxu1 %v10838_v41  ;;  %5897 = vmatprep.subr.bf16.mxu0 %v10874_v59  ;;  %v6724_v19 = vpack.i.bf16 %v3969_v30, %v3968_v40  ;;  %v10880_v40 = vld [vmem:[#allocation20_spill] sm:$0xff]  ;;  %v3978_v59 = vmul.f32 %v9827_v50, %v9842_v46 }
 0x2ff   :  { %6695 = vrot.lane.b32.xlu0 %v6694_v35, %s7143_s28  ;;  %6700 = vrot.lane.b32.xlu1 %v6699_v34, %s7143_s28  ;;  %v10872_v35 = vld [vmem:[#allocation29_spill] sm:$0xff] }
 0x300   :  { %v3970_v38 = vmul.f32 %v10872_v35, %v9862_v8  ;;  %5659 = vmatmul.mubr.msk.f32.gmra.mrb[90].mxu0 %vm382_vm0, %v2711_v49  ;;  %v10873_v34 = vld [vmem:[#allocation17_spill] sm:$0xff]  ;;  %5666 = vmatmul.mubr.msk.f32.gmra.mrb[92].mxu1 %vm382_vm0, %v2712_v3 }
 0x301   :  { %5913 = vmatprep.subr.bf16.mxu1 %v10873_v34  ;;  %3005 = vmatprep.mubr.f32.mxu0 %v10838_v41  ;;  %v2713_v49 = vld [vmem:[#allocation2 + $0xb8] sm:$0xff]  ;;  %v6739_v34 = vpack.i.bf16 %v3974_v14, %v3973_v44  ;;  %v3980_v44 = vmul.f32 %v9836_v5, %v9862_v8  ;;  %v3145_v8 = vld [vmem:[#allocation2 + $0xc8] sm:$0xff] }
 0x302   :  { %5915 = vmatpush1.bf16.msra.mxu1 %v10875_v27  ;;  %5899 = vmatpush1.bf16.msra.mxu0 %v10878_v62  ;;  %v3979_v27 = vmul.f32 %v9812_v7, %v9845_v51  ;;  %v10055_v14 = vld [vmem:[%s10758_s1 + $0x138] sm:$0xff] }
 0x303   :  { %6705 = vrot.lane.b32.xlu0 %v6704_v21, %s7143_s28  ;;  %6710 = vrot.lane.b32.xlu1 %v6709_v56, %s7143_s28  ;;  %v6729_v56 = vpack.i.bf16 %v3971_v54, %v3970_v38  ;;  %v10877_v21 = vld [vmem:[#allocation24_spill] sm:$0xff]  ;;  %v4442_v38 = vpop.permute.xlu0 %4441  ;;  %v10881_v54 = vld [vmem:[#allocation23_spill] sm:$0xff] }
 0x304   :  { %v3967_v57 = vmul.f32 %v10877_v21, %v9782_v28  ;;  %3112 = vmatprep.mubr.f32.mxu1 %v10838_v41  ;;  %5660 = vmatmul.mubr.msk.f32.gmra.mrb[92].mxu0 %vm382_vm0, %v2712_v3  ;;  %v10042_v46 = vsel %vm4445_vm9, %v4440_v25, %v4442_v38 }
 0x305   :  { %5667 = vmatmul.mubr.msk.f32.gmra.mrb[94].mxu1 %vm382_vm0, %v2713_v49  ;;  %5901 = vmatprep.subr.bf16.mxu0 %v10880_v40  ;;  %v3977_v40 = vmul.f32 %v9871_v39, %v9782_v28 }
 0x306   :  { %v6734_v30 = vpack.i.bf16 %v3967_v57, %v3962_v23  ;;  %3011 = vmatprep.mubr.f32.mxu0 %v10838_v41  ;;  %3333 = vmatprep.mubr.f32.mxu1 %v10838_v41  ;;  %v3144_v23 = vld [vmem:[#allocation2 + $0xc0] sm:$0xff]  ;;  %v10039_v57 = vsel %vm4445_vm9, %v9993_v0, %v4440_v25  ;;  %v3981_v25 = vmul.f32 %v10055_v14, %v9787_v45 }
 0x307   :  { %6715 = vrot.lane.b32.xlu0 %v6714_v36, %s7143_s28  ;;  %6720 = vrot.lane.b32.xlu1 %v6719_v4, %s7143_s28  ;;  %v10879_v36 = vld [vmem:[#allocation21_spill] sm:$0xff]  ;;  %v10020_v4 = vld [vmem:[%s10758_s1 + $0x110] sm:$0xff] }
 0x308   :  { %5917 = vmatprep.subr.bf16.mxu1 %v10879_v36  ;;  %v3976_v3 = vmul.f32 %v10020_v4, %v9787_v45  ;;  %5661 = vmatmul.mubr.msk.f32.gmra.mrb[94].mxu0 %vm382_vm0, %v2713_v49  ;;  %v6749_v49 = vpack.i.bf16 %v3979_v27, %v3978_v59  ;;  %v3972_v36 = vmul.f32 %v9852_v60, %v9782_v28  ;;  %v3147_v27 = vld [vmem:[#allocation2 + $0xd8] sm:$0xff] }
 0x309   :  { %5919 = vmatpush1.bf16.msra.mxu1 %v10881_v54  ;;  %3232 = vmatprep.mubr.f32.mxu0 %v10838_v41 }
 0x30a   :  { %v6744_v51 = vpack.i.bf16 %v3976_v3, %v3975_v15  ;;  %v4456_v15 = vmul.f32 %v9577_v42, %v10042_v46  ;;  %v6759_v3 = vpack.i.bf16 %v3977_v40, %v3972_v36  ;;  %v3146_v42 = vld [vmem:[#allocation2 + $0xd0] sm:$0xff] }
 0x30b   :  { %6725 = vrot.lane.b32.xlu0 %v6724_v19, %s7143_s28  ;;  %6730 = vrot.lane.b32.xlu1 %v6729_v56, %s7143_s28  ;;  %v10030_v19 = vpop.permute.xlu1 %4443  ;;  %v10882_v56 = vld [vmem:[#allocation22_spill] sm:$0xff] }
 0x30c   :  { %5903 = vmatpush1.bf16.msra.mxu0 %v10882_v56  ;;  %v10046_v62 = vsel %vm4445_vm9, %v4442_v38, %v10030_v19  ;;  %5674 = vmatmul.mubr.msk.f32.vlgmr.msra.gmra.mrb[84].mxu1 %vm382_vm0, %v3144_v23  ;;  %v4458_v28 = vmul.f32 %v9563_v22, %v10030_v19  ;;  %v4463_v54 = vmul.f32 %v9570_v13, %v10030_v19 }
 0x30d   :  { %3339 = vmatprep.mubr.f32.mxu1 %v10838_v41  ;;  %v4457_v45 = vmul.f32 %v9584_v33, %v10046_v62  ;;  %v10083_v33 = vld [vmem:[%s10758_s1 + $0x30] sm:$0xff]  ;;  %v4462_v59 = vmul.f32 %v9598_v11, %v10046_v62  ;;  %v4461_v13 = vmul.f32 %v9591_v20, %v10042_v46  ;;  %v4465_v56 = vmul.f32 %v9651_v63, %v10039_v57 }
 0x30e   :  { %v4460_v22 = vmul.f32 %v10083_v33, %v10039_v57  ;;  %v4470_v63 = vmul.f32 %v9660_v31, %v10039_v57  ;;  %v4468_v36 = vmul.f32 %v9917_v12, %v10030_v19  ;;  %v3149_v31 = vld [vmem:[#allocation2 + $0xe8] sm:$0xff] }
 0x30f   :  { %6735 = vrot.lane.b32.xlu0 %v6734_v30, %s7143_s28  ;;  %6740 = vrot.lane.b32.xlu1 %v6739_v34, %s7143_s28  ;;  %v4455_v30 = vmul.f32 %v9547_v18, %v10039_v57  ;;  %v6754_v18 = vpack.i.bf16 %v3981_v25, %v3980_v44  ;;  %v6769_v34 = vpack.i.bf16 %v4458_v28, %v4457_v45 }
 0x310   :  { %5668 = vmatmul.mubr.msk.f32.vlgmr.msra.gmra.mrb[84].mxu0 %vm382_vm0, %v3144_v23  ;;  %5675 = vmatmul.mubr.msk.f32.gmra.mrb[86].mxu1 %vm382_vm0, %v3145_v8  ;;  %v4466_v23 = vmul.f32 %v9621_v10, %v10042_v46  ;;  %v6779_v20 = vpack.i.bf16 %v4463_v54, %v4462_v59  ;;  %v6774_v11 = vpack.i.bf16 %v4461_v13, %v4460_v22  ;;  %v3148_v10 = vld [vmem:[#allocation2 + $0xe0] sm:$0xff] }
 0x311   :  { %3238 = vmatprep.mubr.f32.mxu0 %v10838_v41  ;;  %3345 = vmatprep.mubr.f32.mxu1 %v10838_v41  ;;  %v6764_v38 = vpack.i.bf16 %v4456_v15, %v4455_v30  ;;  %v4459_v44 = vmul.f32 %v9614_v26, %v9993_v0  ;;  %v4467_v25 = vmul.f32 %v9628_v52, %v10046_v62 }
 0x312   :  { %v4469_v30 = vmul.f32 %v9674_v1, %v9993_v0  ;;  %v4472_v15 = vmul.f32 %v9687_v17, %v10046_v62  ;;  %v4473_v45 = vmul.f32 %v9700_v32, %v10030_v19  ;;  %v4478_v1 = vmul.f32 %v9727_v48, %v10030_v19 }
 0x313   :  { %6745 = vrot.lane.b32.xlu0 %v6744_v51, %s7143_s28  ;;  %6750 = vrot.lane.b32.xlu1 %v6749_v49, %s7143_s28  ;;  %v4454_v51 = vmul.f32 %v9607_v61, %v9993_v0  ;;  %v6789_v61 = vpack.i.bf16 %v4466_v23, %v4465_v56  ;;  %v4471_v49 = vmul.f32 %v9929_v43, %v10042_v46 }
 0x314   :  { %5669 = vmatmul.mubr.msk.f32.gmra.mrb[86].mxu0 %vm382_vm0, %v3145_v8  ;;  %5676 = vmatmul.mubr.msk.f32.gmra.mrb[88].mxu1 %vm382_vm0, %v3146_v42  ;;  %v4464_v8 = vmul.f32 %v9667_v6, %v9993_v0  ;;  %v6794_v52 = vpack.i.bf16 %v4468_v36, %v4467_v25  ;;  %v4477_v6 = vmul.f32 %v9720_v55, %v10046_v62 }
 0x315   :  { %3244 = vmatprep.mubr.f32.mxu0 %v10838_v41  ;;  %3351 = vmatprep.mubr.f32.mxu1 %v10838_v41  ;;  %v6784_v26 = vpack.i.bf16 %v4459_v44, %v4454_v51  ;;  %v6799_v40 = vpack.i.bf16 %v4471_v49, %v4470_v63  ;;  %v4475_v28 = vmul.f32 %v9734_v47, %v10039_v57 }
 0x316   :  { %v4476_v17 = vmul.f32 %v9709_v53, %v10042_v46  ;;  %v6809_v32 = vpack.i.bf16 %v4469_v30, %v4464_v8  ;;  %v6819_v55 = vpack.i.bf16 %v4478_v1, %v4477_v6  ;;  %v4482_v48 = vmul.f32 %v10872_v35, %v10046_v62 }
 0x317   :  { %6755 = vrot.lane.b32.xlu0 %v6754_v18, %s7143_s28  ;;  %6760 = vrot.lane.b32.xlu1 %v6759_v3, %s7143_s28  ;;  %v6804_v18 = vpack.i.bf16 %v4473_v45, %v4472_v15  ;;  %v4483_v53 = vmul.f32 %v9985_v58, %v10030_v19  ;;  %v4485_v35 = vmul.f32 %v9819_v16, %v10039_v57 }
 0x318   :  { %5670 = vmatmul.mubr.msk.f32.gmra.mrb[88].mxu0 %vm382_vm0, %v3146_v42  ;;  %5677 = vmatmul.mubr.msk.f32.gmra.mrb[90].mxu1 %vm382_vm0, %v3147_v27  ;;  %v6814_v3 = vpack.i.bf16 %v4476_v17, %v4475_v28  ;;  %v4480_v42 = vmul.f32 %v10870_v9, %v10039_v57  ;;  %v4474_v59 = vmul.f32 %v10876_v29, %v9993_v0 }
 0x319   :  { %3250 = vmatprep.mubr.f32.mxu0 %v10838_v41  ;;  %3357 = vmatprep.mubr.f32.mxu1 %v10838_v41  ;;  %v6829_v54 = vpack.i.bf16 %v4483_v53, %v4482_v48  ;;  %v4479_v9 = vmul.f32 %v10877_v21, %v9993_v0  ;;  %v4487_v51 = vmul.f32 %v9803_v24, %v10046_v62 }
 0x31a   :  { %v4488_v21 = vmul.f32 %v10020_v4, %v10030_v19  ;;  %v4492_v63 = vmul.f32 %v9836_v5, %v10046_v62 }
 0x31b   :  { %6770 = vrot.lane.b32.xlu1 %v6769_v34, %s7144_s16  ;;  %6765 = vrot.lane.b32.xlu0 %v6764_v38, %s7144_s16  ;;  %v4481_v38 = vmul.f32 %v9972_v37, %v10042_v46  ;;  %v4486_v34 = vmul.f32 %v9796_v2, %v10042_v46  ;;  %v6834_v16 = vpack.i.bf16 %v4479_v9, %v4474_v59 }
 0x31c   :  { %5671 = vmatmul.mubr.msk.f32.gmra.mrb[90].mxu0 %vm382_vm0, %v3147_v27  ;;  %5678 = vmatmul.mubr.msk.f32.gmra.mrb[92].mxu1 %vm382_vm0, %v3148_v10  ;;  %v4490_v27 = vmul.f32 %v9827_v50, %v10039_v57  ;;  %v4491_v2 = vmul.f32 %v9812_v7, %v10042_v46  ;;  %v4489_v50 = vmul.f32 %v9871_v39, %v9993_v0 }
 0x31d   :  { %3256 = vmatprep.mubr.f32.mxu0 %v10838_v41  ;;  %3363 = vmatprep.mubr.f32.mxu1 %v10838_v41  ;;  %v6824_v22 = vpack.i.bf16 %v4481_v38, %v4480_v42  ;;  %v6839_v13 = vpack.i.bf16 %v4486_v34, %v4485_v35 }
 0x31e   :  { %v6849_v46 = vpack.i.bf16 %v4491_v2, %v4490_v27 }
 0x31f   :  { %6780 = vrot.lane.b32.xlu1 %v6779_v20, %s7144_s16  ;;  %6775 = vrot.lane.b32.xlu0 %v6774_v11, %s7144_s16  ;;  %v4484_v20 = vmul.f32 %v9852_v60, %v9993_v0  ;;  %v4493_v60 = vmul.f32 %v10055_v14, %v10030_v19 }
 0x320   :  { %5672 = vmatmul.mubr.msk.f32.gmra.mrb[92].mxu0 %vm382_vm0, %v3148_v10  ;;  %5679 = vmatmul.mubr.msk.f32.gmra.mrb[94].mxu1 %vm382_vm0, %v3149_v31 }
 0x321   :  { %3262 = vmatprep.mubr.f32.mxu0 %v10838_v41  ;;  %3845 = vmatprep.mubr.f32.mxu1 %v10838_v41  ;;  %v6859_v39 = vpack.i.bf16 %v4489_v50, %v4484_v20  ;;  %v6854_v15 = vpack.i.bf16 %v4493_v60, %v4492_v63 }
 0x323   :  { %6790 = vrot.lane.b32.xlu1 %v6789_v61, %s7144_s16  ;;  %6785 = vrot.lane.b32.xlu0 %v6784_v26, %s7144_s16  ;;  %v6844_v61 = vpack.i.bf16 %v4488_v21, %v4487_v51 }
 0x324   :  { %5673 = vmatmul.mubr.msk.f32.gmra.mrb[94].mxu0 %vm382_vm0, %v3149_v31 }
 0x325   :  { %3744 = vmatprep.mubr.f32.mxu0 %v10838_v41 }
 0x327   :  { %6800 = vrot.lane.b32.xlu1 %v6799_v40, %s7144_s16  ;;  %6795 = vrot.lane.b32.xlu0 %v6794_v52, %s7144_s16 }
 0x32b   :  { %6810 = vrot.lane.b32.xlu1 %v6809_v32, %s7144_s16  ;;  %6805 = vrot.lane.b32.xlu0 %v6804_v18, %s7144_s16 }
 0x32f   :  { %6820 = vrot.lane.b32.xlu1 %v6819_v55, %s7144_s16  ;;  %6815 = vrot.lane.b32.xlu0 %v6814_v3, %s7144_s16 }
 0x333   :  { %6830 = vrot.lane.b32.xlu1 %v6829_v54, %s7144_s16  ;;  %6825 = vrot.lane.b32.xlu0 %v6824_v22, %s7144_s16 }
 0x335   :  { %v6571_v56 = vpop.permute.xlu1 %6570  ;;  %v6566_v23 = vpop.permute.xlu0 %6565 }
 0x336   :  { %v6572_v11 = vunpack.i.l.bf16 %v6571_v56  ;;  %v6568_v44 = vunpack.i.h.bf16 %v6566_v23  ;;  %v6567_v10 = vunpack.i.l.bf16 %v6566_v23  ;;  %v6573_v7 = vunpack.i.h.bf16 %v6571_v56 }
 0x337   :  { %6840 = vrot.lane.b32.xlu1 %v6839_v13, %s7144_s16  ;;  %6835 = vrot.lane.b32.xlu0 %v6834_v16, %s7144_s16 }
 0x338   :  { %v3600_v31 = vsel %vm3597_vm10, %v6568_v44, %v6572_v11  ;;  %v3599_v0 = vsel %vm3597_vm10, %v6567_v10, %v6568_v44  ;;  %v3601_v62 = vsel %vm3597_vm10, %v6572_v11, %v6573_v7 }
 0x339   :  { %v6581_v57 = vpop.permute.xlu1 %6580  ;;  %v6576_v24 = vpop.permute.xlu0 %6575 }
 0x33a   :  { %v6583_v49 = vunpack.i.h.bf16 %v6581_v57  ;;  %v6582_v26 = vunpack.i.l.bf16 %v6581_v57  ;;  %v6578_v25 = vunpack.i.h.bf16 %v6576_v24  ;;  %v6577_v36 = vunpack.i.l.bf16 %v6576_v24 }
 0x33b   :  { %6850 = vrot.lane.b32.xlu1 %v6849_v46, %s7144_s16  ;;  %6845 = vrot.lane.b32.xlu0 %v6844_v61, %s7144_s16 }
 0x33c   :  { %v3604_v40 = vsel %vm3597_vm10, %v6578_v25, %v6582_v26  ;;  %v3603_v5 = vsel %vm3597_vm10, %v6577_v36, %v6578_v25  ;;  %v3605_v19 = vsel %vm3597_vm10, %v6582_v26, %v6583_v49 }
 0x33d   :  { %v5938_v8 = vpack.c.bf16 %v3604_v40, %v3600_v31  ;;  %v6591_v30 = vpop.permute.xlu1 %6590  ;;  %v6586_v52 = vpop.permute.xlu0 %6585  ;;  %v5920_v45 = vpack.c.bf16 %v3603_v5, %v3599_v0  ;;  %v5936_v6 = vpack.c.bf16 %v3605_v19, %v3601_v62 }
 0x33e   :  { %v6588_v1 = vunpack.i.h.bf16 %v6586_v52  ;;  %v6587_v28 = vunpack.i.l.bf16 %v6586_v52  ;;  %v6593_v17 = vunpack.i.h.bf16 %v6591_v30  ;;  %v6592_v32 = vunpack.i.l.bf16 %v6591_v30 }
 0x33f   :  { %6860 = vrot.lane.b32.xlu1 %v6859_v39, %s7144_s16  ;;  %6855 = vrot.lane.b32.xlu0 %v6854_v15, %s7144_s16 }
 0x340   :  { %v3598_v18 = vsel %vm3597_vm10, %v6587_v28, %v6567_v10  ;;  %v3602_v55 = vsel %vm3597_vm10, %v6588_v1, %v6577_v36  ;;  %5921 = vmatprep.subr.bf16.mxu0 %v5920_v45  ;;  %5937 = vmatprep.subr.bf16.mxu1 %v5936_v6  ;;  %v3607_v35 = vsel %vm3597_vm10, %v6592_v32, %v6593_v17 }
 0x341   :  { %v5922_v3 = vpack.c.bf16 %v3602_v55, %v3598_v18  ;;  %5939 = vmatpush1.bf16.msra.mxu1 %v5938_v8  ;;  %v6601_v48 = vpop.permute.xlu1 %6600  ;;  %v6596_v53 = vpop.permute.xlu0 %6595 }
 0x342   :  { %v6603_v42 = vunpack.i.h.bf16 %v6601_v48  ;;  %v6602_v38 = vunpack.i.l.bf16 %v6601_v48  ;;  %v6598_v54 = vunpack.i.h.bf16 %v6596_v53  ;;  %v6597_v22 = vunpack.i.l.bf16 %v6596_v53 }
 0x343   :  { %5923 = vmatpush1.bf16.msra.mxu0 %v5922_v3 }
 0x344   :  { %v3611_v34 = vsel %vm3597_vm10, %v6602_v38, %v6603_v42  ;;  %v3608_v2 = vsel %vm3597_vm10, %v6593_v17, %v6597_v22  ;;  %v3609_v51 = vsel %vm3597_vm10, %v6597_v22, %v6598_v54  ;;  %v7046_v54 = vld [vmem:[%s10758_s1 + $0x10] sm:$0xff] }
 0x345   :  { %v6611_v59 = vpop.permute.xlu1 %6610  ;;  %v6606_v9 = vpop.permute.xlu0 %6605  ;;  %v5924_v13 = vpack.c.bf16 %v3611_v34, %v3607_v35  ;;  %v7047_v35 = vld [vmem:[%s10758_s1] sm:$0xff] }
 0x346   :  { %v6613_v27 = vunpack.i.h.bf16 %v6611_v59  ;;  %v6612_v56 = vunpack.i.l.bf16 %v6611_v59  ;;  %v6608_v23 = vunpack.i.h.bf16 %v6606_v9  ;;  %v6607_v16 = vunpack.i.l.bf16 %v6606_v9  ;;  %v7048_v59 = vld [vmem:[%s10758_s1 + $0x28] sm:$0xff] }
 0x347   :  { %5925 = vmatprep.subr.bf16.mxu0 %v5924_v13 }
 0x348   :  { %v3606_v21 = vsel %vm3597_vm10, %v6612_v56, %v6592_v32  ;;  %v3610_v20 = vsel %vm3597_vm10, %v6613_v27, %v6602_v38  ;;  %v3612_v11 = vsel %vm3597_vm10, %v6603_v42, %v6607_v16  ;;  %v3613_v44 = vsel %vm3597_vm10, %v6607_v16, %v6608_v23  ;;  %v7045_v42 = vld [vmem:[%s10758_s1 + $0x8] sm:$0xff]  ;;  %v7049_v16 = vld [vmem:[%s10758_s1 + $0x38] sm:$0xff] }
 0x349   :  { %v5926_v10 = vpack.c.bf16 %v3610_v20, %v3606_v21  ;;  %v5942_v50 = vpack.c.bf16 %v3612_v11, %v3608_v2  ;;  %v6621_v7 = vpop.permute.xlu1 %6620  ;;  %v6616_v57 = vpop.permute.xlu0 %6615  ;;  %v5940_v24 = vpack.c.bf16 %v3613_v44, %v3609_v51  ;;  %v7050_v21 = vld [vmem:[%s10758_s1 + $0x20] sm:$0xff]  ;;  %v7052_v44 = vld [vmem:[%s10758_s1 + $0x78] sm:$0xff] }
 0x34a   :  { %v6622_v46 = vunpack.i.l.bf16 %v6621_v7  ;;  %v6618_v61 = vunpack.i.h.bf16 %v6616_v57  ;;  %v6617_v63 = vunpack.i.l.bf16 %v6616_v57  ;;  %v6623_v60 = vunpack.i.h.bf16 %v6621_v7 }
 0x34b   :  { %5927 = vmatpush1.bf16.msra.mxu0 %v5926_v10  ;;  %5941 = vmatprep.subr.bf16.mxu1 %v5940_v24  ;;  %v7054_v24 = vld [vmem:[%s10758_s1 + $0x58] sm:$0xff] }
 0x34c   :  { %5943 = vmatpush1.bf16.msra.mxu1 %v5942_v50  ;;  %v3616_v0 = vsel %vm3597_vm10, %v6618_v61, %v6622_v46  ;;  %v3615_v40 = vsel %vm3597_vm10, %v6617_v63, %v6618_v61  ;;  %v3617_v19 = vsel %vm3597_vm10, %v6622_v46, %v6623_v60  ;;  %v7053_v50 = vld [vmem:[%s10758_s1 + $0x18] sm:$0xff] }
 0x34d   :  { %v6631_v49 = vpop.permute.xlu1 %6630  ;;  %v6626_v26 = vpop.permute.xlu0 %6625 }
 0x34e   :  { %v6633_v25 = vunpack.i.h.bf16 %v6631_v49  ;;  %v6632_v36 = vunpack.i.l.bf16 %v6631_v49  ;;  %v6628_v31 = vunpack.i.h.bf16 %v6626_v26  ;;  %v6627_v39 = vunpack.i.l.bf16 %v6626_v26  ;;  %v7055_v49 = vld [vmem:[%s10758_s1 + $0x60] sm:$0xff] }
 0x350   :  { %v3620_v5 = vsel %vm3597_vm10, %v6628_v31, %v6632_v36  ;;  %v3619_v62 = vsel %vm3597_vm10, %v6627_v39, %v6628_v31  ;;  %v3621_v8 = vsel %vm3597_vm10, %v6632_v36, %v6633_v25  ;;  %v7056_v25 = vld [vmem:[%s10758_s1 + $0x80] sm:$0xff] }
 0x351   :  { %v5946_v30 = vpack.c.bf16 %v3620_v5, %v3616_v0  ;;  %v10217_v52 = vpop.permute.xlu1 %4949  ;;  %v6636_v15 = vpop.permute.xlu0 %6635  ;;  %v5928_v45 = vpack.c.bf16 %v3619_v62, %v3615_v40  ;;  %v5944_v6 = vpack.c.bf16 %v3621_v8, %v3617_v19  ;;  %v7057_v40 = vld [vmem:[%s10758_s1 + $0x40] sm:$0xff]  ;;  %v7058_v62 = vld [vmem:[%s10758_s1 + $0x48] sm:$0xff] }
 0x352   :  { %v6638_v1 = vunpack.i.h.bf16 %v6636_v15  ;;  %v6637_v28 = vunpack.i.l.bf16 %v6636_v15  ;;  %v10240_v34 = vmul.f32 %v7047_v35, %v10217_v52  ;;  %v10246_v9 = vmul.f32 %v7048_v59, %v10217_v52 }
 0x353   :  { %5929 = vmatprep.subr.bf16.mxu0 %v5928_v45  ;;  %5945 = vmatprep.subr.bf16.mxu1 %v5944_v6  ;;  %v10276_v10 = vmul.f32 %v7052_v44, %v10217_v52  ;;  %v10293_v61 = vmul.f32 %v10876_v29, %v10217_v52 }
 0x354   :  { %v3614_v17 = vsel %vm3597_vm10, %v6637_v28, %v6617_v63  ;;  %v3618_v32 = vsel %vm3597_vm10, %v6638_v1, %v6627_v39  ;;  %5947 = vmatpush1.bf16.msra.mxu1 %v5946_v30  ;;  %v6884_v57 = vpack.i.bf16 %v10246_v9, %v10240_v34  ;;  %v7059_v28 = vld [vmem:[%s10758_s1 + $0x68] sm:$0xff]  ;;  %v7062_v34 = vld [vmem:[%s10758_s1 + $0x98] sm:$0xff] }
 0x355   :  { %v5930_v18 = vpack.c.bf16 %v3618_v32, %v3614_v17  ;;  %v4954_v55 = vpop.permute.xlu1 %4953  ;;  %v4952_v3 = vpop.permute.xlu0 %4951 }
 0x356   :  { %v10223_v48 = vsel %vm4957_vm11, %v10217_v52, %v4952_v3  ;;  %v10226_v53 = vsel %vm4957_vm11, %v4952_v3, %v4954_v55 }
 0x357   :  { %5931 = vmatpush1.bf16.msra.mxu0 %v5930_v18  ;;  %v4967_v38 = vmul.f32 %v7045_v42, %v10223_v48  ;;  %v4968_v22 = vmul.f32 %v7046_v54, %v10226_v53  ;;  %v4972_v23 = vmul.f32 %v10083_v33, %v10223_v48  ;;  %v4973_v2 = vmul.f32 %v7049_v16, %v10226_v53  ;;  %v7051_v33 = vld [vmem:[%s10758_s1 + $0x50] sm:$0xff] }
 0x358   :  { %v10270_v11 = vmul.f32 %v7051_v33, %v10217_v52  ;;  %v10289_v46 = vmul.f32 %v7054_v24, %v10223_v48  ;;  %v4978_v26 = vmul.f32 %v7055_v49, %v10226_v53  ;;  %v10305_v36 = vmul.f32 %v7056_v25, %v10223_v48  ;;  %v7063_v49 = vld [vmem:[%s10758_s1 + $0xd0] sm:$0xff] }
 0x359   :  { %v10248_v13 = vpop.permute.xlu1 %6640  ;;  %v10250_v27 = vpop.permute.xlu0 %4955  ;;  %v6864_v56 = vpack.i.bf16 %v4968_v22, %v4967_v38  ;;  %v6874_v39 = vpack.i.bf16 %v4973_v2, %v4972_v23  ;;  %v10317_v15 = vmul.f32 %v9929_v43, %v10226_v53  ;;  %v10321_v45 = vmul.f32 %v9734_v47, %v10223_v48 }
 0x35a   :  { %v10260_v51 = vsel %vm4957_vm11, %v4954_v55, %v10250_v27  ;;  %v4970_v20 = vmul.f32 %v7050_v21, %v10250_v27  ;;  %v6643_v63 = vunpack.i.h.bf16 %v10248_v13  ;;  %v6642_v60 = vunpack.i.l.bf16 %v10248_v13  ;;  %v7060_v55 = vld [vmem:[%s10758_s1 + $0xb0] sm:$0xff] }
 0x35b   :  { %6865 = vrot.lane.b32.xlu0 %v6864_v56, %s7145_s29  ;;  %v4969_v7 = vmul.f32 %v7053_v50, %v10260_v51  ;;  %v4974_v5 = vmul.f32 %v7057_v40, %v10260_v51  ;;  %v4975_v19 = vmul.f32 %v7058_v62, %v10250_v27  ;;  %v4979_v17 = vmul.f32 %v7059_v28, %v10260_v51 }
 0x35c   :  { %v4980_v43 = vmul.f32 %v9917_v12, %v10250_v27  ;;  %v3623_v32 = vsel %vm3597_vm10, %v6642_v60, %v6643_v63  ;;  %v6889_v18 = vpack.i.bf16 %v4978_v26, %v10289_v46  ;;  %v10338_v3 = vmul.f32 %v7060_v55, %v10226_v53  ;;  %v7061_v12 = vld [vmem:[%s10758_s1 + $0x90] sm:$0xff] }
 0x35d   :  { %v6651_v31 = vpop.permute.xlu1 %6650  ;;  %v6646_v29 = vpop.permute.xlu0 %6645  ;;  %v6869_v0 = vpack.i.bf16 %v4970_v20, %v4969_v7  ;;  %v6879_v54 = vpack.i.bf16 %v4975_v19, %v4974_v5  ;;  %v4984_v35 = vmul.f32 %v7061_v12, %v10260_v51  ;;  %v4985_v59 = vmul.f32 %v7062_v34, %v10250_v27  ;;  %v7065_v5 = vld [vmem:[%s10758_s1 + $0xc0] sm:$0xff] }
 0x35e   :  { %v6653_v8 = vunpack.i.h.bf16 %v6651_v31  ;;  %v6652_v30 = vunpack.i.l.bf16 %v6651_v31  ;;  %v6648_v6 = vunpack.i.h.bf16 %v6646_v29  ;;  %v6647_v1 = vunpack.i.l.bf16 %v6646_v29 }
 0x35f   :  { %6875 = vrot.lane.b32.xlu0 %v6874_v39, %s7145_s29  ;;  %6870 = vrot.lane.b32.xlu1 %v6869_v0, %s7145_s29  ;;  %v6894_v2 = vpack.i.bf16 %v4980_v43, %v4979_v17  ;;  %v10362_v26 = vmul.f32 %v7063_v49, %v10223_v48  ;;  %v10370_v39 = vmul.f32 %v9972_v37, %v10226_v53  ;;  %v7064_v0 = vld [vmem:[%s10758_s1 + $0xb8] sm:$0xff] }
 0x360   :  { %v3627_v47 = vsel %vm3597_vm10, %v6652_v30, %v6653_v8  ;;  %v3624_v16 = vsel %vm3597_vm10, %v6643_v63, %v6647_v1  ;;  %v3625_v21 = vsel %vm3597_vm10, %v6647_v1, %v6648_v6  ;;  %v10376_v40 = vmul.f32 %v7064_v0, %v10260_v51 }
 0x361   :  { %v6661_v42 = vpop.permute.xlu1 %6660  ;;  %v6656_v38 = vpop.permute.xlu0 %6655  ;;  %v5932_v22 = vpack.c.bf16 %v3627_v47, %v3623_v32  ;;  %v10382_v62 = vmul.f32 %v7065_v5, %v10250_v27  ;;  %v6899_v37 = vpack.i.bf16 %v10317_v15, %v10305_v36  ;;  %v6909_v19 = vpack.i.bf16 %v10276_v10, %v10270_v11  ;;  %v3471_v32 = vld [vmem:[#allocation2 + $0xf0] sm:$0xff] }
 0x362   :  { %v6663_v9 = vunpack.i.h.bf16 %v6661_v42  ;;  %v6662_v13 = vunpack.i.l.bf16 %v6661_v42  ;;  %v6658_v56 = vunpack.i.h.bf16 %v6656_v38  ;;  %v6657_v23 = vunpack.i.l.bf16 %v6656_v38 }
 0x363   :  { %6885 = vrot.lane.b32.xlu0 %v6884_v57, %s7145_s29  ;;  %6880 = vrot.lane.b32.xlu1 %v6879_v54, %s7145_s29  ;;  %v6904_v17 = vpack.i.bf16 %v4985_v59, %v4984_v35  ;;  %v6924_v55 = vpack.i.bf16 %v10370_v39, %v10362_v26  ;;  %v6919_v42 = vpack.i.bf16 %v10382_v62, %v10376_v40  ;;  %v3473_v39 = vld [vmem:[#allocation2 + $0x100] sm:$0xff]  ;;  %v7071_v62 = vld [vmem:[%s10758_s1 + $0x130] sm:$0xff] }
 0x364   :  { %v3622_v20 = vsel %vm3597_vm10, %v6662_v13, %v6642_v60  ;;  %v3626_v33 = vsel %vm3597_vm10, %v6663_v9, %v6652_v30  ;;  %v3628_v44 = vsel %vm3597_vm10, %v6653_v8, %v6657_v23  ;;  %5933 = vmatprep.subr.bf16.mxu0 %v5932_v22  ;;  %v3629_v50 = vsel %vm3597_vm10, %v6657_v23, %v6658_v56  ;;  %v7066_v8 = vld [vmem:[%s10758_s1 + $0xc8] sm:$0xff] }
 0x365   :  { %v5934_v7 = vpack.c.bf16 %v3626_v33, %v3622_v20  ;;  %v5950_v24 = vpack.c.bf16 %v3628_v44, %v3624_v16  ;;  %v6671_v46 = vpop.permute.xlu1 %6670  ;;  %v10356_v63 = vpop.permute.xlu0 %6665  ;;  %v5948_v57 = vpack.c.bf16 %v3629_v50, %v3625_v21  ;;  %v10392_v30 = vmul.f32 %v7066_v8, %v10217_v52  ;;  %v7068_v20 = vld [vmem:[%s10758_s1 + $0x108] sm:$0xff] }
 0x366   :  { %v6673_v60 = vunpack.i.h.bf16 %v6671_v46  ;;  %v6672_v25 = vunpack.i.l.bf16 %v6671_v46  ;;  %v6668_v31 = vunpack.i.h.bf16 %v10356_v63  ;;  %v6667_v29 = vunpack.i.l.bf16 %v10356_v63 }
 0x367   :  { %6895 = vrot.lane.b32.xlu0 %v6894_v2, %s7145_s29  ;;  %6890 = vrot.lane.b32.xlu1 %v6889_v18, %s7145_s29  ;;  %v6914_v18 = vpack.i.bf16 %v10338_v3, %v10321_v45  ;;  %v7067_v3 = vld [vmem:[%s10758_s1 + $0xe0] sm:$0xff]  ;;  %v3472_v2 = vld [vmem:[#allocation2 + $0xf8] sm:$0xff]  ;;  %v4995_v21 = vmul.f32 %v9985_v58, %v10250_v27  ;;  %v10428_v33 = vmul.f32 %v7068_v20, %v10260_v51 }
 0x368   :  { %5935 = vmatpush1.bf16.msra.mxu0 %v5934_v7  ;;  %5949 = vmatprep.subr.bf16.mxu1 %v5948_v57  ;;  %v4112_v6 = vsel %vm4109_vm12, %v6668_v31, %v6672_v25  ;;  %v4113_v43 = vsel %vm4109_vm12, %v6672_v25, %v6673_v60  ;;  %v4111_v36 = vsel %vm4109_vm12, %v6667_v29, %v6668_v31 }
 0x369   :  { %5951 = vmatpush1.bf16.msra.mxu1 %v5950_v24  ;;  %v6681_v1 = vpop.permute.xlu1 %6680  ;;  %v6676_v28 = vpop.permute.xlu0 %6675  ;;  %v4994_v34 = vmul.f32 %v7067_v3, %v10260_v51  ;;  %v10432_v44 = vmul.f32 %v10020_v4, %v10250_v27  ;;  %v7069_v24 = vld [vmem:[%s10758_s1 + $0xf8] sm:$0xff]  ;;  %v7070_v4 = vld [vmem:[%s10758_s1 + $0x100] sm:$0xff]  ;;  %v6934_v0 = vpack.i.bf16 %v10392_v30, %v10293_v61 }
 0x36a   :  { %v6683_v15 = vunpack.i.h.bf16 %v6681_v1  ;;  %v6682_v11 = vunpack.i.l.bf16 %v6681_v1  ;;  %v6678_v10 = vunpack.i.h.bf16 %v6676_v28  ;;  %v6677_v47 = vunpack.i.l.bf16 %v6676_v28 }
 0x36b   :  { %6905 = vrot.lane.b32.xlu0 %v6904_v17, %s7145_s29  ;;  %6900 = vrot.lane.b32.xlu1 %v6899_v37, %s7145_s29  ;;  %v10440_v58 = vmul.f32 %v7069_v24, %v10223_v48  ;;  %v4998_v49 = vmul.f32 %v7070_v4, %v10226_v53  ;;  %v6929_v40 = vpack.i.bf16 %v4995_v21, %v4994_v34  ;;  %v7074_v34 = vld [vmem:[%s10758_s1 + $0xf0] sm:$0xff] }
 0x36c   :  { %v4116_v38 = vsel %vm4109_vm12, %v6678_v10, %v6682_v11  ;;  %v4117_v54 = vsel %vm4109_vm12, %v6682_v11, %v6683_v15  ;;  %5686 = vmatmul.mubr.msk.f32.vlgmr.msra.gmra.mrb[84].mxu1 %vm382_vm0, %v3471_v32  ;;  %v4115_v22 = vsel %vm4109_vm12, %v6677_v47, %v6678_v10  ;;  %5680 = vmatmul.mubr.msk.f32.vlgmr.msra.gmra.mrb[84].mxu0 %vm382_vm0, %v3471_v32  ;;  %v7072_v11 = vld [vmem:[%s10758_s1 + $0x120] sm:$0xff] }
 0x36d   :  { %v5970_v12 = vpack.c.bf16 %v4116_v38, %v4112_v6  ;;  %v10410_v35 = vpop.permute.xlu1 %6690  ;;  %v6686_v45 = vpop.permute.xlu0 %6685  ;;  %v5968_v59 = vpack.c.bf16 %v4117_v54, %v4113_v43  ;;  %v5952_v9 = vpack.c.bf16 %v4115_v22, %v4111_v36  ;;  %3851 = vmatprep.mubr.f32.mxu1 %v10838_v41  ;;  %3750 = vmatprep.mubr.f32.mxu0 %v10838_v41  ;;  %v3474_v36 = vld [vmem:[#allocation2 + $0x108] sm:$0xff] }
 0x36e   :  { %v6693_v13 = vunpack.i.h.bf16 %v10410_v35  ;;  %v6692_v56 = vunpack.i.l.bf16 %v10410_v35  ;;  %v6688_v23 = vunpack.i.h.bf16 %v6686_v45  ;;  %v6687_v16 = vunpack.i.l.bf16 %v6686_v45 }
 0x36f   :  { %6915 = vrot.lane.b32.xlu0 %v6914_v18, %s7145_s29  ;;  %6910 = vrot.lane.b32.xlu1 %v6909_v19, %s7145_s29  ;;  %v6944_v5 = vpack.i.bf16 %v10432_v44, %v10428_v33  ;;  %v10462_v37 = vmul.f32 %v7071_v62, %v10260_v51  ;;  %v6939_v30 = vpack.i.bf16 %v4998_v49, %v10440_v58 }
 0x370   :  { %v4110_v50 = vsel %vm4109_vm12, %v6687_v16, %v6667_v29  ;;  %v4114_v7 = vsel %vm4109_vm12, %v6688_v23, %v6677_v47  ;;  %5969 = vmatprep.subr.bf16.mxu1 %v5968_v59  ;;  %5953 = vmatprep.subr.bf16.mxu0 %v5952_v9  ;;  %v4119_v26 = vsel %vm4109_vm12, %v6692_v56, %v6693_v13  ;;  %v7073_v47 = vld [vmem:[%s10758_s1 + $0x128] sm:$0xff]  ;;  %v3475_v9 = vld [vmem:[#allocation2 + $0x110] sm:$0xff]  ;;  %v7075_v23 = vld [vmem:[%s10758_s1 + $0x118] sm:$0xff] }
 0x371   :  { %v5954_v46 = vpack.c.bf16 %v4114_v7, %v4110_v50  ;;  %v6701_v63 = vpop.permute.xlu1 %6700  ;;  %v6696_v57 = vpop.permute.xlu0 %6695  ;;  %5971 = vmatpush1.bf16.msra.mxu1 %v5970_v12  ;;  %5681 = vmatmul.mubr.msk.f32.gmra.mrb[86].mxu0 %vm382_vm0, %v3472_v2  ;;  %v5005_v15 = vmul.f32 %v10055_v14, %v10250_v27  ;;  %v5002_v10 = vmul.f32 %v7072_v11, %v10223_v48 }
 0x372   :  { %v6703_v60 = vunpack.i.h.bf16 %v6701_v63  ;;  %v6702_v25 = vunpack.i.l.bf16 %v6701_v63  ;;  %v6698_v31 = vunpack.i.h.bf16 %v6696_v57  ;;  %v6697_v29 = vunpack.i.l.bf16 %v6696_v57  ;;  %5687 = vmatmul.mubr.msk.f32.gmra.mrb[86].mxu1 %vm382_vm0, %v3472_v2  ;;  %3756 = vmatprep.mubr.f32.mxu0 %v10838_v41  ;;  %v5442_v63 = vld [vmem:[%s10763_s6] sm:$0xff] }
 0x373   :  { %6925 = vrot.lane.b32.xlu0 %v6924_v55, %s7145_s29  ;;  %6920 = vrot.lane.b32.xlu1 %v6919_v42, %s7145_s29  ;;  %v5003_v18 = vmul.f32 %v7073_v47, %v10226_v53  ;;  %v4996_v59 = vmul.f32 %v7074_v34, %v10217_v52  ;;  %v5001_v16 = vmul.f32 %v7075_v23, %v10217_v52  ;;  %v3476_v52 = vld [vmem:[#allocation2 + $0x118] sm:$0xff] }
 0x374   :  { %5955 = vmatpush1.bf16.msra.mxu0 %v5954_v46  ;;  %v4123_v19 = vsel %vm4109_vm12, %v6702_v25, %v6703_v60  ;;  %3857 = vmatprep.mubr.f32.mxu1 %v10838_v41  ;;  %v4120_v8 = vsel %vm4109_vm12, %v6693_v13, %v6697_v29  ;;  %v4121_v1 = vsel %vm4109_vm12, %v6697_v29, %v6698_v31 }
 0x375   :  { %v6711_v6 = vpop.permute.xlu1 %6710  ;;  %v6706_v61 = vpop.permute.xlu0 %6705  ;;  %v5956_v28 = vpack.c.bf16 %v4123_v19, %v4119_v26  ;;  %5682 = vmatmul.mubr.msk.f32.gmra.mrb[88].mxu0 %vm382_vm0, %v3473_v39  ;;  %v6954_v13 = vpack.i.bf16 %v5005_v15, %v10462_v37  ;;  %v5444_v19 = vld [vmem:[%s10763_s6 + $0x10] sm:$0xff] }
 0x376   :  { %v6713_v17 = vunpack.i.h.bf16 %v6711_v6  ;;  %v6712_v43 = vunpack.i.l.bf16 %v6711_v6  ;;  %v6708_v32 = vunpack.i.h.bf16 %v6706_v61  ;;  %v6707_v51 = vunpack.i.l.bf16 %v6706_v61  ;;  %5688 = vmatmul.mubr.msk.f32.gmra.mrb[88].mxu1 %vm382_vm0, %v3473_v39  ;;  %3762 = vmatprep.mubr.f32.mxu0 %v10838_v41 }
 0x377   :  { %6935 = vrot.lane.b32.xlu0 %v6934_v0, %s7145_s29  ;;  %6930 = vrot.lane.b32.xlu1 %v6929_v40, %s7145_s29 }
 0x378   :  { %v4118_v55 = vsel %vm4109_vm12, %v6712_v43, %v6692_v56  ;;  %v4122_v42 = vsel %vm4109_vm12, %v6713_v17, %v6702_v25  ;;  %v4124_v14 = vsel %vm4109_vm12, %v6703_v60, %v6707_v51  ;;  %v4125_v27 = vsel %vm4109_vm12, %v6707_v51, %v6708_v32  ;;  %5957 = vmatprep.subr.bf16.mxu0 %v5956_v28  ;;  %v5446_v32 = vld [vmem:[%s10763_s6 + $0x20] sm:$0xff]  ;;  %v5445_v51 = vld [vmem:[%s10763_s6 + $0x18] sm:$0xff] }
 0x379   :  { %v5958_v38 = vpack.c.bf16 %v4122_v42, %v4118_v55  ;;  %v5974_v54 = vpack.c.bf16 %v4124_v14, %v4120_v8  ;;  %v6721_v48 = vpop.permute.xlu1 %6720  ;;  %v6716_v22 = vpop.permute.xlu0 %6715  ;;  %v5972_v12 = vpack.c.bf16 %v4125_v27, %v4121_v1  ;;  %3863 = vmatprep.mubr.f32.mxu1 %v10838_v41  ;;  %5683 = vmatmul.mubr.msk.f32.gmra.mrb[90].mxu0 %vm382_vm0, %v3474_v36  ;;  %v5443_v8 = vld [vmem:[%s10763_s6 + $0x8] sm:$0xff] }
 0x37a   :  { %v6723_v53 = vunpack.i.h.bf16 %v6721_v48  ;;  %v6722_v35 = vunpack.i.l.bf16 %v6721_v48  ;;  %v6718_v45 = vunpack.i.h.bf16 %v6716_v22  ;;  %v6717_v3 = vunpack.i.l.bf16 %v6716_v22  ;;  %5689 = vmatmul.mubr.msk.f32.gmra.mrb[90].mxu1 %vm382_vm0, %v3474_v36  ;;  %3768 = vmatprep.mubr.f32.mxu0 %v10838_v41 }
 0x37b   :  { %6945 = vrot.lane.b32.xlu0 %v6944_v5, %s7145_s29  ;;  %6940 = vrot.lane.b32.xlu1 %v6939_v30, %s7145_s29  ;;  %v6949_v56 = vpack.i.bf16 %v5003_v18, %v5002_v10  ;;  %v6959_v25 = vpack.i.bf16 %v5001_v16, %v4996_v59  ;;  %v3983_v16 = vld [vmem:[#allocation2 + $0x120] sm:$0xff] }
 0x37c   :  { %5973 = vmatprep.subr.bf16.mxu1 %v5972_v12  ;;  %5959 = vmatpush1.bf16.msra.mxu0 %v5958_v38  ;;  %v4128_v2 = vsel %vm4109_vm12, %v6718_v45, %v6722_v35  ;;  %v4127_v33 = vsel %vm4109_vm12, %v6717_v3, %v6718_v45  ;;  %v4129_v44 = vsel %vm4109_vm12, %v6722_v35, %v6723_v53  ;;  %v5447_v12 = vld [vmem:[%s10763_s6 + $0x28] sm:$0xff] }
 0x37d   :  { %v6731_v21 = vpop.permute.xlu1 %6730  ;;  %v6726_v20 = vpop.permute.xlu0 %6725  ;;  %5975 = vmatpush1.bf16.msra.mxu1 %v5974_v54  ;;  %3869 = vmatprep.mubr.f32.mxu1 %v10838_v41 }
 0x37e   :  { %v6733_v50 = vunpack.i.h.bf16 %v6731_v21  ;;  %v6732_v7 = vunpack.i.l.bf16 %v6731_v21  ;;  %v6728_v24 = vunpack.i.h.bf16 %v6726_v20  ;;  %v6727_v58 = vunpack.i.l.bf16 %v6726_v20  ;;  %5690 = vmatmul.mubr.msk.f32.gmra.mrb[92].mxu1 %vm382_vm0, %v3475_v9  ;;  %5684 = vmatmul.mubr.msk.f32.gmra.mrb[92].mxu0 %vm382_vm0, %v3475_v9 }
 0x37f   :  { %6955 = vrot.lane.b32.xlu0 %v6954_v13, %s7145_s29  ;;  %6950 = vrot.lane.b32.xlu1 %v6949_v56, %s7145_s29 }
 0x380   :  { %v4132_v46 = vsel %vm4109_vm12, %v6728_v24, %v6732_v7  ;;  %v4131_v57 = vsel %vm4109_vm12, %v6727_v58, %v6728_v24  ;;  %v4133_v4 = vsel %vm4109_vm12, %v6732_v7, %v6733_v50  ;;  %3875 = vmatprep.mubr.f32.mxu1 %v10838_v41  ;;  %3774 = vmatprep.mubr.f32.mxu0 %v10838_v41 }
 0x381   :  { %v5978_v49 = vpack.c.bf16 %v4132_v46, %v4128_v2  ;;  %v6741_v26 = vpop.permute.xlu1 %6740  ;;  %v6736_v60 = vpop.permute.xlu0 %6735  ;;  %v5960_v31 = vpack.c.bf16 %v4131_v57, %v4127_v33  ;;  %v5976_v29 = vpack.c.bf16 %v4133_v4, %v4129_v44 }
 0x382   :  { %v6738_v39 = vunpack.i.h.bf16 %v6736_v60  ;;  %v6737_v0 = vunpack.i.l.bf16 %v6736_v60  ;;  %5691 = vmatmul.mubr.msk.f32.gmra.mrb[94].mxu1 %vm382_vm0, %v3476_v52  ;;  %5685 = vmatmul.mubr.msk.f32.gmra.mrb[94].mxu0 %vm382_vm0, %v3476_v52  ;;  %v6743_v40 = vunpack.i.h.bf16 %v6741_v26  ;;  %v6742_v5 = vunpack.i.l.bf16 %v6741_v26  ;;  %v3984_v52 = vld [vmem:[#allocation2 + $0x128] sm:$0xff] }
 0x383   :  { %5450 = vperm.xlu0 %6262, %v5442_v63   ;;  %6960 = vrot.lane.b32.xlu1 %v6959_v25, %s7145_s29 }
 0x384   :  { %v4126_v62 = vsel %vm4109_vm12, %v6737_v0, %v6717_v3  ;;  %v4130_v37 = vsel %vm4109_vm12, %v6738_v39, %v6727_v58  ;;  %5961 = vmatprep.subr.bf16.mxu0 %v5960_v31  ;;  %5977 = vmatprep.subr.bf16.mxu1 %v5976_v29  ;;  %v4135_v36 = vsel %vm4109_vm12, %v6742_v5, %v6743_v40 }
 0x385   :  { %v5962_v6 = vpack.c.bf16 %v4130_v37, %v4126_v62  ;;  %5979 = vmatpush1.bf16.msra.mxu1 %v5978_v49  ;;  %v6751_v61 = vpop.permute.xlu1 %6750  ;;  %v6746_v30 = vpop.permute.xlu0 %6745  ;;  %4357 = vmatprep.mubr.f32.mxu1 %v10838_v41 }
 0x386   :  { %v6753_v1 = vunpack.i.h.bf16 %v6751_v61  ;;  %v6752_v28 = vunpack.i.l.bf16 %v6751_v61  ;;  %4256 = vmatprep.mubr.f32.mxu0 %v10838_v41  ;;  %v6748_v17 = vunpack.i.h.bf16 %v6746_v30  ;;  %v6747_v43 = vunpack.i.l.bf16 %v6746_v30 }
 0x387   :  { %5460 = vperm.xlu0 %6262, %v5444_v19   ;;  %5455 = vperm.xlu1 %6263, %v5443_v8  }
 0x388   :  { %5963 = vmatpush1.bf16.msra.mxu0 %v5962_v6  ;;  %v4139_v15 = vsel %vm4109_vm12, %v6752_v28, %v6753_v1  ;;  %v4136_v27 = vsel %vm4109_vm12, %v6743_v40, %v6747_v43  ;;  %v4137_v38 = vsel %vm4109_vm12, %v6747_v43, %v6748_v17  ;;  %v3985_v40 = vld [vmem:[#allocation2 + $0x130] sm:$0xff]  ;;  %v3986_v17 = vld [vmem:[#allocation2 + $0x138] sm:$0xff] }
 0x389   :  { %v6761_v11 = vpop.permute.xlu1 %6760  ;;  %v6756_v10 = vpop.permute.xlu0 %6755  ;;  %v5964_v47 = vpack.c.bf16 %v4139_v15, %v4135_v36 }
 0x38a   :  { %v6763_v18 = vunpack.i.h.bf16 %v6761_v11  ;;  %v6762_v55 = vunpack.i.l.bf16 %v6761_v11  ;;  %v6758_v42 = vunpack.i.h.bf16 %v6756_v10  ;;  %v6757_v14 = vunpack.i.l.bf16 %v6756_v10 }
 0x38b   :  { %5470 = vperm.xlu0 %6262, %v5446_v32   ;;  %5465 = vperm.xlu1 %6263, %v5445_v51  }
 0x38c   :  { %v4134_v54 = vsel %vm4109_vm12, %v6762_v55, %v6742_v5  ;;  %v4138_v48 = vsel %vm4109_vm12, %v6763_v18, %v6752_v28  ;;  %v4140_v22 = vsel %vm4109_vm12, %v6753_v1, %v6757_v14  ;;  %5965 = vmatprep.subr.bf16.mxu0 %v5964_v47  ;;  %v4141_v53 = vsel %vm4109_vm12, %v6757_v14, %v6758_v42  ;;  %v3987_v42 = vld [vmem:[#allocation2 + $0x140] sm:$0xff] }
 0x38d   :  { %v5966_v35 = vpack.c.bf16 %v4138_v48, %v4134_v54  ;;  %v5982_v45 = vpack.c.bf16 %v4140_v22, %v4136_v27  ;;  %v6771_v3 = vpop.permute.xlu1 %6770  ;;  %v6766_v34 = vpop.permute.xlu0 %6765  ;;  %v5980_v59 = vpack.c.bf16 %v4141_v53, %v4137_v38 }
 0x38e   :  { %v6773_v9 = vunpack.i.h.bf16 %v6771_v3  ;;  %v6772_v13 = vunpack.i.l.bf16 %v6771_v3  ;;  %v6768_v56 = vunpack.i.h.bf16 %v6766_v34  ;;  %v6767_v23 = vunpack.i.l.bf16 %v6766_v34 }
 0x38f   :  { %5475 = vperm.xlu1 %6263, %v5447_v12   ;;  %5967 = vmatpush1.bf16.msra.mxu0 %v5966_v35 }
 0x390   :  { %5981 = vmatprep.subr.bf16.mxu1 %v5980_v59  ;;  %v4624_v2 = vsel %vm4621_vm13, %v6768_v56, %v6772_v13  ;;  %v4625_v33 = vsel %vm4621_vm13, %v6772_v13, %v6773_v9  ;;  %v4623_v44 = vsel %vm4621_vm13, %v6767_v23, %v6768_v56  ;;  %v3988_v9 = vld [vmem:[#allocation2 + $0x148] sm:$0xff] }
 0x391   :  { %5983 = vmatpush1.bf16.msra.mxu1 %v5982_v45  ;;  %v6781_v21 = vpop.permute.xlu1 %6780  ;;  %v6776_v20 = vpop.permute.xlu0 %6775 }
 0x392   :  { %v6783_v50 = vunpack.i.h.bf16 %v6781_v21  ;;  %v6782_v7 = vunpack.i.l.bf16 %v6781_v21  ;;  %v6778_v24 = vunpack.i.h.bf16 %v6776_v20  ;;  %v6777_v58 = vunpack.i.l.bf16 %v6776_v20  ;;  %5692 = vmatmul.mubr.msk.f32.vlgmr.msra.gmra.mrb[84].mxu0 %vm382_vm0, %v3983_v16 }
 0x393   :  { %4262 = vmatprep.mubr.f32.mxu0 %v10838_v41 }
 0x394   :  { %v4628_v46 = vsel %vm4621_vm13, %v6778_v24, %v6782_v7  ;;  %v4629_v63 = vsel %vm4621_vm13, %v6782_v7, %v6783_v50  ;;  %5698 = vmatmul.mubr.msk.f32.vlgmr.msra.gmra.mrb[84].mxu1 %vm382_vm0, %v3983_v16  ;;  %v4627_v57 = vsel %vm4621_vm13, %v6777_v58, %v6778_v24 }
 0x395   :  { %v6002_v4 = vpack.c.bf16 %v4628_v46, %v4624_v2  ;;  %v6791_v49 = vpop.permute.xlu1 %6790  ;;  %v6786_v26 = vpop.permute.xlu0 %6785  ;;  %v6000_v60 = vpack.c.bf16 %v4629_v63, %v4625_v33  ;;  %v5984_v25 = vpack.c.bf16 %v4627_v57, %v4623_v44  ;;  %4363 = vmatprep.mubr.f32.mxu1 %v10838_v41 }
 0x396   :  { %v6793_v31 = vunpack.i.h.bf16 %v6791_v49  ;;  %v6792_v29 = vunpack.i.l.bf16 %v6791_v49  ;;  %v6788_v39 = vunpack.i.h.bf16 %v6786_v26  ;;  %v6787_v0 = vunpack.i.l.bf16 %v6786_v26  ;;  %5693 = vmatmul.mubr.msk.f32.gmra.mrb[86].mxu0 %vm382_vm0, %v3984_v52 }
 0x397   :  { %6001 = vmatprep.subr.bf16.mxu1 %v6000_v60  ;;  %5985 = vmatprep.subr.bf16.mxu0 %v5984_v25 }
 0x398   :  { %v4622_v5 = vsel %vm4621_vm13, %v6787_v0, %v6767_v23  ;;  %v4626_v62 = vsel %vm4621_vm13, %v6788_v39, %v6777_v58  ;;  %6003 = vmatpush1.bf16.msra.mxu1 %v6002_v4  ;;  %4268 = vmatprep.mubr.f32.mxu0 %v10838_v41  ;;  %v4631_v6 = vsel %vm4621_vm13, %v6792_v29, %v6793_v31 }
 0x399   :  { %v5986_v37 = vpack.c.bf16 %v4626_v62, %v4622_v5  ;;  %v6801_v19 = vpop.permute.xlu1 %6800  ;;  %v6796_v8 = vpop.permute.xlu0 %6795  ;;  %5699 = vmatmul.mubr.msk.f32.gmra.mrb[86].mxu1 %vm382_vm0, %v3984_v52 }
 0x39a   :  { %v6803_v61 = vunpack.i.h.bf16 %v6801_v19  ;;  %v6802_v30 = vunpack.i.l.bf16 %v6801_v19  ;;  %v6798_v1 = vunpack.i.h.bf16 %v6796_v8  ;;  %v6797_v28 = vunpack.i.l.bf16 %v6796_v8  ;;  %5694 = vmatmul.mubr.msk.f32.gmra.mrb[88].mxu0 %vm382_vm0, %v3985_v40  ;;  %4369 = vmatprep.mubr.f32.mxu1 %v10838_v41 }
 0x39b   :  { %5987 = vmatpush1.bf16.msra.mxu0 %v5986_v37  ;;  %4274 = vmatprep.mubr.f32.mxu0 %v10838_v41 }
 0x39c   :  { %v4635_v43 = vsel %vm4621_vm13, %v6802_v30, %v6803_v61  ;;  %v4632_v32 = vsel %vm4621_vm13, %v6793_v31, %v6797_v28  ;;  %v4633_v15 = vsel %vm4621_vm13, %v6797_v28, %v6798_v1 }
 0x39d   :  { %v6811_v51 = vpop.permute.xlu1 %6810  ;;  %v6806_v36 = vpop.permute.xlu0 %6805  ;;  %v5988_v11 = vpack.c.bf16 %v4635_v43, %v4631_v6  ;;  %5700 = vmatmul.mubr.msk.f32.gmra.mrb[88].mxu1 %vm382_vm0, %v3985_v40 }
 0x39e   :  { %v6813_v10 = vunpack.i.h.bf16 %v6811_v51  ;;  %v6812_v47 = vunpack.i.l.bf16 %v6811_v51  ;;  %v6808_v18 = vunpack.i.h.bf16 %v6806_v36  ;;  %v6807_v55 = vunpack.i.l.bf16 %v6806_v36  ;;  %5695 = vmatmul.mubr.msk.f32.gmra.mrb[90].mxu0 %vm382_vm0, %v3986_v17  ;;  %4375 = vmatprep.mubr.f32.mxu1 %v10838_v41 }
 0x39f   :  { %5989 = vmatprep.subr.bf16.mxu0 %v5988_v11  ;;  %4280 = vmatprep.mubr.f32.mxu0 %v10838_v41 }
 0x3a0   :  { %v4630_v14 = vsel %vm4621_vm13, %v6812_v47, %v6792_v29  ;;  %v4634_v27 = vsel %vm4621_vm13, %v6813_v10, %v6802_v30  ;;  %v4636_v38 = vsel %vm4621_vm13, %v6803_v61, %v6807_v55  ;;  %v4637_v54 = vsel %vm4621_vm13, %v6807_v55, %v6808_v18 }
 0x3a1   :  { %v5990_v48 = vpack.c.bf16 %v4634_v27, %v4630_v14  ;;  %v6006_v22 = vpack.c.bf16 %v4636_v38, %v4632_v32  ;;  %v6821_v12 = vpop.permute.xlu1 %6820  ;;  %v6816_v53 = vpop.permute.xlu0 %6815  ;;  %v6004_v35 = vpack.c.bf16 %v4637_v54, %v4633_v15  ;;  %5701 = vmatmul.mubr.msk.f32.gmra.mrb[90].mxu1 %vm382_vm0, %v3986_v17  ;;  %v4496_v14 = vld [vmem:[#allocation2 + $0x158] sm:$0xff]  ;;  %v4497_v27 = vld [vmem:[#allocation2 + $0x160] sm:$0xff]  ;;  %v4498_v38 = vld [vmem:[#allocation2 + $0x168] sm:$0xff] }
 0x3a2   :  { %v6823_v45 = vunpack.i.h.bf16 %v6821_v12  ;;  %v6822_v3 = vunpack.i.l.bf16 %v6821_v12  ;;  %v6818_v34 = vunpack.i.h.bf16 %v6816_v53  ;;  %v6817_v59 = vunpack.i.l.bf16 %v6816_v53  ;;  %5696 = vmatmul.mubr.msk.f32.gmra.mrb[92].mxu0 %vm382_vm0, %v3987_v42  ;;  %4381 = vmatprep.mubr.f32.mxu1 %v10838_v41  ;;  %v4499_v54 = vld [vmem:[#allocation2 + $0x170] sm:$0xff] }
 0x3a3   :  { %6005 = vmatprep.subr.bf16.mxu1 %v6004_v35  ;;  %5991 = vmatpush1.bf16.msra.mxu0 %v5990_v48  ;;  %v4500_v48 = vld [vmem:[#allocation2 + $0x178] sm:$0xff] }
 0x3a4   :  { %6007 = vmatpush1.bf16.msra.mxu1 %v6006_v22  ;;  %4286 = vmatprep.mubr.f32.mxu0 %v10838_v41  ;;  %v4640_v13 = vsel %vm4621_vm13, %v6818_v34, %v6822_v3  ;;  %v4639_v16 = vsel %vm4621_vm13, %v6817_v59, %v6818_v34  ;;  %v4641_v2 = vsel %vm4621_vm13, %v6822_v3, %v6823_v45 }
 0x3a5   :  { %v6831_v56 = vpop.permute.xlu1 %6830  ;;  %v6826_v23 = vpop.permute.xlu0 %6825  ;;  %5702 = vmatmul.mubr.msk.f32.gmra.mrb[92].mxu1 %vm382_vm0, %v3987_v42  ;;  %v4495_v42 = vld [vmem:[#allocation2 + $0x150] sm:$0xff] }
 0x3a6   :  { %v6833_v21 = vunpack.i.h.bf16 %v6831_v56  ;;  %v6832_v20 = vunpack.i.l.bf16 %v6831_v56  ;;  %v6828_v33 = vunpack.i.h.bf16 %v6826_v23  ;;  %v6827_v44 = vunpack.i.l.bf16 %v6826_v23  ;;  %5697 = vmatmul.mubr.msk.f32.gmra.mrb[94].mxu0 %vm382_vm0, %v3988_v9  ;;  %4387 = vmatprep.mubr.f32.mxu1 %v10838_v41 }
 0x3a7   :  { %4768 = vmatprep.mubr.f32.mxu0 %v10838_v41 }
 0x3a8   :  { %v4644_v50 = vsel %vm4621_vm13, %v6828_v33, %v6832_v20  ;;  %v4643_v7 = vsel %vm4621_vm13, %v6827_v44, %v6828_v33  ;;  %v4645_v24 = vsel %vm4621_vm13, %v6832_v20, %v6833_v21 }
 0x3a9   :  { %v6010_v58 = vpack.c.bf16 %v4644_v50, %v4640_v13  ;;  %v6841_v52 = vpop.permute.xlu1 %6840  ;;  %v6836_v46 = vpop.permute.xlu0 %6835  ;;  %v5992_v63 = vpack.c.bf16 %v4643_v7, %v4639_v16  ;;  %v6008_v57 = vpack.c.bf16 %v4645_v24, %v4641_v2  ;;  %5703 = vmatmul.mubr.msk.f32.gmra.mrb[94].mxu1 %vm382_vm0, %v3988_v9 }
 0x3aa   :  { %v6838_v4 = vunpack.i.h.bf16 %v6836_v46  ;;  %v6837_v49 = vunpack.i.l.bf16 %v6836_v46  ;;  %4869 = vmatprep.mubr.f32.mxu1 %v10838_v41  ;;  %v6843_v26 = vunpack.i.h.bf16 %v6841_v52  ;;  %v6842_v60 = vunpack.i.l.bf16 %v6841_v52 }
 0x3ab   :  { %5993 = vmatprep.subr.bf16.mxu0 %v5992_v63  ;;  %6009 = vmatprep.subr.bf16.mxu1 %v6008_v57 }
 0x3ac   :  { %v4638_v25 = vsel %vm4621_vm13, %v6837_v49, %v6817_v59  ;;  %v4642_v31 = vsel %vm4621_vm13, %v6838_v4, %v6827_v44  ;;  %6011 = vmatpush1.bf16.msra.mxu1 %v6010_v58  ;;  %v4647_v19 = vsel %vm4621_vm13, %v6842_v60, %v6843_v26 }
 0x3ad   :  { %v5994_v29 = vpack.c.bf16 %v4642_v31, %v4638_v25  ;;  %v6851_v39 = vpop.permute.xlu1 %6850  ;;  %v6846_v0 = vpop.permute.xlu0 %6845 }
 0x3ae   :  { %v6853_v40 = vunpack.i.h.bf16 %v6851_v39  ;;  %v6852_v5 = vunpack.i.l.bf16 %v6851_v39  ;;  %v6848_v62 = vunpack.i.h.bf16 %v6846_v0  ;;  %v6847_v37 = vunpack.i.l.bf16 %v6846_v0 }
 0x3af   :  { %5995 = vmatpush1.bf16.msra.mxu0 %v5994_v29 }
 0x3b0   :  { %v4651_v8 = vsel %vm4621_vm13, %v6852_v5, %v6853_v40  ;;  %v4648_v32 = vsel %vm4621_vm13, %v6843_v26, %v6847_v37  ;;  %v4649_v51 = vsel %vm4621_vm13, %v6847_v37, %v6848_v62 }
 0x3b1   :  { %v6861_v6 = vpop.permute.xlu1 %6860  ;;  %v6856_v61 = vpop.permute.xlu0 %6855  ;;  %v5996_v30 = vpack.c.bf16 %v4651_v8, %v4647_v19 }
 0x3b2   :  { %v6863_v1 = vunpack.i.h.bf16 %v6861_v6  ;;  %v6862_v28 = vunpack.i.l.bf16 %v6861_v6  ;;  %v6858_v17 = vunpack.i.h.bf16 %v6856_v61  ;;  %v6857_v43 = vunpack.i.l.bf16 %v6856_v61 }
 0x3b3   :  { %5997 = vmatprep.subr.bf16.mxu0 %v5996_v30 }
 0x3b4   :  { %v4646_v36 = vsel %vm4621_vm13, %v6862_v28, %v6842_v60  ;;  %v4650_v15 = vsel %vm4621_vm13, %v6863_v1, %v6852_v5  ;;  %v4652_v11 = vsel %vm4621_vm13, %v6853_v40, %v6857_v43  ;;  %v4653_v10 = vsel %vm4621_vm13, %v6857_v43, %v6858_v17 }
 0x3b5   :  { %v5998_v47 = vpack.c.bf16 %v4650_v15, %v4646_v36  ;;  %v6014_v18 = vpack.c.bf16 %v4652_v11, %v4648_v32  ;;  %v6012_v55 = vpack.c.bf16 %v4653_v10, %v4649_v51 }
 0x3b7   :  { %5999 = vmatpush1.bf16.msra.mxu0 %v5998_v47  ;;  %6013 = vmatprep.subr.bf16.mxu1 %v6012_v55 }
 0x3b8   :  { %6015 = vmatpush1.bf16.msra.mxu1 %v6014_v18 }
 0x3ba   :  { %5704 = vmatmul.mubr.msk.f32.vlgmr.msra.gmra.mrb[84].mxu0 %vm382_vm0, %v4495_v42 }
 0x3bb   :  { %5710 = vmatmul.mubr.msk.f32.vlgmr.msra.gmra.mrb[84].mxu1 %vm382_vm0, %v4495_v42  ;;  %4774 = vmatprep.mubr.f32.mxu0 %v10838_v41 }
 0x3bc   :  { %4875 = vmatprep.mubr.f32.mxu1 %v10838_v41 }
 0x3be   :  { %5705 = vmatmul.mubr.msk.f32.gmra.mrb[86].mxu0 %vm382_vm0, %v4496_v14 }
 0x3bf   :  { %5711 = vmatmul.mubr.msk.f32.gmra.mrb[86].mxu1 %vm382_vm0, %v4496_v14  ;;  %4780 = vmatprep.mubr.f32.mxu0 %v10838_v41 }
 0x3c0   :  { %4881 = vmatprep.mubr.f32.mxu1 %v10838_v41 }
 0x3c2   :  { %5706 = vmatmul.mubr.msk.f32.gmra.mrb[88].mxu0 %vm382_vm0, %v4497_v27 }
 0x3c3   :  { %5712 = vmatmul.mubr.msk.f32.gmra.mrb[88].mxu1 %vm382_vm0, %v4497_v27  ;;  %4786 = vmatprep.mubr.f32.mxu0 %v10838_v41 }
 0x3c4   :  { %4887 = vmatprep.mubr.f32.mxu1 %v10838_v41 }
 0x3c6   :  { %5707 = vmatmul.mubr.msk.f32.gmra.mrb[90].mxu0 %vm382_vm0, %v4498_v38 }
 0x3c7   :  { %5713 = vmatmul.mubr.msk.f32.gmra.mrb[90].mxu1 %vm382_vm0, %v4498_v38  ;;  %4792 = vmatprep.mubr.f32.mxu0 %v10838_v41 }
 0x3c8   :  { %4893 = vmatprep.mubr.f32.mxu1 %v10838_v41 }
 0x3ca   :  { %5708 = vmatmul.mubr.msk.f32.gmra.mrb[92].mxu0 %vm382_vm0, %v4499_v54 }
 0x3cb   :  { %5714 = vmatmul.mubr.msk.f32.gmra.mrb[92].mxu1 %vm382_vm0, %v4499_v54  ;;  %4798 = vmatprep.mubr.f32.mxu0 %v10838_v41 }
 0x3cc   :  { %4899 = vmatprep.mubr.f32.mxu1 %v10838_v41 }
 0x3cd   :  { %v6866_v22 = vpop.permute.xlu0 %6865 }
 0x3ce   :  { %5709 = vmatmul.mubr.msk.f32.gmra.mrb[94].mxu0 %vm382_vm0, %v4500_v48  ;;  %v6868_v12 = vunpack.i.h.bf16 %v6866_v22  ;;  %v6867_v53 = vunpack.i.l.bf16 %v6866_v22 }
 0x3cf   :  { %5715 = vmatmul.mubr.msk.f32.gmra.mrb[94].mxu1 %vm382_vm0, %v4500_v48  ;;  %5280 = vmatprep.mubr.f32.mxu0 %v10838_v41 }
 0x3d0   :  { %5381 = vmatprep.mubr.f32.mxu1 %v10838_v41  ;;  %v5135_v13 = vsel %vm5133_vm14, %v6867_v53, %v6868_v12 }
 0x3d1   :  { %v6871_v35 = vpop.permute.xlu1 %6870  ;;  %v6876_v45 = vpop.permute.xlu0 %6875 }
 0x3d2   :  { %v6878_v3 = vunpack.i.h.bf16 %v6876_v45  ;;  %v6877_v34 = vunpack.i.l.bf16 %v6876_v45  ;;  %v6873_v59 = vunpack.i.h.bf16 %v6871_v35  ;;  %v6872_v9 = vunpack.i.l.bf16 %v6871_v35 }
 0x3d4   :  { %v5139_v56 = vsel %vm5133_vm14, %v6877_v34, %v6878_v3  ;;  %v5136_v50 = vsel %vm5133_vm14, %v6868_v12, %v6872_v9  ;;  %v5137_v7 = vsel %vm5133_vm14, %v6872_v9, %v6873_v59 }
 0x3d5   :  { %v6881_v23 = vpop.permute.xlu1 %6880  ;;  %v6886_v16 = vpop.permute.xlu0 %6885  ;;  %v6016_v2 = vpack.c.bf16 %v5139_v56, %v5135_v13 }
 0x3d6   :  { %v6883_v21 = vunpack.i.h.bf16 %v6881_v23  ;;  %v6882_v20 = vunpack.i.l.bf16 %v6881_v23  ;;  %v6888_v33 = vunpack.i.h.bf16 %v6886_v16  ;;  %v6887_v44 = vunpack.i.l.bf16 %v6886_v16 }
 0x3d7   :  { %6017 = vmatprep.subr.bf16.mxu0 %v6016_v2 }
 0x3d8   :  { %v5140_v24 = vsel %vm5133_vm14, %v6878_v3, %v6882_v20  ;;  %v5134_v58 = vsel %vm5133_vm14, %v6887_v44, %v6867_v53  ;;  %v5138_v52 = vsel %vm5133_vm14, %v6888_v33, %v6877_v34  ;;  %v5141_v46 = vsel %vm5133_vm14, %v6882_v20, %v6883_v21 }
 0x3d9   :  { %v6034_v63 = vpack.c.bf16 %v5140_v24, %v5136_v50  ;;  %v6018_v57 = vpack.c.bf16 %v5138_v52, %v5134_v58  ;;  %v6891_v4 = vpop.permute.xlu1 %6890  ;;  %v6896_v49 = vpop.permute.xlu0 %6895  ;;  %v6032_v26 = vpack.c.bf16 %v5141_v46, %v5137_v7 }
 0x3da   :  { %v6893_v60 = vunpack.i.h.bf16 %v6891_v4  ;;  %v6892_v25 = vunpack.i.l.bf16 %v6891_v4  ;;  %v6897_v31 = vunpack.i.l.bf16 %v6896_v49  ;;  %v6898_v29 = vunpack.i.h.bf16 %v6896_v49 }
 0x3db   :  { %6019 = vmatpush1.bf16.msra.mxu0 %v6018_v57  ;;  %6033 = vmatprep.subr.bf16.mxu1 %v6032_v26 }
 0x3dc   :  { %6035 = vmatpush1.bf16.msra.mxu1 %v6034_v63  ;;  %v5144_v19 = vsel %vm5133_vm14, %v6893_v60, %v6897_v31  ;;  %v5143_v8 = vsel %vm5133_vm14, %v6892_v25, %v6893_v60  ;;  %v5145_v30 = vsel %vm5133_vm14, %v6897_v31, %v6898_v29 }
 0x3dd   :  { %v6901_v39 = vpop.permute.xlu1 %6900  ;;  %v6906_v0 = vpop.permute.xlu0 %6905 }
 0x3de   :  { %v6903_v40 = vunpack.i.h.bf16 %v6901_v39  ;;  %v6902_v5 = vunpack.i.l.bf16 %v6901_v39  ;;  %v6908_v62 = vunpack.i.h.bf16 %v6906_v0  ;;  %v6907_v37 = vunpack.i.l.bf16 %v6906_v0 }
 0x3e0   :  { %v5148_v6 = vsel %vm5133_vm14, %v6903_v40, %v6907_v37  ;;  %v5147_v61 = vsel %vm5133_vm14, %v6902_v5, %v6903_v40  ;;  %v5149_v1 = vsel %vm5133_vm14, %v6907_v37, %v6908_v62 }
 0x3e1   :  { %v6038_v28 = vpack.c.bf16 %v5148_v6, %v5144_v19  ;;  %v6911_v17 = vpop.permute.xlu1 %6910  ;;  %v6916_v43 = vpop.permute.xlu0 %6915  ;;  %v6020_v32 = vpack.c.bf16 %v5147_v61, %v5143_v8  ;;  %v6036_v51 = vpack.c.bf16 %v5149_v1, %v5145_v30  ;;  %v5007_v1 = vld [vmem:[#allocation2 + $0x180] sm:$0xff] }
 0x3e2   :  { %v6913_v36 = vunpack.i.h.bf16 %v6911_v17  ;;  %v6912_v15 = vunpack.i.l.bf16 %v6911_v17  ;;  %v6918_v47 = vunpack.i.h.bf16 %v6916_v43  ;;  %v6917_v18 = vunpack.i.l.bf16 %v6916_v43  ;;  %v5008_v17 = vld [vmem:[#allocation2 + $0x188] sm:$0xff]  ;;  %v5009_v43 = vld [vmem:[#allocation2 + $0x190] sm:$0xff] }
 0x3e3   :  { %6021 = vmatprep.subr.bf16.mxu0 %v6020_v32  ;;  %6037 = vmatprep.subr.bf16.mxu1 %v6036_v51  ;;  %v5010_v32 = vld [vmem:[#allocation2 + $0x198] sm:$0xff]  ;;  %v5011_v51 = vld [vmem:[#allocation2 + $0x1a0] sm:$0xff] }
 0x3e4   :  { %v5142_v11 = vsel %vm5133_vm14, %v6912_v15, %v6892_v25  ;;  %v5146_v10 = vsel %vm5133_vm14, %v6913_v36, %v6902_v5  ;;  %6039 = vmatpush1.bf16.msra.mxu1 %v6038_v28  ;;  %v5151_v22 = vsel %vm5133_vm14, %v6917_v18, %v6918_v47  ;;  %v5012_v36 = vld [vmem:[#allocation2 + $0x1a8] sm:$0xff] }
 0x3e5   :  { %v6022_v55 = vpack.c.bf16 %v5146_v10, %v5142_v11  ;;  %v6921_v42 = vpop.permute.xlu1 %6920  ;;  %v6926_v14 = vpop.permute.xlu0 %6925 }
 0x3e6   :  { %v6928_v27 = vunpack.i.h.bf16 %v6926_v14  ;;  %v6927_v38 = vunpack.i.l.bf16 %v6926_v14  ;;  %v6923_v54 = vunpack.i.h.bf16 %v6921_v42  ;;  %v6922_v48 = vunpack.i.l.bf16 %v6921_v42 }
 0x3e7   :  { %6023 = vmatpush1.bf16.msra.mxu0 %v6022_v55 }
 0x3e8   :  { %v5155_v12 = vsel %vm5133_vm14, %v6927_v38, %v6928_v27  ;;  %v5152_v13 = vsel %vm5133_vm14, %v6918_v47, %v6922_v48  ;;  %v5153_v56 = vsel %vm5133_vm14, %v6922_v48, %v6923_v54 }
 0x3e9   :  { %v6931_v53 = vpop.permute.xlu1 %6930  ;;  %v6936_v35 = vpop.permute.xlu0 %6935  ;;  %v6024_v45 = vpack.c.bf16 %v5155_v12, %v5151_v22 }
 0x3ea   :  { %v6933_v3 = vunpack.i.h.bf16 %v6931_v53  ;;  %v6932_v34 = vunpack.i.l.bf16 %v6931_v53  ;;  %v6938_v59 = vunpack.i.h.bf16 %v6936_v35  ;;  %v6937_v9 = vunpack.i.l.bf16 %v6936_v35 }
 0x3eb   :  { %6025 = vmatprep.subr.bf16.mxu0 %v6024_v45 }
 0x3ec   :  { %v5156_v23 = vsel %vm5133_vm14, %v6928_v27, %v6932_v34  ;;  %v5150_v16 = vsel %vm5133_vm14, %v6937_v9, %v6917_v18  ;;  %v5154_v2 = vsel %vm5133_vm14, %v6938_v59, %v6927_v38  ;;  %v5157_v21 = vsel %vm5133_vm14, %v6932_v34, %v6933_v3 }
 0x3ed   :  { %v6042_v20 = vpack.c.bf16 %v5156_v23, %v5152_v13  ;;  %v6026_v33 = vpack.c.bf16 %v5154_v2, %v5150_v16  ;;  %v6941_v44 = vpop.permute.xlu1 %6940  ;;  %v6946_v50 = vpop.permute.xlu0 %6945  ;;  %v6040_v7 = vpack.c.bf16 %v5157_v21, %v5153_v56 }
 0x3ee   :  { %v6943_v24 = vunpack.i.h.bf16 %v6941_v44  ;;  %v6942_v58 = vunpack.i.l.bf16 %v6941_v44  ;;  %v6947_v52 = vunpack.i.l.bf16 %v6946_v50  ;;  %v6948_v46 = vunpack.i.h.bf16 %v6946_v50 }
 0x3ef   :  { %6027 = vmatpush1.bf16.msra.mxu0 %v6026_v33  ;;  %6041 = vmatprep.subr.bf16.mxu1 %v6040_v7 }
 0x3f0   :  { %6043 = vmatpush1.bf16.msra.mxu1 %v6042_v20  ;;  %v5160_v25 = vsel %vm5133_vm14, %v6943_v24, %v6947_v52  ;;  %v5159_v31 = vsel %vm5133_vm14, %v6942_v58, %v6943_v24  ;;  %v5161_v0 = vsel %vm5133_vm14, %v6947_v52, %v6948_v46 }
 0x3f1   :  { %v6951_v63 = vpop.permute.xlu1 %6950  ;;  %v6956_v57 = vpop.permute.xlu0 %6955 }
 0x3f2   :  { %v6953_v4 = vunpack.i.h.bf16 %v6951_v63  ;;  %v6952_v49 = vunpack.i.l.bf16 %v6951_v63  ;;  %v6958_v26 = vunpack.i.h.bf16 %v6956_v57  ;;  %v6957_v60 = vunpack.i.l.bf16 %v6956_v57 }
 0x3f4   :  { %v5164_v29 = vsel %vm5133_vm14, %v6953_v4, %v6957_v60  ;;  %v5163_v39 = vsel %vm5133_vm14, %v6952_v49, %v6953_v4  ;;  %v5165_v40 = vsel %vm5133_vm14, %v6957_v60, %v6958_v26 }
 0x3f5   :  { %v6046_v5 = vpack.c.bf16 %v5164_v29, %v5160_v25  ;;  %v6961_v62 = vpop.permute.xlu1 %6960  ;;  %v6028_v37 = vpack.c.bf16 %v5163_v39, %v5159_v31  ;;  %v6044_v19 = vpack.c.bf16 %v5165_v40, %v5161_v0 }
 0x3f6   :  { %v6963_v8 = vunpack.i.h.bf16 %v6961_v62  ;;  %v6962_v6 = vunpack.i.l.bf16 %v6961_v62 }
 0x3f7   :  { %6029 = vmatprep.subr.bf16.mxu0 %v6028_v37  ;;  %6045 = vmatprep.subr.bf16.mxu1 %v6044_v19 }
 0x3f8   :  { %v5158_v61 = vsel %vm5133_vm14, %v6962_v6, %v6942_v58  ;;  %v5162_v30 = vsel %vm5133_vm14, %v6963_v8, %v6952_v49  ;;  %6047 = vmatpush1.bf16.msra.mxu1 %v6046_v5 }
 0x3f9   :  { %v6030_v28 = vpack.c.bf16 %v5162_v30, %v5158_v61 }
 0x3fb   :  { %6031 = vmatpush1.bf16.msra.mxu0 %v6030_v28  ;;  %5722 = vmatmul.mubr.msk.f32.vlgmr.msra.gmra.mrb[84].mxu1 %vm382_vm0, %v5007_v1 }
 0x3fc   :  { %5387 = vmatprep.mubr.f32.mxu1 %v10838_v41 }
 0x3fe   :  { %5716 = vmatmul.mubr.msk.f32.vlgmr.msra.gmra.mrb[84].mxu0 %vm382_vm0, %v5007_v1 }
 0x3ff   :  { %5723 = vmatmul.mubr.msk.f32.gmra.mrb[86].mxu1 %vm382_vm0, %v5008_v17  ;;  %5286 = vmatprep.mubr.f32.mxu0 %v10838_v41 }
 0x400   :  { %5393 = vmatprep.mubr.f32.mxu1 %v10838_v41 }
 0x402   :  { %5717 = vmatmul.mubr.msk.f32.gmra.mrb[86].mxu0 %vm382_vm0, %v5008_v17  ;;  %v5451_v15 = vpop.permute.xlu0 %5450 }
 0x403   :  { %5724 = vmatmul.mubr.msk.f32.gmra.mrb[88].mxu1 %vm382_vm0, %v5009_v43  ;;  %5292 = vmatprep.mubr.f32.mxu0 %v10838_v41 }
 0x404   :  { %5399 = vmatprep.mubr.f32.mxu1 %v10838_v41 }
 0x406   :  { %5718 = vmatmul.mubr.msk.f32.gmra.mrb[88].mxu0 %vm382_vm0, %v5009_v43  ;;  %v5456_v55 = vpop.permute.xlu1 %5455  ;;  %v5461_v12 = vpop.permute.xlu0 %5460 }
 0x407   :  { %5725 = vmatmul.mubr.msk.f32.gmra.mrb[90].mxu1 %vm382_vm0, %v5010_v32  ;;  %5298 = vmatprep.mubr.f32.mxu0 %v10838_v41 }
 0x408   :  { %5405 = vmatprep.mubr.f32.mxu1 %v10838_v41 }
 0x40a   :  { %5719 = vmatmul.mubr.msk.f32.gmra.mrb[90].mxu0 %vm382_vm0, %v5010_v32  ;;  %v5466_v56 = vpop.permute.xlu1 %5465  ;;  %v5471_v7 = vpop.permute.xlu0 %5470 }
 0x40b   :  { %5726 = vmatmul.mubr.msk.f32.gmra.mrb[92].mxu1 %vm382_vm0, %v5011_v51  ;;  %5304 = vmatprep.mubr.f32.mxu0 %v10838_v41 }
 0x40c   :  { %5411 = vmatprep.mubr.f32.mxu1 %v10838_v41 }
 0x40e   :  { %5720 = vmatmul.mubr.msk.f32.gmra.mrb[92].mxu0 %vm382_vm0, %v5011_v51  ;;  %v5476_v26 = vpop.permute.xlu1 %5475 }
 0x40f   :  { %5727 = vmatmul.mubr.msk.f32.gmra.mrb[94].mxu1 %vm382_vm0, %v5012_v36  ;;  %5310 = vmatprep.mubr.f32.mxu0 %v10838_v41 }
 0x412   :  { %5721 = vmatmul.mubr.msk.f32.gmra.mrb[94].mxu0 %vm382_vm0, %v5012_v36 }
 0x4ce   :  { %v5383_v11 = vpop.f32.mrb[84].mxu1 }
 0x4cf   :  { %v5480_v10 = vadd.f32 %v5451_v15, %v5383_v11  ;;  %v5385_v47 = vpop.f32.mrb[85].mxu1 }
 0x4d0   :  { %v5481_v18 = vadd.f32 %v5451_v15, %v5385_v47 }
 0x4d1   :  { %5504 = vst [vmem:[%s10765_s8 + $0x10] sm:$0xff] %v5480_v10  ;;  %v5282_v42 = vpop.f32.mrb[84].mxu0 }
 0x4d2   :  { %5505 = vst [vmem:[%s10765_s8 + $0x18] sm:$0xff] %v5481_v18  ;;  %v5478_v14 = vadd.f32 %v5451_v15, %v5282_v42  ;;  %v5284_v27 = vpop.f32.mrb[85].mxu0  ;;  %v5389_v41 = vpop.f32.mrb[86].mxu1 }
 0x4d3   :  { %v5479_v38 = vadd.f32 %v5451_v15, %v5284_v27  ;;  %v5484_v54 = vadd.f32 %v5456_v55, %v5389_v41  ;;  %v5391_v48 = vpop.f32.mrb[87].mxu1 }
 0x4d4   :  { %5502 = vst [vmem:[%s10765_s8] sm:$0xff] %v5478_v14  ;;  %v5485_v22 = vadd.f32 %v5456_v55, %v5391_v48 }
 0x4d5   :  { %5503 = vst [vmem:[%s10765_s8 + $0x8] sm:$0xff] %v5479_v38  ;;  %5508 = vst [vmem:[%s10765_s8 + $0x30] sm:$0xff] %v5484_v54  ;;  %v5288_v53 = vpop.f32.mrb[86].mxu0 }
 0x4d6   :  { %5509 = vst [vmem:[%s10765_s8 + $0x38] sm:$0xff] %v5485_v22  ;;  %v5482_v35 = vadd.f32 %v5456_v55, %v5288_v53  ;;  %v5290_v45 = vpop.f32.mrb[87].mxu0  ;;  %v5395_v3 = vpop.f32.mrb[88].mxu1 }
 0x4d7   :  { %v5483_v34 = vadd.f32 %v5456_v55, %v5290_v45  ;;  %v5488_v59 = vadd.f32 %v5461_v12, %v5395_v3  ;;  %v5397_v9 = vpop.f32.mrb[89].mxu1 }
 0x4d8   :  { %5506 = vst [vmem:[%s10765_s8 + $0x20] sm:$0xff] %v5482_v35  ;;  %v5489_v13 = vadd.f32 %v5461_v12, %v5397_v9 }
 0x4d9   :  { %5507 = vst [vmem:[%s10765_s8 + $0x28] sm:$0xff] %v5483_v34  ;;  %5512 = vst [vmem:[%s10765_s8 + $0x50] sm:$0xff] %v5488_v59  ;;  %v5294_v23 = vpop.f32.mrb[88].mxu0 }
 0x4da   :  { %5513 = vst [vmem:[%s10765_s8 + $0x58] sm:$0xff] %v5489_v13  ;;  %v5486_v16 = vadd.f32 %v5461_v12, %v5294_v23  ;;  %v5296_v2 = vpop.f32.mrb[89].mxu0  ;;  %v5401_v21 = vpop.f32.mrb[90].mxu1 }
 0x4db   :  { %v5487_v20 = vadd.f32 %v5461_v12, %v5296_v2  ;;  %v5492_v33 = vadd.f32 %v5466_v56, %v5401_v21  ;;  %v5403_v44 = vpop.f32.mrb[91].mxu1 }
 0x4dc   :  { %5510 = vst [vmem:[%s10765_s8 + $0x40] sm:$0xff] %v5486_v16  ;;  %v5493_v50 = vadd.f32 %v5466_v56, %v5403_v44 }
 0x4dd   :  { %5511 = vst [vmem:[%s10765_s8 + $0x48] sm:$0xff] %v5487_v20  ;;  %5516 = vst [vmem:[%s10765_s8 + $0x70] sm:$0xff] %v5492_v33  ;;  %v5300_v24 = vpop.f32.mrb[90].mxu0 }
 0x4de   :  { %5517 = vst [vmem:[%s10765_s8 + $0x78] sm:$0xff] %v5493_v50  ;;  %v5490_v58 = vadd.f32 %v5466_v56, %v5300_v24  ;;  %v5302_v52 = vpop.f32.mrb[91].mxu0  ;;  %v5407_v46 = vpop.f32.mrb[92].mxu1 }
 0x4df   :  { %v5491_v63 = vadd.f32 %v5466_v56, %v5302_v52  ;;  %v5496_v57 = vadd.f32 %v5471_v7, %v5407_v46  ;;  %v5409_v4 = vpop.f32.mrb[93].mxu1 }
 0x4e0   :  { %5514 = vst [vmem:[%s10765_s8 + $0x60] sm:$0xff] %v5490_v58  ;;  %v5497_v49 = vadd.f32 %v5471_v7, %v5409_v4 }
 0x4e1   :  { %5515 = vst [vmem:[%s10765_s8 + $0x68] sm:$0xff] %v5491_v63  ;;  %5520 = vst [vmem:[%s10765_s8 + $0x90] sm:$0xff] %v5496_v57  ;;  %v5306_v60 = vpop.f32.mrb[92].mxu0 }
 0x4e2   :  { %5521 = vst [vmem:[%s10765_s8 + $0x98] sm:$0xff] %v5497_v49  ;;  %v5494_v25 = vadd.f32 %v5471_v7, %v5306_v60  ;;  %v5308_v31 = vpop.f32.mrb[93].mxu0  ;;  %v5413_v29 = vpop.f32.mrb[94].mxu1 }
 0x4e3   :  { %v5495_v39 = vadd.f32 %v5471_v7, %v5308_v31  ;;  %v5500_v0 = vadd.f32 %v5476_v26, %v5413_v29  ;;  %v5415_v40 = vpop.f32.mrb[95].mxu1 }
 0x4e4   :  { %5518 = vst [vmem:[%s10765_s8 + $0x80] sm:$0xff] %v5494_v25  ;;  %v5501_v5 = vadd.f32 %v5476_v26, %v5415_v40 }
 0x4e5   :  { %5519 = vst [vmem:[%s10765_s8 + $0x88] sm:$0xff] %v5495_v39  ;;  %5524 = vst [vmem:[%s10765_s8 + $0xb0] sm:$0xff] %v5500_v0  ;;  %v5312_v62 = vpop.f32.mrb[94].mxu0 }
 0x4e6   :  { %5525 = vst [vmem:[%s10765_s8 + $0xb8] sm:$0xff] %v5501_v5  ;;  %v5498_v37 = vadd.f32 %v5476_v26, %v5312_v62  ;;  %v5314_v19 = vpop.f32.mrb[95].mxu0 }
 0x4e7   :  { %v5499_v8 = vadd.f32 %v5476_v26, %v5314_v19 }
 0x4e8   :  { %5522 = vst [vmem:[%s10765_s8 + $0xa0] sm:$0xff] %v5498_v37 }
 0x4e9   :  { %5523 = vst [vmem:[%s10765_s8 + $0xa8] sm:$0xff] %v5499_v8 }
 0x4ea   :  { %5534 = vsyncpa [#allocation3], 1 }
 0x4eb   :  { %5535 = vsyncpa [#allocation5], 1 }

// kernel: _lambda_.4
= control target key start
LH: loop header
LB: loop body
LE: loop exit
PB: predicated region body
PF: predicated region fallthrough
CT: control target
= control target key end

     0   :  { %s1934_s15 = smov 0   ;;  %s1936_s16 = smov 0   ;;  %s2729_s0 = inlined_call_operand.vmem [shape: f32[2,8,256,20], index: 0, kind: input, shape index: {}]   ;;  %s2730_s1 = inlined_call_operand.vmem [shape: f32[2,8,20,256], index: 1, kind: input, shape index: {}]   ;;  %s2731_s2 = inlined_call_operand.vmem [shape: f32[2,8,2,256], index: 2, kind: input, shape index: {}]   ;;  %s2732_s3 = inlined_call_operand.vmem [shape: f32[2,256,256], index: 3, kind: input, shape index: {}]   ;;  %s2733_s4 = inlined_call_operand.vmem [shape: f32[2,8,2,256], index: 4, kind: output, shape index: {}]  }
   0x1   :  { %s1938_s17 = smov 0   ;;  %s1940_s18 = smov 0  }
   0x2   :  { %s1942_s19 = smov 0  }
   0x3 LB: > { %s23_s20 = sadd.s32 1, %s1898_s17  ;;  %s26_s21 = sadd.s32 1, %s1902_s18  ;;  %s1906_s19 = sphi %s1942_s19, %s14_s19   ;;  %s1902_s18 = sphi %s1940_s18, %s2815_s18   ;;  %s1898_s17 = sphi %s1938_s17, %s2814_s17   ;;  %s1894_s16 = sphi %s1936_s16, %s2813_s16   ;;  %s1890_s15 = sphi %s1934_s15, %s2812_s15  }
   0x4   : > { %p24_p0 = scmp.ge.s32.totalorder %s23_s20, 8  ;;  %p1513_p1 = scmp.ge.s32.totalorder %s1906_s19, 1 }
   0x5   : > { %p224_p2 = scmp.lt.s32.totalorder %s1906_s19, 17 }
   0x6   : > { %s2817_s20 = smov (%p24_p0, %s23_s20), 0  ;;  %s2819_s21 = smov (!%p24_p0, %s26_s21), %s1902_s18 }
   0x7   : > { %p225_p3 = pnand %p1513_p1, %p224_p2  ;;  %p28_p4 = scmp.ge.s32.totalorder %s2819_s21, 2 }
   0x9   : > { %s2821_s21 = smov (%p28_p4, %s2819_s21), 0  ;;  %228 = sbr.rel (%p225_p3) target bundleno = 984 (0x3d8), region = 36 }
  0x10   : > { %p281_p5 = scmp.lt.s32.totalorder %s1894_s16, 1  ;;  %p283_p6 = scmp.lt.s32.totalorder %s1890_s15, 7  ;;  %v1908_v0 = vmov 0.0   ;;  %vm521_vm0 = vcmask 1043456   ;;  %vm424_vm1 = vcmask 162816  }
  0x11   : > { %592 = vmatprep.mubr.f32.mxu0 %v1908_v0 }
  0x12   : > { %s2823_s16 = smov (!%p281_p5, %s1894_s16), 1  ;;  %s2825_s15 = smov (!%p283_p6, %s1890_s15), 7 }
  0x13   : > { %s1515_s22 = sshll.u32 %s2823_s16, 8  ;;  %s1634_s23 = smul.u32 48, %s2823_s16 }
  0x14   : > { %s1514_s24 = sshll.u32 %s2825_s15, 5  ;;  %s1633_s25 = smul.u32 6, %s2825_s15 }
  0x15   : > { %s287_s26 = sadd.s32 %s1515_s22, %s1514_s24  ;;  %s1564_s10 = sshll.u32 %s2823_s16, 9 }
  0x16   : > { %s296_s27 = sadd.s32 %s1634_s23, %s1633_s25  ;;  %s1516_s6 = sshll.u32 %s287_s26, 3 }
  0x17   : > { %s1517_s28 = sshll.u32 %s296_s27, 3  ;;  %s1979_s9 = scalar_lea.vmem %s2729_s0, %s1516_s6 }
  0x18   : > { %s298_s5 = scalar_lea.vmem %s2730_s1, %s1517_s28  ;;  %v322_v9 = vld [vmem:[%s1979_s9] sm:$0xff]  ;;  %v323_v10 = vld [vmem:[%s1979_s9 + $0x8] sm:$0xff]  ;;  %v324_v11 = vld [vmem:[%s1979_s9 + $0x10] sm:$0xff]  ;;  %s2080_s13 = scalar_lea.vmem %s2732_s3, %s1564_s10 }
  0x19   : > { %v355_v1 = vld [vmem:[%s298_s5 + $0x8] sm:$0xff]  ;;  %v357_v2 = vld [vmem:[%s298_s5 + $0x18] sm:$0xff]  ;;  %v354_v3 = vld [vmem:[%s298_s5] sm:$0xff]  ;;  %s1518_s14 = sshll.u32 %s2825_s15, 1  ;;  %s1519_s22 = sshll.u32 %s2823_s16, 4 }
  0x1a   : > { %v1565_v4 = vpack.c.bf16 %v357_v2, %v355_v1  ;;  %v356_v5 = vld [vmem:[%s298_s5 + $0x10] sm:$0xff]  ;;  %v359_v7 = vld [vmem:[%s298_s5 + $0x28] sm:$0xf]  ;;  %v358_v8 = vld [vmem:[%s298_s5 + $0x20] sm:$0xf]  ;;  %s2668_s23 = sadd.s32 %s1519_s22, %s1518_s14 }
  0x1b   : > { %v1567_v6 = vpack.c.bf16 %v356_v5, %v354_v3  ;;  %v325_v12 = vld [vmem:[%s1979_s9 + $0x18] sm:$0xff]  ;;  %v326_v13 = vld [vmem:[%s1979_s9 + $0x20] sm:$0xff]  ;;  %v327_v14 = vld [vmem:[%s1979_s9 + $0x28] sm:$0xff]  ;;  %s1520_s24 = sshll.u32 %s2668_s23, 1 }
  0x1c   : > { %1566 = vmatprep.subr.bf16.mxu0 %v1565_v4  ;;  %v328_v15 = vld [vmem:[%s1979_s9 + $0x30] sm:$0xff]  ;;  %v329_v16 = vld [vmem:[%s1979_s9 + $0x38] sm:$0xff]  ;;  %v330_v17 = vld [vmem:[%s1979_s9 + $0x40] sm:$0xff]  ;;  %s307_s27 = scalar_lea.vmem %s2731_s2, %s1520_s24  ;;  %s321_s28 = scalar_lea.vmem %s2733_s4, %s1520_s24 }
  0x1d   : > { %1568 = vmatpush1.bf16.msra.mxu0 %v1567_v6  ;;  %v331_v18 = vld [vmem:[%s1979_s9 + $0x48] sm:$0xff]  ;;  %v332_v19 = vld [vmem:[%s1979_s9 + $0x50] sm:$0xff]  ;;  %v333_v20 = vld [vmem:[%s1979_s9 + $0x58] sm:$0xff] }
  0x1e   : > { %1526 = vmatprep.subr.msk.mxu0 %vm521_vm0, %v359_v7  ;;  %v334_v21 = vld [vmem:[%s1979_s9 + $0x60] sm:$0xff]  ;;  %v335_v22 = vld [vmem:[%s1979_s9 + $0x68] sm:$0xff]  ;;  %v336_v23 = vld [vmem:[%s1979_s9 + $0x70] sm:$0xff] }
  0x1f   : > { %v337_v24 = vld [vmem:[%s1979_s9 + $0x78] sm:$0xff]  ;;  %v338_v25 = vld [vmem:[%s1979_s9 + $0x80] sm:$0xff]  ;;  %v339_v26 = vld [vmem:[%s1979_s9 + $0x88] sm:$0xff] }
  0x20   : > { %v340_v27 = vld [vmem:[%s1979_s9 + $0x90] sm:$0xff]  ;;  %v341_v28 = vld [vmem:[%s1979_s9 + $0x98] sm:$0xff]  ;;  %v342_v29 = vld [vmem:[%s1979_s9 + $0xa0] sm:$0xff] }
  0x21   : > { %1527 = vmatpush1.msk.msra.mxu0 %vm521_vm0, %v358_v8  ;;  %v343_v30 = vld [vmem:[%s1979_s9 + $0xa8] sm:$0xff]  ;;  %v344_v31 = vld [vmem:[%s1979_s9 + $0xb0] sm:$0xff]  ;;  %v345_v32 = vld [vmem:[%s1979_s9 + $0xb8] sm:$0xff] }
  0x22   : > { %1528 = vmatmul.mubr.msk.f32.vlgmr.msra.gmra.mrb[0].mxu0 %vm424_vm1, %v322_v9  ;;  %v346_v33 = vld [vmem:[%s1979_s9 + $0xc0] sm:$0xff]  ;;  %v347_v34 = vld [vmem:[%s1979_s9 + $0xc8] sm:$0xff]  ;;  %v348_v35 = vld [vmem:[%s1979_s9 + $0xd0] sm:$0xff] }
  0x23   : > { %598 = vmatprep.mubr.f32.mxu0 %v1908_v0  ;;  %v349_v36 = vld [vmem:[%s1979_s9 + $0xd8] sm:$0xff]  ;;  %v350_v37 = vld [vmem:[%s1979_s9 + $0xe0] sm:$0xff]  ;;  %v351_v38 = vld [vmem:[%s1979_s9 + $0xe8] sm:$0xff] }
  0x24   : > { %v352_v39 = vld [vmem:[%s1979_s9 + $0xf0] sm:$0xff]  ;;  %v353_v40 = vld [vmem:[%s1979_s9 + $0xf8] sm:$0xff]  ;;  %v360_v41 = vld [vmem:[%s2080_s13] sm:$0xff] }
  0x25   : > { %v361_v42 = vld [vmem:[%s2080_s13 + $0x8] sm:$0xff]  ;;  %v362_v47 = vld [vmem:[%s2080_s13 + $0x10] sm:$0xff]  ;;  %v363_v48 = vld [vmem:[%s2080_s13 + $0x18] sm:$0xff] }
  0x26   : > { %1529 = vmatmul.mubr.msk.f32.gmra.mrb[2].mxu0 %vm424_vm1, %v323_v10  ;;  %v364_v54 = vld [vmem:[%s2080_s13 + $0x20] sm:$0xff]  ;;  %v365_v55 = vld [vmem:[%s2080_s13 + $0x28] sm:$0xff]  ;;  %v366_v61 = vld [vmem:[%s2080_s13 + $0x30] sm:$0xff] }
  0x27   : > { %604 = vmatprep.mubr.f32.mxu0 %v1908_v0  ;;  %v367_v62 = vld [vmem:[%s2080_s13 + $0x38] sm:$0xff]  ;;  %v368_v4 = vld [vmem:[%s2080_s13 + $0x40] sm:$0xff]  ;;  %v369_v5 = vld [vmem:[%s2080_s13 + $0x48] sm:$0xff] }
  0x2a   : > { %1530 = vmatmul.mubr.msk.f32.gmra.mrb[4].mxu0 %vm424_vm1, %v324_v11  ;;  %v370_v11 = vld [vmem:[%s2080_s13 + $0x50] sm:$0xff] }
  0x2b   : > { %610 = vmatprep.mubr.f32.mxu0 %v1908_v0 }
  0x2e   : > { %1531 = vmatmul.mubr.msk.f32.gmra.mrb[6].mxu0 %vm424_vm1, %v325_v12  ;;  %v371_v12 = vld [vmem:[%s2080_s13 + $0x58] sm:$0xff] }
  0x2f   : > { %616 = vmatprep.mubr.f32.mxu0 %v1908_v0 }
  0x32   : > { %1532 = vmatmul.mubr.msk.f32.gmra.mrb[8].mxu0 %vm424_vm1, %v326_v13 }
  0x33   : > { %622 = vmatprep.mubr.f32.mxu0 %v1908_v0 }
  0x36   : > { %1533 = vmatmul.mubr.msk.f32.gmra.mrb[10].mxu0 %vm424_vm1, %v327_v14 }
  0x37   : > { %628 = vmatprep.mubr.f32.mxu0 %v1908_v0 }
  0x3a   : > { %1534 = vmatmul.mubr.msk.f32.gmra.mrb[12].mxu0 %vm424_vm1, %v328_v15 }
  0x3b   : > { %634 = vmatprep.mubr.f32.mxu0 %v1908_v0 }
  0x3e   : > { %1535 = vmatmul.mubr.msk.f32.gmra.mrb[14].mxu0 %vm424_vm1, %v329_v16 }
  0x3f   : > { %640 = vmatprep.mubr.f32.mxu0 %v1908_v0 }
  0x42   : > { %1536 = vmatmul.mubr.msk.f32.gmra.mrb[16].mxu0 %vm424_vm1, %v330_v17 }
  0x43   : > { %646 = vmatprep.mubr.f32.mxu0 %v1908_v0 }
  0x46   : > { %1537 = vmatmul.mubr.msk.f32.gmra.mrb[18].mxu0 %vm424_vm1, %v331_v18  ;;  %v372_v18 = vld [vmem:[%s2080_s13 + $0x60] sm:$0xff] }
  0x47   : > { %652 = vmatprep.mubr.f32.mxu0 %v1908_v0 }
  0x4a   : > { %1538 = vmatmul.mubr.msk.f32.gmra.mrb[20].mxu0 %vm424_vm1, %v332_v19  ;;  %v373_v19 = vld [vmem:[%s2080_s13 + $0x68] sm:$0xff] }
  0x4b   : > { %658 = vmatprep.mubr.f32.mxu0 %v1908_v0 }
  0x4e   : > { %1539 = vmatmul.mubr.msk.f32.gmra.mrb[22].mxu0 %vm424_vm1, %v333_v20 }
  0x4f   : > { %664 = vmatprep.mubr.f32.mxu0 %v1908_v0 }
  0x52   : > { %1540 = vmatmul.mubr.msk.f32.gmra.mrb[24].mxu0 %vm424_vm1, %v334_v21 }
  0x53   : > { %670 = vmatprep.mubr.f32.mxu0 %v1908_v0 }
  0x56   : > { %1541 = vmatmul.mubr.msk.f32.gmra.mrb[26].mxu0 %vm424_vm1, %v335_v22 }
  0x57   : > { %676 = vmatprep.mubr.f32.mxu0 %v1908_v0 }
  0x5a   : > { %1542 = vmatmul.mubr.msk.f32.gmra.mrb[28].mxu0 %vm424_vm1, %v336_v23 }
  0x5b   : > { %682 = vmatprep.mubr.f32.mxu0 %v1908_v0 }
  0x5e   : > { %1543 = vmatmul.mubr.msk.f32.gmra.mrb[30].mxu0 %vm424_vm1, %v337_v24 }
  0x5f   : > { %688 = vmatprep.mubr.f32.mxu0 %v1908_v0 }
  0x62   : > { %1544 = vmatmul.mubr.msk.f32.gmra.mrb[32].mxu0 %vm424_vm1, %v338_v25  ;;  %v374_v25 = vld [vmem:[%s2080_s13 + $0x70] sm:$0xff] }
  0x63   : > { %694 = vmatprep.mubr.f32.mxu0 %v1908_v0 }
  0x66   : > { %1545 = vmatmul.mubr.msk.f32.gmra.mrb[34].mxu0 %vm424_vm1, %v339_v26  ;;  %v375_v26 = vld [vmem:[%s2080_s13 + $0x78] sm:$0xff] }
  0x67   : > { %700 = vmatprep.mubr.f32.mxu0 %v1908_v0 }
  0x6a   : > { %1546 = vmatmul.mubr.msk.f32.gmra.mrb[36].mxu0 %vm424_vm1, %v340_v27 }
  0x6b   : > { %706 = vmatprep.mubr.f32.mxu0 %v1908_v0 }
  0x6e   : > { %1547 = vmatmul.mubr.msk.f32.gmra.mrb[38].mxu0 %vm424_vm1, %v341_v28 }
  0x6f   : > { %712 = vmatprep.mubr.f32.mxu0 %v1908_v0 }
  0x72   : > { %1548 = vmatmul.mubr.msk.f32.gmra.mrb[40].mxu0 %vm424_vm1, %v342_v29 }
  0x73   : > { %718 = vmatprep.mubr.f32.mxu0 %v1908_v0 }
  0x76   : > { %1549 = vmatmul.mubr.msk.f32.gmra.mrb[42].mxu0 %vm424_vm1, %v343_v30 }
  0x77   : > { %724 = vmatprep.mubr.f32.mxu0 %v1908_v0 }
  0x7a   : > { %1550 = vmatmul.mubr.msk.f32.gmra.mrb[44].mxu0 %vm424_vm1, %v344_v31 }
  0x7b   : > { %730 = vmatprep.mubr.f32.mxu0 %v1908_v0 }
  0x7e   : > { %1551 = vmatmul.mubr.msk.f32.gmra.mrb[46].mxu0 %vm424_vm1, %v345_v32  ;;  %v376_v32 = vld [vmem:[%s2080_s13 + $0x80] sm:$0xff] }
  0x7f   : > { %736 = vmatprep.mubr.f32.mxu0 %v1908_v0 }
  0x82   : > { %1552 = vmatmul.mubr.msk.f32.gmra.mrb[48].mxu0 %vm424_vm1, %v346_v33  ;;  %v377_v33 = vld [vmem:[%s2080_s13 + $0x88] sm:$0xff] }
  0x83   : > { %742 = vmatprep.mubr.f32.mxu0 %v1908_v0 }
  0x86   : > { %1553 = vmatmul.mubr.msk.f32.gmra.mrb[50].mxu0 %vm424_vm1, %v347_v34 }
  0x87   : > { %748 = vmatprep.mubr.f32.mxu0 %v1908_v0 }
  0x8a   : > { %1554 = vmatmul.mubr.msk.f32.gmra.mrb[52].mxu0 %vm424_vm1, %v348_v35 }
  0x8b   : > { %754 = vmatprep.mubr.f32.mxu0 %v1908_v0 }
  0x8e   : > { %1555 = vmatmul.mubr.msk.f32.gmra.mrb[54].mxu0 %vm424_vm1, %v349_v36 }
  0x8f   : > { %760 = vmatprep.mubr.f32.mxu0 %v1908_v0 }
  0x92   : > { %1556 = vmatmul.mubr.msk.f32.gmra.mrb[56].mxu0 %vm424_vm1, %v350_v37 }
  0x93   : > { %766 = vmatprep.mubr.f32.mxu0 %v1908_v0 }
  0x96   : > { %1557 = vmatmul.mubr.msk.f32.gmra.mrb[58].mxu0 %vm424_vm1, %v351_v38 }
  0x97   : > { %772 = vmatprep.mubr.f32.mxu0 %v1908_v0 }
  0x9a   : > { %1558 = vmatmul.mubr.msk.f32.gmra.mrb[60].mxu0 %vm424_vm1, %v352_v39  ;;  %v378_v39 = vld [vmem:[%s2080_s13 + $0x90] sm:$0xff] }
  0x9b   : > { %778 = vmatprep.mubr.f32.mxu0 %v1908_v0 }
  0x9e   : > { %1559 = vmatmul.mubr.msk.f32.gmra.mrb[62].mxu0 %vm424_vm1, %v353_v40  ;;  %v379_v40 = vld [vmem:[%s2080_s13 + $0x98] sm:$0xff] }
  0xf5   : > { %v594_v43 = vpop.f32.mrb[0].mxu0 }
  0xf6   : > { %v2084_v44 = vadd.f32 %v594_v43, %v360_v41  ;;  %v596_v45 = vpop.f32.mrb[1].mxu0 }
  0xf7   : > { %v2086_v46 = vadd.f32 %v596_v45, %v361_v42 }
  0xf9   : > { %v600_v49 = vpop.f32.mrb[2].mxu0  ;;  %v785_v50 = vmax.f32 %v2084_v44, %v2086_v46 }
  0xfa   : > { %v2092_v51 = vadd.f32 %v600_v49, %v362_v47  ;;  %v602_v52 = vpop.f32.mrb[3].mxu0  ;;  %v381_v49 = vld [vmem:[%s2080_s13 + $0xa8] sm:$0xff] }
  0xfb   : > { %v2094_v53 = vadd.f32 %v602_v52, %v363_v48  ;;  %786 = vmax.xlane.f32.xlu0 %v785_v50  ;;  %v380_v48 = vld [vmem:[%s2080_s13 + $0xa0] sm:$0xff] }
  0xfd   : > { %v606_v56 = vpop.f32.mrb[4].mxu0  ;;  %v788_v57 = vmax.f32 %v2092_v51, %v2094_v53 }
  0xfe   : > { %v2100_v58 = vadd.f32 %v606_v56, %v364_v54  ;;  %v608_v59 = vpop.f32.mrb[5].mxu0 }
  0xff   : > { %v2102_v60 = vadd.f32 %v608_v59, %v365_v55  ;;  %789 = vmax.xlane.f32.xlu0 %v788_v57  ;;  %v382_v57 = vld [vmem:[%s2080_s13 + $0xb0] sm:$0xff]  ;;  %v383_v59 = vld [vmem:[%s2080_s13 + $0xb8] sm:$0xff] }
 0x101   : > { %v612_v63 = vpop.f32.mrb[6].mxu0  ;;  %v791_v0 = vmax.f32 %v2100_v58, %v2102_v60 }
 0x102   : > { %v2108_v1 = vadd.f32 %v612_v63, %v366_v61  ;;  %v614_v2 = vpop.f32.mrb[7].mxu0 }
 0x103   : > { %v2110_v3 = vadd.f32 %v614_v2, %v367_v62  ;;  %792 = vmax.xlane.f32.xlu1 %v791_v0 }
 0x105   : > { %v618_v6 = vpop.f32.mrb[8].mxu0  ;;  %v794_v7 = vmax.f32 %v2108_v1, %v2110_v3 }
 0x106   : > { %v2116_v8 = vadd.f32 %v618_v6, %v368_v4  ;;  %v620_v9 = vpop.f32.mrb[9].mxu0  ;;  %v384_v4 = vld [vmem:[%s2080_s13 + $0xc0] sm:$0xff] }
 0x107   : > { %v2118_v10 = vadd.f32 %v620_v9, %v369_v5  ;;  %795 = vmax.xlane.f32.xlu1 %v794_v7  ;;  %v385_v5 = vld [vmem:[%s2080_s13 + $0xc8] sm:$0xff] }
 0x109   : > { %v624_v13 = vpop.f32.mrb[10].mxu0  ;;  %v797_v14 = vmax.f32 %v2116_v8, %v2118_v10 }
 0x10a   : > { %v2124_v15 = vadd.f32 %v624_v13, %v370_v11  ;;  %v626_v16 = vpop.f32.mrb[11].mxu0  ;;  %v386_v13 = vld [vmem:[%s2080_s13 + $0xd0] sm:$0xff] }
 0x10b   : > { %v2126_v17 = vadd.f32 %v626_v16, %v371_v12  ;;  %798 = vmax.xlane.f32.xlu0 %v797_v14  ;;  %v387_v14 = vld [vmem:[%s2080_s13 + $0xd8] sm:$0xff] }
 0x10d   : > { %v630_v20 = vpop.f32.mrb[12].mxu0  ;;  %v800_v21 = vmax.f32 %v2124_v15, %v2126_v17 }
 0x10e   : > { %v2132_v22 = vadd.f32 %v630_v20, %v372_v18  ;;  %v632_v23 = vpop.f32.mrb[13].mxu0 }
 0x10f   : > { %v2134_v24 = vadd.f32 %v632_v23, %v373_v19  ;;  %801 = vmax.xlane.f32.xlu1 %v800_v21  ;;  %v388_v23 = vld [vmem:[%s2080_s13 + $0xe0] sm:$0xff] }
 0x111   : > { %v636_v27 = vpop.f32.mrb[14].mxu0  ;;  %v803_v28 = vmax.f32 %v2132_v22, %v2134_v24 }
 0x112   : > { %v2140_v29 = vadd.f32 %v636_v27, %v374_v25  ;;  %v638_v30 = vpop.f32.mrb[15].mxu0  ;;  %v389_v25 = vld [vmem:[%s2080_s13 + $0xe8] sm:$0xff] }
 0x113   : > { %v2142_v31 = vadd.f32 %v638_v30, %v375_v26  ;;  %804 = vmax.xlane.f32.xlu0 %v803_v28 }
 0x115   : > { %v642_v34 = vpop.f32.mrb[16].mxu0  ;;  %v806_v35 = vmax.f32 %v2140_v29, %v2142_v31 }
 0x116   : > { %v2148_v36 = vadd.f32 %v642_v34, %v376_v32  ;;  %v644_v37 = vpop.f32.mrb[17].mxu0  ;;  %v391_v34 = vld [vmem:[%s2080_s13 + $0xf8] sm:$0xff] }
 0x117   : > { %v2150_v38 = vadd.f32 %v644_v37, %v377_v33  ;;  %807 = vmax.xlane.f32.xlu1 %v806_v35  ;;  %v390_v33 = vld [vmem:[%s2080_s13 + $0xf0] sm:$0xff] }
 0x119   : > { %v648_v41 = vpop.f32.mrb[18].mxu0  ;;  %v809_v42 = vmax.f32 %v2148_v36, %v2150_v38 }
 0x11a   : > { %v2156_v43 = vadd.f32 %v648_v41, %v378_v39  ;;  %v650_v45 = vpop.f32.mrb[19].mxu0 }
 0x11b   : > { %v2158_v47 = vadd.f32 %v650_v45, %v379_v40  ;;  %810 = vmax.xlane.f32.xlu0 %v809_v42  ;;  %v392_v42 = vld [vmem:[%s2080_s13 + $0x100] sm:$0xff]  ;;  %v393_v45 = vld [vmem:[%s2080_s13 + $0x108] sm:$0xff] }
 0x11d   : > { %v654_v50 = vpop.f32.mrb[20].mxu0  ;;  %v812_v52 = vmax.f32 %v2156_v43, %v2158_v47 }
 0x11e   : > { %v2164_v54 = vadd.f32 %v654_v50, %v380_v48  ;;  %v656_v55 = vpop.f32.mrb[21].mxu0 }
 0x11f   : > { %v2166_v56 = vadd.f32 %v656_v55, %v381_v49  ;;  %813 = vmax.xlane.f32.xlu1 %v812_v52 }
 0x121   : > { %v660_v61 = vpop.f32.mrb[22].mxu0  ;;  %v815_v62 = vmax.f32 %v2164_v54, %v2166_v56 }
 0x122   : > { %v2172_v63 = vadd.f32 %v660_v61, %v382_v57  ;;  %v662_v0 = vpop.f32.mrb[23].mxu0  ;;  %v394_v57 = vld [vmem:[%s2080_s13 + $0x110] sm:$0xff] }
 0x123   : > { %v2174_v2 = vadd.f32 %v662_v0, %v383_v59  ;;  %816 = vmax.xlane.f32.xlu0 %v815_v62  ;;  %v395_v59 = vld [vmem:[%s2080_s13 + $0x118] sm:$0xff] }
 0x125   : > { %v666_v6 = vpop.f32.mrb[24].mxu0  ;;  %v818_v7 = vmax.f32 %v2172_v63, %v2174_v2 }
 0x126   : > { %v2180_v9 = vadd.f32 %v666_v6, %v384_v4  ;;  %v668_v11 = vpop.f32.mrb[25].mxu0  ;;  %v396_v6 = vld [vmem:[%s2080_s13 + $0x120] sm:$0xff] }
 0x127   : > { %v2182_v12 = vadd.f32 %v668_v11, %v385_v5  ;;  %819 = vmax.xlane.f32.xlu1 %v818_v7  ;;  %v397_v7 = vld [vmem:[%s2080_s13 + $0x128] sm:$0xff] }
 0x129   : > { %v672_v16 = vpop.f32.mrb[26].mxu0  ;;  %v821_v18 = vmax.f32 %v2180_v9, %v2182_v12 }
 0x12a   : > { %v2188_v19 = vadd.f32 %v672_v16, %v386_v13  ;;  %v674_v20 = vpop.f32.mrb[27].mxu0 }
 0x12b   : > { %v2190_v21 = vadd.f32 %v674_v20, %v387_v14  ;;  %822 = vmax.xlane.f32.xlu0 %v821_v18  ;;  %v398_v20 = vld [vmem:[%s2080_s13 + $0x130] sm:$0xff] }
 0x12d   : > { %v678_v26 = vpop.f32.mrb[28].mxu0  ;;  %v824_v27 = vmax.f32 %v2188_v19, %v2190_v21 }
 0x12e   : > { %v2196_v28 = vadd.f32 %v678_v26, %v388_v23  ;;  %v680_v30 = vpop.f32.mrb[29].mxu0  ;;  %v399_v23 = vld [vmem:[%s2080_s13 + $0x138] sm:$0xff] }
 0x12f   : > { %v2198_v32 = vadd.f32 %v680_v30, %v389_v25  ;;  %825 = vmax.xlane.f32.xlu1 %v824_v27 }
 0x131   : > { %v684_v35 = vpop.f32.mrb[30].mxu0  ;;  %v827_v37 = vmax.f32 %v2196_v28, %v2198_v32 }
 0x132   : > { %v2204_v39 = vadd.f32 %v684_v35, %v390_v33  ;;  %v686_v40 = vpop.f32.mrb[31].mxu0  ;;  %v401_v35 = vld [vmem:[%s2080_s13 + $0x148] sm:$0xff] }
 0x133   : > { %v2206_v41 = vadd.f32 %v686_v40, %v391_v34  ;;  %828 = vmax.xlane.f32.xlu0 %v827_v37  ;;  %v400_v34 = vld [vmem:[%s2080_s13 + $0x140] sm:$0xff] }
 0x135   : > { %v690_v48 = vpop.f32.mrb[32].mxu0  ;;  %v830_v49 = vmax.f32 %v2204_v39, %v2206_v41 }
 0x136   : > { %v2212_v50 = vadd.f32 %v690_v48, %v392_v42  ;;  %v692_v52 = vpop.f32.mrb[33].mxu0 }
 0x137   : > { %v2214_v55 = vadd.f32 %v692_v52, %v393_v45  ;;  %831 = vmax.xlane.f32.xlu1 %v830_v49  ;;  %v402_v49 = vld [vmem:[%s2080_s13 + $0x150] sm:$0xff]  ;;  %v403_v52 = vld [vmem:[%s2080_s13 + $0x158] sm:$0xff] }
 0x139   : > { %v696_v61 = vpop.f32.mrb[34].mxu0  ;;  %v833_v62 = vmax.f32 %v2212_v50, %v2214_v55 }
 0x13a   : > { %v2220_v0 = vadd.f32 %v696_v61, %v394_v57  ;;  %v698_v4 = vpop.f32.mrb[35].mxu0 }
 0x13b   : > { %v2222_v5 = vadd.f32 %v698_v4, %v395_v59  ;;  %834 = vmax.xlane.f32.xlu0 %v833_v62 }
 0x13d   : > { %v702_v11 = vpop.f32.mrb[36].mxu0  ;;  %v836_v13 = vmax.f32 %v2220_v0, %v2222_v5 }
 0x13e   : > { %v2228_v14 = vadd.f32 %v702_v11, %v396_v6  ;;  %v704_v16 = vpop.f32.mrb[37].mxu0  ;;  %v404_v6 = vld [vmem:[%s2080_s13 + $0x160] sm:$0xff] }
 0x13f   : > { %v2230_v18 = vadd.f32 %v704_v16, %v397_v7  ;;  %837 = vmax.xlane.f32.xlu1 %v836_v13  ;;  %v405_v7 = vld [vmem:[%s2080_s13 + $0x168] sm:$0xff] }
 0x140   : > { %2760 = vst [vmem:[#allocation2_spill] sm:$0xff] %v2228_v14 }
 0x141   : > { %2761 = vst [vmem:[#allocation3_spill] sm:$0xff] %v2230_v18  ;;  %v708_v25 = vpop.f32.mrb[38].mxu0  ;;  %v839_v26 = vmax.f32 %v2228_v14, %v2230_v18 }
 0x142   : > { %v2236_v27 = vadd.f32 %v708_v25, %v398_v20  ;;  %v710_v30 = vpop.f32.mrb[39].mxu0  ;;  %v406_v25 = vld [vmem:[%s2080_s13 + $0x170] sm:$0xff] }
 0x143   : > { %v2238_v33 = vadd.f32 %v710_v30, %v399_v23  ;;  %840 = vmax.xlane.f32.xlu0 %v839_v26  ;;  %v407_v26 = vld [vmem:[%s2080_s13 + $0x178] sm:$0xff] }
 0x144   : > { %2762 = vst [vmem:[#allocation4_spill] sm:$0xff] %v2236_v27 }
 0x145   : > { %2763 = vst [vmem:[#allocation5_spill] sm:$0xff] %v2238_v33  ;;  %v714_v37 = vpop.f32.mrb[40].mxu0  ;;  %v842_v40 = vmax.f32 %v2236_v27, %v2238_v33 }
 0x146   : > { %v2244_v42 = vadd.f32 %v714_v37, %v400_v34  ;;  %v716_v45 = vpop.f32.mrb[41].mxu0 }
 0x147   : > { %v2246_v48 = vadd.f32 %v716_v45, %v401_v35  ;;  %843 = vmax.xlane.f32.xlu1 %v842_v40 }
 0x148   : > { %2764 = vst [vmem:[#allocation6_spill] sm:$0xff] %v2244_v42 }
 0x149   : > { %2765 = vst [vmem:[#allocation7_spill] sm:$0xff] %v2246_v48  ;;  %v720_v57 = vpop.f32.mrb[42].mxu0  ;;  %v845_v59 = vmax.f32 %v2244_v42, %v2246_v48 }
 0x14a   : > { %v2252_v61 = vadd.f32 %v720_v57, %v402_v49  ;;  %v722_v62 = vpop.f32.mrb[43].mxu0 }
 0x14b   : > { %v2254_v4 = vadd.f32 %v722_v62, %v403_v52  ;;  %846 = vmax.xlane.f32.xlu0 %v845_v59 }
 0x14c   : > { %2766 = vst [vmem:[#allocation8_spill] sm:$0xff] %v2252_v61 }
 0x14d   : > { %2767 = vst [vmem:[#allocation9_spill] sm:$0xff] %v2254_v4  ;;  %v726_v11 = vpop.f32.mrb[44].mxu0  ;;  %v848_v13 = vmax.f32 %v2252_v61, %v2254_v4 }
 0x14e   : > { %v2260_v16 = vadd.f32 %v726_v11, %v404_v6  ;;  %v728_v20 = vpop.f32.mrb[45].mxu0 }
 0x14f   : > { %v2262_v23 = vadd.f32 %v728_v20, %v405_v7  ;;  %849 = vmax.xlane.f32.xlu1 %v848_v13 }
 0x150   : > { %2768 = vst [vmem:[#allocation10_spill] sm:$0xff] %v2260_v16 }
 0x151   : > { %2769 = vst [vmem:[#allocation11_spill] sm:$0xff] %v2262_v23  ;;  %v732_v30 = vpop.f32.mrb[46].mxu0  ;;  %v851_v34 = vmax.f32 %v2260_v16, %v2262_v23 }
 0x152   : > { %v2268_v35 = vadd.f32 %v732_v30, %v406_v25  ;;  %v734_v37 = vpop.f32.mrb[47].mxu0 }
 0x153   : > { %v2270_v40 = vadd.f32 %v734_v37, %v407_v26  ;;  %852 = vmax.xlane.f32.xlu0 %v851_v34 }
 0x154   : > { %2770 = vst [vmem:[#allocation12_spill] sm:$0xff] %v2268_v35 }
 0x155   : > { %2771 = vst [vmem:[#allocation13_spill] sm:$0xff] %v2270_v40  ;;  %v854_v45 = vmax.f32 %v2268_v35, %v2270_v40  ;;  %v738_v49 = vpop.f32.mrb[48].mxu0 }
 0x156   : > { %v740_v52 = vpop.f32.mrb[49].mxu0 }
 0x157   : > { %855 = vmax.xlane.f32.xlu1 %v854_v45 }
 0x159   : > { %v744_v57 = vpop.f32.mrb[50].mxu0 }
 0x15a   : > { %v746_v59 = vpop.f32.mrb[51].mxu0 }
 0x15d   : > { %v2274_v62 = vpop.f32.mrb[52].mxu0 }
 0x15e   : > { %v2276_v6 = vpop.f32.mrb[53].mxu0 }
 0x161   : > { %v2278_v7 = vpop.f32.mrb[54].mxu0 }
 0x162   : > { %v2280_v11 = vpop.f32.mrb[55].mxu0 }
 0x165   : > { %v2282_v13 = vpop.f32.mrb[56].mxu0 }
 0x166   : > { %v2284_v20 = vpop.f32.mrb[57].mxu0 }
 0x169   : > { %v2286_v25 = vpop.f32.mrb[58].mxu0 }
 0x16a   : > { %v2288_v26 = vpop.f32.mrb[59].mxu0 }
 0x16d   : > { %v2290_v30 = vpop.f32.mrb[60].mxu0 }
 0x16e   : > { %v2292_v34 = vpop.f32.mrb[61].mxu0 }
 0x171   : > { %v2294_v37 = vpop.f32.mrb[62].mxu0 }
 0x172   : > { %v2296_v45 = vpop.f32.mrb[63].mxu0 }
 0x188   : > { %v787_v40 = vpop.xlane.xlu0 %786 }
 0x189   : > { %v881_v35 = vsub.f32 %v2084_v44, %v787_v40  ;;  %v882_v23 = vsub.f32 %v2086_v46, %v787_v40 }
 0x18b   : > { %v945_v16 = vmul.f32 1.442695, %v881_v35  ;;  %v947_v4 = vmul.f32 1.442695, %v882_v23  ;;  %v408_v35 = vld [vmem:[%s2080_s13 + $0x180] sm:$0xff] }
 0x18c   : > { %v790_v61 = vpop.xlane.xlu0 %789 }
 0x18d   : > { %1676 = vpow2.f32 %v945_v16  ;;  %v883_v48 = vsub.f32 %v2092_v51, %v790_v61  ;;  %v884_v42 = vsub.f32 %v2094_v53, %v790_v61  ;;  %v409_v16 = vld [vmem:[%s2080_s13 + $0x188] sm:$0xff]  ;;  %v411_v61 = vld [vmem:[%s2080_s13 + $0x198] sm:$0xff] }
 0x18e   : > { %1678 = vpow2.f32 %v947_v4 }
 0x18f   : > { %v949_v33 = vmul.f32 1.442695, %v883_v48  ;;  %v951_v27 = vmul.f32 1.442695, %v884_v42  ;;  %v2308_v42 = vadd.f32 %v738_v49, %v408_v35  ;;  %v410_v48 = vld [vmem:[%s2080_s13 + $0x190] sm:$0xff]  ;;  %v2328_v35 = vadd.f32 %v746_v59, %v411_v61 }
 0x190   : > { %v793_v18 = vpop.xlane.xlu1 %792 }
 0x191   : > { %1680 = vpow2.f32 %v949_v33  ;;  %v885_v14 = vsub.f32 %v2100_v58, %v793_v18  ;;  %v886_v44 = vsub.f32 %v2102_v60, %v793_v18  ;;  %v2310_v33 = vadd.f32 %v740_v52, %v409_v16  ;;  %v412_v16 = vld [vmem:[%s2080_s13 + $0x1a0] sm:$0xff] }
 0x192   : > { %1682 = vpow2.f32 %v951_v27 }
 0x193   : > { %v953_v46 = vmul.f32 1.442695, %v885_v14  ;;  %v955_v23 = vmul.f32 1.442695, %v886_v44  ;;  %v857_v49 = vmax.f32 %v2308_v42, %v2310_v33 }
 0x194   : > { %v796_v40 = vpop.xlane.xlu1 %795 }
 0x195   : > { %1684 = vpow2.f32 %v953_v46  ;;  %v887_v51 = vsub.f32 %v2108_v1, %v796_v40  ;;  %v888_v53 = vsub.f32 %v2110_v3, %v796_v40 }
 0x196   : > { %1686 = vpow2.f32 %v955_v23  ;;  %v2326_v23 = vadd.f32 %v744_v57, %v410_v48  ;;  %v2339_v57 = vadd.f32 %v2274_v62, %v412_v16  ;;  %v415_v62 = vld [vmem:[%s2080_s13 + $0x1b8] sm:$0xff] }
 0x197   : > { %v2312_v58 = vpop.eup %1676  ;;  %v957_v60 = vmul.f32 1.442695, %v887_v51  ;;  %v959_v14 = vmul.f32 1.442695, %v888_v53 }
 0x198   : > { %v2314_v18 = vpop.eup %1678  ;;  %v799_v27 = vpop.xlane.xlu0 %798 }
 0x199   : > { %1688 = vpow2.f32 %v957_v60  ;;  %v889_v1 = vsub.f32 %v2116_v8, %v799_v27  ;;  %v890_v3 = vsub.f32 %v2118_v10, %v799_v27  ;;  %v1073_v4 = vadd.f32 %v2314_v18, %v2312_v58  ;;  %v413_v8 = vld [vmem:[%s2080_s13 + $0x1a8] sm:$0xff] }
 0x19a   : > { %1690 = vpow2.f32 %v959_v14  ;;  %v2342_v59 = vadd.f32 %v2276_v6, %v413_v8 }
 0x19b   : > { %v2324_v52 = vpop.eup %1680  ;;  %v961_v44 = vmul.f32 1.442695, %v889_v1  ;;  %v963_v46 = vmul.f32 1.442695, %v890_v3  ;;  %1074 = vadd.xlane.f32.xlu0 %v1073_v4  ;;  %v414_v1 = vld [vmem:[%s2080_s13 + $0x1b0] sm:$0xff] }
 0x19c   : > { %v2332_v40 = vpop.eup %1682  ;;  %v802_v10 = vpop.xlane.xlu1 %801  ;;  %v2361_v8 = vadd.f32 %v2278_v7, %v414_v1 }
 0x19d   : > { %1692 = vpow2.f32 %v961_v44  ;;  %v891_v51 = vsub.f32 %v2124_v15, %v802_v10  ;;  %v892_v53 = vsub.f32 %v2126_v17, %v802_v10  ;;  %v1076_v60 = vadd.f32 %v2332_v40, %v2324_v52  ;;  %v417_v10 = vld [vmem:[%s2080_s13 + $0x1c8] sm:$0xff] }
 0x19e   : > { %1694 = vpow2.f32 %v963_v46  ;;  %v860_v15 = vmax.f32 %v2326_v23, %v2328_v35 }
 0x19f   : > { %v2344_v14 = vpop.eup %1684  ;;  %v965_v27 = vmul.f32 1.442695, %v891_v51  ;;  %v967_v48 = vmul.f32 1.442695, %v892_v53  ;;  %858 = vmax.xlane.f32.xlu0 %v857_v49  ;;  %1077 = vadd.xlane.f32.xlu1 %v1076_v60  ;;  %v863_v49 = vmax.f32 %v2339_v57, %v2342_v59 }
 0x1a0   : > { %v2348_v17 = vpop.eup %1686  ;;  %v805_v61 = vpop.xlane.xlu0 %804 }
 0x1a1   : > { %1696 = vpow2.f32 %v965_v27  ;;  %v893_v6 = vsub.f32 %v2132_v22, %v805_v61  ;;  %v894_v3 = vsub.f32 %v2134_v24, %v805_v61  ;;  %v1079_v4 = vadd.f32 %v2348_v17, %v2344_v14  ;;  %v416_v24 = vld [vmem:[%s2080_s13 + $0x1c0] sm:$0xff] }
 0x1a2   : > { %1698 = vpow2.f32 %v967_v48  ;;  %v2364_v22 = vadd.f32 %v2280_v11, %v415_v62  ;;  %v2375_v7 = vadd.f32 %v2282_v13, %v416_v24  ;;  %v2378_v11 = vadd.f32 %v2284_v20, %v417_v10  ;;  %v419_v13 = vld [vmem:[%s2080_s13 + $0x1d8] sm:$0xff] }
 0x1a3   : > { %v2358_v44 = vpop.eup %1688  ;;  %v969_v46 = vmul.f32 1.442695, %v893_v6  ;;  %v971_v16 = vmul.f32 1.442695, %v894_v3  ;;  %1080 = vadd.xlane.f32.xlu0 %v1079_v4  ;;  %861 = vmax.xlane.f32.xlu1 %v860_v15  ;;  %v418_v6 = vld [vmem:[%s2080_s13 + $0x1d0] sm:$0xff] }
 0x1a4   : > { %v2368_v51 = vpop.eup %1690  ;;  %v808_v53 = vpop.xlane.xlu1 %807  ;;  %v2397_v10 = vadd.f32 %v2286_v25, %v418_v6 }
 0x1a5   : > { %1700 = vpow2.f32 %v969_v46  ;;  %v895_v60 = vsub.f32 %v2140_v29, %v808_v53  ;;  %v896_v27 = vsub.f32 %v2142_v31, %v808_v53  ;;  %v1082_v48 = vadd.f32 %v2368_v51, %v2358_v44  ;;  %v421_v53 = vld [vmem:[%s2080_s13 + $0x1e8] sm:$0xff] }
 0x1a6   : > { %1702 = vpow2.f32 %v971_v16  ;;  %v866_v29 = vmax.f32 %v2361_v8, %v2364_v22 }
 0x1a7   : > { %v2380_v15 = vpop.eup %1692  ;;  %v973_v61 = vmul.f32 1.442695, %v895_v60  ;;  %v975_v1 = vmul.f32 1.442695, %v896_v27  ;;  %864 = vmax.xlane.f32.xlu0 %v863_v49  ;;  %1083 = vadd.xlane.f32.xlu1 %v1082_v48  ;;  %v869_v49 = vmax.f32 %v2375_v7, %v2378_v11 }
 0x1a8   : > { %v2384_v31 = vpop.eup %1694  ;;  %v811_v62 = vpop.xlane.xlu0 %810 }
 0x1a9   : > { %1704 = vpow2.f32 %v973_v61  ;;  %v897_v20 = vsub.f32 %v2148_v36, %v811_v62  ;;  %v898_v3 = vsub.f32 %v2150_v38, %v811_v62  ;;  %v1085_v4 = vadd.f32 %v2384_v31, %v2380_v15  ;;  %v420_v38 = vld [vmem:[%s2080_s13 + $0x1e0] sm:$0xff] }
 0x1aa   : > { %1706 = vpow2.f32 %v975_v1  ;;  %v2400_v36 = vadd.f32 %v2288_v26, %v419_v13  ;;  %v2411_v25 = vadd.f32 %v2290_v30, %v420_v38  ;;  %v2414_v26 = vadd.f32 %v2292_v34, %v421_v53 }
 0x1ab   : > { %v2394_v46 = vpop.eup %1696  ;;  %v977_v16 = vmul.f32 1.442695, %v897_v20  ;;  %v979_v24 = vmul.f32 1.442695, %v898_v3  ;;  %867 = vmax.xlane.f32.xlu1 %v866_v29  ;;  %1086 = vadd.xlane.f32.xlu0 %v1085_v4  ;;  %v422_v20 = vld [vmem:[%s2080_s13 + $0x1f0] sm:$0xff]  ;;  %v423_v3 = vld [vmem:[%s2080_s13 + $0x1f8] sm:$0xff] }
 0x1ac   : > { %v2404_v60 = vpop.eup %1698  ;;  %v814_v27 = vpop.xlane.xlu1 %813  ;;  %v2433_v53 = vadd.f32 %v2294_v37, %v422_v20 }
 0x1ad   : > { %1708 = vpow2.f32 %v977_v16  ;;  %v899_v48 = vsub.f32 %v2156_v43, %v814_v27  ;;  %v900_v61 = vsub.f32 %v2158_v47, %v814_v27  ;;  %v1088_v1 = vadd.f32 %v2404_v60, %v2394_v46 }
 0x1ae   : > { %1710 = vpow2.f32 %v979_v24  ;;  %v872_v43 = vmax.f32 %v2397_v10, %v2400_v36 }
 0x1af   : > { %v2416_v29 = vpop.eup %1700  ;;  %v981_v62 = vmul.f32 1.442695, %v899_v48  ;;  %v983_v6 = vmul.f32 1.442695, %v900_v61  ;;  %1089 = vadd.xlane.f32.xlu1 %v1088_v1  ;;  %870 = vmax.xlane.f32.xlu0 %v869_v49  ;;  %v875_v49 = vmax.f32 %v2411_v25, %v2414_v26 }
 0x1b0   : > { %v2420_v47 = vpop.eup %1702  ;;  %v817_v13 = vpop.xlane.xlu0 %816 }
 0x1b1   : > { %1712 = vpow2.f32 %v981_v62  ;;  %v901_v30 = vsub.f32 %v2164_v54, %v817_v13  ;;  %v902_v34 = vsub.f32 %v2166_v56, %v817_v13  ;;  %v1091_v4 = vadd.f32 %v2420_v47, %v2416_v29 }
 0x1b2   : > { %1714 = vpow2.f32 %v983_v6  ;;  %v2436_v54 = vadd.f32 %v2296_v45, %v423_v3 }
 0x1b3   : > { %v2430_v16 = vpop.eup %1704  ;;  %v985_v24 = vmul.f32 1.442695, %v901_v30  ;;  %v987_v38 = vmul.f32 1.442695, %v902_v34  ;;  %873 = vmax.xlane.f32.xlu1 %v872_v43  ;;  %1092 = vadd.xlane.f32.xlu0 %v1091_v4 }
 0x1b4   : > { %v2438_v56 = vpop.eup %1706  ;;  %v820_v27 = vpop.xlane.xlu1 %819  ;;  %v878_v45 = vmax.f32 %v2433_v53, %v2436_v54 }
 0x1b5   : > { %1716 = vpow2.f32 %v985_v24  ;;  %v903_v48 = vsub.f32 %v2172_v63, %v820_v27  ;;  %v904_v61 = vsub.f32 %v2174_v2, %v820_v27  ;;  %v1094_v1 = vadd.f32 %v2438_v56, %v2430_v16 }
 0x1b6   : > { %1718 = vpow2.f32 %v987_v38 }
 0x1b7   : > { %v2444_v62 = vpop.eup %1708  ;;  %v989_v6 = vmul.f32 1.442695, %v903_v48  ;;  %v991_v37 = vmul.f32 1.442695, %v904_v61  ;;  %1095 = vadd.xlane.f32.xlu1 %v1094_v1  ;;  %876 = vmax.xlane.f32.xlu0 %v875_v49 }
 0x1b8   : > { %v2448_v43 = vpop.eup %1710  ;;  %v823_v13 = vpop.xlane.xlu0 %822 }
 0x1b9   : > { %1720 = vpow2.f32 %v989_v6  ;;  %v905_v63 = vsub.f32 %v2180_v9, %v823_v13  ;;  %v906_v2 = vsub.f32 %v2182_v12, %v823_v13  ;;  %v1097_v20 = vadd.f32 %v2448_v43, %v2444_v62 }
 0x1ba   : > { %1722 = vpow2.f32 %v991_v37 }
 0x1bb   : > { %v2454_v3 = vpop.eup %1712  ;;  %v993_v30 = vmul.f32 1.442695, %v905_v63  ;;  %v995_v34 = vmul.f32 1.442695, %v906_v2  ;;  %879 = vmax.xlane.f32.xlu1 %v878_v45  ;;  %1098 = vadd.xlane.f32.xlu0 %v1097_v20 }
 0x1bc   : > { %v2456_v4 = vpop.eup %1714  ;;  %v826_v49 = vpop.xlane.xlu1 %825 }
 0x1bd   : > { %1724 = vpow2.f32 %v993_v30  ;;  %v907_v24 = vsub.f32 %v2188_v19, %v826_v49  ;;  %v908_v9 = vsub.f32 %v2190_v21, %v826_v49  ;;  %v1100_v12 = vadd.f32 %v2456_v4, %v2454_v3 }
 0x1be   : > { %1726 = vpow2.f32 %v995_v34 }
 0x1bf   : > { %v2462_v38 = vpop.eup %1716  ;;  %v997_v27 = vmul.f32 1.442695, %v907_v24  ;;  %v999_v48 = vmul.f32 1.442695, %v908_v9  ;;  %1101 = vadd.xlane.f32.xlu1 %v1100_v12 }
 0x1c0   : > { %v2464_v61 = vpop.eup %1718  ;;  %v829_v1 = vpop.xlane.xlu0 %828 }
 0x1c1   : > { %1728 = vpow2.f32 %v997_v27  ;;  %v909_v6 = vsub.f32 %v2196_v28, %v829_v1  ;;  %v910_v37 = vsub.f32 %v2198_v32, %v829_v1  ;;  %v1103_v19 = vadd.f32 %v2464_v61, %v2462_v38 }
 0x1c2   : > { %1730 = vpow2.f32 %v999_v48 }
 0x1c3   : > { %v2470_v21 = vpop.eup %1720  ;;  %v1001_v45 = vmul.f32 1.442695, %v909_v6  ;;  %v1003_v13 = vmul.f32 1.442695, %v910_v37  ;;  %1104 = vadd.xlane.f32.xlu0 %v1103_v19 }
 0x1c4   : > { %v2472_v63 = vpop.eup %1722  ;;  %v832_v2 = vpop.xlane.xlu1 %831 }
 0x1c5   : > { %1732 = vpow2.f32 %v1001_v45  ;;  %v911_v20 = vsub.f32 %v2204_v39, %v832_v2  ;;  %v912_v30 = vsub.f32 %v2206_v41, %v832_v2  ;;  %v1106_v28 = vadd.f32 %v2472_v63, %v2470_v21 }
 0x1c6   : > { %1734 = vpow2.f32 %v1003_v13 }
 0x1c7   : > { %v2478_v32 = vpop.eup %1724  ;;  %v1005_v34 = vmul.f32 1.442695, %v911_v20  ;;  %v1007_v49 = vmul.f32 1.442695, %v912_v30  ;;  %1107 = vadd.xlane.f32.xlu1 %v1106_v28  ;;  %v2773_v28 = vld [vmem:[#allocation2_spill] sm:$0xff] }
 0x1c8   : > { %v2480_v24 = vpop.eup %1726  ;;  %v835_v9 = vpop.xlane.xlu0 %834 }
 0x1c9   : > { %1736 = vpow2.f32 %v1005_v34  ;;  %v913_v12 = vsub.f32 %v2212_v50, %v835_v9  ;;  %v914_v27 = vsub.f32 %v2214_v55, %v835_v9  ;;  %v1109_v39 = vadd.f32 %v2480_v24, %v2478_v32 }
 0x1ca   : > { %1738 = vpow2.f32 %v1007_v49  ;;  %v2774_v49 = vld [vmem:[#allocation3_spill] sm:$0xff] }
 0x1cb   : > { %v2486_v41 = vpop.eup %1728  ;;  %v1009_v48 = vmul.f32 1.442695, %v913_v12  ;;  %v1011_v1 = vmul.f32 1.442695, %v914_v27  ;;  %1110 = vadd.xlane.f32.xlu0 %v1109_v39 }
 0x1cc   : > { %v2488_v6 = vpop.eup %1730  ;;  %v838_v37 = vpop.xlane.xlu1 %837 }
 0x1cd   : > { %1740 = vpow2.f32 %v1009_v48  ;;  %v915_v19 = vsub.f32 %v2220_v0, %v838_v37  ;;  %v916_v45 = vsub.f32 %v2222_v5, %v838_v37  ;;  %v1112_v50 = vadd.f32 %v2488_v6, %v2486_v41 }
 0x1ce   : > { %1742 = vpow2.f32 %v1011_v1  ;;  %v2776_v1 = vld [vmem:[#allocation4_spill] sm:$0xff] }
 0x1cf   : > { %v2494_v55 = vpop.eup %1732  ;;  %v1013_v13 = vmul.f32 1.442695, %v915_v19  ;;  %v1015_v2 = vmul.f32 1.442695, %v916_v45  ;;  %1113 = vadd.xlane.f32.xlu1 %v1112_v50  ;;  %v2777_v19 = vld [vmem:[#allocation5_spill] sm:$0xff] }
 0x1d0   : > { %2772 = vst [vmem:[#allocation14_spill] sm:$0xff] %v2494_v55  ;;  %v2496_v20 = vpop.eup %1734  ;;  %v841_v30 = vpop.xlane.xlu0 %840 }
 0x1d1   : > { %1744 = vpow2.f32 %v1013_v13  ;;  %v917_v34 = vsub.f32 %v2773_v28, %v841_v30  ;;  %v918_v9 = vsub.f32 %v2774_v49, %v841_v30  ;;  %v1115_v0 = vadd.f32 %v2496_v20, %v2494_v55  ;;  %v2780_v49 = vld [vmem:[#allocation6_spill] sm:$0xff] }
 0x1d2   : > { %1746 = vpow2.f32 %v1015_v2 }
 0x1d3   : > { %v2502_v5 = vpop.eup %1736  ;;  %v1017_v12 = vmul.f32 1.442695, %v917_v34  ;;  %v1019_v27 = vmul.f32 1.442695, %v918_v9  ;;  %1116 = vadd.xlane.f32.xlu0 %v1115_v0  ;;  %v2781_v0 = vld [vmem:[#allocation7_spill] sm:$0xff] }
 0x1d4   : > { %2775 = vst [vmem:[#allocation2_spill] sm:$0xff] %v2502_v5  ;;  %v2504_v39 = vpop.eup %1738  ;;  %v844_v48 = vpop.xlane.xlu1 %843 }
 0x1d5   : > { %1748 = vpow2.f32 %v1017_v12  ;;  %v919_v37 = vsub.f32 %v2776_v1, %v844_v48  ;;  %v920_v45 = vsub.f32 %v2777_v19, %v844_v48  ;;  %v1118_v50 = vadd.f32 %v2504_v39, %v2502_v5 }
 0x1d6   : > { %1750 = vpow2.f32 %v1019_v27 }
 0x1d7   : > { %v2510_v13 = vpop.eup %1740  ;;  %v1021_v2 = vmul.f32 1.442695, %v919_v37  ;;  %v1023_v30 = vmul.f32 1.442695, %v920_v45  ;;  %1119 = vadd.xlane.f32.xlu1 %v1118_v50  ;;  %v2784_v50 = vld [vmem:[#allocation8_spill] sm:$0xff] }
 0x1d8   : > { %2778 = vst [vmem:[#allocation3_spill] sm:$0xff] %v2510_v13  ;;  %v2512_v28 = vpop.eup %1742  ;;  %v847_v34 = vpop.xlane.xlu0 %846 }
 0x1d9   : > { %2779 = vst [vmem:[#allocation4_spill] sm:$0xff] %v2512_v28  ;;  %1752 = vpow2.f32 %v1021_v2  ;;  %v921_v9 = vsub.f32 %v2780_v49, %v847_v34  ;;  %v922_v12 = vsub.f32 %v2781_v0, %v847_v34  ;;  %v1121_v48 = vadd.f32 %v2512_v28, %v2510_v13  ;;  %v2785_v2 = vld [vmem:[#allocation9_spill] sm:$0xff] }
 0x1da   : > { %1754 = vpow2.f32 %v1023_v30 }
 0x1db   : > { %v2518_v1 = vpop.eup %1744  ;;  %v1025_v27 = vmul.f32 1.442695, %v921_v9  ;;  %v1027_v19 = vmul.f32 1.442695, %v922_v12  ;;  %1122 = vadd.xlane.f32.xlu0 %v1121_v48  ;;  %v2786_v48 = vld [vmem:[#allocation10_spill] sm:$0xff] }
 0x1dc   : > { %2782 = vst [vmem:[#allocation5_spill] sm:$0xff] %v2518_v1  ;;  %v2520_v37 = vpop.eup %1746  ;;  %v850_v45 = vpop.xlane.xlu1 %849 }
 0x1dd   : > { %2783 = vst [vmem:[#allocation6_spill] sm:$0xff] %v2520_v37  ;;  %1756 = vpow2.f32 %v1025_v27  ;;  %v923_v55 = vsub.f32 %v2784_v50, %v850_v45  ;;  %v924_v5 = vsub.f32 %v2785_v2, %v850_v45  ;;  %v1124_v34 = vadd.f32 %v2520_v37, %v2518_v1  ;;  %v2787_v27 = vld [vmem:[#allocation11_spill] sm:$0xff] }
 0x1de   : > { %1758 = vpow2.f32 %v1027_v19 }
 0x1df   : > { %v2526_v49 = vpop.eup %1748  ;;  %v1029_v30 = vmul.f32 1.442695, %v923_v55  ;;  %v1031_v0 = vmul.f32 1.442695, %v924_v5  ;;  %1125 = vadd.xlane.f32.xlu1 %v1124_v34  ;;  %v2788_v34 = vld [vmem:[#allocation12_spill] sm:$0xff] }
 0x1e0   : > { %v2528_v9 = vpop.eup %1750  ;;  %v853_v12 = vpop.xlane.xlu0 %852 }
 0x1e1   : > { %1760 = vpow2.f32 %v1029_v30  ;;  %v925_v13 = vsub.f32 %v2786_v48, %v853_v12  ;;  %v926_v28 = vsub.f32 %v2787_v27, %v853_v12  ;;  %v1127_v45 = vadd.f32 %v2528_v9, %v2526_v49  ;;  %v2789_v30 = vld [vmem:[#allocation13_spill] sm:$0xff] }
 0x1e2   : > { %1762 = vpow2.f32 %v1031_v0 }
 0x1e3   : > { %v2534_v50 = vpop.eup %1752  ;;  %v1033_v19 = vmul.f32 1.442695, %v925_v13  ;;  %v1035_v2 = vmul.f32 1.442695, %v926_v28  ;;  %1128 = vadd.xlane.f32.xlu0 %v1127_v45 }
 0x1e4   : > { %v2536_v55 = vpop.eup %1754  ;;  %v856_v5 = vpop.xlane.xlu1 %855 }
 0x1e5   : > { %1764 = vpow2.f32 %v1033_v19  ;;  %v927_v1 = vsub.f32 %v2788_v34, %v856_v5  ;;  %v928_v37 = vsub.f32 %v2789_v30, %v856_v5  ;;  %v1130_v12 = vadd.f32 %v2536_v55, %v2534_v50 }
 0x1e6   : > { %1766 = vpow2.f32 %v1035_v2 }
 0x1e7   : > { %v2542_v48 = vpop.eup %1756  ;;  %v1037_v0 = vmul.f32 1.442695, %v927_v1  ;;  %v1039_v27 = vmul.f32 1.442695, %v928_v37  ;;  %1131 = vadd.xlane.f32.xlu1 %v1130_v12 }
 0x1e8   : > { %2790 = vst [vmem:[#allocation7_spill] sm:$0xff] %v2542_v48  ;;  %v2544_v13 = vpop.eup %1758 }
 0x1e9   : > { %2791 = vst [vmem:[#allocation8_spill] sm:$0xff] %v2544_v13  ;;  %1768 = vpow2.f32 %v1037_v0  ;;  %v1133_v28 = vadd.f32 %v2544_v13, %v2542_v48 }
 0x1ea   : > { %1770 = vpow2.f32 %v1039_v27 }
 0x1eb   : > { %v2548_v45 = vpop.eup %1760  ;;  %1134 = vadd.xlane.f32.xlu0 %v1133_v28 }
 0x1ec   : > { %2792 = vst [vmem:[#allocation9_spill] sm:$0xff] %v2548_v45  ;;  %v2550_v19 = vpop.eup %1762 }
 0x1ed   : > { %2793 = vst [vmem:[#allocation10_spill] sm:$0xff] %v2550_v19  ;;  %v1136_v2 = vadd.f32 %v2550_v19, %v2548_v45 }
 0x1ef   : > { %v2554_v5 = vpop.eup %1764  ;;  %1137 = vadd.xlane.f32.xlu1 %v1136_v2 }
 0x1f0   : > { %2794 = vst [vmem:[#allocation11_spill] sm:$0xff] %v2554_v5  ;;  %v2556_v1 = vpop.eup %1766 }
 0x1f1   : > { %2795 = vst [vmem:[#allocation12_spill] sm:$0xff] %v2556_v1  ;;  %v1139_v37 = vadd.f32 %v2556_v1, %v2554_v5 }
 0x1f3   : > { %v2560_v34 = vpop.eup %1768  ;;  %1140 = vadd.xlane.f32.xlu0 %v1139_v37 }
 0x1f4   : > { %2796 = vst [vmem:[#allocation13_spill] sm:$0xff] %v2560_v34  ;;  %v2562_v30 = vpop.eup %1770 }
 0x1f5   : > { %2797 = vst [vmem:[#allocation15_spill] sm:$0xff] %v2562_v30  ;;  %v1142_v12 = vadd.f32 %v2562_v30, %v2560_v34 }
 0x1f7   : > { %1143 = vadd.xlane.f32.xlu1 %v1142_v12 }
 0x228   : > { %v1075_v0 = vpop.xlane.xlu0 %1074 }
 0x229   : > { %1772 = vrcp.f32 %v1075_v0 }
 0x22c   : > { %v1078_v27 = vpop.xlane.xlu1 %1077  ;;  %v859_v28 = vpop.xlane.xlu0 %858 }
 0x22d   : > { %1774 = vrcp.f32 %v1078_v27  ;;  %v929_v2 = vsub.f32 %v2308_v42, %v859_v28  ;;  %v930_v48 = vsub.f32 %v2310_v33, %v859_v28 }
 0x22f   : > { %v1041_v45 = vmul.f32 1.442695, %v929_v2  ;;  %v1043_v5 = vmul.f32 1.442695, %v930_v48 }
 0x230   : > { %v862_v1 = vpop.xlane.xlu1 %861  ;;  %v1081_v19 = vpop.xlane.xlu0 %1080 }
 0x231   : > { %1776 = vpow2.f32 %v1041_v45  ;;  %v931_v37 = vsub.f32 %v2326_v23, %v862_v1  ;;  %v932_v13 = vsub.f32 %v2328_v35, %v862_v1 }
 0x232   : > { %1778 = vpow2.f32 %v1043_v5 }
 0x233   : > { %v1045_v12 = vmul.f32 1.442695, %v931_v37  ;;  %v1047_v34 = vmul.f32 1.442695, %v932_v13  ;;  %1780 = vrcp.f32 %v1081_v19  ;;  %v1773_v27 = vpop.eup %1772 }
 0x234   : > { %v1084_v0 = vpop.xlane.xlu1 %1083  ;;  %v865_v30 = vpop.xlane.xlu0 %864  ;;  %v1202_v35 = vmul.f32 %v1773_v27, %v2314_v18  ;;  %v1201_v19 = vmul.f32 %v1773_v27, %v2312_v58 }
 0x235   : > { %1782 = vpow2.f32 %v1045_v12  ;;  %v933_v42 = vsub.f32 %v2339_v57, %v865_v30  ;;  %v934_v33 = vsub.f32 %v2342_v59, %v865_v30 }
 0x236   : > { %1784 = vpow2.f32 %v1047_v34 }
 0x237   : > { %v1775_v48 = vpop.eup %1774  ;;  %1786 = vrcp.f32 %v1084_v0  ;;  %v1049_v45 = vmul.f32 1.442695, %v933_v42  ;;  %v1051_v28 = vmul.f32 1.442695, %v934_v33 }
 0x238   : > { %v868_v23 = vpop.xlane.xlu1 %867  ;;  %v1087_v2 = vpop.xlane.xlu0 %1086  ;;  %v1204_v13 = vmul.f32 %v1775_v48, %v2332_v40  ;;  %v1203_v5 = vmul.f32 %v1775_v48, %v2324_v52 }
 0x239   : > { %1788 = vpow2.f32 %v1049_v45  ;;  %v935_v57 = vsub.f32 %v2361_v8, %v868_v23  ;;  %v936_v59 = vsub.f32 %v2364_v22, %v868_v23 }
 0x23a   : > { %1790 = vpow2.f32 %v1051_v28  ;;  %v1569_v1 = vpack.c.bf16 %v1204_v13, %v1202_v35  ;;  %v1571_v34 = vpack.c.bf16 %v1203_v5, %v1201_v19 }
 0x23b   : > { %v2578_v30 = vpop.eup %1776  ;;  %v1053_v37 = vmul.f32 1.442695, %v935_v57  ;;  %v1055_v12 = vmul.f32 1.442695, %v936_v59  ;;  %1792 = vrcp.f32 %v1087_v2 }
 0x23c   : > { %v2580_v18 = vpop.eup %1778  ;;  %v1090_v40 = vpop.xlane.xlu1 %1089  ;;  %1570 = vmatprep.subr.bf16.mxu1 %v1569_v1 }
 0x23d   : > { %v871_v58 = vpop.xlane.xlu0 %870  ;;  %v1781_v0 = vpop.eup %1780  ;;  %1794 = vpow2.f32 %v1053_v37  ;;  %1572 = vmatpush1.bf16.xpose.msra.mxu1 %v1571_v34  ;;  %v1145_v22 = vadd.f32 %v2580_v18, %v2578_v30 }
 0x23e   : > { %v937_v52 = vsub.f32 %v2375_v7, %v871_v58  ;;  %v938_v8 = vsub.f32 %v2378_v11, %v871_v58  ;;  %1796 = vpow2.f32 %v1055_v12  ;;  %v1206_v23 = vmul.f32 %v1781_v0, %v2348_v17 }
 0x23f   : > { %v2586_v27 = vpop.eup %1782  ;;  %1798 = vrcp.f32 %v1090_v40  ;;  %1146 = vadd.xlane.f32.xlu0 %v1145_v22  ;;  %v1205_v19 = vmul.f32 %v1781_v0, %v2344_v14 }
 0x240   : > { %v1057_v42 = vmul.f32 1.442695, %v937_v52  ;;  %v1059_v33 = vmul.f32 1.442695, %v938_v8  ;;  %v2588_v48 = vpop.eup %1784  ;;  %v874_v45 = vpop.xlane.xlu1 %873 }
 0x241   : > { %v1093_v28 = vpop.xlane.xlu0 %1092  ;;  %v1787_v7 = vpop.eup %1786  ;;  %v939_v11 = vsub.f32 %v2397_v10, %v874_v45  ;;  %v940_v2 = vsub.f32 %v2400_v36, %v874_v45  ;;  %v1148_v35 = vadd.f32 %v2588_v48, %v2586_v27 }
 0x242   : > { %1800 = vpow2.f32 %v1057_v42  ;;  %v1208_v13 = vmul.f32 %v1787_v7, %v2368_v51  ;;  %v1207_v5 = vmul.f32 %v1787_v7, %v2358_v44 }
 0x243   : > { %1802 = vpow2.f32 %v1059_v33  ;;  %v2598_v57 = vpop.eup %1788  ;;  %v1061_v59 = vmul.f32 1.442695, %v939_v11  ;;  %v1063_v17 = vmul.f32 1.442695, %v940_v2  ;;  %1149 = vadd.xlane.f32.xlu1 %v1148_v35 }
 0x244   : > { %v2600_v1 = vpop.eup %1790  ;;  %1804 = vrcp.f32 %v1093_v28  ;;  %v1096_v10 = vpop.xlane.xlu1 %1095  ;;  %v1573_v36 = vpack.c.bf16 %v1208_v13, %v1206_v23  ;;  %v1575_v37 = vpack.c.bf16 %v1207_v5, %v1205_v19 }
 0x245   : > { %v877_v34 = vpop.xlane.xlu0 %876  ;;  %v1793_v12 = vpop.eup %1792  ;;  %1806 = vpow2.f32 %v1061_v59  ;;  %v1151_v44 = vadd.f32 %v2600_v1, %v2598_v57 }
 0x246   : > { %v941_v51 = vsub.f32 %v2411_v25, %v877_v34  ;;  %v942_v14 = vsub.f32 %v2414_v26, %v877_v34  ;;  %1808 = vpow2.f32 %v1063_v17  ;;  %1574 = vmatprep.subr.bf16.mxu1 %v1573_v36  ;;  %v1210_v22 = vmul.f32 %v1793_v12, %v2384_v31 }
 0x247   : > { %v2606_v40 = vpop.eup %1794  ;;  %1810 = vrcp.f32 %v1096_v10  ;;  %1576 = vmatpush1.bf16.xpose.msra.mxu1 %v1575_v37  ;;  %1152 = vadd.xlane.f32.xlu0 %v1151_v44  ;;  %v1209_v23 = vmul.f32 %v1793_v12, %v2380_v15 }
 0x248   : > { %v1065_v58 = vmul.f32 1.442695, %v941_v51  ;;  %v1067_v0 = vmul.f32 1.442695, %v942_v14  ;;  %v2608_v52 = vpop.eup %1796  ;;  %v880_v8 = vpop.xlane.xlu1 %879 }
 0x249   : > { %v1799_v25 = vpop.eup %1798  ;;  %v943_v26 = vsub.f32 %v2433_v53, %v880_v8  ;;  %v944_v42 = vsub.f32 %v2436_v54, %v880_v8  ;;  %v1099_v33 = vpop.xlane.xlu0 %1098  ;;  %v1154_v45 = vadd.f32 %v2608_v52, %v2606_v40 }
 0x24a   : > { %1812 = vpow2.f32 %v1065_v58  ;;  %v1212_v28 = vmul.f32 %v1799_v25, %v2404_v60  ;;  %v1211_v7 = vmul.f32 %v1799_v25, %v2394_v46 }
 0x24b   : > { %1814 = vpow2.f32 %v1067_v0  ;;  %v1069_v31 = vmul.f32 1.442695, %v943_v26  ;;  %v1071_v2 = vmul.f32 1.442695, %v944_v42  ;;  %1155 = vadd.xlane.f32.xlu1 %v1154_v45 }
 0x24c   : > { %v2618_v11 = vpop.eup %1800  ;;  %1816 = vrcp.f32 %v1099_v33  ;;  %v1102_v53 = vpop.xlane.xlu1 %1101  ;;  %v1577_v54 = vpack.c.bf16 %v1212_v28, %v1210_v22  ;;  %v1579_v13 = vpack.c.bf16 %v1211_v7, %v1209_v23 }
 0x24d   : > { %v2620_v35 = vpop.eup %1802  ;;  %1818 = vpow2.f32 %v1069_v31 }
 0x24e   : > { %v1157_v19 = vadd.f32 %v2620_v35, %v2618_v11  ;;  %v1805_v60 = vpop.eup %1804  ;;  %1820 = vpow2.f32 %v1071_v2  ;;  %1578 = vmatprep.subr.bf16.mxu1 %v1577_v54 }
 0x24f   : > { %v2624_v15 = vpop.eup %1806  ;;  %1822 = vrcp.f32 %v1102_v53  ;;  %1580 = vmatpush1.bf16.xpose.msra.mxu1 %v1579_v13  ;;  %v1214_v10 = vmul.f32 %v1805_v60, %v2420_v47  ;;  %v1213_v34 = vmul.f32 %v1805_v60, %v2416_v29 }
 0x250   : > { %1158 = vadd.xlane.f32.xlu0 %v1157_v19  ;;  %v2626_v46 = vpop.eup %1808  ;;  %v1105_v5 = vpop.xlane.xlu0 %1104 }
 0x251   : > { %v1811_v59 = vpop.eup %1810  ;;  %v1160_v17 = vadd.f32 %v2626_v46, %v2624_v15  ;;  %1824 = vrcp.f32 %v1105_v5 }
 0x252   : > { %v1216_v36 = vmul.f32 %v1811_v59, %v2438_v56  ;;  %v1215_v37 = vmul.f32 %v1811_v59, %v2430_v16 }
 0x253   : > { %1161 = vadd.xlane.f32.xlu1 %v1160_v17 }
 0x254   : > { %v2634_v12 = vpop.eup %1812  ;;  %v1108_v14 = vpop.xlane.xlu1 %1107  ;;  %v1581_v44 = vpack.c.bf16 %v1216_v36, %v1214_v10  ;;  %v1583_v58 = vpack.c.bf16 %v1215_v37, %v1213_v34 }
 0x255   : > { %v2636_v51 = vpop.eup %1814  ;;  %1826 = vrcp.f32 %v1108_v14 }
 0x256   : > { %v1163_v0 = vadd.f32 %v2636_v51, %v2634_v12  ;;  %v1817_v47 = vpop.eup %1816  ;;  %1582 = vmatprep.subr.bf16.mxu1 %v1581_v44  ;;  %v2798_v44 = vld [vmem:[#allocation2_spill] sm:$0xff] }
 0x257   : > { %v2640_v56 = vpop.eup %1818  ;;  %1584 = vmatpush1.bf16.xpose.msra.mxu1 %v1583_v58  ;;  %v1218_v25 = vmul.f32 %v1817_v47, %v2448_v43  ;;  %v1217_v42 = vmul.f32 %v1817_v47, %v2444_v62  ;;  %v2799_v58 = vld [vmem:[#allocation14_spill] sm:$0xff] }
 0x258   : > { %1164 = vadd.xlane.f32.xlu0 %v1163_v0  ;;  %v2642_v29 = vpop.eup %1820  ;;  %v1111_v16 = vpop.xlane.xlu0 %1110 }
 0x259   : > { %v1823_v8 = vpop.eup %1822  ;;  %v1166_v22 = vadd.f32 %v2642_v29, %v2640_v56  ;;  %1828 = vrcp.f32 %v1111_v16 }
 0x25a   : > { %v1220_v26 = vmul.f32 %v1823_v8, %v2456_v4  ;;  %v1219_v33 = vmul.f32 %v1823_v8, %v2454_v3 }
 0x25b   : > { %1167 = vadd.xlane.f32.xlu1 %v1166_v22  ;;  %v1825_v7 = vpop.eup %1824 }
 0x25c   : > { %v1114_v45 = vpop.xlane.xlu1 %1113  ;;  %v1585_v28 = vpack.c.bf16 %v1220_v26, %v1218_v25  ;;  %v1587_v23 = vpack.c.bf16 %v1219_v33, %v1217_v42  ;;  %v1222_v53 = vmul.f32 %v1825_v7, %v2464_v61  ;;  %v1221_v62 = vmul.f32 %v1825_v7, %v2462_v38  ;;  %v2800_v25 = vld [vmem:[#allocation4_spill] sm:$0xff]  ;;  %v2801_v26 = vld [vmem:[#allocation6_spill] sm:$0xff]  ;;  %v2802_v42 = vld [vmem:[#allocation5_spill] sm:$0xff] }
 0x25d   : > { %1830 = vrcp.f32 %v1114_v45  ;;  %v2803_v45 = vld [vmem:[#allocation3_spill] sm:$0xff] }
 0x25e   : > { %1586 = vmatprep.subr.bf16.mxu1 %v1585_v28 }
 0x25f   : > { %v1827_v31 = vpop.eup %1826  ;;  %1588 = vmatpush1.bf16.xpose.msra.mxu1 %v1587_v23 }
 0x260   : > { %v1117_v2 = vpop.xlane.xlu0 %1116  ;;  %v1224_v43 = vmul.f32 %v1827_v31, %v2472_v63  ;;  %v1223_v4 = vmul.f32 %v1827_v31, %v2470_v21 }
 0x261   : > { %1832 = vrcp.f32 %v1117_v2 }
 0x262   : > { %v1589_v3 = vpack.c.bf16 %v1224_v43, %v1222_v53  ;;  %v1591_v54 = vpack.c.bf16 %v1223_v4, %v1221_v62  ;;  %v2676_v53 = vld.sshfl [vmem:[%s307_s27] sm:$0x33 pattern:$0x76325410] }
 0x263   : > { %v1829_v19 = vpop.eup %1828  ;;  %v1274_v43 = vcombine.high %v2676_v53, %v2676_v53 }
 0x264   : > { %v1120_v13 = vpop.xlane.xlu1 %1119  ;;  %1590 = vmatprep.subr.bf16.mxu1 %v1589_v3  ;;  %v1226_v59 = vmul.f32 %v1829_v19, %v2480_v24  ;;  %v1225_v21 = vmul.f32 %v1829_v19, %v2478_v32 }
 0x265   : > { %1834 = vrcp.f32 %v1120_v13  ;;  %1341 = vmatprep.mubr.f32.mxu1 %v1274_v43 }
 0x267   : > { %v1831_v60 = vpop.eup %1830  ;;  %1592 = vmatpush1.bf16.xpose.msra.mxu1 %v1591_v54 }
 0x268   : > { %v1123_v5 = vpop.xlane.xlu0 %1122  ;;  %v1228_v61 = vmul.f32 %v1831_v60, %v2488_v6  ;;  %v1227_v63 = vmul.f32 %v1831_v60, %v2486_v41 }
 0x269   : > { %1836 = vrcp.f32 %v1123_v5 }
 0x26a   : > { %v1593_v17 = vpack.c.bf16 %v1228_v61, %v1226_v59  ;;  %v1595_v38 = vpack.c.bf16 %v1227_v63, %v1225_v21  ;;  %v2804_v21 = vld [vmem:[#allocation8_spill] sm:$0xff] }
 0x26b   : > { %v1833_v36 = vpop.eup %1832 }
 0x26c   : > { %v1126_v10 = vpop.xlane.xlu1 %1125  ;;  %1594 = vmatprep.subr.bf16.mxu1 %v1593_v17  ;;  %v1230_v14 = vmul.f32 %v1833_v36, %v2496_v20  ;;  %v1229_v41 = vmul.f32 %v1833_v36, %v2799_v58  ;;  %v2807_v36 = vld [vmem:[#allocation7_spill] sm:$0xff] }
 0x26d   : > { %1838 = vrcp.f32 %v1126_v10  ;;  %v2806_v10 = vld [vmem:[#allocation9_spill] sm:$0xff] }
 0x26f   : > { %v1835_v34 = vpop.eup %1834  ;;  %1596 = vmatpush1.bf16.xpose.msra.mxu1 %v1595_v38  ;;  %v2805_v38 = vld [vmem:[#allocation10_spill] sm:$0xff] }
 0x270   : > { %v1129_v37 = vpop.xlane.xlu0 %1128  ;;  %v1232_v24 = vmul.f32 %v1835_v34, %v2504_v39  ;;  %v1231_v6 = vmul.f32 %v1835_v34, %v2798_v44 }
 0x271   : > { %1840 = vrcp.f32 %v1129_v37 }
 0x272   : > { %v1597_v32 = vpack.c.bf16 %v1232_v24, %v1230_v14  ;;  %v1599_v0 = vpack.c.bf16 %v1231_v6, %v1229_v41  ;;  %v2808_v24 = vld [vmem:[#allocation12_spill] sm:$0xff]  ;;  %v2809_v6 = vld [vmem:[#allocation15_spill] sm:$0xff]  ;;  %v2810_v41 = vld [vmem:[#allocation13_spill] sm:$0xff] }
 0x273   : > { %v1837_v16 = vpop.eup %1836 }
 0x274   : > { %v1132_v47 = vpop.xlane.xlu1 %1131  ;;  %1598 = vmatprep.subr.bf16.mxu1 %v1597_v32  ;;  %v1234_v20 = vmul.f32 %v1837_v16, %v2800_v25  ;;  %v1233_v28 = vmul.f32 %v1837_v16, %v2803_v45 }
 0x275   : > { %1842 = vrcp.f32 %v1132_v47 }
 0x277   : > { %v1839_v8 = vpop.eup %1838  ;;  %1600 = vmatpush1.bf16.xpose.msra.mxu1 %v1599_v0  ;;  %v2811_v0 = vld [vmem:[#allocation11_spill] sm:$0xff] }
 0x278   : > { %v1135_v22 = vpop.xlane.xlu0 %1134  ;;  %v1236_v39 = vmul.f32 %v1839_v8, %v2801_v26  ;;  %v1235_v33 = vmul.f32 %v1839_v8, %v2802_v42 }
 0x279   : > { %1844 = vrcp.f32 %v1135_v22 }
 0x27a   : > { %v1601_v23 = vpack.c.bf16 %v1236_v39, %v1234_v20  ;;  %v1603_v7 = vpack.c.bf16 %v1235_v33, %v1233_v28 }
 0x27b   : > { %v1841_v2 = vpop.eup %1840 }
 0x27c   : > { %v1138_v31 = vpop.xlane.xlu1 %1137  ;;  %1602 = vmatprep.subr.bf16.mxu1 %v1601_v23  ;;  %v1238_v3 = vmul.f32 %v1841_v2, %v2528_v9  ;;  %v1237_v19 = vmul.f32 %v1841_v2, %v2526_v49 }
 0x27d   : > { %1846 = vrcp.f32 %v1138_v31 }
 0x27f   : > { %v1843_v4 = vpop.eup %1842  ;;  %1604 = vmatpush1.bf16.xpose.msra.mxu1 %v1603_v7 }
 0x280   : > { %v1141_v62 = vpop.xlane.xlu0 %1140  ;;  %v1240_v54 = vmul.f32 %v1843_v4, %v2536_v55  ;;  %v1239_v13 = vmul.f32 %v1843_v4, %v2534_v50 }
 0x281   : > { %1848 = vrcp.f32 %v1141_v62 }
 0x282   : > { %v1605_v60 = vpack.c.bf16 %v1240_v54, %v1238_v3  ;;  %v1607_v5 = vpack.c.bf16 %v1239_v13, %v1237_v19 }
 0x283   : > { %v1845_v61 = vpop.eup %1844 }
 0x284   : > { %v1144_v59 = vpop.xlane.xlu1 %1143  ;;  %1606 = vmatprep.subr.bf16.mxu1 %v1605_v60  ;;  %v1242_v17 = vmul.f32 %v1845_v61, %v2804_v21  ;;  %v1241_v50 = vmul.f32 %v1845_v61, %v2807_v36 }
 0x285   : > { %1850 = vrcp.f32 %v1144_v59 }
 0x287   : > { %v1847_v63 = vpop.eup %1846  ;;  %1608 = vmatpush1.bf16.xpose.msra.mxu1 %v1607_v5 }
 0x288   : > { %v1244_v9 = vmul.f32 %v1847_v63, %v2805_v38  ;;  %v1243_v55 = vmul.f32 %v1847_v63, %v2806_v10 }
 0x28a   : > { %v1609_v34 = vpack.c.bf16 %v1244_v9, %v1242_v17  ;;  %v1611_v37 = vpack.c.bf16 %v1243_v55, %v1241_v50 }
 0x28b   : > { %v1849_v49 = vpop.eup %1848 }
 0x28c   : > { %1610 = vmatprep.subr.bf16.mxu1 %v1609_v34  ;;  %v1246_v44 = vmul.f32 %v1849_v49, %v2808_v24  ;;  %v1245_v47 = vmul.f32 %v1849_v49, %v2811_v0 }
 0x28f   : > { %v1851_v14 = vpop.eup %1850  ;;  %1612 = vmatpush1.bf16.xpose.msra.mxu1 %v1611_v37 }
 0x290   : > { %v1248_v58 = vmul.f32 %v1851_v14, %v2809_v6  ;;  %v1247_v32 = vmul.f32 %v1851_v14, %v2810_v41 }
 0x292   : > { %v1613_v16 = vpack.c.bf16 %v1248_v58, %v1246_v44  ;;  %v1615_v8 = vpack.c.bf16 %v1247_v32, %v1245_v47 }
 0x294   : > { %1614 = vmatprep.subr.bf16.mxu1 %v1613_v16 }
 0x297   : > { %1616 = vmatpush1.bf16.xpose.msra.mxu1 %v1615_v8 }
 0x2cc   : > { %v1147_v22 = vpop.xlane.xlu0 %1146 }
 0x2cd   : > { %1852 = vrcp.f32 %v1147_v22 }
 0x2d0   : > { %v1150_v25 = vpop.xlane.xlu1 %1149 }
 0x2d1   : > { %1854 = vrcp.f32 %v1150_v25 }
 0x2d4   : > { %v1153_v20 = vpop.xlane.xlu0 %1152 }
 0x2d5   : > { %1856 = vrcp.f32 %v1153_v20 }
 0x2d7   : > { %v1853_v39 = vpop.eup %1852 }
 0x2d8   : > { %v1156_v26 = vpop.xlane.xlu1 %1155  ;;  %v1250_v45 = vmul.f32 %v1853_v39, %v2580_v18  ;;  %v1249_v23 = vmul.f32 %v1853_v39, %v2578_v30 }
 0x2d9   : > { %1858 = vrcp.f32 %v1156_v26 }
 0x2db   : > { %v1855_v42 = vpop.eup %1854 }
 0x2dc   : > { %v1252_v28 = vmul.f32 %v1855_v42, %v2588_v48  ;;  %v1251_v7 = vmul.f32 %v1855_v42, %v2586_v27 }
 0x2dd   : > { %v1159_v33 = vpop.xlane.xlu0 %1158 }
 0x2de   : > { %v1617_v31 = vpack.c.bf16 %v1252_v28, %v1250_v45  ;;  %v1619_v2 = vpack.c.bf16 %v1251_v7, %v1249_v23  ;;  %1860 = vrcp.f32 %v1159_v33 }
 0x2df   : > { %v1857_v4 = vpop.eup %1856 }
 0x2e0   : > { %v1162_v43 = vpop.xlane.xlu1 %1161  ;;  %1618 = vmatprep.subr.bf16.mxu1 %v1617_v31  ;;  %v1254_v54 = vmul.f32 %v1857_v4, %v2600_v1  ;;  %v1253_v48 = vmul.f32 %v1857_v4, %v2598_v57 }
 0x2e1   : > { %1862 = vrcp.f32 %v1162_v43  ;;  %1620 = vmatpush1.bf16.xpose.msra.mxu1 %v1619_v2 }
 0x2e3   : > { %v1859_v62 = vpop.eup %1858 }
 0x2e4   : > { %v1256_v18 = vmul.f32 %v1859_v62, %v2608_v52  ;;  %v1255_v30 = vmul.f32 %v1859_v62, %v2606_v40 }
 0x2e5   : > { %v1165_v3 = vpop.xlane.xlu0 %1164 }
 0x2e6   : > { %v1621_v13 = vpack.c.bf16 %v1256_v18, %v1254_v54  ;;  %v1623_v27 = vpack.c.bf16 %v1255_v30, %v1253_v48  ;;  %1864 = vrcp.f32 %v1165_v3 }
 0x2e8   : > { %v1168_v19 = vpop.xlane.xlu1 %1167  ;;  %1622 = vmatprep.subr.bf16.mxu1 %v1621_v13  ;;  %v1861_v60 = vpop.eup %1860 }
 0x2e9   : > { %1866 = vrcp.f32 %v1168_v19  ;;  %1624 = vmatpush1.bf16.xpose.msra.mxu1 %v1623_v27  ;;  %v1258_v59 = vmul.f32 %v1861_v60, %v2620_v35  ;;  %v1257_v1 = vmul.f32 %v1861_v60, %v2618_v11 }
 0x2eb   : > { %v1863_v5 = vpop.eup %1862 }
 0x2ec   : > { %v1260_v61 = vmul.f32 %v1863_v5, %v2626_v46  ;;  %v1259_v52 = vmul.f32 %v1863_v5, %v2624_v15 }
 0x2ee   : > { %v1625_v57 = vpack.c.bf16 %v1260_v61, %v1258_v59  ;;  %v1627_v40 = vpack.c.bf16 %v1259_v52, %v1257_v1 }
 0x2f0   : > { %1626 = vmatprep.subr.bf16.mxu1 %v1625_v57  ;;  %v1865_v63 = vpop.eup %1864 }
 0x2f1   : > { %1628 = vmatpush1.bf16.xpose.msra.mxu1 %v1627_v40  ;;  %v1262_v17 = vmul.f32 %v1865_v63, %v2636_v51  ;;  %v1261_v9 = vmul.f32 %v1865_v63, %v2634_v12 }
 0x2f3   : > { %v1867_v21 = vpop.eup %1866 }
 0x2f4   : > { %v1264_v38 = vmul.f32 %v1867_v21, %v2642_v29  ;;  %v1263_v35 = vmul.f32 %v1867_v21, %v2640_v56 }
 0x2f6   : > { %v1629_v46 = vpack.c.bf16 %v1264_v38, %v1262_v17  ;;  %v1631_v10 = vpack.c.bf16 %v1263_v35, %v1261_v9 }
 0x2f8   : > { %1630 = vmatprep.subr.bf16.mxu1 %v1629_v46 }
 0x2f9   : > { %1632 = vmatpush1.bf16.xpose.msra.mxu1 %v1631_v10 }
 0x300   : > { %1342 = vmatmul.mubr.f32.vlgmr.msra.gmra.mrb[0].mxu1 %v2676_v53 }
 0x3d3   : > { %v1343_v11 = vpop.f32.mrb[0].mxu1 }
 0x3d4   : > { %v1345_v15 = vpop.f32.mrb[1].mxu1 }
 0x3d5   : > { %v1350_v51 = vcombine.low %v1343_v11, %v1345_v15 }
 0x3d7   : > { %1561 = vst.sshfl [vmem:[%s321_s28] sm:$0x33 pattern:$0x76325410] %v1350_v51 }
 0x3d8 PF: > { %s14_s19 = sadd.s32 1, %s1906_s19   ;;  %s2812_s15 = smov %s1898_s17 }
 0x3d9   : > { %p11_p7 = scmp.ge.s32.totalorder %s14_s19, 18   ;;  %s2813_s16 = smov %s1902_s18 }
 0x3da   : > { %s2814_s17 = smov %s2817_s20  ;;  %s2815_s18 = smov %s2821_s21 }
 0x3db   :  { %13 = sbr.rel (!%p11_p7) target bundleno = 3 (0x3), region = 75 }

// kernel: _lambda_.5
= control target key start
LH: loop header
LB: loop body
LE: loop exit
PB: predicated region body
PF: predicated region fallthrough
CT: control target
= control target key end

     0   :  { %v224_v3 = vmov 0.0   ;;  %v225_v8 = vmov 0   ;;  %vm36_vm0 = vcmask 130048   ;;  %s306_s0 = inlined_call_operand.vmem [shape: f32[16,512], index: 0, kind: input, shape index: {}]   ;;  %s307_s2 = inlined_call_operand.vmem [shape: f32[16,1], index: 2, kind: input, shape index: {}]   ;;  %s308_s1 = inlined_call_operand.vmem [shape: f32[16,16], index: 1, kind: input, shape index: {}]   ;;  %s309_s3 = inlined_call_operand.vmem [shape: f32[16,512], index: 3, kind: output, shape index: {}]  }
   0x1   :  { %v17_v0 = vld [vmem:[%s306_s0 + $0x8] sm:$0xff]  ;;  %v19_v2 = vld [vmem:[%s306_s0 + $0x18] sm:$0xff]  ;;  %107 = vmatprep.mubr.f32.mxu0 %v224_v3  ;;  %184 = vmatprep.mubr.f32.mxu1 %v224_v3  ;;  %v16_v6 = vld [vmem:[%s306_s0] sm:$0xff] }
   0x2   :  { %v21_v1 = vld [vmem:[%s306_s0 + $0x28] sm:$0xff]  ;;  %v23_v5 = vld [vmem:[%s306_s0 + $0x38] sm:$0xff]  ;;  %v20_v7 = vld [vmem:[%s306_s0 + $0x20] sm:$0xff]  ;;  %223 = vset.pattern.permute.xlu0 %v225_v8 }
   0x3   :  { %v213_v4 = vpack.c.bf16 %v21_v1, %v17_v0  ;;  %v217_v9 = vpack.c.bf16 %v23_v5, %v19_v2  ;;  %v215_v10 = vpack.c.bf16 %v20_v7, %v16_v6  ;;  %v18_v11 = vld [vmem:[%s306_s0 + $0x10] sm:$0xff]  ;;  %v24_v14 = vld [vmem:[%s307_s2] sm:$0xff]  ;;  %v25_v16 = vld [vmem:[%s307_s2 + $0x8] sm:$0xff] }
   0x4   :  { %v22_v12 = vld [vmem:[%s306_s0 + $0x30] sm:$0xff]  ;;  %v14_v15 = vld [vmem:[%s308_s1] sm:$0xff]  ;;  %28 = vperm.xlu0 %223, %v24_v14   ;;  %v15_v17 = vld [vmem:[%s308_s1 + $0x8] sm:$0xff] }
   0x5   :  { %214 = vmatprep.subr.bf16.mxu0 %v213_v4  ;;  %v219_v13 = vpack.c.bf16 %v22_v12, %v18_v11  ;;  %218 = vmatprep.subr.bf16.mxu1 %v217_v9 }
   0x6   :  { %216 = vmatpush1.bf16.msra.mxu0 %v215_v10 }
   0x7   :  { %220 = vmatpush1.bf16.msra.mxu1 %v219_v13 }
   0x8   :  { %33 = vperm.xlu0 %223, %v25_v16  }
   0x9   :  { %209 = vmatmul.mubr.msk.f32.vlgmr.msra.gmra.mrb[0].mxu0 %vm36_vm0, %v14_v15 }
   0xa   :  { %211 = vmatmul.mubr.msk.f32.vlgmr.msra.gmra.mrb[0].mxu1 %vm36_vm0, %v14_v15  ;;  %113 = vmatprep.mubr.f32.mxu0 %v224_v3 }
   0xb   :  { %190 = vmatprep.mubr.f32.mxu1 %v224_v3 }
   0xd   :  { %210 = vmatmul.mubr.msk.f32.gmra.mrb[2].mxu0 %vm36_vm0, %v15_v17 }
   0xe   :  { %212 = vmatmul.mubr.msk.f32.gmra.mrb[2].mxu1 %vm36_vm0, %v15_v17 }
  0x83   :  { %v29_v18 = vpop.permute.xlu0 %28 }
  0x87   :  { %v34_v27 = vpop.permute.xlu0 %33 }
  0xdc   :  { %v109_v19 = vpop.f32.mrb[0].mxu0 }
  0xdd   :  { %v110_v20 = vadd.f32 %v109_v19, %v29_v18  ;;  %v186_v21 = vpop.f32.mrb[0].mxu1  ;;  %v111_v22 = vpop.f32.mrb[1].mxu0 }
  0xde   :  { %v187_v23 = vadd.f32 %v186_v21, %v29_v18  ;;  %v112_v24 = vadd.f32 %v111_v22, %v29_v18  ;;  %v188_v25 = vpop.f32.mrb[1].mxu1 }
  0xdf   :  { %197 = vst [vmem:[%s309_s3] sm:$0xff] %v110_v20  ;;  %v189_v26 = vadd.f32 %v188_v25, %v29_v18 }
  0xe0   :  { %199 = vst [vmem:[%s309_s3 + $0x10] sm:$0xff] %v187_v23  ;;  %198 = vst [vmem:[%s309_s3 + $0x8] sm:$0xff] %v112_v24  ;;  %v115_v28 = vpop.f32.mrb[2].mxu0 }
  0xe1   :  { %200 = vst [vmem:[%s309_s3 + $0x18] sm:$0xff] %v189_v26  ;;  %v116_v29 = vadd.f32 %v115_v28, %v34_v27  ;;  %v192_v30 = vpop.f32.mrb[2].mxu1  ;;  %v117_v31 = vpop.f32.mrb[3].mxu0 }
  0xe2   :  { %v193_v32 = vadd.f32 %v192_v30, %v34_v27  ;;  %v118_v33 = vadd.f32 %v117_v31, %v34_v27  ;;  %v194_v34 = vpop.f32.mrb[3].mxu1 }
  0xe3   :  { %201 = vst [vmem:[%s309_s3 + $0x20] sm:$0xff] %v116_v29  ;;  %v195_v35 = vadd.f32 %v194_v34, %v34_v27 }
  0xe4   :  { %203 = vst [vmem:[%s309_s3 + $0x30] sm:$0xff] %v193_v32  ;;  %202 = vst [vmem:[%s309_s3 + $0x28] sm:$0xff] %v118_v33 }
  0xe5   :  { %204 = vst [vmem:[%s309_s3 + $0x38] sm:$0xff] %v195_v35 }

</bundles_post_ra>
